<compile_context>
chip_gen: v6e
topology: v6e:2x2x1
jax: 0.10.0
libtpu: 0.0.40
codegen_flags: <defaults>
</compile_context>

<pallas_src>
import functools

import jax
import jax.numpy as jnp
from jax.experimental import pallas as pl
from jax.experimental.pallas import tpu as pltpu

EMBED_DIM = 256
HIDDEN_DIM = 512
INPUT_DIM = 256
NUM_LAYERS = 1


def encoder_kernel(src_ref, w_ih_ref, w_hh_ref, b_ih_ref, b_hh_ref,
                   out_ref, gi_ref, h_ref):
    """One (batch-chunk, T-chunk) grid step of the GRU.

    src_ref : (Tc, Bc, E)   bf16   streamed input chunk
    w_ih_ref: (E, 3H)       bf16   W_ih^T, columns [r | z | n]   (resident)
    w_hh_ref: (H, 3H)       bf16   W_hh^T, columns [r | z | n]   (resident)
    b_ih_ref: (1, 3H)       f32
    b_hh_ref: (1, 3H)       f32
    out_ref : (Tc, Bc, H)   f32    streamed output chunk
    gi_ref  : (Tc, Bc, 3H)  f32    scratch: hoisted input projection
    h_ref   : (Bc, H)       f32    scratch: carried hidden state
    """
    Tc, Bc, E = src_ref.shape
    H = HIDDEN_DIM

    # h0 = zeros at the first T-chunk of every batch chunk (torch.nn.GRU default).
    @pl.when(pl.program_id(1) == 0)
    def _():
        h_ref[...] = jnp.zeros_like(h_ref)

    # ---- Phase 1: input projection for the whole chunk (off the serial path).
    # One tall MXU-friendly matmul instead of Tc tiny ones.
    x2d = src_ref[...].reshape(Tc * Bc, E)                       # bf16
    gi = jnp.dot(x2d, w_ih_ref[...],
                 preferred_element_type=jnp.float32) + b_ih_ref[...]
    gi_ref[...] = gi.reshape(Tc, Bc, 3 * H)

    # ---- Phase 2: serial recurrence; only h @ W_hh^T on the critical path.
    w_hh = w_hh_ref[...]          # hoisted out of the loop
    b_hh = b_hh_ref[...]          # hoisted out of the loop

    def step(t, h):
        gh = jnp.dot(h.astype(jnp.bfloat16), w_hh,
                     preferred_element_type=jnp.float32) + b_hh   # (Bc, 3H)
        gi_t = gi_ref[t]                                          # (Bc, 3H)
        r = jax.nn.sigmoid(gi_t[:, 0:H] + gh[:, 0:H])
        z = jax.nn.sigmoid(gi_t[:, H:2 * H] + gh[:, H:2 * H])
        n = jnp.tanh(gi_t[:, 2 * H:3 * H] + r * gh[:, 2 * H:3 * H])
        h_new = (1.0 - z) * n + z * h                             # (Bc, H) f32
        out_ref[t] = h_new
        return h_new

    # Tc is small (a chunk), so unrolling stays cheap while giving the LLO
    # scheduler visibility; the full-T unroll of the previous version is gone.
    h_ref[...] = jax.lax.fori_loop(0, Tc, step, h_ref[...], unroll=True)


def init_params(key):
    """PyTorch-style U(-1/sqrt(H), 1/sqrt(H)) init for GRU(E, H, num_layers=1)."""
    H, E = HIDDEN_DIM, EMBED_DIM
    k = 1.0 / jnp.sqrt(jnp.float32(H))
    ks = jax.random.split(key, 4)
    w_ih = jax.random.uniform(ks[0], (3 * H, E), jnp.float32, -k, k)  # [W_ir;W_iz;W_in]
    w_hh = jax.random.uniform(ks[1], (3 * H, H), jnp.float32, -k, k)  # [W_hr;W_hz;W_hn]
    b_ih = jax.random.uniform(ks[2], (3 * H,), jnp.float32, -k, k)
    b_hh = jax.random.uniform(ks[3], (3 * H,), jnp.float32, -k, k)
    return {
        "w_ih_t": w_ih.T.astype(jnp.bfloat16),     # (E, 3H) bf16, 0.75 MiB
        "w_hh_t": w_hh.T.astype(jnp.bfloat16),     # (H, 3H) bf16, 1.5 MiB
        "b_ih": b_ih.reshape(1, 3 * H),            # (1, 3H) f32
        "b_hh": b_hh.reshape(1, 3 * H),            # (1, 3H) f32
    }


@functools.partial(jax.jit, static_argnames=("t_chunk", "b_chunk"))
def encoder_forward(src, params, *, t_chunk=8, b_chunk=8):
    """src: (T, B, EMBED_DIM) -> (outputs (T, B, H), hidden (NUM_LAYERS, B, H))."""
    T, B, E = src.shape
    assert E == EMBED_DIM
    H = HIDDEN_DIM

    Tc = min(t_chunk, T)
    Bc = b_chunk
    T_pad = pl.cdiv(T, Tc) * Tc
    B_pad = pl.cdiv(B, Bc) * Bc

    # src travels in bf16 (kernel consumes bf16 anyway) -> half the DMA traffic.
    src_p = jnp.zeros((T_pad, B_pad, E), jnp.bfloat16)
    src_p = src_p.at[:T, :B, :].set(src.astype(jnp.bfloat16))

    grid = (B_pad // Bc, T_pad // Tc)

    # Explicit VMEM budget: weights + double-buffered streamed chunks + scratch.
    bytes_w = (E * 3 * H + H * 3 * H) * 2 + 2 * (3 * H) * 4
    bytes_stream = 2 * (Tc * Bc * E * 2 + Tc * Bc * H * 4)
    bytes_scratch = Tc * Bc * 3 * H * 4 + Bc * H * 4
    vmem_limit = int(min(bytes_w + bytes_stream + bytes_scratch + (16 << 20),
                         48 << 20))

    outputs_p = pl.pallas_call(
        encoder_kernel,
        out_shape=jax.ShapeDtypeStruct((T_pad, B_pad, H), jnp.float32),
        grid_spec=pltpu.PrefetchScalarGridSpec(
            num_scalar_prefetch=0,
            grid=grid,
            in_specs=[
                pl.BlockSpec((Tc, Bc, E), lambda b, t: (t, b, 0)),      # src
                pl.BlockSpec((E, 3 * H), lambda b, t: (0, 0)),          # W_ih^T
                pl.BlockSpec((H, 3 * H), lambda b, t: (0, 0)),          # W_hh^T
                pl.BlockSpec((1, 3 * H), lambda b, t: (0, 0)),          # b_ih
                pl.BlockSpec((1, 3 * H), lambda b, t: (0, 0)),          # b_hh
            ],
            out_specs=pl.BlockSpec((Tc, Bc, H), lambda b, t: (t, b, 0)),
            scratch_shapes=[
                pltpu.VMEM((Tc, Bc, 3 * H), jnp.float32),   # gi (hoisted proj)
                pltpu.VMEM((Bc, H), jnp.float32),           # carried h
            ],
        ),
        compiler_params=pltpu.CompilerParams(
            dimension_semantics=("parallel", "arbitrary"),
            vmem_limit_bytes=vmem_limit,
        ),
    )(src_p, params["w_ih_t"], params["w_hh_t"], params["b_ih"], params["b_hh"])

    outputs = outputs_p[:T, :B, :]
    hidden = outputs_p[T - 1, :B, :].reshape(NUM_LAYERS, B, H)
    return outputs, hidden


def encoder_reference(src, params):
    """Pure-JAX GRU reference with identical bf16 rounding (for validation)."""
    T, B, _ = src.shape
    H = HIDDEN_DIM
    w_ih = params["w_ih_t"].astype(jnp.float32)
    w_hh = params["w_hh_t"].astype(jnp.float32)
    b_ih = params["b_ih"]
    b_hh = params["b_hh"]
    h = jnp.zeros((B, H), jnp.float32)
    outs = []
    for t in range(T):
        x = src[t].astype(jnp.bfloat16).astype(jnp.float32)
        gi = x @ w_ih + b_ih
        gh = h.astype(jnp.bfloat16).astype(jnp.float32) @ w_hh + b_hh
        r = jax.nn.sigmoid(gi[:, 0:H] + gh[:, 0:H])
        z = jax.nn.sigmoid(gi[:, H:2 * H] + gh[:, H:2 * H])
        n = jnp.tanh(gi[:, 2 * H:3 * H] + r * gh[:, 2 * H:3 * H])
        h = (1.0 - z) * n + z * h
        outs.append(h)
    return jnp.stack(outs), h.reshape(NUM_LAYERS, B, H)


if __name__ == "__main__":
    key = jax.random.PRNGKey(0)
    k_param, k_src = jax.random.split(key)

    T, B = 8, 2   # small example: seq=8, batch=2 (EMBED/HIDDEN fixed by module)
    params = init_params(k_param)
    src = jax.random.normal(k_src, (T, B, EMBED_DIM), jnp.float32)

    # t_chunk=4 -> 2 T-chunks, exercising the carried-h streaming path.
    outputs, hidden = encoder_forward(src, params, t_chunk=4, b_chunk=8)
    jax.block_until_ready((outputs, hidden))

    assert outputs.shape == (T, B, HIDDEN_DIM)
    assert hidden.shape == (NUM_LAYERS, B, HIDDEN_DIM)
    # GRU semantics: final hidden equals the last output step.
    assert jnp.array_equal(hidden[0], outputs[-1])

    # Numerical check against a pure-JAX GRU with the same bf16-rounded inputs.
    # TODO(synk): re-validate the bf16 recurrent rounding at production T.
    ref_out, ref_hid = encoder_reference(src, params)
    assert jnp.allclose(outputs, ref_out, atol=5e-3, rtol=5e-3)
    assert jnp.allclose(hidden, ref_hid, atol=5e-3, rtol=5e-3)

    print("KERNEL_OK")
</pallas_src>

<mosaic_0001>
module attributes {stable_mosaic.version = 11 : i64} {
  func.func @encoder_kernel(%arg0: i32, %arg1: i32, %arg2: memref<4x8x256xbf16, #tpu.memory_space<vmem>>, %arg3: memref<256x1536xbf16, #tpu.memory_space<vmem>>, %arg4: memref<512x1536xbf16, #tpu.memory_space<vmem>>, %arg5: memref<1x1536xf32, #tpu.memory_space<vmem>>, %arg6: memref<1x1536xf32, #tpu.memory_space<vmem>>, %arg7: memref<4x8x512xf32, #tpu.memory_space<vmem>>, %arg8: memref<4x8x1536xf32, #tpu.memory_space<vmem>>, %arg9: memref<8x512xf32, #tpu.memory_space<vmem>>) attributes {dimension_semantics = [#tpu.dimension_semantics<parallel>, #tpu.dimension_semantics<arbitrary>], iteration_bounds = array<i64: 1, 2>, scalar_prefetch = 0 : i64, scratch_operands = 2 : i64, tpu.core_type = #tpu.core_type<tc>, window_params = [{transform_indices = @transform_0, window_bounds = array<i64: 4, 8, 256>}, {pipeline_mode = #tpu.pipeline_mode<synchronous>, transform_indices = @transform_1, window_bounds = array<i64: 256, 1536>}, {pipeline_mode = #tpu.pipeline_mode<synchronous>, transform_indices = @transform_2, window_bounds = array<i64: 512, 1536>}, {pipeline_mode = #tpu.pipeline_mode<synchronous>, transform_indices = @transform_3, window_bounds = array<i64: 1, 1536>}, {pipeline_mode = #tpu.pipeline_mode<synchronous>, transform_indices = @transform_4, window_bounds = array<i64: 1, 1536>}, {transform_indices = @transform_5, window_bounds = array<i64: 4, 8, 512>}]} {
    %c0_i32 = arith.constant 0 : i32
    %0 = arith.cmpi eq, %arg1, %c0_i32 : i32
    %1 = arith.extui %0 : i1 to i32
    %c0_i32_0 = arith.constant 0 : i32
    %2 = arith.cmpi ne, %1, %c0_i32_0 : i32
    scf.if %2 {
      %cst_51 = arith.constant 0.000000e+00 : f32
      %164 = vector.broadcast %cst_51 : f32 to vector<8x512xf32>
      %c0_52 = arith.constant 0 : index
      %c0_53 = arith.constant 0 : index
      %165 = vector.load %arg9[%c0_52, %c0_53] : memref<8x512xf32, #tpu.memory_space<vmem>>, vector<8x512xf32>
      tpu.vector_store %arg9[%c0_52, %c0_53], %164 {strides = array<i32>} : memref<8x512xf32, #tpu.memory_space<vmem>>, vector<8x512xf32>,
    } else {
    }
    %c0 = arith.constant 0 : index
    %c0_1 = arith.constant 0 : index
    %c0_2 = arith.constant 0 : index
    %3 = vector.load %arg2[%c0, %c0_1, %c0_2] : memref<4x8x256xbf16, #tpu.memory_space<vmem>>, vector<4x8x256xbf16>
    %4 = vector.shape_cast %3 : vector<4x8x256xbf16> to vector<32x256xbf16>
    %c0_3 = arith.constant 0 : index
    %c0_4 = arith.constant 0 : index
    %5 = vector.load %arg3[%c0_3, %c0_4] : memref<256x1536xbf16, #tpu.memory_space<vmem>>, vector<256x1536xbf16>
    %cst = arith.constant dense<0.000000e+00> : vector<32x1536xf32>
    %6 = tpu.matmul %4, %5, %cst {dimension_numbers = #tpu.dot_dimension_numbers<[1], [0], [0], [1], [0, 0, 1, 1], [], []>} : vector<32x256xbf16>, vector<256x1536xbf16>, vector<32x1536xf32> -> vector<32x1536xf32>
    %c0_5 = arith.constant 0 : index
    %c0_6 = arith.constant 0 : index
    %7 = vector.load %arg5[%c0_5, %c0_6] : memref<1x1536xf32, #tpu.memory_space<vmem>>, vector<1x1536xf32>
    %8 = vector.broadcast %7 : vector<1x1536xf32> to vector<32x1536xf32>
    %9 = arith.addf %6, %8 : vector<32x1536xf32>
    %10 = vector.shape_cast %9 : vector<32x1536xf32> to vector<4x8x1536xf32>
    %c0_7 = arith.constant 0 : index
    %c0_8 = arith.constant 0 : index
    %c0_9 = arith.constant 0 : index
    %11 = vector.load %arg8[%c0_7, %c0_8, %c0_9] : memref<4x8x1536xf32, #tpu.memory_space<vmem>>, vector<4x8x1536xf32>
    tpu.vector_store %arg8[%c0_7, %c0_8, %c0_9], %10 {strides = array<i32>} : memref<4x8x1536xf32, #tpu.memory_space<vmem>>, vector<4x8x1536xf32>,
    %c0_10 = arith.constant 0 : index
    %c0_11 = arith.constant 0 : index
    %12 = vector.load %arg4[%c0_10, %c0_11] : memref<512x1536xbf16, #tpu.memory_space<vmem>>, vector<512x1536xbf16>
    %c0_12 = arith.constant 0 : index
    %c0_13 = arith.constant 0 : index
    %13 = vector.load %arg6[%c0_12, %c0_13] : memref<1x1536xf32, #tpu.memory_space<vmem>>, vector<1x1536xf32>
    %c0_14 = arith.constant 0 : index
    %c0_15 = arith.constant 0 : index
    %14 = vector.load %arg9[%c0_14, %c0_15] : memref<8x512xf32, #tpu.memory_space<vmem>>, vector<8x512xf32>
    %c0_i32_16 = arith.constant 0 : i32
    %15 = arith.truncf %14 : vector<8x512xf32> to vector<8x512xbf16>
    %cst_17 = arith.constant dense<0.000000e+00> : vector<8x1536xf32>
    %16 = tpu.matmul %15, %12, %cst_17 {dimension_numbers = #tpu.dot_dimension_numbers<[1], [0], [0], [1], [0, 0, 1, 1], [], []>} : vector<8x512xbf16>, vector<512x1536xbf16>, vector<8x1536xf32> -> vector<8x1536xf32>
    %17 = vector.broadcast %13 : vector<1x1536xf32> to vector<8x1536xf32>
    %18 = arith.addf %16, %17 : vector<8x1536xf32>
    %19 = arith.index_cast %c0_i32_16 : i32 to index
    %c0_18 = arith.constant 0 : index
    %c0_19 = arith.constant 0 : index
    %20 = vector.load %arg8[%19, %c0_18, %c0_19] : memref<4x8x1536xf32, #tpu.memory_space<vmem>>, vector<1x8x1536xf32>
    %21 = vector.shape_cast %20 : vector<1x8x1536xf32> to vector<8x1536xf32>
    %22 = vector.extract_strided_slice %21 {offsets = [0, 0], sizes = [8, 512], strides = [1, 1]} : vector<8x1536xf32> to vector<8x512xf32>
    %23 = vector.extract_strided_slice %18 {offsets = [0, 0], sizes = [8, 512], strides = [1, 1]} : vector<8x1536xf32> to vector<8x512xf32>
    %24 = arith.addf %22, %23 : vector<8x512xf32>
    %25 = arith.negf %24 : vector<8x512xf32>
    %26 = math.exp %25 : vector<8x512xf32>
    %cst_20 = arith.constant 1.000000e+00 : f32
    %27 = vector.broadcast %cst_20 : f32 to vector<8x512xf32>
    %28 = arith.addf %27, %26 : vector<8x512xf32>
    %29 = arith.divf %27, %28 : vector<8x512xf32>
    %30 = vector.extract_strided_slice %21 {offsets = [0, 512], sizes = [8, 512], strides = [1, 1]} : vector<8x1536xf32> to vector<8x512xf32>
    %31 = vector.extract_strided_slice %18 {offsets = [0, 512], sizes = [8, 512], strides = [1, 1]} : vector<8x1536xf32> to vector<8x512xf32>
    %32 = arith.addf %30, %31 : vector<8x512xf32>
    %33 = arith.negf %32 : vector<8x512xf32>
    %34 = math.exp %33 : vector<8x512xf32>
    %cst_21 = arith.constant 1.000000e+00 : f32
    %35 = vector.broadcast %cst_21 : f32 to vector<8x512xf32>
    %36 = arith.addf %35, %34 : vector<8x512xf32>
    %37 = arith.divf %35, %36 : vector<8x512xf32>
    %38 = vector.extract_strided_slice %21 {offsets = [0, 1024], sizes = [8, 512], strides = [1, 1]} : vector<8x1536xf32> to vector<8x512xf32>
    %39 = vector.extract_strided_slice %18 {offsets = [0, 1024], sizes = [8, 512], strides = [1, 1]} : vector<8x1536xf32> to vector<8x512xf32>
    %40 = arith.mulf %29, %39 : vector<8x512xf32>
    %41 = arith.addf %38, %40 : vector<8x512xf32>
    %42 = math.tanh %41 : vector<8x512xf32>
    %cst_22 = arith.constant 1.000000e+00 : f32
    %43 = vector.broadcast %cst_22 : f32 to vector<8x512xf32>
    %44 = arith.subf %43, %37 : vector<8x512xf32>
    %45 = arith.mulf %44, %42 : vector<8x512xf32>
    %46 = arith.mulf %37, %14 : vector<8x512xf32>
    %47 = arith.addf %45, %46 : vector<8x512xf32>
    %48 = arith.index_cast %c0_i32_16 : i32 to index
    %c0_23 = arith.constant 0 : index
    %c0_24 = arith.constant 0 : index
    %49 = vector.load %arg7[%48, %c0_23, %c0_24] : memref<4x8x512xf32, #tpu.memory_space<vmem>>, vector<1x8x512xf32>
    %50 = vector.shape_cast %49 : vector<1x8x512xf32> to vector<8x512xf32>
    %51 = vector.shape_cast %47 : vector<8x512xf32> to vector<1x8x512xf32>
    tpu.vector_store %arg7[%48, %c0_23, %c0_24], %51 {strides = array<i32>} : memref<4x8x512xf32, #tpu.memory_space<vmem>>, vector<1x8x512xf32>,
    %c1_i32 = arith.constant 1 : i32
    %52 = arith.truncf %47 : vector<8x512xf32> to vector<8x512xbf16>
    %cst_25 = arith.constant dense<0.000000e+00> : vector<8x1536xf32>
    %53 = tpu.matmul %52, %12, %cst_25 {dimension_numbers = #tpu.dot_dimension_numbers<[1], [0], [0], [1], [0, 0, 1, 1], [], []>} : vector<8x512xbf16>, vector<512x1536xbf16>, vector<8x1536xf32> -> vector<8x1536xf32>
    %54 = vector.broadcast %13 : vector<1x1536xf32> to vector<8x1536xf32>
    %55 = arith.addf %53, %54 : vector<8x1536xf32>
    %56 = arith.index_cast %c1_i32 : i32 to index
    %c0_26 = arith.constant 0 : index
    %c0_27 = arith.constant 0 : index
    %57 = vector.load %arg8[%56, %c0_26, %c0_27] : memref<4x8x1536xf32, #tpu.memory_space<vmem>>, vector<1x8x1536xf32>
    %58 = vector.shape_cast %57 : vector<1x8x1536xf32> to vector<8x1536xf32>
    %59 = vector.extract_strided_slice %58 {offsets = [0, 0], sizes = [8, 512], strides = [1, 1]} : vector<8x1536xf32> to vector<8x512xf32>
    %60 = vector.extract_strided_slice %55 {offsets = [0, 0], sizes = [8, 512], strides = [1, 1]} : vector<8x1536xf32> to vector<8x512xf32>
    %61 = arith.addf %59, %60 : vector<8x512xf32>
    %62 = arith.negf %61 : vector<8x512xf32>
    %63 = math.exp %62 : vector<8x512xf32>
    %cst_28 = arith.constant 1.000000e+00 : f32
    %64 = vector.broadcast %cst_28 : f32 to vector<8x512xf32>
    %65 = arith.addf %64, %63 : vector<8x512xf32>
    %66 = arith.divf %64, %65 : vector<8x512xf32>
    %67 = vector.extract_strided_slice %58 {offsets = [0, 512], sizes = [8, 512], strides = [1, 1]} : vector<8x1536xf32> to vector<8x512xf32>
    %68 = vector.extract_strided_slice %55 {offsets = [0, 512], sizes = [8, 512], strides = [1, 1]} : vector<8x1536xf32> to vector<8x512xf32>
    %69 = arith.addf %67, %68 : vector<8x512xf32>
    %70 = arith.negf %69 : vector<8x512xf32>
    %71 = math.exp %70 : vector<8x512xf32>
    %cst_29 = arith.constant 1.000000e+00 : f32
    %72 = vector.broadcast %cst_29 : f32 to vector<8x512xf32>
    %73 = arith.addf %72, %71 : vector<8x512xf32>
    %74 = arith.divf %72, %73 : vector<8x512xf32>
    %75 = vector.extract_strided_slice %58 {offsets = [0, 1024], sizes = [8, 512], strides = [1, 1]} : vector<8x1536xf32> to vector<8x512xf32>
    %76 = vector.extract_strided_slice %55 {offsets = [0, 1024], sizes = [8, 512], strides = [1, 1]} : vector<8x1536xf32> to vector<8x512xf32>
    %77 = arith.mulf %66, %76 : vector<8x512xf32>
    %78 = arith.addf %75, %77 : vector<8x512xf32>
    %79 = math.tanh %78 : vector<8x512xf32>
    %cst_30 = arith.constant 1.000000e+00 : f32
    %80 = vector.broadcast %cst_30 : f32 to vector<8x512xf32>
    %81 = arith.subf %80, %74 : vector<8x512xf32>
    %82 = arith.mulf %81, %79 : vector<8x512xf32>
    %83 = arith.mulf %74, %47 : vector<8x512xf32>
    %84 = arith.addf %82, %83 : vector<8x512xf32>
    %85 = arith.index_cast %c1_i32 : i32 to index
    %c0_31 = arith.constant 0 : index
    %c0_32 = arith.constant 0 : index
    %86 = vector.load %arg7[%85, %c0_31, %c0_32] : memref<4x8x512xf32, #tpu.memory_space<vmem>>, vector<1x8x512xf32>
    %87 = vector.shape_cast %86 : vector<1x8x512xf32> to vector<8x512xf32>
    %88 = vector.shape_cast %84 : vector<8x512xf32> to vector<1x8x512xf32>
    tpu.vector_store %arg7[%85, %c0_31, %c0_32], %88 {strides = array<i32>} : memref<4x8x512xf32, #tpu.memory_space<vmem>>, vector<1x8x512xf32>,
    %c2_i32 = arith.constant 2 : i32
    %89 = arith.truncf %84 : vector<8x512xf32> to vector<8x512xbf16>
    %cst_33 = arith.constant dense<0.000000e+00> : vector<8x1536xf32>
    %90 = tpu.matmul %89, %12, %cst_33 {dimension_numbers = #tpu.dot_dimension_numbers<[1], [0], [0], [1], [0, 0, 1, 1], [], []>} : vector<8x512xbf16>, vector<512x1536xbf16>, vector<8x1536xf32> -> vector<8x1536xf32>
    %91 = vector.broadcast %13 : vector<1x1536xf32> to vector<8x1536xf32>
    %92 = arith.addf %90, %91 : vector<8x1536xf32>
    %93 = arith.index_cast %c2_i32 : i32 to index
    %c0_34 = arith.constant 0 : index
    %c0_35 = arith.constant 0 : index
    %94 = vector.load %arg8[%93, %c0_34, %c0_35] : memref<4x8x1536xf32, #tpu.memory_space<vmem>>, vector<1x8x1536xf32>
    %95 = vector.shape_cast %94 : vector<1x8x1536xf32> to vector<8x1536xf32>
    %96 = vector.extract_strided_slice %95 {offsets = [0, 0], sizes = [8, 512], strides = [1, 1]} : vector<8x1536xf32> to vector<8x512xf32>
    %97 = vector.extract_strided_slice %92 {offsets = [0, 0], sizes = [8, 512], strides = [1, 1]} : vector<8x1536xf32> to vector<8x512xf32>
    %98 = arith.addf %96, %97 : vector<8x512xf32>
    %99 = arith.negf %98 : vector<8x512xf32>
    %100 = math.exp %99 : vector<8x512xf32>
    %cst_36 = arith.constant 1.000000e+00 : f32
    %101 = vector.broadcast %cst_36 : f32 to vector<8x512xf32>
    %102 = arith.addf %101, %100 : vector<8x512xf32>
    %103 = arith.divf %101, %102 : vector<8x512xf32>
    %104 = vector.extract_strided_slice %95 {offsets = [0, 512], sizes = [8, 512], strides = [1, 1]} : vector<8x1536xf32> to vector<8x512xf32>
    %105 = vector.extract_strided_slice %92 {offsets = [0, 512], sizes = [8, 512], strides = [1, 1]} : vector<8x1536xf32> to vector<8x512xf32>
    %106 = arith.addf %104, %105 : vector<8x512xf32>
    %107 = arith.negf %106 : vector<8x512xf32>
    %108 = math.exp %107 : vector<8x512xf32>
    %cst_37 = arith.constant 1.000000e+00 : f32
    %109 = vector.broadcast %cst_37 : f32 to vector<8x512xf32>
    %110 = arith.addf %109, %108 : vector<8x512xf32>
    %111 = arith.divf %109, %110 : vector<8x512xf32>
    %112 = vector.extract_strided_slice %95 {offsets = [0, 1024], sizes = [8, 512], strides = [1, 1]} : vector<8x1536xf32> to vector<8x512xf32>
    %113 = vector.extract_strided_slice %92 {offsets = [0, 1024], sizes = [8, 512], strides = [1, 1]} : vector<8x1536xf32> to vector<8x512xf32>
    %114 = arith.mulf %103, %113 : vector<8x512xf32>
    %115 = arith.addf %112, %114 : vector<8x512xf32>
    %116 = math.tanh %115 : vector<8x512xf32>
    %cst_38 = arith.constant 1.000000e+00 : f32
    %117 = vector.broadcast %cst_38 : f32 to vector<8x512xf32>
    %118 = arith.subf %117, %111 : vector<8x512xf32>
    %119 = arith.mulf %118, %116 : vector<8x512xf32>
    %120 = arith.mulf %111, %84 : vector<8x512xf32>
    %121 = arith.addf %119, %120 : vector<8x512xf32>
    %122 = arith.index_cast %c2_i32 : i32 to index
    %c0_39 = arith.constant 0 : index
    %c0_40 = arith.constant 0 : index
    %123 = vector.load %arg7[%122, %c0_39, %c0_40] : memref<4x8x512xf32, #tpu.memory_space<vmem>>, vector<1x8x512xf32>
    %124 = vector.shape_cast %123 : vector<1x8x512xf32> to vector<8x512xf32>
    %125 = vector.shape_cast %121 : vector<8x512xf32> to vector<1x8x512xf32>
    tpu.vector_store %arg7[%122, %c0_39, %c0_40], %125 {strides = array<i32>} : memref<4x8x512xf32, #tpu.memory_space<vmem>>, vector<1x8x512xf32>,
    %c3_i32 = arith.constant 3 : i32
    %126 = arith.truncf %121 : vector<8x512xf32> to vector<8x512xbf16>
    %cst_41 = arith.constant dense<0.000000e+00> : vector<8x1536xf32>
    %127 = tpu.matmul %126, %12, %cst_41 {dimension_numbers = #tpu.dot_dimension_numbers<[1], [0], [0], [1], [0, 0, 1, 1], [], []>} : vector<8x512xbf16>, vector<512x1536xbf16>, vector<8x1536xf32> -> vector<8x1536xf32>
    %128 = vector.broadcast %13 : vector<1x1536xf32> to vector<8x1536xf32>
    %129 = arith.addf %127, %128 : vector<8x1536xf32>
    %130 = arith.index_cast %c3_i32 : i32 to index
    %c0_42 = arith.constant 0 : index
    %c0_43 = arith.constant 0 : index
    %131 = vector.load %arg8[%130, %c0_42, %c0_43] : memref<4x8x1536xf32, #tpu.memory_space<vmem>>, vector<1x8x1536xf32>
    %132 = vector.shape_cast %131 : vector<1x8x1536xf32> to vector<8x1536xf32>
    %133 = vector.extract_strided_slice %132 {offsets = [0, 0], sizes = [8, 512], strides = [1, 1]} : vector<8x1536xf32> to vector<8x512xf32>
    %134 = vector.extract_strided_slice %129 {offsets = [0, 0], sizes = [8, 512], strides = [1, 1]} : vector<8x1536xf32> to vector<8x512xf32>
    %135 = arith.addf %133, %134 : vector<8x512xf32>
    %136 = arith.negf %135 : vector<8x512xf32>
    %137 = math.exp %136 : vector<8x512xf32>
    %cst_44 = arith.constant 1.000000e+00 : f32
    %138 = vector.broadcast %cst_44 : f32 to vector<8x512xf32>
    %139 = arith.addf %138, %137 : vector<8x512xf32>
    %140 = arith.divf %138, %139 : vector<8x512xf32>
    %141 = vector.extract_strided_slice %132 {offsets = [0, 512], sizes = [8, 512], strides = [1, 1]} : vector<8x1536xf32> to vector<8x512xf32>
    %142 = vector.extract_strided_slice %129 {offsets = [0, 512], sizes = [8, 512], strides = [1, 1]} : vector<8x1536xf32> to vector<8x512xf32>
    %143 = arith.addf %141, %142 : vector<8x512xf32>
    %144 = arith.negf %143 : vector<8x512xf32>
    %145 = math.exp %144 : vector<8x512xf32>
    %cst_45 = arith.constant 1.000000e+00 : f32
    %146 = vector.broadcast %cst_45 : f32 to vector<8x512xf32>
    %147 = arith.addf %146, %145 : vector<8x512xf32>
    %148 = arith.divf %146, %147 : vector<8x512xf32>
    %149 = vector.extract_strided_slice %132 {offsets = [0, 1024], sizes = [8, 512], strides = [1, 1]} : vector<8x1536xf32> to vector<8x512xf32>
    %150 = vector.extract_strided_slice %129 {offsets = [0, 1024], sizes = [8, 512], strides = [1, 1]} : vector<8x1536xf32> to vector<8x512xf32>
    %151 = arith.mulf %140, %150 : vector<8x512xf32>
    %152 = arith.addf %149, %151 : vector<8x512xf32>
    %153 = math.tanh %152 : vector<8x512xf32>
    %cst_46 = arith.constant 1.000000e+00 : f32
    %154 = vector.broadcast %cst_46 : f32 to vector<8x512xf32>
    %155 = arith.subf %154, %148 : vector<8x512xf32>
    %156 = arith.mulf %155, %153 : vector<8x512xf32>
    %157 = arith.mulf %148, %121 : vector<8x512xf32>
    %158 = arith.addf %156, %157 : vector<8x512xf32>
    %159 = arith.index_cast %c3_i32 : i32 to index
    %c0_47 = arith.constant 0 : index
    %c0_48 = arith.constant 0 : index
    %160 = vector.load %arg7[%159, %c0_47, %c0_48] : memref<4x8x512xf32, #tpu.memory_space<vmem>>, vector<1x8x512xf32>
    %161 = vector.shape_cast %160 : vector<1x8x512xf32> to vector<8x512xf32>
    %162 = vector.shape_cast %158 : vector<8x512xf32> to vector<1x8x512xf32>
    tpu.vector_store %arg7[%159, %c0_47, %c0_48], %162 {strides = array<i32>} : memref<4x8x512xf32, #tpu.memory_space<vmem>>, vector<1x8x512xf32>,
    %c4_i32 = arith.constant 4 : i32
    %c0_49 = arith.constant 0 : index
    %c0_50 = arith.constant 0 : index
    %163 = vector.load %arg9[%c0_49, %c0_50] : memref<8x512xf32, #tpu.memory_space<vmem>>, vector<8x512xf32>
    tpu.vector_store %arg9[%c0_49, %c0_50], %158 {strides = array<i32>} : memref<8x512xf32, #tpu.memory_space<vmem>>, vector<8x512xf32>,
    return
  }
  func.func @transform_0(%arg0: i32, %arg1: i32) -> (i32, i32, i32) {
    %c0_i32 = arith.constant 0 : i32
    %c0_i32_0 = arith.constant 0 : i32
    return %arg1, %arg0, %c0_i32 : i32, i32, i32
  }
  func.func @transform_1(%arg0: i32, %arg1: i32) -> (i32, i32) {
    %c0_i32 = arith.constant 0 : i32
    %c0_i32_0 = arith.constant 0 : i32
    %c0_i32_1 = arith.constant 0 : i32
    return %c0_i32, %c0_i32_0 : i32, i32
  }
  func.func @transform_2(%arg0: i32, %arg1: i32) -> (i32, i32) {
    %c0_i32 = arith.constant 0 : i32
    %c0_i32_0 = arith.constant 0 : i32
    %c0_i32_1 = arith.constant 0 : i32
    return %c0_i32, %c0_i32_0 : i32, i32
  }
  func.func @transform_3(%arg0: i32, %arg1: i32) -> (i32, i32) {
    %c0_i32 = arith.constant 0 : i32
    %c0_i32_0 = arith.constant 0 : i32
    %c0_i32_1 = arith.constant 0 : i32
    return %c0_i32, %c0_i32_0 : i32, i32
  }
  func.func @transform_4(%arg0: i32, %arg1: i32) -> (i32, i32) {
    %c0_i32 = arith.constant 0 : i32
    %c0_i32_0 = arith.constant 0 : i32
    %c0_i32_1 = arith.constant 0 : i32
    return %c0_i32, %c0_i32_0 : i32, i32
  }
  func.func @transform_5(%arg0: i32, %arg1: i32) -> (i32, i32, i32) {
    %c0_i32 = arith.constant 0 : i32
    %c0_i32_0 = arith.constant 0 : i32
    return %arg1, %arg0, %c0_i32 : i32, i32, i32
  }
}

</mosaic_0001>

<bundles_post_ra>
// kernel: encoder_forward.1
= control target key start
LH: loop header
LB: loop body
LE: loop exit
PB: predicated region body
PF: predicated region fallthrough
CT: control target
= control target key end

     0   :  { %10 = vsyncpa [#allocation5], 0  ;;  %s10784_s0 = inlined_call_operand.vmem [shape: bf16[8,8,256], index: 0, kind: input, shape index: {}]   ;;  %s10785_s1 = inlined_call_operand.hbm [shape: bf16[256,1536], index: 1, kind: input, shape index: {}]   ;;  %s10786_s2 = inlined_call_operand.hbm [shape: bf16[512,1536], index: 2, kind: input, shape index: {}]   ;;  %s10787_s3 = inlined_call_operand.hbm [shape: f32[1,1536], index: 3, kind: input, shape index: {}]   ;;  %s10788_s4 = inlined_call_operand.hbm [shape: f32[1,1536], index: 4, kind: input, shape index: {}]   ;;  %s10789_s5 = inlined_call_operand.vmem [shape: f32[8,8,512], index: 5, kind: output, shape index: {}]  }
   0x1   :  { %11 = vsyncpa [#allocation7], 0 }
   0x2   :  { %12 = vsyncpa [#allocation10], 0  ;;  %s9928_s18 = smov 0   ;;  %s9930_s19 = smov 0  }
   0x3   :  { %s9932_s20 = smov 0  }
   0x4 LB: > { %s6841_s21 = sadd.s32 4294967295, %s9889_s20   ;;  %p6843_p0 = scmp.ge.s32.totalorder %s9889_s20, 1  ;;  %s9889_s20 = sphi %s9932_s20, %s18_s20   ;;  %s9885_s19 = sphi %s9930_s19, %s10850_s19   ;;  %s9881_s18 = sphi %s9928_s18, %s10849_s18  }
   0x5   : > { %p175_p1 = scmp.lt.s32.totalorder %s9889_s20, 3  ;;  %p9946_p2 = scmp.eq.s32.totalorder %s6841_s21, 0 }
   0x6   : > { %s9891_s24 = smov [#allocation6]   ;;  %s27_s27 = sadd.s32 1, %s9885_s19 }
   0x7   : > { %s10796_s22 = scalar_select %p9946_p2, 1, 0 }
   0x8   : > { %p9950_p3 = pnand %p6843_p0, %p175_p1  ;;  %s200_s25 = sshll.u32 %s9891_s24, 4  ;;  %s201_s25 = int_to_ptr.vmem [resolvable:$true] %s200_s25 }
   0x9   : > { %p9963_p6 = scmp.ge.s32.totalorder %s27_s27, 2  ;;  %s9892_s29 = smov [#allocation4]  }
   0xa   : > { %p7505_p4 = pneg %p9950_p3  ;;  %s187_s30 = sshll.u32 %s9892_s29, 4  ;;  %s188_s30 = int_to_ptr.vmem [resolvable:$true] %s187_s30 }
   0xb   : > { %s9762_s6 = scalar_lea.vmem %s201_s25, 49152  ;;  %p9770_p11 = scmp.lt.s32.totalorder %s201_s25, %s201_s25 }
   0xc   : > { %p9958_p5 = pnand %p9946_p2, %p7505_p4  ;;  %p9763_p8 = scmp.ne.s32.totalorder %s201_s25, %s9762_s6 }
   0xd   : > { %p9771_p12 = scmp.lt.s32.totalorder %s9762_s6, %s9762_s6 }
   0xe   : > { %p9753_p7 = pneg %p9958_p5 }
   0xf   : > { %p9772_p13 = por %p9771_p12, %p9770_p11 }
  0x10   : > { %p9765_p9 = pnand %p9763_p8, %p9753_p7 }
  0x12   : > { %p9766_p10 = pneg %p9765_p9 }
  0x14   : > { %p9773_p0 = pnand %p9772_p13, %p9766_p10 }
  0x16   : > { %9776 = shalt.err (!%p9773_p0)
}
  0x17   : > { %s9893_s7 = smov 768   ;;  %s9894_s8 = smov 48  }
  0x18   : > { %7511 = dma.hbm_to_vmem [thread:$0]  (!%p9958_p5), %s10786_s2, 49152, %s201_s25, [#allocation7], %s9893_s7, %s9893_s7, %s9894_s8  }
  0x19   : > { %s10852_s27 = smov (%p9963_p6, %s27_s27), 0  ;;  %s9788_s11 = scalar_lea.vmem %s188_s30, 24576 }
  0x1a   : > { %p9789_p1 = scmp.ne.s32.totalorder %s188_s30, %s9788_s11  ;;  %p9796_p9 = scmp.lt.s32.totalorder %s188_s30, %s188_s30 }
  0x1b   : > { %p9797_p10 = scmp.lt.s32.totalorder %s9788_s11, %s9788_s11 }
  0x1c   : > { %p9791_p4 = pnand %p9789_p1, %p9753_p7 }
  0x1d   : > { %p9798_p11 = por %p9797_p10, %p9796_p9 }
  0x1e   : > { %p9792_p8 = pneg %p9791_p4 }
  0x20   : > { %p9799_p12 = pnand %p9798_p11, %p9792_p8 }
  0x22   : > { %9802 = shalt.err (!%p9799_p12)
}
  0x23   : > { %7508 = dma.hbm_to_vmem [thread:$0]  (!%p9958_p5), %s10785_s1, 24576, %s188_s30, [#allocation5], %s9893_s7, %s9893_s7, %s9894_s8  }
  0x24   : > { %s9895_s14 = smov [#allocation8]   ;;  %s9896_s16 = smov [#allocation9]  }
  0x25   : > { %s214_s15 = sshll.u32 %s9895_s14, 4  ;;  %s225_s17 = sshll.u32 %s9896_s16, 4  ;;  %s215_s15 = int_to_ptr.vmem [resolvable:$true] %s214_s15  ;;  %s226_s17 = int_to_ptr.vmem [resolvable:$true] %s225_s17 }
  0x26   : > { %s9814_s21 = scalar_lea.vmem %s215_s15, 192  ;;  %p9822_p1 = scmp.lt.s32.totalorder %s215_s15, %s215_s15 }
  0x27   : > { %p9815_p6 = scmp.ne.s32.totalorder %s215_s15, %s9814_s21  ;;  %p9823_p4 = scmp.lt.s32.totalorder %s9814_s21, %s9814_s21 }
  0x29   : > { %p9817_p13 = pnand %p9815_p6, %p9753_p7  ;;  %p9824_p8 = por %p9823_p4, %p9822_p1 }
  0x2b   : > { %p9818_p0 = pneg %p9817_p13 }
  0x2d   : > { %p9825_p9 = pnand %p9824_p8, %p9818_p0 }
  0x2f   : > { %9828 = shalt.err (!%p9825_p9)
}
  0x30   : > { %7514 = dma.hbm_to_vmem [thread:$0]  (!%p9958_p5), %s10787_s3, 192, %s215_s15, [#allocation7]  }
  0x31   : > { %s9840_s28 = scalar_lea.vmem %s226_s17, 192  ;;  %p9848_p6 = scmp.lt.s32.totalorder %s226_s17, %s226_s17 }
  0x32   : > { %p9841_p10 = scmp.ne.s32.totalorder %s226_s17, %s9840_s28  ;;  %p9849_p13 = scmp.lt.s32.totalorder %s9840_s28, %s9840_s28 }
  0x34   : > { %p9843_p11 = pnand %p9841_p10, %p9753_p7  ;;  %p9850_p2 = por %p9849_p13, %p9848_p6 }
  0x36   : > { %p9844_p12 = pneg %p9843_p11 }
  0x38   : > { %p9851_p1 = pnand %p9850_p2, %p9844_p12 }
  0x3a   : > { %9854 = shalt.err (!%p9851_p1)
}
  0x3b   : > { %7517 = dma.hbm_to_vmem [thread:$0]  (!%p9958_p5), %s10788_s4, 192, %s226_s17, [#allocation10]  }
  0x3c   : > { %252 = sbr.rel (%p9950_p3) target bundleno = 2507 (0x9cb), region = 40 }
  0x41   : > { %p10800_p0 = scmp.ne.s32.totalorder %s10796_s22, 0 }
  0x43   : > { %9868 = dma.done.wait (%p10800_p0), [#allocation5], 24576  }
  0x44   : > { %9870 = vsyncadd (%p10800_p0), [#allocation5], 4294942720 }
  0x45   : > { %9872 = dma.done.wait (%p10800_p0), [#allocation7], 49344  }
  0x46   : > { %9874 = vsyncadd (%p10800_p0), [#allocation7], 4294917952 }
  0x47   : > { %9876 = dma.done.wait (%p10800_p0), [#allocation10], 192  }
  0x48   : > { %9878 = vsyncadd (%p10800_p0), [#allocation10], 4294967104  ;;  %s6854_s23 = sshll.u32 %s9881_s18, 2  ;;  %p6860_p3 = scmp.ne.s32.totalorder %s9881_s18, 0 }
  0x49   : > { %p303_p2 = scmp.lt.s32.totalorder %s6854_s23, 7 }
  0x4a   : > { %327 = sbr.rel (%p6860_p3) target bundleno = 82 (0x52), region = 60 }
  0x4b   : > { %s10854_s23 = smov (!%p303_p2, %s6854_s23), 7 }
  0x4c   : > { %s7487_s26 = sshll.u32 %s10854_s23, 3  ;;  %s7488_s6 = sshll.u32 %s10854_s23, 5 }
  0x4d   : > { %s10023_s9 = scalar_lea.vmem %s10784_s0, %s7487_s26  ;;  %s10028_s12 = scalar_lea.vmem %s10789_s5, %s7488_s6 }
  0x4f   : > { %v9897_v0 = vmov 0.0  }
  0x50   : > { %328 = vst [vmem:[#allocation3 + $0x10] sm:$0xff] %v9897_v0  ;;  %329 = vst [vmem:[#allocation3] sm:$0xff] %v9897_v0 }
  0x51   : > { %330 = vst [vmem:[#allocation3 + $0x18] sm:$0xff] %v9897_v0  ;;  %331 = vst [vmem:[#allocation3 + $0x8] sm:$0xff] %v9897_v0 }
  0x52 PF: > { %v7557_v1 = vld [vmem:[#allocation4 + $0x2a4] ss:$48 sps:$4 sm:$0xff]   ;;  %v7559_v2 = vld [vmem:[#allocation4 + $0x2ac] ss:$48 sps:$4 sm:$0xff]   ;;  %v7561_v3 = vld [vmem:[#allocation4 + $0x2a0] ss:$48 sps:$4 sm:$0xff]  }
  0x53   : > { %1572 = vmatprep.subr.bf16.mxu0 %v7557_v1  ;;  %v7562_v4 = vld [vmem:[#allocation4 + $0x2a8] ss:$48 sps:$4 sm:$0xff]   ;;  %1625 = vmatprep.subr.bf16.mxu1 %v7559_v2  ;;  %v7563_v5 = vld [vmem:[#allocation4 + $0x244] ss:$48 sps:$4 sm:$0xff]   ;;  %v7565_v6 = vld [vmem:[#allocation4 + $0x24c] ss:$48 sps:$4 sm:$0xff]  }
  0x54   : > { %1573 = vmatpush1.bf16.msra.mxu0 %v7561_v3  ;;  %1626 = vmatpush1.bf16.msra.mxu1 %v7562_v4  ;;  %v7567_v7 = vld [vmem:[#allocation4 + $0x240] ss:$48 sps:$4 sm:$0xff]   ;;  %v7568_v8 = vld [vmem:[#allocation4 + $0x248] ss:$48 sps:$4 sm:$0xff]   ;;  %v7569_v9 = vld [vmem:[#allocation4 + $0x1e4] ss:$48 sps:$4 sm:$0xff]  }
  0x55   : > { %1574 = vmatprep.subr.bf16.mxu0 %v7563_v5  ;;  %1627 = vmatprep.subr.bf16.mxu1 %v7565_v6  ;;  %v7571_v10 = vld [vmem:[#allocation4 + $0x1ec] ss:$48 sps:$4 sm:$0xff]   ;;  %v7573_v11 = vld [vmem:[#allocation4 + $0x1e0] ss:$48 sps:$4 sm:$0xff]   ;;  %v7574_v12 = vld [vmem:[#allocation4 + $0x1e8] ss:$48 sps:$4 sm:$0xff]  }
  0x56   : > { %v7575_v13 = vld [vmem:[#allocation4 + $0x184] ss:$48 sps:$4 sm:$0xff]   ;;  %v7577_v14 = vld [vmem:[#allocation4 + $0x18c] ss:$48 sps:$4 sm:$0xff]   ;;  %v7579_v15 = vld [vmem:[#allocation4 + $0x180] ss:$48 sps:$4 sm:$0xff]  }
  0x57   : > { %v7580_v16 = vld [vmem:[#allocation4 + $0x188] ss:$48 sps:$4 sm:$0xff]   ;;  %v7581_v17 = vld [vmem:[#allocation4 + $0x124] ss:$48 sps:$4 sm:$0xff]   ;;  %v7583_v18 = vld [vmem:[#allocation4 + $0x12c] ss:$48 sps:$4 sm:$0xff]  }
  0x58   : > { %1575 = vmatpush1.bf16.msra.mxu0 %v7567_v7  ;;  %1628 = vmatpush1.bf16.msra.mxu1 %v7568_v8  ;;  %v7585_v19 = vld [vmem:[#allocation4 + $0x120] ss:$48 sps:$4 sm:$0xff]   ;;  %v7586_v20 = vld [vmem:[#allocation4 + $0x128] ss:$48 sps:$4 sm:$0xff]   ;;  %v7587_v21 = vld [vmem:[#allocation4 + $0xc4] ss:$48 sps:$4 sm:$0xff]  }
  0x59   : > { %1576 = vmatprep.subr.bf16.mxu0 %v7569_v9  ;;  %1629 = vmatprep.subr.bf16.mxu1 %v7571_v10  ;;  %v7589_v22 = vld [vmem:[#allocation4 + $0xcc] ss:$48 sps:$4 sm:$0xff]   ;;  %v7591_v23 = vld [vmem:[#allocation4 + $0xc0] ss:$48 sps:$4 sm:$0xff]   ;;  %v7592_v24 = vld [vmem:[#allocation4 + $0xc8] ss:$48 sps:$4 sm:$0xff]  }
  0x5a   : > { %v7593_v25 = vld [vmem:[#allocation4 + $0x64] ss:$48 sps:$4 sm:$0xff]   ;;  %v7595_v26 = vld [vmem:[#allocation4 + $0x6c] ss:$48 sps:$4 sm:$0xff]   ;;  %v7597_v27 = vld [vmem:[#allocation4 + $0x60] ss:$48 sps:$4 sm:$0xff]  }
  0x5b   : > { %v7598_v28 = vld [vmem:[#allocation4 + $0x68] ss:$48 sps:$4 sm:$0xff]   ;;  %v7599_v29 = vld [vmem:[#allocation4 + $0x4] ss:$48 sps:$4 sm:$0xff]   ;;  %v7601_v30 = vld [vmem:[#allocation4 + $0xc] ss:$48 sps:$4 sm:$0xff]  }
  0x5c   : > { %1577 = vmatpush1.bf16.msra.mxu0 %v7573_v11  ;;  %1630 = vmatpush1.bf16.msra.mxu1 %v7574_v12  ;;  %v7603_v31 = vld [vmem:[#allocation4] ss:$48 sps:$4 sm:$0xff]   ;;  %v7604_v32 = vld [vmem:[#allocation4 + $0x8] ss:$48 sps:$4 sm:$0xff]   ;;  %v7605_v33 = vld [vmem:[#allocation4 + $0x5a4] ss:$48 sps:$4 sm:$0xff]  }
  0x5d   : > { %1578 = vmatprep.subr.bf16.mxu0 %v7575_v13  ;;  %1631 = vmatprep.subr.bf16.mxu1 %v7577_v14  ;;  %v7607_v34 = vld [vmem:[#allocation4 + $0x5ac] ss:$48 sps:$4 sm:$0xff]   ;;  %v7609_v35 = vld [vmem:[#allocation4 + $0x5a0] ss:$48 sps:$4 sm:$0xff]   ;;  %v7610_v36 = vld [vmem:[#allocation4 + $0x5a8] ss:$48 sps:$4 sm:$0xff]  }
  0x5e   : > { %v7611_v37 = vld [vmem:[#allocation4 + $0x544] ss:$48 sps:$4 sm:$0xff]   ;;  %v7613_v38 = vld [vmem:[#allocation4 + $0x54c] ss:$48 sps:$4 sm:$0xff]   ;;  %v7615_v39 = vld [vmem:[#allocation4 + $0x540] ss:$48 sps:$4 sm:$0xff]  }
  0x5f   : > { %v7616_v40 = vld [vmem:[#allocation4 + $0x548] ss:$48 sps:$4 sm:$0xff]   ;;  %v7617_v41 = vld [vmem:[#allocation4 + $0x4e4] ss:$48 sps:$4 sm:$0xff]   ;;  %v7619_v42 = vld [vmem:[#allocation4 + $0x4ec] ss:$48 sps:$4 sm:$0xff]  }
  0x60   : > { %1579 = vmatpush1.bf16.msra.mxu0 %v7579_v15  ;;  %1632 = vmatpush1.bf16.msra.mxu1 %v7580_v16  ;;  %v7621_v43 = vld [vmem:[#allocation4 + $0x4e0] ss:$48 sps:$4 sm:$0xff]   ;;  %v7622_v44 = vld [vmem:[#allocation4 + $0x4e8] ss:$48 sps:$4 sm:$0xff]   ;;  %v7623_v45 = vld [vmem:[#allocation4 + $0x484] ss:$48 sps:$4 sm:$0xff]  }
  0x61   : > { %1580 = vmatprep.subr.bf16.mxu0 %v7581_v17  ;;  %1633 = vmatprep.subr.bf16.mxu1 %v7583_v18  ;;  %v7625_v46 = vld [vmem:[#allocation4 + $0x48c] ss:$48 sps:$4 sm:$0xff]   ;;  %v7627_v47 = vld [vmem:[#allocation4 + $0x480] ss:$48 sps:$4 sm:$0xff]   ;;  %v7628_v48 = vld [vmem:[#allocation4 + $0x488] ss:$48 sps:$4 sm:$0xff]  }
  0x62   : > { %v10032_v49 = vld [vmem:[%s10023_s9 + $0x4] ss:$8 sps:$4 sm:$0xff]   ;;  %v7633_v52 = vld [vmem:[#allocation4 + $0x420] ss:$48 sps:$4 sm:$0xff]   ;;  %v7634_v53 = vld [vmem:[#allocation4 + $0x428] ss:$48 sps:$4 sm:$0xff]  }
  0x63   : > { %v7629_v50 = vld [vmem:[#allocation4 + $0x424] ss:$48 sps:$4 sm:$0xff]   ;;  %v7631_v51 = vld [vmem:[#allocation4 + $0x42c] ss:$48 sps:$4 sm:$0xff]   ;;  %1604 = vmatprep.mubr.bf16.mxu0 %v10032_v49  ;;  %1657 = vmatprep.mubr.bf16.mxu1 %v10032_v49  ;;  %v7639_v56 = vld [vmem:[#allocation4 + $0x3c0] ss:$48 sps:$4 sm:$0xff]  }
  0x64   : > { %1581 = vmatpush1.bf16.msra.mxu0 %v7585_v19  ;;  %1634 = vmatpush1.bf16.msra.mxu1 %v7586_v20  ;;  %v7635_v54 = vld [vmem:[#allocation4 + $0x3c4] ss:$48 sps:$4 sm:$0xff]   ;;  %v7637_v55 = vld [vmem:[#allocation4 + $0x3cc] ss:$48 sps:$4 sm:$0xff]   ;;  %v7640_v57 = vld [vmem:[#allocation4 + $0x3c8] ss:$48 sps:$4 sm:$0xff]  }
  0x65   : > { %1582 = vmatprep.subr.bf16.mxu0 %v7587_v21  ;;  %1635 = vmatprep.subr.bf16.mxu1 %v7589_v22  ;;  %v7641_v58 = vld [vmem:[#allocation4 + $0x364] ss:$48 sps:$4 sm:$0xff]   ;;  %v7643_v59 = vld [vmem:[#allocation4 + $0x36c] ss:$48 sps:$4 sm:$0xff]   ;;  %v7645_v60 = vld [vmem:[#allocation4 + $0x360] ss:$48 sps:$4 sm:$0xff]  }
  0x66   : > { %v7646_v61 = vld [vmem:[#allocation4 + $0x368] ss:$48 sps:$4 sm:$0xff]   ;;  %v7647_v62 = vld [vmem:[#allocation4 + $0x304] ss:$48 sps:$4 sm:$0xff]   ;;  %v7649_v63 = vld [vmem:[#allocation4 + $0x30c] ss:$48 sps:$4 sm:$0xff]  }
  0x67   : > { %v7651_v0 = vld [vmem:[#allocation4 + $0x300] ss:$48 sps:$4 sm:$0xff]   ;;  %v7652_v1 = vld [vmem:[#allocation4 + $0x308] ss:$48 sps:$4 sm:$0xff]   ;;  %v7658_v2 = vld [vmem:[#allocation4 + $0x2b4] ss:$48 sps:$4 sm:$0xff]  }
  0x68   : > { %1583 = vmatpush1.bf16.msra.mxu0 %v7591_v23  ;;  %1636 = vmatpush1.bf16.msra.mxu1 %v7592_v24  ;;  %v7661_v3 = vld [vmem:[#allocation4 + $0x2bc] ss:$48 sps:$4 sm:$0xff]   ;;  %v10037_v4 = vld [vmem:[%s10023_s9] ss:$8 sps:$4 sm:$0xff]   ;;  %v7664_v7 = vld [vmem:[#allocation4 + $0x254] ss:$48 sps:$4 sm:$0xff]  }
  0x69   : > { %1584 = vmatprep.subr.bf16.mxu0 %v7593_v25  ;;  %1637 = vmatprep.subr.bf16.mxu1 %v7595_v26  ;;  %v7656_v5 = vld [vmem:[#allocation4 + $0x2b0] ss:$48 sps:$4 sm:$0xff]   ;;  %v7659_v6 = vld [vmem:[#allocation4 + $0x2b8] ss:$48 sps:$4 sm:$0xff]   ;;  %v7667_v8 = vld [vmem:[#allocation4 + $0x25c] ss:$48 sps:$4 sm:$0xff]  }
  0x6a   : > { %v7662_v9 = vld [vmem:[#allocation4 + $0x250] ss:$48 sps:$4 sm:$0xff]   ;;  %v7665_v10 = vld [vmem:[#allocation4 + $0x258] ss:$48 sps:$4 sm:$0xff]   ;;  %v7670_v11 = vld [vmem:[#allocation4 + $0x1f4] ss:$48 sps:$4 sm:$0xff]  }
  0x6b   : > { %v7673_v12 = vld [vmem:[#allocation4 + $0x1fc] ss:$48 sps:$4 sm:$0xff]   ;;  %v7668_v13 = vld [vmem:[#allocation4 + $0x1f0] ss:$48 sps:$4 sm:$0xff]   ;;  %v7671_v14 = vld [vmem:[#allocation4 + $0x1f8] ss:$48 sps:$4 sm:$0xff]  }
  0x6c   : > { %1585 = vmatpush1.bf16.msra.mxu0 %v7597_v27  ;;  %1638 = vmatpush1.bf16.msra.mxu1 %v7598_v28  ;;  %v7676_v15 = vld [vmem:[#allocation4 + $0x194] ss:$48 sps:$4 sm:$0xff]   ;;  %v7679_v16 = vld [vmem:[#allocation4 + $0x19c] ss:$48 sps:$4 sm:$0xff]   ;;  %v7674_v17 = vld [vmem:[#allocation4 + $0x190] ss:$48 sps:$4 sm:$0xff]  }
  0x6d   : > { %1586 = vmatprep.subr.bf16.mxu0 %v7599_v29  ;;  %1639 = vmatprep.subr.bf16.mxu1 %v7601_v30  ;;  %v7677_v18 = vld [vmem:[#allocation4 + $0x198] ss:$48 sps:$4 sm:$0xff]   ;;  %v7682_v19 = vld [vmem:[#allocation4 + $0x134] ss:$48 sps:$4 sm:$0xff]   ;;  %v7685_v20 = vld [vmem:[#allocation4 + $0x13c] ss:$48 sps:$4 sm:$0xff]  }
  0x6e   : > { %v7680_v21 = vld [vmem:[#allocation4 + $0x130] ss:$48 sps:$4 sm:$0xff]   ;;  %v7683_v22 = vld [vmem:[#allocation4 + $0x138] ss:$48 sps:$4 sm:$0xff]   ;;  %v10042_v23 = vld [vmem:[%s10023_s9 + $0x14] ss:$8 sps:$4 sm:$0xff]  }
  0x6f   : > { %v10045_v24 = vld [vmem:[%s10023_s9 + $0x10] ss:$8 sps:$4 sm:$0xff]   ;;  %v7688_v25 = vld [vmem:[#allocation4 + $0xd4] ss:$48 sps:$4 sm:$0xff]   ;;  %v7691_v26 = vld [vmem:[#allocation4 + $0xdc] ss:$48 sps:$4 sm:$0xff]  }
  0x70   : > { %1587 = vmatpush1.bf16.msra.mxu0 %v7603_v31  ;;  %1640 = vmatpush1.bf16.msra.mxu1 %v7604_v32  ;;  %v7686_v27 = vld [vmem:[#allocation4 + $0xd0] ss:$48 sps:$4 sm:$0xff]   ;;  %v7689_v28 = vld [vmem:[#allocation4 + $0xd8] ss:$48 sps:$4 sm:$0xff]   ;;  %v7694_v29 = vld [vmem:[#allocation4 + $0x74] ss:$48 sps:$4 sm:$0xff]  }
  0x71   : > { %1588 = vmatprep.subr.bf16.mxu0 %v7605_v33  ;;  %1641 = vmatprep.subr.bf16.mxu1 %v7607_v34  ;;  %v7697_v30 = vld [vmem:[#allocation4 + $0x7c] ss:$48 sps:$4 sm:$0xff]   ;;  %v7692_v31 = vld [vmem:[#allocation4 + $0x70] ss:$48 sps:$4 sm:$0xff]   ;;  %v7695_v32 = vld [vmem:[#allocation4 + $0x78] ss:$48 sps:$4 sm:$0xff]  }
  0x72   : > { %v7700_v33 = vld [vmem:[#allocation4 + $0x14] ss:$48 sps:$4 sm:$0xff]   ;;  %v7703_v34 = vld [vmem:[#allocation4 + $0x1c] ss:$48 sps:$4 sm:$0xff]  }
  0x74   : > { %1589 = vmatpush2.bf16.msra.mxu0 %v7609_v35  ;;  %1642 = vmatpush2.bf16.msra.mxu1 %v7610_v36  ;;  %v7698_v35 = vld [vmem:[#allocation4 + $0x10] ss:$48 sps:$4 sm:$0xff]   ;;  %v7701_v36 = vld [vmem:[#allocation4 + $0x18] ss:$48 sps:$4 sm:$0xff]  }
  0x75   : > { %1590 = vmatprep.subr.bf16.mxu0 %v7611_v37  ;;  %1643 = vmatprep.subr.bf16.mxu1 %v7613_v38  ;;  %v7706_v37 = vld [vmem:[#allocation4 + $0x5b4] ss:$48 sps:$4 sm:$0xff]   ;;  %v7709_v38 = vld [vmem:[#allocation4 + $0x5bc] ss:$48 sps:$4 sm:$0xff]  }
  0x78   : > { %1591 = vmatpush2.bf16.msra.mxu0 %v7615_v39  ;;  %1644 = vmatpush2.bf16.msra.mxu1 %v7616_v40  ;;  %v7704_v39 = vld [vmem:[#allocation4 + $0x5b0] ss:$48 sps:$4 sm:$0xff]   ;;  %v7707_v40 = vld [vmem:[#allocation4 + $0x5b8] ss:$48 sps:$4 sm:$0xff]  }
  0x79   : > { %1592 = vmatprep.subr.bf16.mxu0 %v7617_v41  ;;  %1645 = vmatprep.subr.bf16.mxu1 %v7619_v42  ;;  %v7712_v41 = vld [vmem:[#allocation4 + $0x554] ss:$48 sps:$4 sm:$0xff]   ;;  %v7715_v42 = vld [vmem:[#allocation4 + $0x55c] ss:$48 sps:$4 sm:$0xff]  }
  0x7c   : > { %1593 = vmatpush2.bf16.msra.mxu0 %v7621_v43  ;;  %1646 = vmatpush2.bf16.msra.mxu1 %v7622_v44  ;;  %v7710_v43 = vld [vmem:[#allocation4 + $0x550] ss:$48 sps:$4 sm:$0xff]   ;;  %v7713_v44 = vld [vmem:[#allocation4 + $0x558] ss:$48 sps:$4 sm:$0xff]  }
  0x7d   : > { %1594 = vmatprep.subr.bf16.mxu0 %v7623_v45  ;;  %1647 = vmatprep.subr.bf16.mxu1 %v7625_v46  ;;  %v7718_v45 = vld [vmem:[#allocation4 + $0x4f4] ss:$48 sps:$4 sm:$0xff]   ;;  %v7721_v46 = vld [vmem:[#allocation4 + $0x4fc] ss:$48 sps:$4 sm:$0xff]  }
  0x80   : > { %1595 = vmatpush2.bf16.msra.mxu0 %v7627_v47  ;;  %1648 = vmatpush2.bf16.msra.mxu1 %v7628_v48  ;;  %v7716_v47 = vld [vmem:[#allocation4 + $0x4f0] ss:$48 sps:$4 sm:$0xff]   ;;  %v7719_v48 = vld [vmem:[#allocation4 + $0x4f8] ss:$48 sps:$4 sm:$0xff]  }
  0x81   : > { %1596 = vmatprep.subr.bf16.mxu0 %v7629_v50  ;;  %1649 = vmatprep.subr.bf16.mxu1 %v7631_v51  ;;  %v7724_v50 = vld [vmem:[#allocation4 + $0x494] ss:$48 sps:$4 sm:$0xff]   ;;  %v7727_v51 = vld [vmem:[#allocation4 + $0x49c] ss:$48 sps:$4 sm:$0xff]  }
  0x84   : > { %1597 = vmatpush2.bf16.msra.mxu0 %v7633_v52  ;;  %1650 = vmatpush2.bf16.msra.mxu1 %v7634_v53  ;;  %v7722_v52 = vld [vmem:[#allocation4 + $0x490] ss:$48 sps:$4 sm:$0xff]   ;;  %v7725_v53 = vld [vmem:[#allocation4 + $0x498] ss:$48 sps:$4 sm:$0xff]  }
  0x85   : > { %1598 = vmatprep.subr.bf16.mxu0 %v7635_v54  ;;  %1651 = vmatprep.subr.bf16.mxu1 %v7637_v55  ;;  %v7730_v54 = vld [vmem:[#allocation4 + $0x434] ss:$48 sps:$4 sm:$0xff]   ;;  %v7733_v55 = vld [vmem:[#allocation4 + $0x43c] ss:$48 sps:$4 sm:$0xff]  }
  0x88   : > { %1599 = vmatpush2.bf16.msra.mxu0 %v7639_v56  ;;  %1652 = vmatpush2.bf16.msra.mxu1 %v7640_v57  ;;  %v7728_v56 = vld [vmem:[#allocation4 + $0x430] ss:$48 sps:$4 sm:$0xff]   ;;  %v7731_v57 = vld [vmem:[#allocation4 + $0x438] ss:$48 sps:$4 sm:$0xff]  }
  0x89   : > { %1600 = vmatprep.subr.bf16.mxu0 %v7641_v58  ;;  %1653 = vmatprep.subr.bf16.mxu1 %v7643_v59  ;;  %v7739_v58 = vld [vmem:[#allocation4 + $0x3d4] ss:$48 sps:$4 sm:$0xff]   ;;  %v7742_v59 = vld [vmem:[#allocation4 + $0x3dc] ss:$48 sps:$4 sm:$0xff]  }
  0x8c   : > { %1601 = vmatpush2.bf16.msra.mxu0 %v7645_v60  ;;  %1654 = vmatpush2.bf16.msra.mxu1 %v7646_v61  ;;  %v7737_v60 = vld [vmem:[#allocation4 + $0x3d0] ss:$48 sps:$4 sm:$0xff]   ;;  %v7740_v61 = vld [vmem:[#allocation4 + $0x3d8] ss:$48 sps:$4 sm:$0xff]  }
  0x8d   : > { %1602 = vmatprep.subr.bf16.mxu0 %v7647_v62  ;;  %1655 = vmatprep.subr.bf16.mxu1 %v7649_v63  ;;  %v7745_v62 = vld [vmem:[#allocation4 + $0x374] ss:$48 sps:$4 sm:$0xff]   ;;  %v7748_v63 = vld [vmem:[#allocation4 + $0x37c] ss:$48 sps:$4 sm:$0xff]  }
  0x90   : > { %1603 = vmatpush2.bf16.msra.mxu0 %v7651_v0  ;;  %1656 = vmatpush2.bf16.msra.mxu1 %v7652_v1  ;;  %v7743_v0 = vld [vmem:[#allocation4 + $0x370] ss:$48 sps:$4 sm:$0xff]   ;;  %v7746_v1 = vld [vmem:[#allocation4 + $0x378] ss:$48 sps:$4 sm:$0xff]  }
  0x91   : > { %1678 = vmatprep.subr.bf16.mxu0 %v7658_v2  ;;  %1731 = vmatprep.subr.bf16.mxu1 %v7661_v3  ;;  %v7751_v2 = vld [vmem:[#allocation4 + $0x314] ss:$48 sps:$4 sm:$0xff]   ;;  %v7754_v3 = vld [vmem:[#allocation4 + $0x31c] ss:$48 sps:$4 sm:$0xff]  }
  0x93   : > { %1605 = vmatmul.mubr.bf16.vlgmr.msra.gmra.mxu0 %v10037_v4  ;;  %1658 = vmatmul.mubr.bf16.vlgmr.msra.gmra.mxu1 %v10037_v4 }
  0x94   : > { %1679 = vmatpush1.bf16.msra.mxu0 %v7656_v5  ;;  %1732 = vmatpush1.bf16.msra.mxu1 %v7659_v6  ;;  %v7749_v5 = vld [vmem:[#allocation4 + $0x310] ss:$48 sps:$4 sm:$0xff]   ;;  %v7752_v6 = vld [vmem:[#allocation4 + $0x318] ss:$48 sps:$4 sm:$0xff]  }
  0x95   : > { %1680 = vmatprep.subr.bf16.mxu0 %v7664_v7  ;;  %1733 = vmatprep.subr.bf16.mxu1 %v7667_v8  ;;  %v7757_v7 = vld [vmem:[#allocation4 + $0x2c4] ss:$48 sps:$4 sm:$0xff]   ;;  %v7760_v8 = vld [vmem:[#allocation4 + $0x2cc] ss:$48 sps:$4 sm:$0xff]  }
  0x96   : > { %1614 = vmatprep.mubr.bf16.mxu0 %v10042_v23  ;;  %1667 = vmatprep.mubr.bf16.mxu1 %v10042_v23 }
  0x98   : > { %1681 = vmatpush1.bf16.msra.mxu0 %v7662_v9  ;;  %1734 = vmatpush1.bf16.msra.mxu1 %v7665_v10  ;;  %v7755_v9 = vld [vmem:[#allocation4 + $0x2c0] ss:$48 sps:$4 sm:$0xff]   ;;  %v7758_v10 = vld [vmem:[#allocation4 + $0x2c8] ss:$48 sps:$4 sm:$0xff]  }
  0x99   : > { %1682 = vmatprep.subr.bf16.mxu0 %v7670_v11  ;;  %1735 = vmatprep.subr.bf16.mxu1 %v7673_v12  ;;  %v7763_v11 = vld [vmem:[#allocation4 + $0x264] ss:$48 sps:$4 sm:$0xff]   ;;  %v7766_v12 = vld [vmem:[#allocation4 + $0x26c] ss:$48 sps:$4 sm:$0xff]  }
  0x9b   : > { %1615 = vmatmul.mubr.bf16.gmra.mxu0 %v10045_v24  ;;  %1668 = vmatmul.mubr.bf16.gmra.mxu1 %v10045_v24 }
  0x9c   : > { %1683 = vmatpush1.bf16.msra.mxu0 %v7668_v13  ;;  %1736 = vmatpush1.bf16.msra.mxu1 %v7671_v14  ;;  %v7761_v13 = vld [vmem:[#allocation4 + $0x260] ss:$48 sps:$4 sm:$0xff]   ;;  %v7764_v14 = vld [vmem:[#allocation4 + $0x268] ss:$48 sps:$4 sm:$0xff]  }
  0x9d   : > { %1684 = vmatprep.subr.bf16.mxu0 %v7676_v15  ;;  %1737 = vmatprep.subr.bf16.mxu1 %v7679_v16  ;;  %v7769_v15 = vld [vmem:[#allocation4 + $0x204] ss:$48 sps:$4 sm:$0xff]   ;;  %v7772_v16 = vld [vmem:[#allocation4 + $0x20c] ss:$48 sps:$4 sm:$0xff]  }
  0x9e   : > { %1710 = vmatprep.mubr.bf16.mxu0 %v10032_v49  ;;  %1763 = vmatprep.mubr.bf16.mxu1 %v10032_v49 }
  0xa0   : > { %1685 = vmatpush1.bf16.msra.mxu0 %v7674_v17  ;;  %1738 = vmatpush1.bf16.msra.mxu1 %v7677_v18  ;;  %v7767_v17 = vld [vmem:[#allocation4 + $0x200] ss:$48 sps:$4 sm:$0xff]   ;;  %v7770_v18 = vld [vmem:[#allocation4 + $0x208] ss:$48 sps:$4 sm:$0xff]  }
  0xa1   : > { %1686 = vmatprep.subr.bf16.mxu0 %v7682_v19  ;;  %1739 = vmatprep.subr.bf16.mxu1 %v7685_v20  ;;  %v7775_v19 = vld [vmem:[#allocation4 + $0x1a4] ss:$48 sps:$4 sm:$0xff]   ;;  %v7778_v20 = vld [vmem:[#allocation4 + $0x1ac] ss:$48 sps:$4 sm:$0xff]  }
  0xa4   : > { %1687 = vmatpush1.bf16.msra.mxu0 %v7680_v21  ;;  %1740 = vmatpush1.bf16.msra.mxu1 %v7683_v22  ;;  %v7773_v21 = vld [vmem:[#allocation4 + $0x1a0] ss:$48 sps:$4 sm:$0xff]   ;;  %v7776_v22 = vld [vmem:[#allocation4 + $0x1a8] ss:$48 sps:$4 sm:$0xff]  }
  0xa5   : > { %1688 = vmatprep.subr.bf16.mxu0 %v7688_v25  ;;  %1741 = vmatprep.subr.bf16.mxu1 %v7691_v26  ;;  %v7781_v25 = vld [vmem:[#allocation4 + $0x144] ss:$48 sps:$4 sm:$0xff]   ;;  %v7784_v26 = vld [vmem:[#allocation4 + $0x14c] ss:$48 sps:$4 sm:$0xff]  }
  0xa8   : > { %1689 = vmatpush1.bf16.msra.mxu0 %v7686_v27  ;;  %1742 = vmatpush1.bf16.msra.mxu1 %v7689_v28  ;;  %v7779_v27 = vld [vmem:[#allocation4 + $0x140] ss:$48 sps:$4 sm:$0xff]   ;;  %v7782_v28 = vld [vmem:[#allocation4 + $0x148] ss:$48 sps:$4 sm:$0xff]  }
  0xa9   : > { %1690 = vmatprep.subr.bf16.mxu0 %v7694_v29  ;;  %1743 = vmatprep.subr.bf16.mxu1 %v7697_v30  ;;  %v7787_v29 = vld [vmem:[#allocation4 + $0xe4] ss:$48 sps:$4 sm:$0xff]   ;;  %v7790_v30 = vld [vmem:[#allocation4 + $0xec] ss:$48 sps:$4 sm:$0xff]  }
  0xac   : > { %1691 = vmatpush1.bf16.msra.mxu0 %v7692_v31  ;;  %1744 = vmatpush1.bf16.msra.mxu1 %v7695_v32  ;;  %v7785_v31 = vld [vmem:[#allocation4 + $0xe0] ss:$48 sps:$4 sm:$0xff]   ;;  %v7788_v32 = vld [vmem:[#allocation4 + $0xe8] ss:$48 sps:$4 sm:$0xff]  }
  0xad   : > { %1692 = vmatprep.subr.bf16.mxu0 %v7700_v33  ;;  %1745 = vmatprep.subr.bf16.mxu1 %v7703_v34  ;;  %v7793_v33 = vld [vmem:[#allocation4 + $0x84] ss:$48 sps:$4 sm:$0xff]   ;;  %v7796_v34 = vld [vmem:[#allocation4 + $0x8c] ss:$48 sps:$4 sm:$0xff]  }
  0xb0   : > { %1693 = vmatpush1.bf16.msra.mxu0 %v7698_v35  ;;  %1746 = vmatpush1.bf16.msra.mxu1 %v7701_v36  ;;  %v7791_v35 = vld [vmem:[#allocation4 + $0x80] ss:$48 sps:$4 sm:$0xff]   ;;  %v7794_v36 = vld [vmem:[#allocation4 + $0x88] ss:$48 sps:$4 sm:$0xff]  }
  0xb1   : > { %1694 = vmatprep.subr.bf16.mxu0 %v7706_v37  ;;  %1747 = vmatprep.subr.bf16.mxu1 %v7709_v38  ;;  %v7802_v37 = vld [vmem:[#allocation4 + $0x2c] ss:$48 sps:$4 sm:$0xff]   ;;  %v7797_v38 = vld [vmem:[#allocation4 + $0x20] ss:$48 sps:$4 sm:$0xff]  }
  0xb4   : > { %1695 = vmatpush2.bf16.msra.mxu0 %v7704_v39  ;;  %1748 = vmatpush2.bf16.msra.mxu1 %v7707_v40  ;;  %v7800_v39 = vld [vmem:[#allocation4 + $0x28] ss:$48 sps:$4 sm:$0xff]   ;;  %v7805_v40 = vld [vmem:[#allocation4 + $0x5c4] ss:$48 sps:$4 sm:$0xff]  }
  0xb5   : > { %1696 = vmatprep.subr.bf16.mxu0 %v7712_v41  ;;  %1749 = vmatprep.subr.bf16.mxu1 %v7715_v42  ;;  %v7808_v41 = vld [vmem:[#allocation4 + $0x5cc] ss:$48 sps:$4 sm:$0xff]   ;;  %v7803_v42 = vld [vmem:[#allocation4 + $0x5c0] ss:$48 sps:$4 sm:$0xff]  }
  0xb8   : > { %1697 = vmatpush2.bf16.msra.mxu0 %v7710_v43  ;;  %1750 = vmatpush2.bf16.msra.mxu1 %v7713_v44  ;;  %v7806_v43 = vld [vmem:[#allocation4 + $0x5c8] ss:$48 sps:$4 sm:$0xff]   ;;  %v7811_v44 = vld [vmem:[#allocation4 + $0x564] ss:$48 sps:$4 sm:$0xff]  }
  0xb9   : > { %1698 = vmatprep.subr.bf16.mxu0 %v7718_v45  ;;  %1751 = vmatprep.subr.bf16.mxu1 %v7721_v46  ;;  %v7814_v45 = vld [vmem:[#allocation4 + $0x56c] ss:$48 sps:$4 sm:$0xff]   ;;  %v7809_v46 = vld [vmem:[#allocation4 + $0x560] ss:$48 sps:$4 sm:$0xff]  }
  0xbc   : > { %1699 = vmatpush2.bf16.msra.mxu0 %v7716_v47  ;;  %1752 = vmatpush2.bf16.msra.mxu1 %v7719_v48  ;;  %v7812_v47 = vld [vmem:[#allocation4 + $0x568] ss:$48 sps:$4 sm:$0xff]   ;;  %v7817_v48 = vld [vmem:[#allocation4 + $0x504] ss:$48 sps:$4 sm:$0xff]  }
  0xbd   : > { %1700 = vmatprep.subr.bf16.mxu0 %v7724_v50  ;;  %1753 = vmatprep.subr.bf16.mxu1 %v7727_v51  ;;  %v7820_v50 = vld [vmem:[#allocation4 + $0x50c] ss:$48 sps:$4 sm:$0xff]   ;;  %v7815_v51 = vld [vmem:[#allocation4 + $0x500] ss:$48 sps:$4 sm:$0xff]  }
  0xc0   : > { %1701 = vmatpush2.bf16.msra.mxu0 %v7722_v52  ;;  %1754 = vmatpush2.bf16.msra.mxu1 %v7725_v53  ;;  %v7818_v52 = vld [vmem:[#allocation4 + $0x508] ss:$48 sps:$4 sm:$0xff]   ;;  %v7823_v53 = vld [vmem:[#allocation4 + $0x4a4] ss:$48 sps:$4 sm:$0xff]  }
  0xc1   : > { %1702 = vmatprep.subr.bf16.mxu0 %v7730_v54  ;;  %1755 = vmatprep.subr.bf16.mxu1 %v7733_v55  ;;  %v7826_v54 = vld [vmem:[#allocation4 + $0x4ac] ss:$48 sps:$4 sm:$0xff]   ;;  %v7821_v55 = vld [vmem:[#allocation4 + $0x4a0] ss:$48 sps:$4 sm:$0xff]  }
  0xc4   : > { %1703 = vmatpush2.bf16.msra.mxu0 %v7728_v56  ;;  %1756 = vmatpush2.bf16.msra.mxu1 %v7731_v57  ;;  %v7824_v56 = vld [vmem:[#allocation4 + $0x4a8] ss:$48 sps:$4 sm:$0xff]   ;;  %v7829_v57 = vld [vmem:[#allocation4 + $0x444] ss:$48 sps:$4 sm:$0xff]  }
  0xc5   : > { %1704 = vmatprep.subr.bf16.mxu0 %v7739_v58  ;;  %1757 = vmatprep.subr.bf16.mxu1 %v7742_v59  ;;  %v7832_v58 = vld [vmem:[#allocation4 + $0x44c] ss:$48 sps:$4 sm:$0xff]   ;;  %v7827_v59 = vld [vmem:[#allocation4 + $0x440] ss:$48 sps:$4 sm:$0xff]  }
  0xc8   : > { %1705 = vmatpush2.bf16.msra.mxu0 %v7737_v60  ;;  %1758 = vmatpush2.bf16.msra.mxu1 %v7740_v61  ;;  %v7830_v60 = vld [vmem:[#allocation4 + $0x448] ss:$48 sps:$4 sm:$0xff]   ;;  %v7835_v61 = vld [vmem:[#allocation4 + $0x3e4] ss:$48 sps:$4 sm:$0xff]  }
  0xc9   : > { %1706 = vmatprep.subr.bf16.mxu0 %v7745_v62  ;;  %1759 = vmatprep.subr.bf16.mxu1 %v7748_v63  ;;  %v7838_v62 = vld [vmem:[#allocation4 + $0x3ec] ss:$48 sps:$4 sm:$0xff]   ;;  %v7833_v63 = vld [vmem:[#allocation4 + $0x3e0] ss:$48 sps:$4 sm:$0xff]  }
  0xcc   : > { %1707 = vmatpush2.bf16.msra.mxu0 %v7743_v0  ;;  %1760 = vmatpush2.bf16.msra.mxu1 %v7746_v1  ;;  %v7836_v0 = vld [vmem:[#allocation4 + $0x3e8] ss:$48 sps:$4 sm:$0xff]   ;;  %v7841_v1 = vld [vmem:[#allocation4 + $0x384] ss:$48 sps:$4 sm:$0xff]  }
  0xcd   : > { %1708 = vmatprep.subr.bf16.mxu0 %v7751_v2  ;;  %1761 = vmatprep.subr.bf16.mxu1 %v7754_v3  ;;  %v7844_v2 = vld [vmem:[#allocation4 + $0x38c] ss:$48 sps:$4 sm:$0xff]   ;;  %v7839_v3 = vld [vmem:[#allocation4 + $0x380] ss:$48 sps:$4 sm:$0xff]  }
  0xd0   : > { %1709 = vmatpush2.bf16.msra.mxu0 %v7749_v5  ;;  %1762 = vmatpush2.bf16.msra.mxu1 %v7752_v6  ;;  %v7842_v5 = vld [vmem:[#allocation4 + $0x388] ss:$48 sps:$4 sm:$0xff]   ;;  %v7847_v6 = vld [vmem:[#allocation4 + $0x324] ss:$48 sps:$4 sm:$0xff]  }
  0xd1   : > { %1784 = vmatprep.subr.bf16.mxu0 %v7757_v7  ;;  %1837 = vmatprep.subr.bf16.mxu1 %v7760_v8  ;;  %v7850_v7 = vld [vmem:[#allocation4 + $0x32c] ss:$48 sps:$4 sm:$0xff]   ;;  %v7845_v8 = vld [vmem:[#allocation4 + $0x320] ss:$48 sps:$4 sm:$0xff]  }
  0xd3   : > { %1711 = vmatmul.mubr.bf16.vlgmr.msra.gmra.mxu0 %v10037_v4  ;;  %1764 = vmatmul.mubr.bf16.vlgmr.msra.gmra.mxu1 %v10037_v4 }
  0xd4   : > { %1785 = vmatpush1.bf16.msra.mxu0 %v7755_v9  ;;  %1838 = vmatpush1.bf16.msra.mxu1 %v7758_v10  ;;  %v7848_v9 = vld [vmem:[#allocation4 + $0x328] ss:$48 sps:$4 sm:$0xff]   ;;  %v7851_v10 = vld [vmem:[#allocation6 + $0x2a4] ss:$48 sps:$4 sm:$0xff]  }
  0xd5   : > { %1786 = vmatprep.subr.bf16.mxu0 %v7763_v11  ;;  %1839 = vmatprep.subr.bf16.mxu1 %v7766_v12  ;;  %v7853_v11 = vld [vmem:[#allocation6 + $0x8a4] ss:$48 sps:$4 sm:$0xff]   ;;  %v7855_v12 = vld [vmem:[#allocation6 + $0x2a0] ss:$48 sps:$4 sm:$0xff]  }
  0xd6   : > { %1720 = vmatprep.mubr.bf16.mxu0 %v10042_v23  ;;  %1773 = vmatprep.mubr.bf16.mxu1 %v10042_v23 }
  0xd8   : > { %1787 = vmatpush1.bf16.msra.mxu0 %v7761_v13  ;;  %1840 = vmatpush1.bf16.msra.mxu1 %v7764_v14  ;;  %v7856_v13 = vld [vmem:[#allocation6 + $0x8a0] ss:$48 sps:$4 sm:$0xff]   ;;  %v7857_v14 = vld [vmem:[#allocation6 + $0x244] ss:$48 sps:$4 sm:$0xff]  }
  0xd9   : > { %1788 = vmatprep.subr.bf16.mxu0 %v7769_v15  ;;  %1841 = vmatprep.subr.bf16.mxu1 %v7772_v16  ;;  %v7859_v15 = vld [vmem:[#allocation6 + $0x844] ss:$48 sps:$4 sm:$0xff]   ;;  %v7861_v16 = vld [vmem:[#allocation6 + $0x240] ss:$48 sps:$4 sm:$0xff]  }
  0xdb   : > { %1721 = vmatmul.mubr.bf16.gmra.mxu0 %v10045_v24  ;;  %1774 = vmatmul.mubr.bf16.gmra.mxu1 %v10045_v24 }
  0xdc   : > { %1789 = vmatpush1.bf16.msra.mxu0 %v7767_v17  ;;  %1842 = vmatpush1.bf16.msra.mxu1 %v7770_v18  ;;  %v7862_v17 = vld [vmem:[#allocation6 + $0x840] ss:$48 sps:$4 sm:$0xff]   ;;  %v7863_v18 = vld [vmem:[#allocation6 + $0x1e4] ss:$48 sps:$4 sm:$0xff]  }
  0xdd   : > { %1790 = vmatprep.subr.bf16.mxu0 %v7775_v19  ;;  %1843 = vmatprep.subr.bf16.mxu1 %v7778_v20  ;;  %v7865_v19 = vld [vmem:[#allocation6 + $0x7e4] ss:$48 sps:$4 sm:$0xff]   ;;  %v7867_v20 = vld [vmem:[#allocation6 + $0x1e0] ss:$48 sps:$4 sm:$0xff]  }
  0xde   : > { %1816 = vmatprep.mubr.bf16.mxu0 %v10032_v49  ;;  %1869 = vmatprep.mubr.bf16.mxu1 %v10032_v49  ;;  %v7799_v49 = vld [vmem:[#allocation4 + $0x24] ss:$48 sps:$4 sm:$0xff]  }
  0xe0   : > { %1791 = vmatpush1.bf16.msra.mxu0 %v7773_v21  ;;  %1844 = vmatpush1.bf16.msra.mxu1 %v7776_v22  ;;  %v2325_v21 = vld [vmem:[#allocation3] sm:$0xff]  ;;  %v2327_v22 = vld [vmem:[#allocation3 + $0x8] sm:$0xff] }
  0xe1   : > { %1792 = vmatprep.subr.bf16.mxu0 %v7781_v25  ;;  %1845 = vmatprep.subr.bf16.mxu1 %v7784_v26  ;;  %v7868_v25 = vld [vmem:[#allocation6 + $0x7e0] ss:$48 sps:$4 sm:$0xff]   ;;  %v7871_v26 = vld [vmem:[#allocation6 + $0x784] ss:$48 sps:$4 sm:$0xff]  }
  0xe4   : > { %1793 = vmatpush1.bf16.msra.mxu0 %v7779_v27  ;;  %1846 = vmatpush1.bf16.msra.mxu1 %v7782_v28  ;;  %v10065_v27 = vpack.c.bf16 %v2325_v21, %v2325_v21  ;;  %v10067_v28 = vpack.c.bf16 %v2327_v22, %v2327_v22  ;;  %v10078_v21 = vld [vmem:[#allocation8] sm:$0xff] }
  0xe5   : > { %1794 = vmatprep.subr.bf16.mxu0 %v7787_v29  ;;  %1847 = vmatprep.subr.bf16.mxu1 %v7790_v30  ;;  %v7873_v29 = vld [vmem:[#allocation6 + $0x180] ss:$48 sps:$4 sm:$0xff]  }
  0xe6   : > { %v7874_v30 = vld [vmem:[#allocation6 + $0x780] ss:$48 sps:$4 sm:$0xff]  }
  0xe8   : > { %1795 = vmatpush1.bf16.msra.mxu0 %v7785_v31  ;;  %1848 = vmatpush1.bf16.msra.mxu1 %v7788_v32  ;;  %v7877_v31 = vld [vmem:[#allocation6 + $0x724] ss:$48 sps:$4 sm:$0xff]   ;;  %v7879_v32 = vld [vmem:[#allocation6 + $0x120] ss:$48 sps:$4 sm:$0xff]  }
  0xe9   : > { %1796 = vmatprep.subr.bf16.mxu0 %v7793_v33  ;;  %1849 = vmatprep.subr.bf16.mxu1 %v7796_v34  ;;  %v7880_v33 = vld [vmem:[#allocation6 + $0x720] ss:$48 sps:$4 sm:$0xff]   ;;  %v7881_v34 = vld [vmem:[#allocation6 + $0xc4] ss:$48 sps:$4 sm:$0xff]  }
  0xec   : > { %1797 = vmatpush1.bf16.msra.mxu0 %v7791_v35  ;;  %1850 = vmatpush1.bf16.msra.mxu1 %v7794_v36  ;;  %v7883_v35 = vld [vmem:[#allocation6 + $0x6c4] ss:$48 sps:$4 sm:$0xff]   ;;  %v7885_v36 = vld [vmem:[#allocation6 + $0xc0] ss:$48 sps:$4 sm:$0xff]  }
  0xed   : > { %1798 = vmatprep.subr.bf16.mxu0 %v7799_v49  ;;  %1851 = vmatprep.subr.bf16.mxu1 %v7802_v37  ;;  %v7887_v49 = vld [vmem:[#allocation6 + $0x64] ss:$48 sps:$4 sm:$0xff]  }
  0xee   : > { %v7889_v37 = vld [vmem:[#allocation6 + $0x664] ss:$48 sps:$4 sm:$0xff]  }
  0xf0   : > { %1799 = vmatpush1.bf16.msra.mxu0 %v7797_v38  ;;  %1852 = vmatpush1.bf16.msra.mxu1 %v7800_v39  ;;  %v7891_v38 = vld [vmem:[#allocation6 + $0x60] ss:$48 sps:$4 sm:$0xff]  }
  0xf1   : > { %1800 = vmatprep.subr.bf16.mxu0 %v7805_v40  ;;  %1853 = vmatprep.subr.bf16.mxu1 %v7808_v41  ;;  %v7892_v39 = vld [vmem:[#allocation6 + $0x660] ss:$48 sps:$4 sm:$0xff]   ;;  %v7893_v40 = vld [vmem:[#allocation6 + $0x4] ss:$48 sps:$4 sm:$0xff]  }
  0xf2   : > { %v7895_v41 = vld [vmem:[#allocation6 + $0x604] ss:$48 sps:$4 sm:$0xff]  }
  0xf4   : > { %1801 = vmatpush2.bf16.msra.mxu0 %v7803_v42  ;;  %1854 = vmatpush2.bf16.msra.mxu1 %v7806_v43  ;;  %v7897_v42 = vld [vmem:[#allocation6] ss:$48 sps:$4 sm:$0xff]  }
  0xf5   : > { %1802 = vmatprep.subr.bf16.mxu0 %v7811_v44  ;;  %1855 = vmatprep.subr.bf16.mxu1 %v7814_v45  ;;  %v7898_v43 = vld [vmem:[#allocation6 + $0x600] ss:$48 sps:$4 sm:$0xff]   ;;  %v7899_v44 = vld [vmem:[#allocation6 + $0x5a4] ss:$48 sps:$4 sm:$0xff]  }
  0xf6   : > { %v7901_v45 = vld [vmem:[#allocation6 + $0xba4] ss:$48 sps:$4 sm:$0xff]  }
  0xf8   : > { %1803 = vmatpush2.bf16.msra.mxu0 %v7809_v46  ;;  %1856 = vmatpush2.bf16.msra.mxu1 %v7812_v47  ;;  %v7903_v46 = vld [vmem:[#allocation6 + $0x5a0] ss:$48 sps:$4 sm:$0xff]  }
  0xf9   : > { %1804 = vmatprep.subr.bf16.mxu0 %v7817_v48  ;;  %1857 = vmatprep.subr.bf16.mxu1 %v7820_v50  ;;  %v7904_v47 = vld [vmem:[#allocation6 + $0xba0] ss:$48 sps:$4 sm:$0xff]   ;;  %v7905_v48 = vld [vmem:[#allocation6 + $0x544] ss:$48 sps:$4 sm:$0xff]  }
  0xfa   : > { %v7907_v50 = vld [vmem:[#allocation6 + $0xb44] ss:$48 sps:$4 sm:$0xff]  }
  0xfc   : > { %1805 = vmatpush2.bf16.msra.mxu0 %v7815_v51  ;;  %1858 = vmatpush2.bf16.msra.mxu1 %v7818_v52  ;;  %v7909_v51 = vld [vmem:[#allocation6 + $0x540] ss:$48 sps:$4 sm:$0xff]  }
  0xfd   : > { %1806 = vmatprep.subr.bf16.mxu0 %v7823_v53  ;;  %1859 = vmatprep.subr.bf16.mxu1 %v7826_v54  ;;  %v7910_v52 = vld [vmem:[#allocation6 + $0xb40] ss:$48 sps:$4 sm:$0xff]   ;;  %v7911_v53 = vld [vmem:[#allocation6 + $0x4e4] ss:$48 sps:$4 sm:$0xff]  }
  0xfe   : > { %v7913_v54 = vld [vmem:[#allocation6 + $0xae4] ss:$48 sps:$4 sm:$0xff]  }
 0x100   : > { %1807 = vmatpush2.bf16.msra.mxu0 %v7821_v55  ;;  %1860 = vmatpush2.bf16.msra.mxu1 %v7824_v56  ;;  %v7915_v55 = vld [vmem:[#allocation6 + $0x4e0] ss:$48 sps:$4 sm:$0xff]  }
 0x101   : > { %1808 = vmatprep.subr.bf16.mxu0 %v7829_v57  ;;  %1861 = vmatprep.subr.bf16.mxu1 %v7832_v58  ;;  %v7916_v56 = vld [vmem:[#allocation6 + $0xae0] ss:$48 sps:$4 sm:$0xff]   ;;  %v7917_v57 = vld [vmem:[#allocation6 + $0x484] ss:$48 sps:$4 sm:$0xff]  }
 0x102   : > { %v7919_v58 = vld [vmem:[#allocation6 + $0xa84] ss:$48 sps:$4 sm:$0xff]  }
 0x104   : > { %1809 = vmatpush2.bf16.msra.mxu0 %v7827_v59  ;;  %1862 = vmatpush2.bf16.msra.mxu1 %v7830_v60  ;;  %v7921_v59 = vld [vmem:[#allocation6 + $0x480] ss:$48 sps:$4 sm:$0xff]  }
 0x105   : > { %1810 = vmatprep.subr.bf16.mxu0 %v7835_v61  ;;  %1863 = vmatprep.subr.bf16.mxu1 %v7838_v62  ;;  %v7922_v60 = vld [vmem:[#allocation6 + $0xa80] ss:$48 sps:$4 sm:$0xff]   ;;  %v7923_v61 = vld [vmem:[#allocation6 + $0x424] ss:$48 sps:$4 sm:$0xff]  }
 0x106   : > { %v7925_v62 = vld [vmem:[#allocation6 + $0xa24] ss:$48 sps:$4 sm:$0xff]  }
 0x108   : > { %1811 = vmatpush2.bf16.msra.mxu0 %v7833_v63  ;;  %1864 = vmatpush2.bf16.msra.mxu1 %v7836_v0  ;;  %v7927_v63 = vld [vmem:[#allocation6 + $0x420] ss:$48 sps:$4 sm:$0xff]  }
 0x109   : > { %1812 = vmatprep.subr.bf16.mxu0 %v7841_v1  ;;  %1865 = vmatprep.subr.bf16.mxu1 %v7844_v2  ;;  %v7928_v0 = vld [vmem:[#allocation6 + $0xa20] ss:$48 sps:$4 sm:$0xff]   ;;  %v7929_v1 = vld [vmem:[#allocation6 + $0x3c4] ss:$48 sps:$4 sm:$0xff]  }
 0x10a   : > { %v7931_v2 = vld [vmem:[#allocation6 + $0x9c4] ss:$48 sps:$4 sm:$0xff]  }
 0x10c   : > { %1813 = vmatpush2.bf16.msra.mxu0 %v7839_v3  ;;  %1866 = vmatpush2.bf16.msra.mxu1 %v7842_v5  ;;  %v7933_v3 = vld [vmem:[#allocation6 + $0x3c0] ss:$48 sps:$4 sm:$0xff]  }
 0x10d   : > { %1814 = vmatprep.subr.bf16.mxu0 %v7847_v6  ;;  %1867 = vmatprep.subr.bf16.mxu1 %v7850_v7  ;;  %v7934_v5 = vld [vmem:[#allocation6 + $0x9c0] ss:$48 sps:$4 sm:$0xff]   ;;  %v7935_v6 = vld [vmem:[#allocation6 + $0x364] ss:$48 sps:$4 sm:$0xff]  }
 0x10e   : > { %v7937_v7 = vld [vmem:[#allocation6 + $0x964] ss:$48 sps:$4 sm:$0xff]  }
 0x110   : > { %1815 = vmatpush2.bf16.msra.mxu0 %v7845_v8  ;;  %1868 = vmatpush2.bf16.msra.mxu1 %v7848_v9  ;;  %v532_v8 = vlaneseq  ;;  %v7939_v9 = vld [vmem:[#allocation6 + $0x360] ss:$48 sps:$4 sm:$0xff]  }
 0x111   : > { %4314 = vmatprep.subr.bf16.mxu0 %v7851_v10  ;;  %4355 = vmatprep.subr.bf16.mxu1 %v7853_v11  ;;  %v7940_v10 = vld [vmem:[#allocation6 + $0x960] ss:$48 sps:$4 sm:$0xff]   ;;  %v7941_v11 = vld [vmem:[#allocation6 + $0x304] ss:$48 sps:$4 sm:$0xff]  }
 0x113   : > { %1817 = vmatmul.mubr.bf16.vlgmr.msra.gmra.mxu0 %v10037_v4  ;;  %1870 = vmatmul.mubr.bf16.vlgmr.msra.gmra.mxu1 %v10037_v4  ;;  %v7869_v4 = vld [vmem:[#allocation6 + $0x184] ss:$48 sps:$4 sm:$0xff]  }
 0x114   : > { %4315 = vmatpush1.bf16.msra.mxu0 %v7855_v12  ;;  %4356 = vmatpush1.bf16.msra.mxu1 %v7856_v13  ;;  %v7943_v12 = vld [vmem:[#allocation6 + $0x904] ss:$48 sps:$4 sm:$0xff]   ;;  %v7945_v13 = vld [vmem:[#allocation6 + $0x300] ss:$48 sps:$4 sm:$0xff]  }
 0x115   : > { %4316 = vmatprep.subr.bf16.mxu0 %v7857_v14  ;;  %4357 = vmatprep.subr.bf16.mxu1 %v7859_v15  ;;  %v7946_v14 = vld [vmem:[#allocation6 + $0x900] ss:$48 sps:$4 sm:$0xff]   ;;  %v10073_v15 = vshrl.u32 %v532_v8, 7  ;;  %v7985_v8 = vld [vmem:[#allocation6 + $0x66c] ss:$48 sps:$4 sm:$0xff]  }
 0x116   : > { %1826 = vmatprep.mubr.bf16.mxu0 %v10042_v23  ;;  %1879 = vmatprep.mubr.bf16.mxu1 %v10042_v23  ;;  %v7875_v23 = vld [vmem:[#allocation6 + $0x124] ss:$48 sps:$4 sm:$0xff]  }
 0x117   : > { %v10081_v22 = vsub.s32 3, %v10073_v15 }
 0x118   : > { %4317 = vmatpush1.bf16.msra.mxu0 %v7861_v16  ;;  %4358 = vmatpush1.bf16.msra.mxu1 %v7862_v17  ;;  %v2324_v16 = vld [vmem:[#allocation3 + $0x10] sm:$0xff]  ;;  %v2326_v17 = vld [vmem:[#allocation3 + $0x18] sm:$0xff] }
 0x119   : > { %4318 = vmatprep.subr.bf16.mxu0 %v7863_v18  ;;  %4359 = vmatprep.subr.bf16.mxu1 %v7865_v19  ;;  %v10076_v18 = vsub.s32 2, %v10073_v15  ;;  %v7947_v19 = vld [vmem:[#allocation6 + $0x2ac] ss:$48 sps:$4 sm:$0xff]  }
 0x11b   : > { %1827 = vmatmul.mubr.bf16.gmra.mxu0 %v10045_v24  ;;  %1880 = vmatmul.mubr.bf16.gmra.mxu1 %v10045_v24  ;;  %v7886_v24 = vld [vmem:[#allocation6 + $0x6c0] ss:$48 sps:$4 sm:$0xff]  }
 0x11c   : > { %4319 = vmatpush1.bf16.msra.mxu0 %v7867_v20  ;;  %4360 = vmatpush1.bf16.msra.mxu1 %v7868_v25  ;;  %v7949_v20 = vld [vmem:[#allocation6 + $0x8ac] ss:$48 sps:$4 sm:$0xff]   ;;  %v10083_v25 = vpack.c.bf16 %v2324_v16, %v2324_v16 }
 0x11d   : > { %4320 = vmatprep.subr.bf16.mxu0 %v7869_v4  ;;  %4361 = vmatprep.subr.bf16.mxu1 %v7871_v26  ;;  %v10085_v4 = vpack.c.bf16 %v2326_v17, %v2326_v17  ;;  %v7951_v26 = vld [vmem:[#allocation6 + $0x2a8] ss:$48 sps:$4 sm:$0xff]  }
 0x11e   : > { %4346 = vmatprep.mubr.bf16.mxu0 %v10065_v27  ;;  %4387 = vmatprep.mubr.bf16.mxu1 %v10067_v28  ;;  %v7988_v17 = vld [vmem:[#allocation6 + $0x668] ss:$48 sps:$4 sm:$0xff]  }
 0x120   : > { %4321 = vmatpush1.bf16.msra.mxu0 %v7873_v29  ;;  %4362 = vmatpush1.bf16.msra.mxu1 %v7874_v30  ;;  %v10089_v29 = vrot.slane %v10078_v21, %v10076_v18  ;;  %v7952_v30 = vld [vmem:[#allocation6 + $0x8a8] ss:$48 sps:$4 sm:$0xff]  }
 0x121   : > { %4322 = vmatprep.subr.bf16.mxu0 %v7875_v23  ;;  %4363 = vmatprep.subr.bf16.mxu1 %v7877_v31  ;;  %v7953_v23 = vld [vmem:[#allocation6 + $0x24c] ss:$48 sps:$4 sm:$0xff]  }
 0x122   : > { %v7955_v31 = vld [vmem:[#allocation6 + $0x84c] ss:$48 sps:$4 sm:$0xff]  }
 0x124   : > { %4323 = vmatpush1.bf16.msra.mxu0 %v7879_v32  ;;  %4364 = vmatpush1.bf16.msra.mxu1 %v7880_v33  ;;  %v10092_v32 = vsub.s32 0, %v10073_v15  ;;  %v10096_v33 = vrot.slane %v10078_v21, %v10081_v22 }
 0x125   : > { %4324 = vmatprep.subr.bf16.mxu0 %v7881_v34  ;;  %4365 = vmatprep.subr.bf16.mxu1 %v7883_v35 }
 0x128   : > { %4325 = vmatpush1.bf16.msra.mxu0 %v7885_v36  ;;  %4366 = vmatpush1.bf16.msra.mxu1 %v7886_v24  ;;  %v7957_v36 = vld [vmem:[#allocation6 + $0x248] ss:$48 sps:$4 sm:$0xff]  }
 0x129   : > { %4326 = vmatprep.subr.bf16.mxu0 %v7887_v49  ;;  %4367 = vmatprep.subr.bf16.mxu1 %v7889_v37  ;;  %v7958_v49 = vld [vmem:[#allocation6 + $0x848] ss:$48 sps:$4 sm:$0xff]   ;;  %v7959_v37 = vld [vmem:[#allocation6 + $0x1ec] ss:$48 sps:$4 sm:$0xff]  }
 0x12c   : > { %4327 = vmatpush1.bf16.msra.mxu0 %v7891_v38  ;;  %4368 = vmatpush1.bf16.msra.mxu1 %v7892_v39 }
 0x12d   : > { %4328 = vmatprep.subr.bf16.mxu0 %v7893_v40  ;;  %4369 = vmatprep.subr.bf16.mxu1 %v7895_v41  ;;  %v7961_v40 = vld [vmem:[#allocation6 + $0x7ec] ss:$48 sps:$4 sm:$0xff]   ;;  %v10109_v41 = vrot.slane %v10078_v21, %v10092_v32 }
 0x130   : > { %4329 = vmatpush1.bf16.msra.mxu0 %v7897_v42  ;;  %4370 = vmatpush1.bf16.msra.mxu1 %v7898_v43 }
 0x131   : > { %4330 = vmatprep.subr.bf16.mxu0 %v7899_v44  ;;  %4371 = vmatprep.subr.bf16.mxu1 %v7901_v45  ;;  %v7963_v45 = vld [vmem:[#allocation6 + $0x1e8] ss:$48 sps:$4 sm:$0xff]  }
 0x134   : > { %4331 = vmatpush2.bf16.msra.mxu0 %v7903_v46  ;;  %4372 = vmatpush2.bf16.msra.mxu1 %v7904_v47 }
 0x135   : > { %4332 = vmatprep.subr.bf16.mxu0 %v7905_v48  ;;  %4373 = vmatprep.subr.bf16.mxu1 %v7907_v50  ;;  %v7964_v48 = vld [vmem:[#allocation6 + $0x7e8] ss:$48 sps:$4 sm:$0xff]   ;;  %v7965_v50 = vld [vmem:[#allocation6 + $0x18c] ss:$48 sps:$4 sm:$0xff]  }
 0x138   : > { %4333 = vmatpush2.bf16.msra.mxu0 %v7909_v51  ;;  %4374 = vmatpush2.bf16.msra.mxu1 %v7910_v52  ;;  %v7967_v51 = vld [vmem:[#allocation6 + $0x78c] ss:$48 sps:$4 sm:$0xff]   ;;  %v7969_v52 = vld [vmem:[#allocation6 + $0x188] ss:$48 sps:$4 sm:$0xff]  }
 0x139   : > { %4334 = vmatprep.subr.bf16.mxu0 %v7911_v53  ;;  %4375 = vmatprep.subr.bf16.mxu1 %v7913_v54  ;;  %v7970_v53 = vld [vmem:[#allocation6 + $0x788] ss:$48 sps:$4 sm:$0xff]   ;;  %v7971_v54 = vld [vmem:[#allocation6 + $0x12c] ss:$48 sps:$4 sm:$0xff]  }
 0x13c   : > { %4335 = vmatpush2.bf16.msra.mxu0 %v7915_v55  ;;  %4376 = vmatpush2.bf16.msra.mxu1 %v7916_v56  ;;  %v7973_v55 = vld [vmem:[#allocation6 + $0x72c] ss:$48 sps:$4 sm:$0xff]   ;;  %v7975_v56 = vld [vmem:[#allocation6 + $0x128] ss:$48 sps:$4 sm:$0xff]  }
 0x13d   : > { %4336 = vmatprep.subr.bf16.mxu0 %v7917_v57  ;;  %4377 = vmatprep.subr.bf16.mxu1 %v7919_v58  ;;  %v10123_v57 = vsub.s32 1, %v10073_v15  ;;  %v7976_v58 = vld [vmem:[#allocation6 + $0x728] ss:$48 sps:$4 sm:$0xff]  }
 0x140   : > { %4337 = vmatpush2.bf16.msra.mxu0 %v7921_v59  ;;  %4378 = vmatpush2.bf16.msra.mxu1 %v7922_v60 }
 0x141   : > { %4338 = vmatprep.subr.bf16.mxu0 %v7923_v61  ;;  %4379 = vmatprep.subr.bf16.mxu1 %v7925_v62  ;;  %v7977_v61 = vld [vmem:[#allocation6 + $0xcc] ss:$48 sps:$4 sm:$0xff]  }
 0x142   : > { %v7979_v62 = vld [vmem:[#allocation6 + $0x6cc] ss:$48 sps:$4 sm:$0xff]  }
 0x144   : > { %4339 = vmatpush2.bf16.msra.mxu0 %v7927_v63  ;;  %4380 = vmatpush2.bf16.msra.mxu1 %v7928_v0  ;;  %v7981_v63 = vld [vmem:[#allocation6 + $0xc8] ss:$48 sps:$4 sm:$0xff]  }
 0x145   : > { %4340 = vmatprep.subr.bf16.mxu0 %v7929_v1  ;;  %4381 = vmatprep.subr.bf16.mxu1 %v7931_v2  ;;  %v10131_v2 = vrot.slane %v10078_v21, %v10123_v57 }
 0x148   : > { %4341 = vmatpush2.bf16.msra.mxu0 %v7933_v3  ;;  %4382 = vmatpush2.bf16.msra.mxu1 %v7934_v5  ;;  %v7982_v3 = vld [vmem:[#allocation6 + $0x6c8] ss:$48 sps:$4 sm:$0xff]  }
 0x149   : > { %4342 = vmatprep.subr.bf16.mxu0 %v7935_v6  ;;  %4383 = vmatprep.subr.bf16.mxu1 %v7937_v7  ;;  %v7983_v7 = vld [vmem:[#allocation6 + $0x6c] ss:$48 sps:$4 sm:$0xff]  }
 0x14c   : > { %4343 = vmatpush2.bf16.msra.mxu0 %v7939_v9  ;;  %4384 = vmatpush2.bf16.msra.mxu1 %v7940_v10 }
 0x14d   : > { %4344 = vmatprep.subr.bf16.mxu0 %v7941_v11  ;;  %4385 = vmatprep.subr.bf16.mxu1 %v7943_v12  ;;  %v7987_v11 = vld [vmem:[#allocation6 + $0x68] ss:$48 sps:$4 sm:$0xff]  }
 0x150   : > { %4345 = vmatpush2.bf16.msra.mxu0 %v7945_v13  ;;  %4386 = vmatpush2.bf16.msra.mxu1 %v7946_v14 }
 0x151   : > { %4396 = vmatprep.subr.bf16.mxu0 %v7947_v19  ;;  %4437 = vmatprep.subr.bf16.mxu1 %v7949_v20 }
 0x153   : > { %v10098_v34 = vpop.f32.mrf.mxu0  ;;  %v1659_v35 = vpop.f32.mrf.mxu1  ;;  %4347 = vmatmul.mubr.bf16.vlgmr.msra.gmra.mxu0 %v10083_v25  ;;  %4388 = vmatmul.mubr.bf16.vlgmr.msra.gmra.mxu1 %v10085_v4 }
 0x154   : > { %v10103_v24 = vadd.f32 %v1659_v35, %v10089_v29  ;;  %4397 = vmatpush1.bf16.msra.mxu0 %v7951_v26  ;;  %4438 = vmatpush1.bf16.msra.mxu1 %v7952_v30  ;;  %v7989_v26 = vld [vmem:[#allocation6 + $0xc] ss:$48 sps:$4 sm:$0xff]  }
 0x155   : > { %v10105_v38 = vpop.f32.mrf.mxu0  ;;  %v1661_v39 = vpop.f32.mrf.mxu1  ;;  %4398 = vmatprep.subr.bf16.mxu0 %v7953_v23  ;;  %4439 = vmatprep.subr.bf16.mxu1 %v7955_v31  ;;  %v7991_v30 = vld [vmem:[#allocation6 + $0x60c] ss:$48 sps:$4 sm:$0xff]   ;;  %v7993_v23 = vld [vmem:[#allocation6 + $0x8] ss:$48 sps:$4 sm:$0xff]  }
 0x156   : > { %v10112_v42 = vadd.f32 %v1661_v39, %v10096_v33  ;;  %4428 = vmatprep.mubr.bf16.mxu0 %v10065_v27  ;;  %4469 = vmatprep.mubr.bf16.mxu1 %v10067_v28  ;;  %v7994_v31 = vld [vmem:[#allocation6 + $0x608] ss:$48 sps:$4 sm:$0xff]   ;;  %v7995_v35 = vld [vmem:[#allocation6 + $0x5ac] ss:$48 sps:$4 sm:$0xff]  }
 0x157   : > { %v1610_v43 = vpop.f32.mrf.mxu0  ;;  %v1663_v44 = vpop.f32.mrf.mxu1  ;;  %v8003_v39 = vld [vmem:[#allocation6 + $0xb4c] ss:$48 sps:$4 sm:$0xff]  }
 0x158   : > { %v10117_v46 = vadd.f32 %v1610_v43, %v10109_v41  ;;  %v10120_v47 = vadd.f32 %v1663_v44, %v10089_v29  ;;  %4399 = vmatpush1.bf16.msra.mxu0 %v7957_v36  ;;  %4440 = vmatpush1.bf16.msra.mxu1 %v7958_v49  ;;  %v7997_v36 = vld [vmem:[#allocation6 + $0xbac] ss:$48 sps:$4 sm:$0xff]   ;;  %v7999_v49 = vld [vmem:[#allocation6 + $0x5a8] ss:$48 sps:$4 sm:$0xff]  }
 0x159   : > { %4400 = vmatprep.subr.bf16.mxu0 %v7959_v37  ;;  %4441 = vmatprep.subr.bf16.mxu1 %v7961_v40  ;;  %v10125_v59 = vpop.f32.mrf.mxu0  ;;  %v10127_v60 = vpop.f32.mrf.mxu1  ;;  %v8000_v37 = vld [vmem:[#allocation6 + $0xba8] ss:$48 sps:$4 sm:$0xff]   ;;  %v8007_v44 = vld [vmem:[#allocation6 + $0x4ec] ss:$48 sps:$4 sm:$0xff]  }
 0x15a   : > { %v8005_v40 = vld [vmem:[#allocation6 + $0x548] ss:$48 sps:$4 sm:$0xff]  }
 0x15b   : > { %v1616_v0 = vpop.f32.mrf.mxu0  ;;  %v1669_v1 = vpop.f32.mrf.mxu1  ;;  %v8006_v43 = vld [vmem:[#allocation6 + $0xb48] ss:$48 sps:$4 sm:$0xff]  }
 0x15c   : > { %4401 = vmatpush1.bf16.msra.mxu0 %v7963_v45  ;;  %4442 = vmatpush1.bf16.msra.mxu1 %v7964_v48  ;;  %v10134_v5 = vadd.f32 %v1616_v0, %v10109_v41  ;;  %v10137_v6 = vadd.f32 %v1669_v1, %v10089_v29  ;;  %v8009_v45 = vld [vmem:[#allocation6 + $0xaec] ss:$48 sps:$4 sm:$0xff]   ;;  %v8011_v48 = vld [vmem:[#allocation6 + $0x4e8] ss:$48 sps:$4 sm:$0xff]  }
 0x15d   : > { %4402 = vmatprep.subr.bf16.mxu0 %v7965_v50  ;;  %4443 = vmatprep.subr.bf16.mxu1 %v7967_v51  ;;  %v1618_v9 = vpop.f32.mrf.mxu0  ;;  %v1671_v10 = vpop.f32.mrf.mxu1  ;;  %v8012_v50 = vld [vmem:[#allocation6 + $0xae8] ss:$48 sps:$4 sm:$0xff]   ;;  %v8013_v51 = vld [vmem:[#allocation6 + $0x48c] ss:$48 sps:$4 sm:$0xff]  }
 0x15e   : > { %10801 = vst [vmem:[#allocation14_spill] sm:$0xff] %v10137_v6  ;;  %v10140_v12 = vadd.f32 %v1618_v9, %v10131_v2  ;;  %v10143_v13 = vadd.f32 %v1671_v10, %v10096_v33  ;;  %v8029_v0 = vld [vmem:[#allocation6 + $0x3c8] ss:$48 sps:$4 sm:$0xff]   ;;  %v8037_v10 = vld [vmem:[#allocation6 + $0x30c] ss:$48 sps:$4 sm:$0xff]  }
 0x15f   : > { %v1620_v14 = vpop.f32.mrf.mxu0  ;;  %v1673_v16 = vpop.f32.mrf.mxu1  ;;  %v8030_v1 = vld [vmem:[#allocation6 + $0x9c8] ss:$48 sps:$4 sm:$0xff]  }
 0x160   : > { %4403 = vmatpush1.bf16.msra.mxu0 %v7969_v52  ;;  %4444 = vmatpush1.bf16.msra.mxu1 %v7970_v53  ;;  %10802 = vst [vmem:[#allocation15_spill] sm:$0xff] %v10143_v13  ;;  %v10146_v19 = vadd.f32 %v1620_v14, %v10109_v41  ;;  %v10149_v20 = vadd.f32 %v1673_v16, %v10089_v29  ;;  %v8001_v29 = vld [vmem:[#allocation6 + $0x54c] ss:$48 sps:$4 sm:$0xff]   ;;  %v8017_v53 = vld [vmem:[#allocation6 + $0x488] ss:$48 sps:$4 sm:$0xff]  }
 0x161   : > { %4404 = vmatprep.subr.bf16.mxu0 %v7971_v54  ;;  %4445 = vmatprep.subr.bf16.mxu1 %v7973_v55  ;;  %v8015_v52 = vld [vmem:[#allocation6 + $0xa8c] ss:$48 sps:$4 sm:$0xff]   ;;  %v8018_v54 = vld [vmem:[#allocation6 + $0xa88] ss:$48 sps:$4 sm:$0xff]   ;;  %v8252_v13 = vld [vmem:[#allocation6 + $0x800] ss:$48 sps:$4 sm:$0xff]  }
 0x162   : > { %10803 = vst [vmem:[#allocation16_spill] sm:$0xff] %v10146_v19  ;;  %10804 = vst [vmem:[#allocation17_spill] sm:$0xff] %v10149_v20  ;;  %v8019_v55 = vld [vmem:[#allocation6 + $0x42c] ss:$48 sps:$4 sm:$0xff]   ;;  %v8036_v9 = vld [vmem:[#allocation6 + $0x968] ss:$48 sps:$4 sm:$0xff]  }
 0x163   : > { %v8041_v14 = vld [vmem:[#allocation6 + $0x308] ss:$48 sps:$4 sm:$0xff]   ;;  %v8159_v20 = vld [vmem:[#allocation6 + $0x79c] ss:$48 sps:$4 sm:$0xff]  }
 0x164   : > { %4405 = vmatpush1.bf16.msra.mxu0 %v7975_v56  ;;  %4446 = vmatpush1.bf16.msra.mxu1 %v7976_v58  ;;  %v8021_v56 = vld [vmem:[#allocation6 + $0xa2c] ss:$48 sps:$4 sm:$0xff]   ;;  %v8023_v58 = vld [vmem:[#allocation6 + $0x428] ss:$48 sps:$4 sm:$0xff]  }
 0x165   : > { %4406 = vmatprep.subr.bf16.mxu0 %v7977_v61  ;;  %4447 = vmatprep.subr.bf16.mxu1 %v7979_v62  ;;  %v8024_v61 = vld [vmem:[#allocation6 + $0xa28] ss:$48 sps:$4 sm:$0xff]   ;;  %v8025_v62 = vld [vmem:[#allocation6 + $0x3cc] ss:$48 sps:$4 sm:$0xff]  }
 0x166   : > { %v8042_v16 = vld [vmem:[#allocation6 + $0x908] ss:$48 sps:$4 sm:$0xff]  }
 0x168   : > { %4407 = vmatpush1.bf16.msra.mxu0 %v7981_v63  ;;  %4448 = vmatpush1.bf16.msra.mxu1 %v7982_v3  ;;  %v8027_v63 = vld [vmem:[#allocation6 + $0x9cc] ss:$48 sps:$4 sm:$0xff]  }
 0x169   : > { %4408 = vmatprep.subr.bf16.mxu0 %v7983_v7  ;;  %4449 = vmatprep.subr.bf16.mxu1 %v7985_v8  ;;  %v8031_v3 = vld [vmem:[#allocation6 + $0x36c] ss:$48 sps:$4 sm:$0xff]   ;;  %v8035_v8 = vld [vmem:[#allocation6 + $0x368] ss:$48 sps:$4 sm:$0xff]  }
 0x16a   : > { %v8033_v7 = vld [vmem:[#allocation6 + $0x96c] ss:$48 sps:$4 sm:$0xff]  }
 0x16c   : > { %4409 = vmatpush1.bf16.msra.mxu0 %v7987_v11  ;;  %4450 = vmatpush1.bf16.msra.mxu1 %v7988_v17  ;;  %v8039_v11 = vld [vmem:[#allocation6 + $0x90c] ss:$48 sps:$4 sm:$0xff]   ;;  %v10793_v17 = vsub.s32 6, %v10073_v15 }
 0x16d   : > { %4410 = vmatprep.subr.bf16.mxu0 %v7989_v26  ;;  %4451 = vmatprep.subr.bf16.mxu1 %v7991_v30  ;;  %v8043_v26 = vld [vmem:[#allocation6 + $0x2b4] ss:$48 sps:$4 sm:$0xff]  }
 0x16e   : > { %v8045_v30 = vld [vmem:[#allocation6 + $0x8b4] ss:$48 sps:$4 sm:$0xff]  }
 0x170   : > { %4411 = vmatpush1.bf16.msra.mxu0 %v7993_v23  ;;  %4452 = vmatpush1.bf16.msra.mxu1 %v7994_v31  ;;  %v8047_v23 = vld [vmem:[#allocation6 + $0x2b0] ss:$48 sps:$4 sm:$0xff]   ;;  %v10792_v31 = vsub.s32 7, %v10073_v15 }
 0x171   : > { %4412 = vmatprep.subr.bf16.mxu0 %v7995_v35  ;;  %4453 = vmatprep.subr.bf16.mxu1 %v7997_v36  ;;  %v10156_v35 = vrot.slane %v10078_v21, %v10793_v17  ;;  %v8048_v36 = vld [vmem:[#allocation6 + $0x8b0] ss:$48 sps:$4 sm:$0xff]  }
 0x172   : > { %v8089_v17 = vld [vmem:[#allocation6 + $0x10] ss:$48 sps:$4 sm:$0xff]  }
 0x174   : > { %4413 = vmatpush2.bf16.msra.mxu0 %v7999_v49  ;;  %4454 = vmatpush2.bf16.msra.mxu1 %v8000_v37  ;;  %v10158_v49 = vpop.f32.mrf.mxu0  ;;  %v10160_v37 = vpop.f32.mrf.mxu1 }
 0x175   : > { %4414 = vmatprep.subr.bf16.mxu0 %v8001_v29  ;;  %4455 = vmatprep.subr.bf16.mxu1 %v8003_v39  ;;  %10805 = vst [vmem:[#allocation18_spill] sm:$0xff] %v10158_v49  ;;  %10806 = vst [vmem:[#allocation19_spill] sm:$0xff] %v10160_v37  ;;  %v8049_v29 = vld [vmem:[#allocation6 + $0x254] ss:$48 sps:$4 sm:$0xff]  }
 0x176   : > { %v8051_v39 = vld [vmem:[#allocation6 + $0x854] ss:$48 sps:$4 sm:$0xff]  }
 0x178   : > { %4415 = vmatpush2.bf16.msra.mxu0 %v8005_v40  ;;  %4456 = vmatpush2.bf16.msra.mxu1 %v8006_v43  ;;  %v10795_v40 = vsub.s32 4, %v10073_v15  ;;  %v10166_v43 = vrot.slane %v10078_v21, %v10792_v31  ;;  %v8078_v31 = vld [vmem:[#allocation6 + $0x6d0] ss:$48 sps:$4 sm:$0xff]  }
 0x179   : > { %4416 = vmatprep.subr.bf16.mxu0 %v8007_v44  ;;  %4457 = vmatprep.subr.bf16.mxu1 %v8009_v45  ;;  %v8053_v44 = vld [vmem:[#allocation6 + $0x250] ss:$48 sps:$4 sm:$0xff]  }
 0x17a   : > { %v8054_v45 = vld [vmem:[#allocation6 + $0x850] ss:$48 sps:$4 sm:$0xff]  }
 0x17c   : > { %4417 = vmatpush2.bf16.msra.mxu0 %v8011_v48  ;;  %4458 = vmatpush2.bf16.msra.mxu1 %v8012_v50 }
 0x17d   : > { %4418 = vmatprep.subr.bf16.mxu0 %v8013_v51  ;;  %4459 = vmatprep.subr.bf16.mxu1 %v8015_v52  ;;  %v10794_v52 = vsub.s32 5, %v10073_v15 }
 0x180   : > { %4419 = vmatpush2.bf16.msra.mxu0 %v8017_v53  ;;  %4460 = vmatpush2.bf16.msra.mxu1 %v8018_v54 }
 0x181   : > { %4420 = vmatprep.subr.bf16.mxu0 %v8019_v55  ;;  %4461 = vmatprep.subr.bf16.mxu1 %v8021_v56  ;;  %v8055_v55 = vld [vmem:[#allocation6 + $0x1f4] ss:$48 sps:$4 sm:$0xff]  }
 0x182   : > { %v8057_v56 = vld [vmem:[#allocation6 + $0x7f4] ss:$48 sps:$4 sm:$0xff]  }
 0x184   : > { %4421 = vmatpush2.bf16.msra.mxu0 %v8023_v58  ;;  %4462 = vmatpush2.bf16.msra.mxu1 %v8024_v61  ;;  %v10181_v58 = vrot.slane %v10078_v21, %v10795_v40 }
 0x185   : > { %4422 = vmatprep.subr.bf16.mxu0 %v8025_v62  ;;  %4463 = vmatprep.subr.bf16.mxu1 %v8027_v63  ;;  %v8059_v62 = vld [vmem:[#allocation6 + $0x1f0] ss:$48 sps:$4 sm:$0xff]  }
 0x186   : > { %v8060_v63 = vld [vmem:[#allocation6 + $0x7f0] ss:$48 sps:$4 sm:$0xff]  }
 0x188   : > { %4423 = vmatpush2.bf16.msra.mxu0 %v8029_v0  ;;  %4464 = vmatpush2.bf16.msra.mxu1 %v8030_v1 }
 0x189   : > { %4424 = vmatprep.subr.bf16.mxu0 %v8031_v3  ;;  %4465 = vmatprep.subr.bf16.mxu1 %v8033_v7  ;;  %v10191_v3 = vrot.slane %v10078_v21, %v10794_v52 }
 0x18c   : > { %4425 = vmatpush2.bf16.msra.mxu0 %v8035_v8  ;;  %4466 = vmatpush2.bf16.msra.mxu1 %v8036_v9 }
 0x18d   : > { %4426 = vmatprep.subr.bf16.mxu0 %v8037_v10  ;;  %4467 = vmatprep.subr.bf16.mxu1 %v8039_v11  ;;  %v8061_v11 = vld [vmem:[#allocation6 + $0x194] ss:$48 sps:$4 sm:$0xff]  }
 0x190   : > { %4427 = vmatpush2.bf16.msra.mxu0 %v8041_v14  ;;  %4468 = vmatpush2.bf16.msra.mxu1 %v8042_v16  ;;  %v8063_v14 = vld [vmem:[#allocation6 + $0x794] ss:$48 sps:$4 sm:$0xff]  }
 0x191   : > { %4478 = vmatprep.subr.bf16.mxu0 %v8043_v26  ;;  %4519 = vmatprep.subr.bf16.mxu1 %v8045_v30  ;;  %v8065_v26 = vld [vmem:[#allocation6 + $0x190] ss:$48 sps:$4 sm:$0xff]  }
 0x192   : > { %v8066_v30 = vld [vmem:[#allocation6 + $0x790] ss:$48 sps:$4 sm:$0xff]  }
 0x193   : > { %v10168_v48 = vpop.f32.mrf.mxu0  ;;  %v1765_v50 = vpop.f32.mrf.mxu1  ;;  %4429 = vmatmul.mubr.bf16.vlgmr.msra.gmra.mxu0 %v10083_v25  ;;  %4470 = vmatmul.mubr.bf16.vlgmr.msra.gmra.mxu1 %v10085_v4 }
 0x194   : > { %v10173_v51 = vadd.f32 %v1765_v50, %v10156_v35  ;;  %4479 = vmatpush1.bf16.msra.mxu0 %v8047_v23  ;;  %4520 = vmatpush1.bf16.msra.mxu1 %v8048_v36 }
 0x195   : > { %v10176_v53 = vpop.f32.mrf.mxu0  ;;  %v1767_v54 = vpop.f32.mrf.mxu1  ;;  %4480 = vmatprep.subr.bf16.mxu0 %v8049_v29  ;;  %4521 = vmatprep.subr.bf16.mxu1 %v8051_v39 }
 0x196   : > { %v10184_v61 = vadd.f32 %v1767_v54, %v10166_v43  ;;  %4510 = vmatprep.mubr.bf16.mxu0 %v10065_v27  ;;  %4551 = vmatprep.mubr.bf16.mxu1 %v10067_v28 }
 0x197   : > { %v1716_v0 = vpop.f32.mrf.mxu0  ;;  %v1769_v1 = vpop.f32.mrf.mxu1 }
 0x198   : > { %v10194_v7 = vadd.f32 %v1716_v0, %v10181_v58  ;;  %v10197_v8 = vadd.f32 %v1769_v1, %v10156_v35  ;;  %4481 = vmatpush1.bf16.msra.mxu0 %v8053_v44  ;;  %4522 = vmatpush1.bf16.msra.mxu1 %v8054_v45  ;;  %v8067_v44 = vld [vmem:[#allocation6 + $0x134] ss:$48 sps:$4 sm:$0xff]  }
 0x199   : > { %v1718_v9 = vpop.f32.mrf.mxu0  ;;  %v1771_v10 = vpop.f32.mrf.mxu1  ;;  %4482 = vmatprep.subr.bf16.mxu0 %v8055_v55  ;;  %4523 = vmatprep.subr.bf16.mxu1 %v8057_v56  ;;  %v8069_v45 = vld [vmem:[#allocation6 + $0x734] ss:$48 sps:$4 sm:$0xff]   ;;  %v8071_v55 = vld [vmem:[#allocation6 + $0x130] ss:$48 sps:$4 sm:$0xff]  }
 0x19a   : > { %v10200_v16 = vadd.f32 %v1718_v9, %v10191_v3  ;;  %v10203_v21 = vadd.f32 %v1771_v10, %v10166_v43  ;;  %v8072_v56 = vld [vmem:[#allocation6 + $0x730] ss:$48 sps:$4 sm:$0xff]  }
 0x19b   : > { %v1722_v23 = vpop.f32.mrf.mxu0  ;;  %v1775_v36 = vpop.f32.mrf.mxu1 }
 0x19c   : > { %4483 = vmatpush1.bf16.msra.mxu0 %v8059_v62  ;;  %4524 = vmatpush1.bf16.msra.mxu1 %v8060_v63  ;;  %v10206_v29 = vadd.f32 %v1722_v23, %v10181_v58  ;;  %v10209_v39 = vadd.f32 %v1775_v36, %v10156_v35 }
 0x19d   : > { %4484 = vmatprep.subr.bf16.mxu0 %v8061_v11  ;;  %4525 = vmatprep.subr.bf16.mxu1 %v8063_v14  ;;  %v1724_v50 = vpop.f32.mrf.mxu0  ;;  %v1777_v54 = vpop.f32.mrf.mxu1  ;;  %v8073_v11 = vld [vmem:[#allocation6 + $0xd4] ss:$48 sps:$4 sm:$0xff]  }
 0x19e   : > { %10807 = vst [vmem:[#allocation20_spill] sm:$0xff] %v10206_v29  ;;  %10808 = vst [vmem:[#allocation21_spill] sm:$0xff] %v10209_v39  ;;  %v10212_v0 = vadd.f32 %v1724_v50, %v10191_v3  ;;  %v10215_v62 = vadd.f32 %v1777_v54, %v10166_v43  ;;  %v8075_v14 = vld [vmem:[#allocation6 + $0x6d4] ss:$48 sps:$4 sm:$0xff]   ;;  %v8077_v50 = vld [vmem:[#allocation6 + $0xd0] ss:$48 sps:$4 sm:$0xff]  }
 0x19f   : > { %v1726_v63 = vpop.f32.mrf.mxu0  ;;  %v1779_v1 = vpop.f32.mrf.mxu1 }
 0x1a0   : > { %10809 = vst [vmem:[#allocation22_spill] sm:$0xff] %v10212_v0  ;;  %10810 = vst [vmem:[#allocation23_spill] sm:$0xff] %v10215_v62  ;;  %4485 = vmatpush1.bf16.msra.mxu0 %v8065_v26  ;;  %4526 = vmatpush1.bf16.msra.mxu1 %v8066_v30  ;;  %v10218_v9 = vadd.f32 %v1726_v63, %v10181_v58  ;;  %v10221_v10 = vadd.f32 %v1779_v1, %v10156_v35  ;;  %v8079_v35 = vld [vmem:[#allocation6 + $0x74] ss:$48 sps:$4 sm:$0xff]  }
 0x1a1   : > { %4486 = vmatprep.subr.bf16.mxu0 %v8067_v44  ;;  %4527 = vmatprep.subr.bf16.mxu1 %v8069_v45  ;;  %v1728_v23 = vpop.f32.mrf.mxu0  ;;  %v1781_v36 = vpop.f32.mrf.mxu1  ;;  %v8081_v30 = vld [vmem:[#allocation6 + $0x674] ss:$48 sps:$4 sm:$0xff]   ;;  %v8083_v44 = vld [vmem:[#allocation6 + $0x70] ss:$48 sps:$4 sm:$0xff]  }
 0x1a2   : > { %10811 = vst [vmem:[#allocation24_spill] sm:$0xff] %v10218_v9  ;;  %10812 = vst [vmem:[#allocation25_spill] sm:$0xff] %v10221_v10  ;;  %v10224_v54 = vadd.f32 %v1728_v23, %v10191_v3  ;;  %v10227_v26 = vadd.f32 %v1781_v36, %v10166_v43  ;;  %v8084_v45 = vld [vmem:[#allocation6 + $0x670] ss:$48 sps:$4 sm:$0xff]   ;;  %v8085_v63 = vld [vmem:[#allocation6 + $0x14] ss:$48 sps:$4 sm:$0xff]  }
 0x1a3   : > { %v8087_v1 = vld [vmem:[#allocation6 + $0x614] ss:$48 sps:$4 sm:$0xff]   ;;  %v8090_v23 = vld [vmem:[#allocation6 + $0x610] ss:$48 sps:$4 sm:$0xff]   ;;  %v8157_v9 = vld [vmem:[#allocation6 + $0x19c] ss:$48 sps:$4 sm:$0xff]  }
 0x1a4   : > { %10813 = vst [vmem:[#allocation26_spill] sm:$0xff] %v10224_v54  ;;  %10814 = vst [vmem:[#allocation27_spill] sm:$0xff] %v10227_v26  ;;  %4487 = vmatpush1.bf16.msra.mxu0 %v8071_v55  ;;  %4528 = vmatpush1.bf16.msra.mxu1 %v8072_v56  ;;  %v8091_v43 = vld [vmem:[#allocation6 + $0x5b4] ss:$48 sps:$4 sm:$0xff]   ;;  %v8095_v56 = vld [vmem:[#allocation6 + $0x5b0] ss:$48 sps:$4 sm:$0xff]  }
 0x1a5   : > { %4488 = vmatprep.subr.bf16.mxu0 %v8073_v11  ;;  %4529 = vmatprep.subr.bf16.mxu1 %v8075_v14  ;;  %v8093_v55 = vld [vmem:[#allocation6 + $0xbb4] ss:$48 sps:$4 sm:$0xff]   ;;  %v8096_v11 = vld [vmem:[#allocation6 + $0xbb0] ss:$48 sps:$4 sm:$0xff]   ;;  %v8155_v26 = vld [vmem:[#allocation6 + $0x1f8] ss:$48 sps:$4 sm:$0xff]  }
 0x1a6   : > { %v8097_v14 = vld [vmem:[#allocation6 + $0x554] ss:$48 sps:$4 sm:$0xff]   ;;  %v8101_v36 = vld [vmem:[#allocation6 + $0x550] ss:$48 sps:$4 sm:$0xff]  }
 0x1a8   : > { %4489 = vmatpush1.bf16.msra.mxu0 %v8077_v50  ;;  %4530 = vmatpush1.bf16.msra.mxu1 %v8078_v31  ;;  %v8099_v31 = vld [vmem:[#allocation6 + $0xb54] ss:$48 sps:$4 sm:$0xff]   ;;  %v8102_v50 = vld [vmem:[#allocation6 + $0xb50] ss:$48 sps:$4 sm:$0xff]  }
 0x1a9   : > { %4490 = vmatprep.subr.bf16.mxu0 %v8079_v35  ;;  %4531 = vmatprep.subr.bf16.mxu1 %v8081_v30  ;;  %v8103_v35 = vld [vmem:[#allocation6 + $0x4f4] ss:$48 sps:$4 sm:$0xff]  }
 0x1aa   : > { %v8105_v30 = vld [vmem:[#allocation6 + $0xaf4] ss:$48 sps:$4 sm:$0xff]  }
 0x1ac   : > { %4491 = vmatpush1.bf16.msra.mxu0 %v8083_v44  ;;  %4532 = vmatpush1.bf16.msra.mxu1 %v8084_v45  ;;  %v8107_v44 = vld [vmem:[#allocation6 + $0x4f0] ss:$48 sps:$4 sm:$0xff]  }
 0x1ad   : > { %4492 = vmatprep.subr.bf16.mxu0 %v8085_v63  ;;  %4533 = vmatprep.subr.bf16.mxu1 %v8087_v1  ;;  %v8108_v45 = vld [vmem:[#allocation6 + $0xaf0] ss:$48 sps:$4 sm:$0xff]   ;;  %v8111_v63 = vld [vmem:[#allocation6 + $0xa94] ss:$48 sps:$4 sm:$0xff]  }
 0x1ae   : > { %v8113_v1 = vld [vmem:[#allocation6 + $0x490] ss:$48 sps:$4 sm:$0xff]  }
 0x1b0   : > { %4493 = vmatpush1.bf16.msra.mxu0 %v8089_v17  ;;  %4534 = vmatpush1.bf16.msra.mxu1 %v8090_v23  ;;  %v8109_v17 = vld [vmem:[#allocation6 + $0x494] ss:$48 sps:$4 sm:$0xff]   ;;  %v8114_v23 = vld [vmem:[#allocation6 + $0xa90] ss:$48 sps:$4 sm:$0xff]  }
 0x1b1   : > { %4494 = vmatprep.subr.bf16.mxu0 %v8091_v43  ;;  %4535 = vmatprep.subr.bf16.mxu1 %v8093_v55  ;;  %v8115_v43 = vld [vmem:[#allocation6 + $0x434] ss:$48 sps:$4 sm:$0xff]  }
 0x1b2   : > { %v8117_v55 = vld [vmem:[#allocation6 + $0xa34] ss:$48 sps:$4 sm:$0xff]  }
 0x1b4   : > { %4495 = vmatpush2.bf16.msra.mxu0 %v8095_v56  ;;  %4536 = vmatpush2.bf16.msra.mxu1 %v8096_v11  ;;  %v8119_v56 = vld [vmem:[#allocation6 + $0x430] ss:$48 sps:$4 sm:$0xff]  }
 0x1b5   : > { %4496 = vmatprep.subr.bf16.mxu0 %v8097_v14  ;;  %4537 = vmatprep.subr.bf16.mxu1 %v8099_v31  ;;  %v8120_v11 = vld [vmem:[#allocation6 + $0xa30] ss:$48 sps:$4 sm:$0xff]   ;;  %v8121_v14 = vld [vmem:[#allocation6 + $0x3d4] ss:$48 sps:$4 sm:$0xff]  }
 0x1b6   : > { %v8123_v31 = vld [vmem:[#allocation6 + $0x9d4] ss:$48 sps:$4 sm:$0xff]  }
 0x1b8   : > { %4497 = vmatpush2.bf16.msra.mxu0 %v8101_v36  ;;  %4538 = vmatpush2.bf16.msra.mxu1 %v8102_v50  ;;  %v8125_v36 = vld [vmem:[#allocation6 + $0x3d0] ss:$48 sps:$4 sm:$0xff]  }
 0x1b9   : > { %4498 = vmatprep.subr.bf16.mxu0 %v8103_v35  ;;  %4539 = vmatprep.subr.bf16.mxu1 %v8105_v30  ;;  %v8126_v50 = vld [vmem:[#allocation6 + $0x9d0] ss:$48 sps:$4 sm:$0xff]   ;;  %v8127_v35 = vld [vmem:[#allocation6 + $0x374] ss:$48 sps:$4 sm:$0xff]  }
 0x1ba   : > { %v8129_v30 = vld [vmem:[#allocation6 + $0x974] ss:$48 sps:$4 sm:$0xff]  }
 0x1bc   : > { %4499 = vmatpush2.bf16.msra.mxu0 %v8107_v44  ;;  %4540 = vmatpush2.bf16.msra.mxu1 %v8108_v45  ;;  %v8131_v44 = vld [vmem:[#allocation6 + $0x370] ss:$48 sps:$4 sm:$0xff]  }
 0x1bd   : > { %4500 = vmatprep.subr.bf16.mxu0 %v8109_v17  ;;  %4541 = vmatprep.subr.bf16.mxu1 %v8111_v63  ;;  %v8132_v45 = vld [vmem:[#allocation6 + $0x970] ss:$48 sps:$4 sm:$0xff]   ;;  %v8133_v17 = vld [vmem:[#allocation6 + $0x314] ss:$48 sps:$4 sm:$0xff]  }
 0x1be   : > { %v8135_v63 = vld [vmem:[#allocation6 + $0x914] ss:$48 sps:$4 sm:$0xff]  }
 0x1c0   : > { %4501 = vmatpush2.bf16.msra.mxu0 %v8113_v1  ;;  %4542 = vmatpush2.bf16.msra.mxu1 %v8114_v23  ;;  %v8137_v1 = vld [vmem:[#allocation6 + $0x310] ss:$48 sps:$4 sm:$0xff]  }
 0x1c1   : > { %4502 = vmatprep.subr.bf16.mxu0 %v8115_v43  ;;  %4543 = vmatprep.subr.bf16.mxu1 %v8117_v55  ;;  %v8138_v23 = vld [vmem:[#allocation6 + $0x910] ss:$48 sps:$4 sm:$0xff]   ;;  %v8139_v43 = vld [vmem:[#allocation6 + $0x2bc] ss:$48 sps:$4 sm:$0xff]  }
 0x1c2   : > { %v8141_v55 = vld [vmem:[#allocation6 + $0x8bc] ss:$48 sps:$4 sm:$0xff]  }
 0x1c4   : > { %4503 = vmatpush2.bf16.msra.mxu0 %v8119_v56  ;;  %4544 = vmatpush2.bf16.msra.mxu1 %v8120_v11  ;;  %v529_v56 = vld [vmem:[#allocation8 + $0x8] sm:$0xf] }
 0x1c5   : > { %4504 = vmatprep.subr.bf16.mxu0 %v8121_v14  ;;  %4545 = vmatprep.subr.bf16.mxu1 %v8123_v31  ;;  %v10230_v11 = vrot.slane %v529_v56, %v10076_v18  ;;  %v8143_v14 = vld [vmem:[#allocation6 + $0x2b8] ss:$48 sps:$4 sm:$0xff]   ;;  %v10245_v52 = vrot.slane %v529_v56, %v10092_v32 }
 0x1c6   : > { %v8144_v31 = vld [vmem:[#allocation6 + $0x8b8] ss:$48 sps:$4 sm:$0xff]  }
 0x1c8   : > { %4505 = vmatpush2.bf16.msra.mxu0 %v8125_v36  ;;  %4546 = vmatpush2.bf16.msra.mxu1 %v8126_v50  ;;  %v8145_v36 = vld [vmem:[#allocation6 + $0x25c] ss:$48 sps:$4 sm:$0xff]  }
 0x1c9   : > { %4506 = vmatprep.subr.bf16.mxu0 %v8127_v35  ;;  %4547 = vmatprep.subr.bf16.mxu1 %v8129_v30  ;;  %v8147_v50 = vld [vmem:[#allocation6 + $0x85c] ss:$48 sps:$4 sm:$0xff]   ;;  %v10233_v35 = vrot.slane %v529_v56, %v10081_v22 }
 0x1cc   : > { %4507 = vmatpush2.bf16.msra.mxu0 %v8131_v44  ;;  %4548 = vmatpush2.bf16.msra.mxu1 %v8132_v45 }
 0x1cd   : > { %4508 = vmatprep.subr.bf16.mxu0 %v8133_v17  ;;  %4549 = vmatprep.subr.bf16.mxu1 %v8135_v63  ;;  %v8149_v17 = vld [vmem:[#allocation6 + $0x258] ss:$48 sps:$4 sm:$0xff]  }
 0x1ce   : > { %v8150_v63 = vld [vmem:[#allocation6 + $0x858] ss:$48 sps:$4 sm:$0xff]  }
 0x1d0   : > { %4509 = vmatpush2.bf16.msra.mxu0 %v8137_v1  ;;  %4550 = vmatpush2.bf16.msra.mxu1 %v8138_v23 }
 0x1d1   : > { %4560 = vmatprep.subr.bf16.mxu0 %v8139_v43  ;;  %4601 = vmatprep.subr.bf16.mxu1 %v8141_v55  ;;  %v8151_v43 = vld [vmem:[#allocation6 + $0x1fc] ss:$48 sps:$4 sm:$0xff]  }
 0x1d2   : > { %v8153_v55 = vld [vmem:[#allocation6 + $0x7fc] ss:$48 sps:$4 sm:$0xff]  }
 0x1d3   : > { %v10235_v30 = vpop.f32.mrf.mxu0  ;;  %v1871_v44 = vpop.f32.mrf.mxu1  ;;  %4511 = vmatmul.mubr.bf16.vlgmr.msra.gmra.mxu0 %v10083_v25  ;;  %4552 = vmatmul.mubr.bf16.vlgmr.msra.gmra.mxu1 %v10085_v4 }
 0x1d4   : > { %v10240_v45 = vadd.f32 %v1871_v44, %v10230_v11  ;;  %4561 = vmatpush1.bf16.msra.mxu0 %v8143_v14  ;;  %4602 = vmatpush1.bf16.msra.mxu1 %v8144_v31  ;;  %v10253_v44 = vrot.slane %v529_v56, %v10123_v57 }
 0x1d5   : > { %v10242_v1 = vpop.f32.mrf.mxu0  ;;  %v1873_v23 = vpop.f32.mrf.mxu1  ;;  %4562 = vmatprep.subr.bf16.mxu0 %v8145_v36  ;;  %4603 = vmatprep.subr.bf16.mxu1 %v8147_v50 }
 0x1d6   : > { %v10248_v40 = vadd.f32 %v1873_v23, %v10233_v35  ;;  %4592 = vmatprep.mubr.bf16.mxu0 %v10065_v27  ;;  %4633 = vmatprep.mubr.bf16.mxu1 %v10067_v28  ;;  %v8156_v23 = vld [vmem:[#allocation6 + $0x7f8] ss:$48 sps:$4 sm:$0xff]  }
 0x1d7   : > { %v1822_v14 = vpop.f32.mrf.mxu0  ;;  %v1875_v31 = vpop.f32.mrf.mxu1 }
 0x1d8   : > { %v10256_v36 = vadd.f32 %v1822_v14, %v10245_v52  ;;  %v10259_v50 = vadd.f32 %v1875_v31, %v10230_v11  ;;  %4563 = vmatpush1.bf16.msra.mxu0 %v8149_v17  ;;  %4604 = vmatpush1.bf16.msra.mxu1 %v8150_v63  ;;  %v8161_v17 = vld [vmem:[#allocation6 + $0x198] ss:$48 sps:$4 sm:$0xff]  }
 0x1d9   : > { %v1824_v10 = vpop.f32.mrf.mxu0  ;;  %v1877_v54 = vpop.f32.mrf.mxu1  ;;  %4564 = vmatprep.subr.bf16.mxu0 %v8151_v43  ;;  %4605 = vmatprep.subr.bf16.mxu1 %v8153_v55  ;;  %v8162_v63 = vld [vmem:[#allocation6 + $0x798] ss:$48 sps:$4 sm:$0xff]   ;;  %v8163_v55 = vld [vmem:[#allocation6 + $0x13c] ss:$48 sps:$4 sm:$0xff]  }
 0x1da   : > { %v10262_v37 = vadd.f32 %v1824_v10, %v10253_v44  ;;  %v10265_v56 = vadd.f32 %v1877_v54, %v10233_v35  ;;  %v8165_v10 = vld [vmem:[#allocation6 + $0x73c] ss:$48 sps:$4 sm:$0xff]  }
 0x1db   : > { %v1828_v14 = vpop.f32.mrf.mxu0  ;;  %v1881_v19 = vpop.f32.mrf.mxu1 }
 0x1dc   : > { %4565 = vmatpush1.bf16.msra.mxu0 %v8155_v26  ;;  %4606 = vmatpush1.bf16.msra.mxu1 %v8156_v23  ;;  %v10268_v31 = vadd.f32 %v1828_v14, %v10245_v52  ;;  %v10271_v43 = vadd.f32 %v1881_v19, %v10230_v11  ;;  %v8167_v14 = vld [vmem:[#allocation6 + $0x138] ss:$48 sps:$4 sm:$0xff]  }
 0x1dd   : > { %4566 = vmatprep.subr.bf16.mxu0 %v8157_v9  ;;  %4607 = vmatprep.subr.bf16.mxu1 %v8159_v20  ;;  %v1830_v49 = vpop.f32.mrf.mxu0  ;;  %v1883_v62 = vpop.f32.mrf.mxu1  ;;  %v8169_v9 = vld [vmem:[#allocation6 + $0xdc] ss:$48 sps:$4 sm:$0xff]  }
 0x1de   : > { %10815 = vst [vmem:[#allocation28_spill] sm:$0xff] %v10268_v31  ;;  %10816 = vst [vmem:[#allocation29_spill] sm:$0xff] %v10271_v43  ;;  %v10274_v54 = vadd.f32 %v1830_v49, %v10253_v44  ;;  %v10277_v26 = vadd.f32 %v1883_v62, %v10233_v35  ;;  %v8168_v31 = vld [vmem:[#allocation6 + $0x738] ss:$48 sps:$4 sm:$0xff]   ;;  %v8171_v49 = vld [vmem:[#allocation6 + $0x6dc] ss:$48 sps:$4 sm:$0xff]  }
 0x1df   : > { %v1832_v23 = vpop.f32.mrf.mxu0  ;;  %v1885_v39 = vpop.f32.mrf.mxu1 }
 0x1e0   : > { %10817 = vst [vmem:[#allocation30_spill] sm:$0xff] %v10274_v54  ;;  %10818 = vst [vmem:[#allocation31_spill] sm:$0xff] %v10277_v26  ;;  %4567 = vmatpush1.bf16.msra.mxu0 %v8161_v17  ;;  %4608 = vmatpush1.bf16.msra.mxu1 %v8162_v63  ;;  %v10280_v19 = vadd.f32 %v1832_v23, %v10245_v52  ;;  %v10283_v20 = vadd.f32 %v1885_v39, %v10230_v11  ;;  %v8173_v63 = vld [vmem:[#allocation6 + $0xd8] ss:$48 sps:$4 sm:$0xff]   ;;  %v8175_v39 = vld [vmem:[#allocation6 + $0x7c] ss:$48 sps:$4 sm:$0xff]  }
 0x1e1   : > { %4568 = vmatprep.subr.bf16.mxu0 %v8163_v55  ;;  %4609 = vmatprep.subr.bf16.mxu1 %v8165_v10  ;;  %v1834_v43 = vpop.f32.mrf.mxu0  ;;  %v1887_v54 = vpop.f32.mrf.mxu1  ;;  %v8174_v23 = vld [vmem:[#allocation6 + $0x6d8] ss:$48 sps:$4 sm:$0xff]   ;;  %v8177_v11 = vld [vmem:[#allocation6 + $0x67c] ss:$48 sps:$4 sm:$0xff]  }
 0x1e2   : > { %10819 = vst [vmem:[#allocation32_spill] sm:$0xff] %v10280_v19  ;;  %10820 = vst [vmem:[#allocation33_spill] sm:$0xff] %v10283_v20  ;;  %v10286_v62 = vadd.f32 %v1834_v43, %v10253_v44  ;;  %v10289_v17 = vadd.f32 %v1887_v54, %v10233_v35  ;;  %v8179_v55 = vld [vmem:[#allocation6 + $0x78] ss:$48 sps:$4 sm:$0xff]   ;;  %v8181_v20 = vld [vmem:[#allocation6 + $0x1c] ss:$48 sps:$4 sm:$0xff]   ;;  %v1607_v19 = vadd.f32 %v10098_v34, %v10109_v41 }
 0x1e3   : > { %v8180_v10 = vld [vmem:[#allocation6 + $0x678] ss:$48 sps:$4 sm:$0xff]   ;;  %v8183_v43 = vld [vmem:[#allocation6 + $0x61c] ss:$48 sps:$4 sm:$0xff]  }
 0x1e4   : > { %10821 = vst [vmem:[#allocation34_spill] sm:$0xff] %v10286_v62  ;;  %10822 = vst [vmem:[#allocation35_spill] sm:$0xff] %v10289_v17  ;;  %4569 = vmatpush1.bf16.msra.mxu0 %v8167_v14  ;;  %4610 = vmatpush1.bf16.msra.mxu1 %v8168_v31  ;;  %v8185_v35 = vld [vmem:[#allocation6 + $0x18] ss:$48 sps:$4 sm:$0xff]   ;;  %v8187_v31 = vld [vmem:[#allocation6 + $0x5bc] ss:$48 sps:$4 sm:$0xff]  }
 0x1e5   : > { %4570 = vmatprep.subr.bf16.mxu0 %v8169_v9  ;;  %4611 = vmatprep.subr.bf16.mxu1 %v8171_v49  ;;  %v8186_v54 = vld [vmem:[#allocation6 + $0x618] ss:$48 sps:$4 sm:$0xff]   ;;  %v8189_v14 = vld [vmem:[#allocation6 + $0xbbc] ss:$48 sps:$4 sm:$0xff]   ;;  %v8247_v17 = vld [vmem:[#allocation6 + $0x204] ss:$48 sps:$4 sm:$0xff]  }
 0x1e6   : > { %v8191_v9 = vld [vmem:[#allocation6 + $0x5b8] ss:$48 sps:$4 sm:$0xff]   ;;  %v8249_v62 = vld [vmem:[#allocation6 + $0x804] ss:$48 sps:$4 sm:$0xff]  }
 0x1e7   : > { %v8192_v49 = vld [vmem:[#allocation6 + $0xbb8] ss:$48 sps:$4 sm:$0xff]  }
 0x1e8   : > { %4571 = vmatpush1.bf16.msra.mxu0 %v8173_v63  ;;  %4612 = vmatpush1.bf16.msra.mxu1 %v8174_v23  ;;  %v8193_v63 = vld [vmem:[#allocation6 + $0x55c] ss:$48 sps:$4 sm:$0xff]  }
 0x1e9   : > { %4572 = vmatprep.subr.bf16.mxu0 %v8175_v39  ;;  %4613 = vmatprep.subr.bf16.mxu1 %v8177_v11  ;;  %v8195_v23 = vld [vmem:[#allocation6 + $0xb5c] ss:$48 sps:$4 sm:$0xff]   ;;  %v8197_v39 = vld [vmem:[#allocation6 + $0x558] ss:$48 sps:$4 sm:$0xff]  }
 0x1ea   : > { %v8198_v11 = vld [vmem:[#allocation6 + $0xb58] ss:$48 sps:$4 sm:$0xff]  }
 0x1ec   : > { %4573 = vmatpush1.bf16.msra.mxu0 %v8179_v55  ;;  %4614 = vmatpush1.bf16.msra.mxu1 %v8180_v10  ;;  %v8199_v55 = vld [vmem:[#allocation6 + $0x4fc] ss:$48 sps:$4 sm:$0xff]  }
 0x1ed   : > { %4574 = vmatprep.subr.bf16.mxu0 %v8181_v20  ;;  %4615 = vmatprep.subr.bf16.mxu1 %v8183_v43  ;;  %v8201_v10 = vld [vmem:[#allocation6 + $0xafc] ss:$48 sps:$4 sm:$0xff]   ;;  %v8203_v20 = vld [vmem:[#allocation6 + $0x4f8] ss:$48 sps:$4 sm:$0xff]  }
 0x1ee   : > { %v8204_v43 = vld [vmem:[#allocation6 + $0xaf8] ss:$48 sps:$4 sm:$0xff]  }
 0x1f0   : > { %4575 = vmatpush1.bf16.msra.mxu0 %v8185_v35  ;;  %4616 = vmatpush1.bf16.msra.mxu1 %v8186_v54  ;;  %v8205_v35 = vld [vmem:[#allocation6 + $0x49c] ss:$48 sps:$4 sm:$0xff]  }
 0x1f1   : > { %4576 = vmatprep.subr.bf16.mxu0 %v8187_v31  ;;  %4617 = vmatprep.subr.bf16.mxu1 %v8189_v14  ;;  %v8207_v54 = vld [vmem:[#allocation6 + $0xa9c] ss:$48 sps:$4 sm:$0xff]   ;;  %v8209_v31 = vld [vmem:[#allocation6 + $0x498] ss:$48 sps:$4 sm:$0xff]  }
 0x1f2   : > { %v8210_v14 = vld [vmem:[#allocation6 + $0xa98] ss:$48 sps:$4 sm:$0xff]  }
 0x1f4   : > { %4577 = vmatpush2.bf16.msra.mxu0 %v8191_v9  ;;  %4618 = vmatpush2.bf16.msra.mxu1 %v8192_v49  ;;  %v8211_v9 = vld [vmem:[#allocation6 + $0x43c] ss:$48 sps:$4 sm:$0xff]  }
 0x1f5   : > { %4578 = vmatprep.subr.bf16.mxu0 %v8193_v63  ;;  %4619 = vmatprep.subr.bf16.mxu1 %v8195_v23  ;;  %v8213_v49 = vld [vmem:[#allocation6 + $0xa3c] ss:$48 sps:$4 sm:$0xff]   ;;  %v8215_v63 = vld [vmem:[#allocation6 + $0x438] ss:$48 sps:$4 sm:$0xff]  }
 0x1f6   : > { %v8216_v23 = vld [vmem:[#allocation6 + $0xa38] ss:$48 sps:$4 sm:$0xff]  }
 0x1f8   : > { %4579 = vmatpush2.bf16.msra.mxu0 %v8197_v39  ;;  %4620 = vmatpush2.bf16.msra.mxu1 %v8198_v11  ;;  %v8217_v39 = vld [vmem:[#allocation6 + $0x3dc] ss:$48 sps:$4 sm:$0xff]  }
 0x1f9   : > { %4580 = vmatprep.subr.bf16.mxu0 %v8199_v55  ;;  %4621 = vmatprep.subr.bf16.mxu1 %v8201_v10  ;;  %v8219_v11 = vld [vmem:[#allocation6 + $0x9dc] ss:$48 sps:$4 sm:$0xff]   ;;  %v8221_v55 = vld [vmem:[#allocation6 + $0x3d8] ss:$48 sps:$4 sm:$0xff]  }
 0x1fa   : > { %v8222_v10 = vld [vmem:[#allocation6 + $0x9d8] ss:$48 sps:$4 sm:$0xff]  }
 0x1fc   : > { %4581 = vmatpush2.bf16.msra.mxu0 %v8203_v20  ;;  %4622 = vmatpush2.bf16.msra.mxu1 %v8204_v43  ;;  %v8223_v20 = vld [vmem:[#allocation6 + $0x37c] ss:$48 sps:$4 sm:$0xff]  }
 0x1fd   : > { %4582 = vmatprep.subr.bf16.mxu0 %v8205_v35  ;;  %4623 = vmatprep.subr.bf16.mxu1 %v8207_v54  ;;  %v8225_v43 = vld [vmem:[#allocation6 + $0x97c] ss:$48 sps:$4 sm:$0xff]   ;;  %v8227_v35 = vld [vmem:[#allocation6 + $0x378] ss:$48 sps:$4 sm:$0xff]  }
 0x1fe   : > { %v8228_v54 = vld [vmem:[#allocation6 + $0x978] ss:$48 sps:$4 sm:$0xff]  }
 0x200   : > { %4583 = vmatpush2.bf16.msra.mxu0 %v8209_v31  ;;  %4624 = vmatpush2.bf16.msra.mxu1 %v8210_v14  ;;  %v8229_v31 = vld [vmem:[#allocation6 + $0x31c] ss:$48 sps:$4 sm:$0xff]  }
 0x201   : > { %4584 = vmatprep.subr.bf16.mxu0 %v8211_v9  ;;  %4625 = vmatprep.subr.bf16.mxu1 %v8213_v49  ;;  %v8231_v14 = vld [vmem:[#allocation6 + $0x91c] ss:$48 sps:$4 sm:$0xff]   ;;  %v8233_v9 = vld [vmem:[#allocation6 + $0x318] ss:$48 sps:$4 sm:$0xff]  }
 0x202   : > { %v8234_v49 = vld [vmem:[#allocation6 + $0x918] ss:$48 sps:$4 sm:$0xff]  }
 0x204   : > { %4585 = vmatpush2.bf16.msra.mxu0 %v8215_v63  ;;  %4626 = vmatpush2.bf16.msra.mxu1 %v8216_v23  ;;  %v10291_v63 = vld [vmem:[#allocation9] sm:$0xff]  ;;  %v8235_v23 = vld [vmem:[#allocation6 + $0x2c4] ss:$48 sps:$4 sm:$0xff]  }
 0x205   : > { %4586 = vmatprep.subr.bf16.mxu0 %v8217_v39  ;;  %4627 = vmatprep.subr.bf16.mxu1 %v8219_v11  ;;  %v8237_v39 = vld [vmem:[#allocation6 + $0x8c4] ss:$48 sps:$4 sm:$0xff]   ;;  %v10295_v11 = vrot.slane %v10291_v63, %v10092_v32 }
 0x208   : > { %4587 = vmatpush2.bf16.msra.mxu0 %v8221_v55  ;;  %4628 = vmatpush2.bf16.msra.mxu1 %v8222_v10  ;;  %v8239_v55 = vld [vmem:[#allocation6 + $0x2c0] ss:$48 sps:$4 sm:$0xff]  }
 0x209   : > { %4588 = vmatprep.subr.bf16.mxu0 %v8223_v20  ;;  %4629 = vmatprep.subr.bf16.mxu1 %v8225_v43  ;;  %v8240_v10 = vld [vmem:[#allocation6 + $0x8c0] ss:$48 sps:$4 sm:$0xff]   ;;  %v8241_v20 = vld [vmem:[#allocation6 + $0x264] ss:$48 sps:$4 sm:$0xff]  }
 0x20a   : > { %v8243_v43 = vld [vmem:[#allocation6 + $0x864] ss:$48 sps:$4 sm:$0xff]  }
 0x20c   : > { %4589 = vmatpush2.bf16.msra.mxu0 %v8227_v35  ;;  %4630 = vmatpush2.bf16.msra.mxu1 %v8228_v54  ;;  %v10299_v35 = vrot.slane %v10291_v63, %v10123_v57 }
 0x20d   : > { %4590 = vmatprep.subr.bf16.mxu0 %v8229_v31  ;;  %4631 = vmatprep.subr.bf16.mxu1 %v8231_v14 }
 0x210   : > { %4591 = vmatpush2.bf16.msra.mxu0 %v8233_v9  ;;  %4632 = vmatpush2.bf16.msra.mxu1 %v8234_v49  ;;  %v8245_v9 = vld [vmem:[#allocation6 + $0x260] ss:$48 sps:$4 sm:$0xff]  }
 0x211   : > { %4642 = vmatprep.subr.bf16.mxu0 %v8235_v23  ;;  %4683 = vmatprep.subr.bf16.mxu1 %v8237_v39  ;;  %v8246_v49 = vld [vmem:[#allocation6 + $0x860] ss:$48 sps:$4 sm:$0xff]  }
 0x213   : > { %v4348_v54 = vpop.f32.mrf.mxu0  ;;  %v4389_v31 = vpop.f32.mrf.mxu1  ;;  %4593 = vmatmul.mubr.bf16.vlgmr.msra.gmra.mxu0 %v10083_v25  ;;  %4634 = vmatmul.mubr.bf16.vlgmr.msra.gmra.mxu1 %v10085_v4 }
 0x214   : > { %v4349_v14 = vadd.f32 %v4348_v54, %v10295_v11  ;;  %4643 = vmatpush1.bf16.msra.mxu0 %v8239_v55  ;;  %4684 = vmatpush1.bf16.msra.mxu1 %v8240_v10  ;;  %v1609_v54 = vadd.f32 %v10105_v38, %v10131_v2  ;;  %v8259_v38 = vld [vmem:[#allocation6 + $0x144] ss:$48 sps:$4 sm:$0xff]  }
 0x215   : > { %v4350_v23 = vpop.f32.mrf.mxu0  ;;  %v4391_v39 = vpop.f32.mrf.mxu1  ;;  %4644 = vmatprep.subr.bf16.mxu0 %v8241_v20  ;;  %4685 = vmatprep.subr.bf16.mxu1 %v8243_v43  ;;  %v8251_v43 = vld [vmem:[#allocation6 + $0x200] ss:$48 sps:$4 sm:$0xff]  }
 0x216   : > { %v4390_v26 = vadd.f32 %v4389_v31, %v4349_v14  ;;  %v4351_v0 = vadd.f32 %v4350_v23, %v10299_v35  ;;  %4674 = vmatprep.mubr.bf16.mxu0 %v10065_v27  ;;  %4715 = vmatprep.mubr.bf16.mxu1 %v10067_v28  ;;  %v8253_v31 = vld [vmem:[#allocation6 + $0x1a4] ss:$48 sps:$4 sm:$0xff]  }
 0x217   : > { %v4352_v55 = vpop.f32.mrf.mxu0  ;;  %v4393_v10 = vpop.f32.mrf.mxu1  ;;  %v8255_v14 = vld [vmem:[#allocation6 + $0x7a4] ss:$48 sps:$4 sm:$0xff]  }
 0x218   : > { %v10311_v29 = vadd.f32 %v4390_v26, %v1607_v19  ;;  %v4392_v20 = vadd.f32 %v4391_v39, %v4351_v0  ;;  %4645 = vmatpush1.bf16.msra.mxu0 %v8245_v9  ;;  %4686 = vmatpush1.bf16.msra.mxu1 %v8246_v49  ;;  %v8257_v55 = vld [vmem:[#allocation6 + $0x1a0] ss:$48 sps:$4 sm:$0xff]   ;;  %v8261_v0 = vld [vmem:[#allocation6 + $0x744] ss:$48 sps:$4 sm:$0xff]  }
 0x219   : > { %v4353_v34 = vpop.f32.mrf.mxu0  ;;  %v4394_v41 = vpop.f32.mrf.mxu1  ;;  %4646 = vmatprep.subr.bf16.mxu0 %v8247_v17  ;;  %4687 = vmatprep.subr.bf16.mxu1 %v8249_v62  ;;  %v8258_v10 = vld [vmem:[#allocation6 + $0x7a0] ss:$48 sps:$4 sm:$0xff]   ;;  %v8265_v17 = vld [vmem:[#allocation6 + $0xe4] ss:$48 sps:$4 sm:$0xff]  }
 0x21a   : > { %v10313_v23 = vadd.f32 %v4392_v20, %v1609_v54  ;;  %v8263_v26 = vld [vmem:[#allocation6 + $0x140] ss:$48 sps:$4 sm:$0xff]   ;;  %v8267_v62 = vld [vmem:[#allocation6 + $0x6e4] ss:$48 sps:$4 sm:$0xff]  }
 0x21b   : > { %v8264_v19 = vld [vmem:[#allocation6 + $0x740] ss:$48 sps:$4 sm:$0xff]   ;;  %v8273_v39 = vld [vmem:[#allocation6 + $0x684] ss:$48 sps:$4 sm:$0xff]  }
 0x21c   : > { %4647 = vmatpush1.bf16.msra.mxu0 %v8251_v43  ;;  %4688 = vmatpush1.bf16.msra.mxu1 %v8252_v13  ;;  %v8269_v9 = vld [vmem:[#allocation6 + $0xe0] ss:$48 sps:$4 sm:$0xff]   ;;  %v8271_v13 = vld [vmem:[#allocation6 + $0x84] ss:$48 sps:$4 sm:$0xff]  }
 0x21d   : > { %4648 = vmatprep.subr.bf16.mxu0 %v8253_v31  ;;  %4689 = vmatprep.subr.bf16.mxu1 %v8255_v14  ;;  %v8270_v49 = vld [vmem:[#allocation6 + $0x6e0] ss:$48 sps:$4 sm:$0xff]   ;;  %v8277_v43 = vld [vmem:[#allocation6 + $0x24] ss:$48 sps:$4 sm:$0xff]  }
 0x21e   : > { %v8275_v54 = vld [vmem:[#allocation6 + $0x80] ss:$48 sps:$4 sm:$0xff]   ;;  %v8279_v34 = vld [vmem:[#allocation6 + $0x624] ss:$48 sps:$4 sm:$0xff]  }
 0x21f   : > { %v8276_v20 = vld [vmem:[#allocation6 + $0x680] ss:$48 sps:$4 sm:$0xff]   ;;  %v8283_v14 = vld [vmem:[#allocation6 + $0x5c4] ss:$48 sps:$4 sm:$0xff]  }
 0x220   : > { %4649 = vmatpush1.bf16.msra.mxu0 %v8257_v55  ;;  %4690 = vmatpush1.bf16.msra.mxu1 %v8258_v10  ;;  %v8281_v41 = vld [vmem:[#allocation6 + $0x20] ss:$48 sps:$4 sm:$0xff]   ;;  %v8285_v55 = vld [vmem:[#allocation6 + $0xbc4] ss:$48 sps:$4 sm:$0xff]  }
 0x221   : > { %4650 = vmatprep.subr.bf16.mxu0 %v8259_v38  ;;  %4691 = vmatprep.subr.bf16.mxu1 %v8261_v0  ;;  %v8282_v31 = vld [vmem:[#allocation6 + $0x620] ss:$48 sps:$4 sm:$0xff]   ;;  %v8289_v0 = vld [vmem:[#allocation6 + $0x564] ss:$48 sps:$4 sm:$0xff]  }
 0x222   : > { %v8287_v10 = vld [vmem:[#allocation6 + $0x5c0] ss:$48 sps:$4 sm:$0xff]  }
 0x223   : > { %v8288_v38 = vld [vmem:[#allocation6 + $0xbc0] ss:$48 sps:$4 sm:$0xff]  }
 0x224   : > { %4651 = vmatpush1.bf16.msra.mxu0 %v8263_v26  ;;  %4692 = vmatpush1.bf16.msra.mxu1 %v8264_v19  ;;  %v8291_v26 = vld [vmem:[#allocation6 + $0xb64] ss:$48 sps:$4 sm:$0xff]   ;;  %v8293_v19 = vld [vmem:[#allocation6 + $0x560] ss:$48 sps:$4 sm:$0xff]  }
 0x225   : > { %4652 = vmatprep.subr.bf16.mxu0 %v8265_v17  ;;  %4693 = vmatprep.subr.bf16.mxu1 %v8267_v62  ;;  %v8294_v17 = vld [vmem:[#allocation6 + $0xb60] ss:$48 sps:$4 sm:$0xff]   ;;  %v8295_v62 = vld [vmem:[#allocation6 + $0x504] ss:$48 sps:$4 sm:$0xff]  }
 0x228   : > { %4653 = vmatpush1.bf16.msra.mxu0 %v8269_v9  ;;  %4694 = vmatpush1.bf16.msra.mxu1 %v8270_v49  ;;  %v8297_v9 = vld [vmem:[#allocation6 + $0xb04] ss:$48 sps:$4 sm:$0xff]   ;;  %v8299_v49 = vld [vmem:[#allocation6 + $0x500] ss:$48 sps:$4 sm:$0xff]  }
 0x229   : > { %4654 = vmatprep.subr.bf16.mxu0 %v8271_v13  ;;  %4695 = vmatprep.subr.bf16.mxu1 %v8273_v39  ;;  %v8300_v13 = vld [vmem:[#allocation6 + $0xb00] ss:$48 sps:$4 sm:$0xff]   ;;  %v8301_v39 = vld [vmem:[#allocation6 + $0x4a4] ss:$48 sps:$4 sm:$0xff]  }
 0x22c   : > { %4655 = vmatpush1.bf16.msra.mxu0 %v8275_v54  ;;  %4696 = vmatpush1.bf16.msra.mxu1 %v8276_v20  ;;  %v8303_v54 = vld [vmem:[#allocation6 + $0xaa4] ss:$48 sps:$4 sm:$0xff]   ;;  %v8305_v20 = vld [vmem:[#allocation6 + $0x4a0] ss:$48 sps:$4 sm:$0xff]  }
 0x22d   : > { %4656 = vmatprep.subr.bf16.mxu0 %v8277_v43  ;;  %4697 = vmatprep.subr.bf16.mxu1 %v8279_v34  ;;  %v8306_v43 = vld [vmem:[#allocation6 + $0xaa0] ss:$48 sps:$4 sm:$0xff]   ;;  %v8307_v34 = vld [vmem:[#allocation6 + $0x444] ss:$48 sps:$4 sm:$0xff]  }
 0x230   : > { %4657 = vmatpush1.bf16.msra.mxu0 %v8281_v41  ;;  %4698 = vmatpush1.bf16.msra.mxu1 %v8282_v31  ;;  %v8309_v41 = vld [vmem:[#allocation6 + $0xa44] ss:$48 sps:$4 sm:$0xff]   ;;  %v8311_v31 = vld [vmem:[#allocation6 + $0x440] ss:$48 sps:$4 sm:$0xff]  }
 0x231   : > { %4658 = vmatprep.subr.bf16.mxu0 %v8283_v14  ;;  %4699 = vmatprep.subr.bf16.mxu1 %v8285_v55  ;;  %v8312_v14 = vld [vmem:[#allocation6 + $0xa40] ss:$48 sps:$4 sm:$0xff]   ;;  %v8313_v55 = vld [vmem:[#allocation6 + $0x3e4] ss:$48 sps:$4 sm:$0xff]  }
 0x234   : > { %4659 = vmatpush2.bf16.msra.mxu0 %v8287_v10  ;;  %4700 = vmatpush2.bf16.msra.mxu1 %v8288_v38  ;;  %v8315_v10 = vld [vmem:[#allocation6 + $0x9e4] ss:$48 sps:$4 sm:$0xff]   ;;  %v8317_v38 = vld [vmem:[#allocation6 + $0x3e0] ss:$48 sps:$4 sm:$0xff]  }
 0x235   : > { %4660 = vmatprep.subr.bf16.mxu0 %v8289_v0  ;;  %4701 = vmatprep.subr.bf16.mxu1 %v8291_v26  ;;  %v8318_v0 = vld [vmem:[#allocation6 + $0x9e0] ss:$48 sps:$4 sm:$0xff]   ;;  %v8319_v26 = vld [vmem:[#allocation6 + $0x384] ss:$48 sps:$4 sm:$0xff]  }
 0x238   : > { %4661 = vmatpush2.bf16.msra.mxu0 %v8293_v19  ;;  %4702 = vmatpush2.bf16.msra.mxu1 %v8294_v17  ;;  %v8321_v19 = vld [vmem:[#allocation6 + $0x984] ss:$48 sps:$4 sm:$0xff]   ;;  %v8323_v17 = vld [vmem:[#allocation6 + $0x380] ss:$48 sps:$4 sm:$0xff]  }
 0x239   : > { %4662 = vmatprep.subr.bf16.mxu0 %v8295_v62  ;;  %4703 = vmatprep.subr.bf16.mxu1 %v8297_v9  ;;  %v8324_v62 = vld [vmem:[#allocation6 + $0x980] ss:$48 sps:$4 sm:$0xff]   ;;  %v8325_v9 = vld [vmem:[#allocation6 + $0x324] ss:$48 sps:$4 sm:$0xff]  }
 0x23c   : > { %4663 = vmatpush2.bf16.msra.mxu0 %v8299_v49  ;;  %4704 = vmatpush2.bf16.msra.mxu1 %v8300_v13  ;;  %v8327_v49 = vld [vmem:[#allocation6 + $0x924] ss:$48 sps:$4 sm:$0xff]   ;;  %v8329_v13 = vld [vmem:[#allocation6 + $0x320] ss:$48 sps:$4 sm:$0xff]  }
 0x23d   : > { %4664 = vmatprep.subr.bf16.mxu0 %v8301_v39  ;;  %4705 = vmatprep.subr.bf16.mxu1 %v8303_v54  ;;  %v8330_v39 = vld [vmem:[#allocation6 + $0x920] ss:$48 sps:$4 sm:$0xff]   ;;  %v8331_v54 = vld [vmem:[#allocation6 + $0x2cc] ss:$48 sps:$4 sm:$0xff]  }
 0x240   : > { %4665 = vmatpush2.bf16.msra.mxu0 %v8305_v20  ;;  %4706 = vmatpush2.bf16.msra.mxu1 %v8306_v43  ;;  %v8333_v20 = vld [vmem:[#allocation6 + $0x8cc] ss:$48 sps:$4 sm:$0xff]   ;;  %v10317_v43 = vrot.slane %v10291_v63, %v10076_v18 }
 0x241   : > { %4666 = vmatprep.subr.bf16.mxu0 %v8307_v34  ;;  %4707 = vmatprep.subr.bf16.mxu1 %v8309_v41  ;;  %v8335_v34 = vld [vmem:[#allocation6 + $0x2c8] ss:$48 sps:$4 sm:$0xff]  }
 0x242   : > { %v8336_v41 = vld [vmem:[#allocation6 + $0x8c8] ss:$48 sps:$4 sm:$0xff]  }
 0x244   : > { %4667 = vmatpush2.bf16.msra.mxu0 %v8311_v31  ;;  %4708 = vmatpush2.bf16.msra.mxu1 %v8312_v14  ;;  %v8337_v31 = vld [vmem:[#allocation6 + $0x26c] ss:$48 sps:$4 sm:$0xff]  }
 0x245   : > { %4668 = vmatprep.subr.bf16.mxu0 %v8313_v55  ;;  %4709 = vmatprep.subr.bf16.mxu1 %v8315_v10  ;;  %v8339_v14 = vld [vmem:[#allocation6 + $0x86c] ss:$48 sps:$4 sm:$0xff]   ;;  %v10321_v55 = vrot.slane %v10291_v63, %v10081_v22 }
 0x248   : > { %4669 = vmatpush2.bf16.msra.mxu0 %v8317_v38  ;;  %4710 = vmatpush2.bf16.msra.mxu1 %v8318_v0 }
 0x249   : > { %4670 = vmatprep.subr.bf16.mxu0 %v8319_v26  ;;  %4711 = vmatprep.subr.bf16.mxu1 %v8321_v19  ;;  %v8341_v26 = vld [vmem:[#allocation6 + $0x268] ss:$48 sps:$4 sm:$0xff]  }
 0x24a   : > { %v8342_v19 = vld [vmem:[#allocation6 + $0x868] ss:$48 sps:$4 sm:$0xff]  }
 0x24c   : > { %4671 = vmatpush2.bf16.msra.mxu0 %v8323_v17  ;;  %4712 = vmatpush2.bf16.msra.mxu1 %v8324_v62 }
 0x24d   : > { %4672 = vmatprep.subr.bf16.mxu0 %v8325_v9  ;;  %4713 = vmatprep.subr.bf16.mxu1 %v8327_v49  ;;  %v8343_v9 = vld [vmem:[#allocation6 + $0x20c] ss:$48 sps:$4 sm:$0xff]  }
 0x24e   : > { %v8345_v49 = vld [vmem:[#allocation6 + $0x80c] ss:$48 sps:$4 sm:$0xff]  }
 0x250   : > { %4673 = vmatpush2.bf16.msra.mxu0 %v8329_v13  ;;  %4714 = vmatpush2.bf16.msra.mxu1 %v8330_v39 }
 0x251   : > { %4724 = vmatprep.subr.bf16.mxu0 %v8331_v54  ;;  %4765 = vmatprep.subr.bf16.mxu1 %v8333_v20 }
 0x253   : > { %v4430_v10 = vpop.f32.mrf.mxu0  ;;  %v4471_v38 = vpop.f32.mrf.mxu1  ;;  %4675 = vmatmul.mubr.bf16.vlgmr.msra.gmra.mxu0 %v10083_v25  ;;  %4716 = vmatmul.mubr.bf16.vlgmr.msra.gmra.mxu1 %v10085_v4 }
 0x254   : > { %v4431_v0 = vadd.f32 %v4430_v10, %v10317_v43  ;;  %4725 = vmatpush1.bf16.msra.mxu0 %v8335_v34  ;;  %4766 = vmatpush1.bf16.msra.mxu1 %v8336_v41  ;;  %v8347_v10 = vld [vmem:[#allocation6 + $0x208] ss:$48 sps:$4 sm:$0xff]  }
 0x255   : > { %v4432_v17 = vpop.f32.mrf.mxu0  ;;  %v4473_v62 = vpop.f32.mrf.mxu1  ;;  %4726 = vmatprep.subr.bf16.mxu0 %v8337_v31  ;;  %4767 = vmatprep.subr.bf16.mxu1 %v8339_v14  ;;  %v8348_v31 = vld [vmem:[#allocation6 + $0x808] ss:$48 sps:$4 sm:$0xff]  }
 0x256   : > { %v4472_v13 = vadd.f32 %v4471_v38, %v4431_v0  ;;  %v4433_v39 = vadd.f32 %v4432_v17, %v10321_v55  ;;  %4756 = vmatprep.mubr.bf16.mxu0 %v10065_v27  ;;  %4797 = vmatprep.mubr.bf16.mxu1 %v10067_v28  ;;  %v8349_v38 = vld [vmem:[#allocation6 + $0x1ac] ss:$48 sps:$4 sm:$0xff]   ;;  %v8353_v28 = vld [vmem:[#allocation6 + $0x1a8] ss:$48 sps:$4 sm:$0xff]  }
 0x257   : > { %v4434_v54 = vpop.f32.mrf.mxu0  ;;  %v4475_v20 = vpop.f32.mrf.mxu1  ;;  %v8351_v0 = vld [vmem:[#allocation6 + $0x7ac] ss:$48 sps:$4 sm:$0xff]   ;;  %v8354_v17 = vld [vmem:[#allocation6 + $0x7a8] ss:$48 sps:$4 sm:$0xff]  }
 0x258   : > { %v10330_v34 = vadd.f32 %v4472_v13, %v10103_v24  ;;  %v4474_v41 = vadd.f32 %v4473_v62, %v4433_v39  ;;  %4727 = vmatpush1.bf16.msra.mxu0 %v8341_v26  ;;  %4768 = vmatpush1.bf16.msra.mxu1 %v8342_v19  ;;  %v8355_v24 = vld [vmem:[#allocation6 + $0x14c] ss:$48 sps:$4 sm:$0xff]   ;;  %v8359_v19 = vld [vmem:[#allocation6 + $0x148] ss:$48 sps:$4 sm:$0xff]  }
 0x259   : > { %v4435_v14 = vpop.f32.mrf.mxu0  ;;  %v4476_v6 = vpop.f32.mrf.mxu1  ;;  %4728 = vmatprep.subr.bf16.mxu0 %v8343_v9  ;;  %4769 = vmatprep.subr.bf16.mxu1 %v8345_v49  ;;  %v8357_v26 = vld [vmem:[#allocation6 + $0x74c] ss:$48 sps:$4 sm:$0xff]   ;;  %v8360_v62 = vld [vmem:[#allocation6 + $0x748] ss:$48 sps:$4 sm:$0xff]  }
 0x25a   : > { %v10333_v27 = vadd.f32 %v4474_v41, %v10112_v42  ;;  %v8361_v6 = vld [vmem:[#allocation6 + $0xec] ss:$48 sps:$4 sm:$0xff]   ;;  %v8365_v42 = vld [vmem:[#allocation6 + $0xe8] ss:$48 sps:$4 sm:$0xff]  }
 0x25b   : > { %v8363_v9 = vld [vmem:[#allocation6 + $0x6ec] ss:$48 sps:$4 sm:$0xff]   ;;  %v8366_v49 = vld [vmem:[#allocation6 + $0x6e8] ss:$48 sps:$4 sm:$0xff]  }
 0x25c   : > { %4729 = vmatpush1.bf16.msra.mxu0 %v8347_v10  ;;  %4770 = vmatpush1.bf16.msra.mxu1 %v8348_v31  ;;  %v8367_v13 = vld [vmem:[#allocation6 + $0x8c] ss:$48 sps:$4 sm:$0xff]   ;;  %v8371_v54 = vld [vmem:[#allocation6 + $0x88] ss:$48 sps:$4 sm:$0xff]  }
 0x25d   : > { %4730 = vmatprep.subr.bf16.mxu0 %v8349_v38  ;;  %4771 = vmatprep.subr.bf16.mxu1 %v8351_v0  ;;  %v8369_v39 = vld [vmem:[#allocation6 + $0x68c] ss:$48 sps:$4 sm:$0xff]   ;;  %v8372_v20 = vld [vmem:[#allocation6 + $0x688] ss:$48 sps:$4 sm:$0xff]  }
 0x25e   : > { %v8373_v41 = vld [vmem:[#allocation6 + $0x2c] ss:$48 sps:$4 sm:$0xff]   ;;  %v8377_v31 = vld [vmem:[#allocation6 + $0x28] ss:$48 sps:$4 sm:$0xff]  }
 0x25f   : > { %v8375_v10 = vld [vmem:[#allocation6 + $0x62c] ss:$48 sps:$4 sm:$0xff]   ;;  %v8378_v14 = vld [vmem:[#allocation6 + $0x628] ss:$48 sps:$4 sm:$0xff]  }
 0x260   : > { %4731 = vmatpush1.bf16.msra.mxu0 %v8353_v28  ;;  %4772 = vmatpush1.bf16.msra.mxu1 %v8354_v17  ;;  %v8379_v38 = vld [vmem:[#allocation6 + $0x5cc] ss:$48 sps:$4 sm:$0xff]   ;;  %v8383_v28 = vld [vmem:[#allocation6 + $0x5c8] ss:$48 sps:$4 sm:$0xff]  }
 0x261   : > { %4732 = vmatprep.subr.bf16.mxu0 %v8355_v24  ;;  %4773 = vmatprep.subr.bf16.mxu1 %v8357_v26  ;;  %v8381_v0 = vld [vmem:[#allocation6 + $0xbcc] ss:$48 sps:$4 sm:$0xff]   ;;  %v8384_v17 = vld [vmem:[#allocation6 + $0xbc8] ss:$48 sps:$4 sm:$0xff]  }
 0x262   : > { %v8385_v24 = vld [vmem:[#allocation6 + $0x56c] ss:$48 sps:$4 sm:$0xff]  }
 0x263   : > { %v8387_v26 = vld [vmem:[#allocation6 + $0xb6c] ss:$48 sps:$4 sm:$0xff]  }
 0x264   : > { %4733 = vmatpush1.bf16.msra.mxu0 %v8359_v19  ;;  %4774 = vmatpush1.bf16.msra.mxu1 %v8360_v62  ;;  %v8389_v19 = vld [vmem:[#allocation6 + $0x568] ss:$48 sps:$4 sm:$0xff]  }
 0x265   : > { %4734 = vmatprep.subr.bf16.mxu0 %v8361_v6  ;;  %4775 = vmatprep.subr.bf16.mxu1 %v8363_v9  ;;  %v8390_v62 = vld [vmem:[#allocation6 + $0xb68] ss:$48 sps:$4 sm:$0xff]   ;;  %v8391_v6 = vld [vmem:[#allocation6 + $0x50c] ss:$48 sps:$4 sm:$0xff]  }
 0x266   : > { %v8393_v9 = vld [vmem:[#allocation6 + $0xb0c] ss:$48 sps:$4 sm:$0xff]  }
 0x268   : > { %4735 = vmatpush1.bf16.msra.mxu0 %v8365_v42  ;;  %4776 = vmatpush1.bf16.msra.mxu1 %v8366_v49  ;;  %v8395_v42 = vld [vmem:[#allocation6 + $0x508] ss:$48 sps:$4 sm:$0xff]  }
 0x269   : > { %4736 = vmatprep.subr.bf16.mxu0 %v8367_v13  ;;  %4777 = vmatprep.subr.bf16.mxu1 %v8369_v39  ;;  %v8396_v49 = vld [vmem:[#allocation6 + $0xb08] ss:$48 sps:$4 sm:$0xff]   ;;  %v8397_v13 = vld [vmem:[#allocation6 + $0x4ac] ss:$48 sps:$4 sm:$0xff]  }
 0x26a   : > { %v8399_v39 = vld [vmem:[#allocation6 + $0xaac] ss:$48 sps:$4 sm:$0xff]  }
 0x26c   : > { %4737 = vmatpush1.bf16.msra.mxu0 %v8371_v54  ;;  %4778 = vmatpush1.bf16.msra.mxu1 %v8372_v20  ;;  %v8401_v54 = vld [vmem:[#allocation6 + $0x4a8] ss:$48 sps:$4 sm:$0xff]  }
 0x26d   : > { %4738 = vmatprep.subr.bf16.mxu0 %v8373_v41  ;;  %4779 = vmatprep.subr.bf16.mxu1 %v8375_v10  ;;  %v8402_v20 = vld [vmem:[#allocation6 + $0xaa8] ss:$48 sps:$4 sm:$0xff]   ;;  %v8403_v41 = vld [vmem:[#allocation6 + $0x44c] ss:$48 sps:$4 sm:$0xff]  }
 0x26e   : > { %v8405_v10 = vld [vmem:[#allocation6 + $0xa4c] ss:$48 sps:$4 sm:$0xff]  }
 0x270   : > { %4739 = vmatpush1.bf16.msra.mxu0 %v8377_v31  ;;  %4780 = vmatpush1.bf16.msra.mxu1 %v8378_v14  ;;  %v8407_v31 = vld [vmem:[#allocation6 + $0x448] ss:$48 sps:$4 sm:$0xff]  }
 0x271   : > { %4740 = vmatprep.subr.bf16.mxu0 %v8379_v38  ;;  %4781 = vmatprep.subr.bf16.mxu1 %v8381_v0  ;;  %v8408_v14 = vld [vmem:[#allocation6 + $0xa48] ss:$48 sps:$4 sm:$0xff]   ;;  %v8409_v38 = vld [vmem:[#allocation6 + $0x3ec] ss:$48 sps:$4 sm:$0xff]  }
 0x272   : > { %v8411_v0 = vld [vmem:[#allocation6 + $0x9ec] ss:$48 sps:$4 sm:$0xff]  }
 0x274   : > { %4741 = vmatpush2.bf16.msra.mxu0 %v8383_v28  ;;  %4782 = vmatpush2.bf16.msra.mxu1 %v8384_v17  ;;  %v8413_v28 = vld [vmem:[#allocation6 + $0x3e8] ss:$48 sps:$4 sm:$0xff]  }
 0x275   : > { %4742 = vmatprep.subr.bf16.mxu0 %v8385_v24  ;;  %4783 = vmatprep.subr.bf16.mxu1 %v8387_v26  ;;  %v8414_v17 = vld [vmem:[#allocation6 + $0x9e8] ss:$48 sps:$4 sm:$0xff]   ;;  %v8415_v24 = vld [vmem:[#allocation6 + $0x38c] ss:$48 sps:$4 sm:$0xff]  }
 0x276   : > { %v8417_v26 = vld [vmem:[#allocation6 + $0x98c] ss:$48 sps:$4 sm:$0xff]  }
 0x278   : > { %4743 = vmatpush2.bf16.msra.mxu0 %v8389_v19  ;;  %4784 = vmatpush2.bf16.msra.mxu1 %v8390_v62  ;;  %v8419_v19 = vld [vmem:[#allocation6 + $0x388] ss:$48 sps:$4 sm:$0xff]  }
 0x279   : > { %4744 = vmatprep.subr.bf16.mxu0 %v8391_v6  ;;  %4785 = vmatprep.subr.bf16.mxu1 %v8393_v9  ;;  %v8420_v62 = vld [vmem:[#allocation6 + $0x988] ss:$48 sps:$4 sm:$0xff]   ;;  %v8421_v6 = vld [vmem:[#allocation6 + $0x32c] ss:$48 sps:$4 sm:$0xff]  }
 0x27a   : > { %v8423_v9 = vld [vmem:[#allocation6 + $0x92c] ss:$48 sps:$4 sm:$0xff]  }
 0x27c   : > { %4745 = vmatpush2.bf16.msra.mxu0 %v8395_v42  ;;  %4786 = vmatpush2.bf16.msra.mxu1 %v8396_v49  ;;  %v8425_v42 = vld [vmem:[#allocation6 + $0x328] ss:$48 sps:$4 sm:$0xff]  }
 0x27d   : > { %4746 = vmatprep.subr.bf16.mxu0 %v8397_v13  ;;  %4787 = vmatprep.subr.bf16.mxu1 %v8399_v39  ;;  %v8426_v49 = vld [vmem:[#allocation6 + $0x928] ss:$48 sps:$4 sm:$0xff]   ;;  %v10823_v13 = vsub.s32 4, %v10073_v15 }
 0x27f   : > { %v10338_v39 = vrot.slane %v10291_v63, %v10823_v13 }
 0x280   : > { %4747 = vmatpush2.bf16.msra.mxu0 %v8401_v54  ;;  %4788 = vmatpush2.bf16.msra.mxu1 %v8402_v20  ;;  %v8587_v54 = vld [vmem:[#allocation6 + $0x2a4] ss:$48 sps:$4 sm:$0xff]  }
 0x281   : > { %4748 = vmatprep.subr.bf16.mxu0 %v8403_v41  ;;  %4789 = vmatprep.subr.bf16.mxu1 %v8405_v10  ;;  %v8588_v20 = vld [vmem:[#allocation6 + $0x8a4] ss:$48 sps:$4 sm:$0xff]   ;;  %v10824_v41 = vsub.s32 5, %v10073_v15 }
 0x283   : > { %v10343_v10 = vrot.slane %v10291_v63, %v10824_v41 }
 0x284   : > { %4749 = vmatpush2.bf16.msra.mxu0 %v8407_v31  ;;  %4790 = vmatpush2.bf16.msra.mxu1 %v8408_v14 }
 0x285   : > { %4750 = vmatprep.subr.bf16.mxu0 %v8409_v38  ;;  %4791 = vmatprep.subr.bf16.mxu1 %v8411_v0  ;;  %v8589_v0 = vld [vmem:[#allocation6 + $0x2a0] ss:$48 sps:$4 sm:$0xff]  }
 0x288   : > { %4751 = vmatpush2.bf16.msra.mxu0 %v8413_v28  ;;  %4792 = vmatpush2.bf16.msra.mxu1 %v8414_v17  ;;  %v8590_v28 = vld [vmem:[#allocation6 + $0x8a0] ss:$48 sps:$4 sm:$0xff]  }
 0x289   : > { %4752 = vmatprep.subr.bf16.mxu0 %v8415_v24  ;;  %4793 = vmatprep.subr.bf16.mxu1 %v8417_v26  ;;  %v8591_v26 = vld [vmem:[#allocation6 + $0x244] ss:$48 sps:$4 sm:$0xff]  }
 0x28c   : > { %4753 = vmatpush2.bf16.msra.mxu0 %v8419_v19  ;;  %4794 = vmatpush2.bf16.msra.mxu1 %v8420_v62  ;;  %v8592_v19 = vld [vmem:[#allocation6 + $0x844] ss:$48 sps:$4 sm:$0xff]   ;;  %v1713_v62 = vadd.f32 %v10168_v48, %v10181_v58 }
 0x28d   : > { %4754 = vmatprep.subr.bf16.mxu0 %v8421_v6  ;;  %4795 = vmatprep.subr.bf16.mxu1 %v8423_v9  ;;  %v8596_v48 = vld [vmem:[#allocation6 + $0x7e4] ss:$48 sps:$4 sm:$0xff]  }
 0x290   : > { %4755 = vmatpush2.bf16.msra.mxu0 %v8425_v42  ;;  %4796 = vmatpush2.bf16.msra.mxu1 %v8426_v49  ;;  %v1715_v42 = vadd.f32 %v10176_v53, %v10191_v3  ;;  %v8599_v53 = vld [vmem:[#allocation6 + $0x184] ss:$48 sps:$4 sm:$0xff]  }
 0x291   : > { %4910 = vmatprep.subr.bf16.mxu0 %v8587_v54  ;;  %4951 = vmatprep.subr.bf16.mxu1 %v8588_v20  ;;  %v8593_v54 = vld [vmem:[#allocation6 + $0x240] ss:$48 sps:$4 sm:$0xff]   ;;  %v8600_v3 = vld [vmem:[#allocation6 + $0x784] ss:$48 sps:$4 sm:$0xff]  }
 0x292   : > { %v8594_v20 = vld [vmem:[#allocation6 + $0x840] ss:$48 sps:$4 sm:$0xff]  }
 0x293   : > { %v4512_v31 = vpop.f32.mrf.mxu0  ;;  %v4553_v14 = vpop.f32.mrf.mxu1  ;;  %4757 = vmatmul.mubr.bf16.vlgmr.msra.gmra.mxu0 %v10083_v25  ;;  %4798 = vmatmul.mubr.bf16.vlgmr.msra.gmra.mxu1 %v10085_v4 }
 0x294   : > { %v4513_v38 = vadd.f32 %v4512_v31, %v10338_v39  ;;  %4911 = vmatpush1.bf16.msra.mxu0 %v8589_v0  ;;  %4952 = vmatpush1.bf16.msra.mxu1 %v8590_v28  ;;  %v8595_v0 = vld [vmem:[#allocation6 + $0x1e4] ss:$48 sps:$4 sm:$0xff]   ;;  %v8601_v28 = vld [vmem:[#allocation6 + $0x180] ss:$48 sps:$4 sm:$0xff]  }
 0x295   : > { %v4514_v17 = vpop.f32.mrf.mxu0  ;;  %v4555_v24 = vpop.f32.mrf.mxu1  ;;  %4912 = vmatprep.subr.bf16.mxu0 %v8591_v26  ;;  %4953 = vmatprep.subr.bf16.mxu1 %v8592_v19  ;;  %v8604_v26 = vld [vmem:[#allocation6 + $0x724] ss:$48 sps:$4 sm:$0xff]   ;;  %v8605_v19 = vld [vmem:[#allocation6 + $0x120] ss:$48 sps:$4 sm:$0xff]  }
 0x296   : > { %v4554_v6 = vadd.f32 %v4553_v14, %v4513_v38  ;;  %v4515_v25 = vadd.f32 %v4514_v17, %v10343_v10  ;;  %v8597_v14 = vld [vmem:[#allocation6 + $0x1e0] ss:$48 sps:$4 sm:$0xff]  }
 0x297   : > { %v4516_v9 = vpop.f32.mrf.mxu0  ;;  %v4557_v4 = vpop.f32.mrf.mxu1  ;;  %v8598_v38 = vld [vmem:[#allocation6 + $0x7e0] ss:$48 sps:$4 sm:$0xff]  }
 0x298   : > { %v10353_v49 = vadd.f32 %v4554_v6, %v1713_v62  ;;  %v4556_v13 = vadd.f32 %v4555_v24, %v4515_v25  ;;  %4913 = vmatpush1.bf16.msra.mxu0 %v8593_v54  ;;  %4954 = vmatpush1.bf16.msra.mxu1 %v8594_v20  ;;  %v8602_v17 = vld [vmem:[#allocation6 + $0x780] ss:$48 sps:$4 sm:$0xff]   ;;  %v8603_v24 = vld [vmem:[#allocation6 + $0x124] ss:$48 sps:$4 sm:$0xff]  }
 0x299   : > { %v4517_v41 = vpop.f32.mrf.mxu0  ;;  %v4558_v31 = vpop.f32.mrf.mxu1  ;;  %4914 = vmatprep.subr.bf16.mxu0 %v8595_v0  ;;  %4955 = vmatprep.subr.bf16.mxu1 %v8596_v48  ;;  %v8606_v62 = vld [vmem:[#allocation6 + $0x720] ss:$48 sps:$4 sm:$0xff]   ;;  %v8607_v6 = vld [vmem:[#allocation6 + $0xc4] ss:$48 sps:$4 sm:$0xff]  }
 0x29a   : > { %v10355_v58 = vadd.f32 %v4556_v13, %v1715_v42  ;;  %v8608_v25 = vld [vmem:[#allocation6 + $0x6c4] ss:$48 sps:$4 sm:$0xff]   ;;  %v8609_v9 = vld [vmem:[#allocation6 + $0xc0] ss:$48 sps:$4 sm:$0xff]  }
 0x29b   : > { %v8610_v4 = vld [vmem:[#allocation6 + $0x6c0] ss:$48 sps:$4 sm:$0xff]   ;;  %v8611_v42 = vld [vmem:[#allocation6 + $0x64] ss:$48 sps:$4 sm:$0xff]  }
 0x29c   : > { %4915 = vmatpush1.bf16.msra.mxu0 %v8597_v14  ;;  %4956 = vmatpush1.bf16.msra.mxu1 %v8598_v38  ;;  %v8612_v13 = vld [vmem:[#allocation6 + $0x664] ss:$48 sps:$4 sm:$0xff]   ;;  %v8613_v54 = vld [vmem:[#allocation6 + $0x60] ss:$48 sps:$4 sm:$0xff]  }
 0x29d   : > { %4916 = vmatprep.subr.bf16.mxu0 %v8599_v53  ;;  %4957 = vmatprep.subr.bf16.mxu1 %v8600_v3  ;;  %v8614_v20 = vld [vmem:[#allocation6 + $0x660] ss:$48 sps:$4 sm:$0xff]   ;;  %v8615_v41 = vld [vmem:[#allocation6 + $0x4] ss:$48 sps:$4 sm:$0xff]  }
 0x29e   : > { %v8616_v31 = vld [vmem:[#allocation6 + $0x604] ss:$48 sps:$4 sm:$0xff]   ;;  %v8617_v0 = vld [vmem:[#allocation6] ss:$48 sps:$4 sm:$0xff]  }
 0x29f   : > { %v8618_v48 = vld [vmem:[#allocation6 + $0x600] ss:$48 sps:$4 sm:$0xff]   ;;  %v8619_v14 = vld [vmem:[#allocation6 + $0x5a4] ss:$48 sps:$4 sm:$0xff]  }
 0x2a0   : > { %4917 = vmatpush1.bf16.msra.mxu0 %v8601_v28  ;;  %4958 = vmatpush1.bf16.msra.mxu1 %v8602_v17  ;;  %v8620_v38 = vld [vmem:[#allocation6 + $0xba4] ss:$48 sps:$4 sm:$0xff]   ;;  %v8621_v53 = vld [vmem:[#allocation6 + $0x5a0] ss:$48 sps:$4 sm:$0xff]  }
 0x2a1   : > { %4918 = vmatprep.subr.bf16.mxu0 %v8603_v24  ;;  %4959 = vmatprep.subr.bf16.mxu1 %v8604_v26  ;;  %v8622_v3 = vld [vmem:[#allocation6 + $0xba0] ss:$48 sps:$4 sm:$0xff]   ;;  %v8623_v28 = vld [vmem:[#allocation6 + $0x544] ss:$48 sps:$4 sm:$0xff]  }
 0x2a2   : > { %v8624_v17 = vld [vmem:[#allocation6 + $0xb44] ss:$48 sps:$4 sm:$0xff]   ;;  %v8625_v24 = vld [vmem:[#allocation6 + $0x540] ss:$48 sps:$4 sm:$0xff]  }
 0x2a3   : > { %v8626_v26 = vld [vmem:[#allocation6 + $0xb40] ss:$48 sps:$4 sm:$0xff]  }
 0x2a4   : > { %4919 = vmatpush1.bf16.msra.mxu0 %v8605_v19  ;;  %4960 = vmatpush1.bf16.msra.mxu1 %v8606_v62  ;;  %v8627_v19 = vld [vmem:[#allocation6 + $0x4e4] ss:$48 sps:$4 sm:$0xff]  }
 0x2a5   : > { %4920 = vmatprep.subr.bf16.mxu0 %v8607_v6  ;;  %4961 = vmatprep.subr.bf16.mxu1 %v8608_v25  ;;  %v8628_v62 = vld [vmem:[#allocation6 + $0xae4] ss:$48 sps:$4 sm:$0xff]   ;;  %v8629_v6 = vld [vmem:[#allocation6 + $0x4e0] ss:$48 sps:$4 sm:$0xff]  }
 0x2a6   : > { %v8630_v25 = vld [vmem:[#allocation6 + $0xae0] ss:$48 sps:$4 sm:$0xff]  }
 0x2a8   : > { %4921 = vmatpush1.bf16.msra.mxu0 %v8609_v9  ;;  %4962 = vmatpush1.bf16.msra.mxu1 %v8610_v4  ;;  %v8631_v9 = vld [vmem:[#allocation6 + $0x484] ss:$48 sps:$4 sm:$0xff]  }
 0x2a9   : > { %4922 = vmatprep.subr.bf16.mxu0 %v8611_v42  ;;  %4963 = vmatprep.subr.bf16.mxu1 %v8612_v13  ;;  %v8632_v4 = vld [vmem:[#allocation6 + $0xa84] ss:$48 sps:$4 sm:$0xff]   ;;  %v8633_v42 = vld [vmem:[#allocation6 + $0x480] ss:$48 sps:$4 sm:$0xff]  }
 0x2aa   : > { %v8634_v13 = vld [vmem:[#allocation6 + $0xa80] ss:$48 sps:$4 sm:$0xff]  }
 0x2ac   : > { %4923 = vmatpush1.bf16.msra.mxu0 %v8613_v54  ;;  %4964 = vmatpush1.bf16.msra.mxu1 %v8614_v20  ;;  %v8635_v54 = vld [vmem:[#allocation6 + $0x424] ss:$48 sps:$4 sm:$0xff]  }
 0x2ad   : > { %4924 = vmatprep.subr.bf16.mxu0 %v8615_v41  ;;  %4965 = vmatprep.subr.bf16.mxu1 %v8616_v31  ;;  %v8636_v20 = vld [vmem:[#allocation6 + $0xa24] ss:$48 sps:$4 sm:$0xff]   ;;  %v8637_v41 = vld [vmem:[#allocation6 + $0x420] ss:$48 sps:$4 sm:$0xff]  }
 0x2ae   : > { %v8638_v31 = vld [vmem:[#allocation6 + $0xa20] ss:$48 sps:$4 sm:$0xff]  }
 0x2b0   : > { %4925 = vmatpush1.bf16.msra.mxu0 %v8617_v0  ;;  %4966 = vmatpush1.bf16.msra.mxu1 %v8618_v48  ;;  %v8639_v0 = vld [vmem:[#allocation6 + $0x3c4] ss:$48 sps:$4 sm:$0xff]  }
 0x2b1   : > { %4926 = vmatprep.subr.bf16.mxu0 %v8619_v14  ;;  %4967 = vmatprep.subr.bf16.mxu1 %v8620_v38  ;;  %v8640_v48 = vld [vmem:[#allocation6 + $0x9c4] ss:$48 sps:$4 sm:$0xff]   ;;  %v8641_v14 = vld [vmem:[#allocation6 + $0x3c0] ss:$48 sps:$4 sm:$0xff]  }
 0x2b2   : > { %v8642_v38 = vld [vmem:[#allocation6 + $0x9c0] ss:$48 sps:$4 sm:$0xff]  }
 0x2b4   : > { %4927 = vmatpush2.bf16.msra.mxu0 %v8621_v53  ;;  %4968 = vmatpush2.bf16.msra.mxu1 %v8622_v3  ;;  %v8643_v53 = vld [vmem:[#allocation6 + $0x364] ss:$48 sps:$4 sm:$0xff]  }
 0x2b5   : > { %4928 = vmatprep.subr.bf16.mxu0 %v8623_v28  ;;  %4969 = vmatprep.subr.bf16.mxu1 %v8624_v17  ;;  %v8644_v3 = vld [vmem:[#allocation6 + $0x964] ss:$48 sps:$4 sm:$0xff]   ;;  %v8645_v28 = vld [vmem:[#allocation6 + $0x360] ss:$48 sps:$4 sm:$0xff]  }
 0x2b6   : > { %v8646_v17 = vld [vmem:[#allocation6 + $0x960] ss:$48 sps:$4 sm:$0xff]  }
 0x2b8   : > { %4929 = vmatpush2.bf16.msra.mxu0 %v8625_v24  ;;  %4970 = vmatpush2.bf16.msra.mxu1 %v8626_v26  ;;  %v8647_v24 = vld [vmem:[#allocation6 + $0x304] ss:$48 sps:$4 sm:$0xff]  }
 0x2b9   : > { %4930 = vmatprep.subr.bf16.mxu0 %v8627_v19  ;;  %4971 = vmatprep.subr.bf16.mxu1 %v8628_v62  ;;  %v8648_v26 = vld [vmem:[#allocation6 + $0x904] ss:$48 sps:$4 sm:$0xff]   ;;  %v10825_v19 = vsub.s32 6, %v10073_v15 }
 0x2bb   : > { %v10360_v62 = vrot.slane %v10291_v63, %v10825_v19  ;;  %v7445_v19 = vmul.f32 -1.442695, %v10353_v49 }
 0x2bc   : > { %4931 = vmatpush2.bf16.msra.mxu0 %v8629_v6  ;;  %4972 = vmatpush2.bf16.msra.mxu1 %v8630_v25  ;;  %v8649_v6 = vld [vmem:[#allocation6 + $0x300] ss:$48 sps:$4 sm:$0xff]  }
 0x2bd   : > { %4932 = vmatprep.subr.bf16.mxu0 %v8631_v9  ;;  %4973 = vmatprep.subr.bf16.mxu1 %v8632_v4  ;;  %v8650_v25 = vld [vmem:[#allocation6 + $0x900] ss:$48 sps:$4 sm:$0xff]   ;;  %v8651_v9 = vld [vmem:[#allocation6 + $0x2ac] ss:$48 sps:$4 sm:$0xff]  }
 0x2be   : > { %v8652_v4 = vld [vmem:[#allocation6 + $0x8ac] ss:$48 sps:$4 sm:$0xff]  }
 0x2c0   : > { %4933 = vmatpush2.bf16.msra.mxu0 %v8633_v42  ;;  %4974 = vmatpush2.bf16.msra.mxu1 %v8634_v13  ;;  %v10826_v42 = vsub.s32 7, %v10073_v15 }
 0x2c1   : > { %4934 = vmatprep.subr.bf16.mxu0 %v8635_v54  ;;  %4975 = vmatprep.subr.bf16.mxu1 %v8636_v20 }
 0x2c2   : > { %v10365_v13 = vrot.slane %v10291_v63, %v10826_v42 }
 0x2c4   : > { %4935 = vmatpush2.bf16.msra.mxu0 %v8637_v41  ;;  %4976 = vmatpush2.bf16.msra.mxu1 %v8638_v31 }
 0x2c5   : > { %4936 = vmatprep.subr.bf16.mxu0 %v8639_v0  ;;  %4977 = vmatprep.subr.bf16.mxu1 %v8640_v48 }
 0x2c8   : > { %4937 = vmatpush2.bf16.msra.mxu0 %v8641_v14  ;;  %4978 = vmatpush2.bf16.msra.mxu1 %v8642_v38 }
 0x2c9   : > { %4938 = vmatprep.subr.bf16.mxu0 %v8643_v53  ;;  %4979 = vmatprep.subr.bf16.mxu1 %v8644_v3 }
 0x2cc   : > { %4939 = vmatpush2.bf16.msra.mxu0 %v8645_v28  ;;  %4980 = vmatpush2.bf16.msra.mxu1 %v8646_v17 }
 0x2cd   : > { %4940 = vmatprep.subr.bf16.mxu0 %v8647_v24  ;;  %4981 = vmatprep.subr.bf16.mxu1 %v8648_v26  ;;  %v7441_v24 = vmul.f32 -1.442695, %v10311_v29  ;;  %v7442_v26 = vmul.f32 -1.442695, %v10313_v23 }
 0x2cf   : > { %8427 = vpow2.f32 %v7441_v24 }
 0x2d0   : > { %4941 = vmatpush2.bf16.msra.mxu0 %v8649_v6  ;;  %4982 = vmatpush2.bf16.msra.mxu1 %v8650_v25  ;;  %8429 = vpow2.f32 %v7442_v26  ;;  %v7446_v6 = vmul.f32 -1.442695, %v10355_v58 }
 0x2d1   : > { %4992 = vmatprep.subr.bf16.mxu0 %v8651_v9  ;;  %5033 = vmatprep.subr.bf16.mxu1 %v8652_v4  ;;  %8431 = vpow2.f32 %v7445_v19 }
 0x2d2   : > { %8433 = vpow2.f32 %v7446_v6  ;;  %v1821_v6 = vadd.f32 %v10242_v1, %v10253_v44 }
 0x2d3   : > { %v4594_v54 = vpop.f32.mrf.mxu0  ;;  %v4635_v20 = vpop.f32.mrf.mxu1 }
 0x2d4   : > { %v4595_v41 = vadd.f32 %v4594_v54, %v10360_v62 }
 0x2d5   : > { %v4596_v31 = vpop.f32.mrf.mxu0  ;;  %v4637_v0 = vpop.f32.mrf.mxu1 }
 0x2d6   : > { %v4636_v48 = vadd.f32 %v4635_v20, %v4595_v41  ;;  %v4597_v14 = vadd.f32 %v4596_v31, %v10365_v13 }
 0x2d7   : > { %v4598_v38 = vpop.f32.mrf.mxu0  ;;  %v4639_v53 = vpop.f32.mrf.mxu1 }
 0x2d8   : > { %v10370_v3 = vadd.f32 %v4636_v48, %v10173_v51  ;;  %v4638_v28 = vadd.f32 %v4637_v0, %v4597_v14 }
 0x2d9   : > { %v4599_v17 = vpop.f32.mrf.mxu0  ;;  %v4640_v15 = vpop.f32.mrf.mxu1 }
 0x2da   : > { %v10373_v63 = vadd.f32 %v4638_v28, %v10184_v61  ;;  %v10379_v61 = vld [vmem:[#allocation9 + $0x8] sm:$0xf]  ;;  %v1819_v17 = vadd.f32 %v10235_v30, %v10245_v52 }
 0x2db   : > { %v10383_v29 = vrot.slane %v10379_v61, %v10092_v32  ;;  %v10387_v49 = vrot.slane %v10379_v61, %v10123_v57 }
 0x2dc   : > { %v8428_v25 = vpop.eup %8427 }
 0x2dd   : > { %v8430_v51 = vpop.eup %8429  ;;  %v4834_v9 = vadd.f32 1.0, %v8428_v25 }
 0x2de   : > { %v4835_v4 = vadd.f32 1.0, %v8430_v51  ;;  %v8432_v23 = vpop.eup %8431 }
 0x2df   : > { %8435 = vrcp.f32 %v4834_v9  ;;  %v8434_v58 = vpop.eup %8433  ;;  %v4862_v20 = vadd.f32 1.0, %v8432_v23 }
 0x2e0   : > { %8437 = vrcp.f32 %v4835_v4  ;;  %v4863_v48 = vadd.f32 1.0, %v8434_v58  ;;  %v8653_v58 = vld [vmem:[#allocation3 + $0x10] sm:$0xff] }
 0x2e1   : > { %8439 = vrcp.f32 %v4862_v20 }
 0x2e2   : > { %8441 = vrcp.f32 %v4863_v48 }
 0x2ec   : > { %v8436_v53 = vpop.eup %8435 }
 0x2ed   : > { %v8438_v24 = vpop.eup %8437 }
 0x2ee   : > { %v8440_v4 = vpop.eup %8439 }
 0x2ef   : > { %v8442_v23 = vpop.eup %8441  ;;  %v4886_v52 = vsub.f32 1.0, %v8440_v4 }
 0x2f0   : > { %v4887_v20 = vsub.f32 1.0, %v8442_v23 }
 0x313   : > { %v4676_v42 = vpop.f32.mrf.mxu0  ;;  %v4717_v54 = vpop.f32.mrf.mxu1 }
 0x314   : > { %v4677_v41 = vadd.f32 %v4676_v42, %v10383_v29  ;;  %v4894_v42 = vmul.f32 %v8653_v58, %v8440_v4  ;;  %v8664_v4 = vld [vmem:[#allocation6 + $0xcc] ss:$48 sps:$4 sm:$0xff]  }
 0x315   : > { %v4678_v31 = vpop.f32.mrf.mxu0  ;;  %v4719_v0 = vpop.f32.mrf.mxu1  ;;  %v8666_v58 = vld [vmem:[#allocation6 + $0x6c] ss:$48 sps:$4 sm:$0xff]  }
 0x316   : > { %v4718_v14 = vadd.f32 %v4717_v54, %v4677_v41  ;;  %v4679_v38 = vadd.f32 %v4678_v31, %v10387_v49  ;;  %v8654_v31 = vld [vmem:[#allocation3] sm:$0xff] }
 0x317   : > { %v4680_v32 = vpop.f32.mrf.mxu0  ;;  %v4721_v28 = vpop.f32.mrf.mxu1 }
 0x318   : > { %v4874_v57 = vmul.f32 %v8436_v53, %v4718_v14  ;;  %v4720_v15 = vadd.f32 %v4719_v0, %v4679_v38  ;;  %v4895_v0 = vmul.f32 %v8654_v31, %v8442_v23  ;;  %v7443_v53 = vmul.f32 -1.442695, %v10330_v34  ;;  %v8655_v28 = vld [vmem:[#allocation6 + $0x2a8] ss:$48 sps:$4 sm:$0xff]   ;;  %v8660_v34 = vld [vmem:[#allocation6 + $0x18c] ss:$48 sps:$4 sm:$0xff]  }
 0x319   : > { %v4681_v26 = vpop.f32.mrf.mxu0  ;;  %v4722_v19 = vpop.f32.mrf.mxu1  ;;  %v7444_v32 = vmul.f32 -1.442695, %v10333_v27  ;;  %v8662_v27 = vld [vmem:[#allocation6 + $0x12c] ss:$48 sps:$4 sm:$0xff]   ;;  %v10414_v31 = vrot.slane %v10379_v61, %v10081_v22 }
 0x31a   : > { %v4878_v25 = vadd.f32 %v4874_v57, %v1819_v17  ;;  %v4875_v51 = vmul.f32 %v8438_v24, %v4720_v15  ;;  %v8656_v17 = vld [vmem:[#allocation6 + $0x24c] ss:$48 sps:$4 sm:$0xff]   ;;  %v8657_v57 = vld [vmem:[#allocation6 + $0x248] ss:$48 sps:$4 sm:$0xff]   ;;  %v7447_v26 = vmul.f32 -1.442695, %v10370_v3 }
 0x31b   : > { %v8658_v15 = vld [vmem:[#allocation6 + $0x1ec] ss:$48 sps:$4 sm:$0xff]   ;;  %v8659_v24 = vld [vmem:[#allocation6 + $0x1e8] ss:$48 sps:$4 sm:$0xff]  }
 0x31c   : > { %8443 = vtanh.f32 %v4878_v25  ;;  %v4879_v9 = vadd.f32 %v4875_v51, %v1821_v6  ;;  %v8661_v19 = vld [vmem:[#allocation6 + $0x188] ss:$48 sps:$4 sm:$0xff]   ;;  %v7448_v6 = vmul.f32 -1.442695, %v10373_v63 }
 0x31d   : > { %v8663_v51 = vld [vmem:[#allocation6 + $0x128] ss:$48 sps:$4 sm:$0xff]  }
 0x31e   : > { %8445 = vtanh.f32 %v4879_v9  ;;  %v8667_v3 = vld [vmem:[#allocation6 + $0x68] ss:$48 sps:$4 sm:$0xff]  }
 0x31f   : > { %8447 = vpow2.f32 %v7443_v53  ;;  %v8669_v63 = vld [vmem:[#allocation6 + $0x8] ss:$48 sps:$4 sm:$0xff]  }
 0x320   : > { %8449 = vpow2.f32 %v7444_v32  ;;  %v8671_v32 = vld [vmem:[#allocation6 + $0x5a8] ss:$48 sps:$4 sm:$0xff]  }
 0x321   : > { %8451 = vpow2.f32 %v7447_v26 }
 0x322   : > { %8453 = vpow2.f32 %v7448_v6 }
 0x329   : > { %v8444_v30 = vpop.eup %8443 }
 0x32a   : > { %v4890_v54 = vmul.f32 %v8444_v30, %v4886_v52  ;;  %v8665_v30 = vld [vmem:[#allocation6 + $0xc8] ss:$48 sps:$4 sm:$0xff]  }
 0x32b   : > { %v8446_v41 = vpop.eup %8445 }
 0x32c   : > { %v4898_v1 = vadd.f32 %v4894_v42, %v4890_v54  ;;  %v4891_v44 = vmul.f32 %v8446_v41, %v4887_v20  ;;  %v8448_v25 = vpop.eup %8447  ;;  %v8668_v42 = vld [vmem:[#allocation6 + $0xc] ss:$48 sps:$4 sm:$0xff]   ;;  %v10410_v54 = vrot.slane %v10379_v61, %v10076_v18 }
 0x32d   : > { %v8450_v9 = vpop.eup %8449  ;;  %v4836_v23 = vadd.f32 1.0, %v8448_v25  ;;  %v8670_v41 = vld [vmem:[#allocation6 + $0x5ac] ss:$48 sps:$4 sm:$0xff]  }
 0x32e   : > { %4902 = vst [vmem:[%s10028_s12] sm:$0xff] %v4898_v1  ;;  %v4899_v48 = vadd.f32 %v4895_v0, %v4891_v44  ;;  %v10399_v38 = vpack.c.bf16 %v4898_v1, %v4898_v1  ;;  %v4837_v52 = vadd.f32 1.0, %v8450_v9  ;;  %v8452_v20 = vpop.eup %8451  ;;  %v8674_v9 = vld [vmem:[#allocation6 + $0x4ec] ss:$48 sps:$4 sm:$0xff]  }
 0x32f   : > { %8455 = vrcp.f32 %v4836_v23  ;;  %v8454_v0 = vpop.eup %8453 }
 0x330   : > { %4903 = vst [vmem:[%s10028_s12 + $0x8] sm:$0xff] %v4899_v48  ;;  %v10397_v14 = vpack.c.bf16 %v4899_v48, %v4899_v48  ;;  %8457 = vrcp.f32 %v4837_v52  ;;  %v4864_v48 = vadd.f32 1.0, %v8452_v20  ;;  %v4865_v18 = vadd.f32 1.0, %v8454_v0 }
 0x332   : > { %4942 = vmatprep.mubr.bf16.mxu0 %v10397_v14  ;;  %8459 = vrcp.f32 %v4864_v48  ;;  %v8683_v48 = vld [vmem:[#allocation3 + $0x18] sm:$0xff] }
 0x333   : > { %4943 = vmatmul.mubr.bf16.vlgmr.msra.gmra.mxu0 %v10399_v38  ;;  %8461 = vrcp.f32 %v4865_v18 }
 0x334   : > { %4993 = vmatpush1.bf16.msra.mxu0 %v8655_v28  ;;  %5024 = vmatprep.mubr.bf16.mxu0 %v10397_v14 }
 0x335   : > { %4994 = vmatprep.subr.bf16.mxu0 %v8656_v17 }
 0x338   : > { %4995 = vmatpush1.bf16.msra.mxu0 %v8657_v57  ;;  %v8672_v57 = vld [vmem:[#allocation6 + $0x54c] ss:$48 sps:$4 sm:$0xff]  }
 0x339   : > { %4996 = vmatprep.subr.bf16.mxu0 %v8658_v15 }
 0x33c   : > { %4997 = vmatpush1.bf16.msra.mxu0 %v8659_v24 }
 0x33d   : > { %4998 = vmatprep.subr.bf16.mxu0 %v8660_v34  ;;  %v8456_v34 = vpop.eup %8455 }
 0x33e   : > { %v8458_v6 = vpop.eup %8457 }
 0x33f   : > { %v8460_v20 = vpop.eup %8459 }
 0x340   : > { %4999 = vmatpush1.bf16.msra.mxu0 %v8661_v19  ;;  %v8462_v0 = vpop.eup %8461 }
 0x341   : > { %5000 = vmatprep.subr.bf16.mxu0 %v8662_v27  ;;  %v8673_v27 = vld [vmem:[#allocation6 + $0x548] ss:$48 sps:$4 sm:$0xff]  }
 0x344   : > { %5001 = vmatpush1.bf16.msra.mxu0 %v8663_v51 }
 0x345   : > { %5002 = vmatprep.subr.bf16.mxu0 %v8664_v4 }
 0x348   : > { %5003 = vmatpush1.bf16.msra.mxu0 %v8665_v30  ;;  %v8675_v30 = vld [vmem:[#allocation6 + $0x4e8] ss:$48 sps:$4 sm:$0xff]  }
 0x349   : > { %5004 = vmatprep.subr.bf16.mxu0 %v8666_v58  ;;  %v8676_v58 = vld [vmem:[#allocation6 + $0x48c] ss:$48 sps:$4 sm:$0xff]  }
 0x34c   : > { %5005 = vmatpush1.bf16.msra.mxu0 %v8667_v3  ;;  %v8677_v3 = vld [vmem:[#allocation6 + $0x488] ss:$48 sps:$4 sm:$0xff]  }
 0x34d   : > { %5006 = vmatprep.subr.bf16.mxu0 %v8668_v42  ;;  %v8678_v42 = vld [vmem:[#allocation6 + $0x42c] ss:$48 sps:$4 sm:$0xff]  }
 0x350   : > { %5007 = vmatpush1.bf16.msra.mxu0 %v8669_v63  ;;  %v8679_v63 = vld [vmem:[#allocation6 + $0x428] ss:$48 sps:$4 sm:$0xff]  }
 0x351   : > { %5008 = vmatprep.subr.bf16.mxu0 %v8670_v41  ;;  %v8680_v41 = vld [vmem:[#allocation6 + $0x3cc] ss:$48 sps:$4 sm:$0xff]  }
 0x353   : > { %v4758_v1 = vpop.f32.mrf.mxu0  ;;  %v4799_v44 = vpop.f32.mrf.mxu1 }
 0x354   : > { %v4759_v53 = vadd.f32 %v4758_v1, %v10410_v54  ;;  %5009 = vmatpush2.bf16.msra.mxu0 %v8671_v32  ;;  %v8681_v1 = vld [vmem:[#allocation6 + $0x3c8] ss:$48 sps:$4 sm:$0xff]  }
 0x355   : > { %v4760_v28 = vpop.f32.mrf.mxu0  ;;  %v4801_v17 = vpop.f32.mrf.mxu1  ;;  %5010 = vmatprep.subr.bf16.mxu0 %v8672_v57  ;;  %v8684_v57 = vld [vmem:[#allocation3 + $0x8] sm:$0xff] }
 0x356   : > { %v4800_v15 = vadd.f32 %v4799_v44, %v4759_v53  ;;  %v4761_v24 = vadd.f32 %v4760_v28, %v10414_v31  ;;  %v4896_v53 = vmul.f32 %v8683_v48, %v8460_v20  ;;  %v4889_v28 = vsub.f32 1.0, %v8462_v0  ;;  %v8707_v48 = vld [vmem:[#allocation6 + $0x6cc] ss:$48 sps:$4 sm:$0xff]  }
 0x357   : > { %v4762_v26 = vpop.f32.mrf.mxu0  ;;  %v4803_v22 = vpop.f32.mrf.mxu1  ;;  %v4897_v18 = vmul.f32 %v8684_v57, %v8462_v0  ;;  %v8702_v0 = vld [vmem:[#allocation6 + $0x190] ss:$48 sps:$4 sm:$0xff]   ;;  %v8712_v57 = vld [vmem:[#allocation6 + $0x74] ss:$48 sps:$4 sm:$0xff]  }
 0x358   : > { %v4876_v61 = vmul.f32 %v8456_v34, %v4800_v15  ;;  %v4802_v19 = vadd.f32 %v4801_v17, %v4761_v24  ;;  %5011 = vmatpush2.bf16.msra.mxu0 %v8673_v27  ;;  %v8685_v34 = vld [vmem:[#allocation6 + $0x368] ss:$48 sps:$4 sm:$0xff]   ;;  %v8686_v26 = vld [vmem:[#allocation6 + $0x30c] ss:$48 sps:$4 sm:$0xff]   ;;  %v8688_v27 = vld [vmem:[#allocation6 + $0x2b4] ss:$48 sps:$4 sm:$0xff]  }
 0x359   : > { %v4763_v25 = vpop.f32.mrf.mxu0  ;;  %v4804_v51 = vpop.f32.mrf.mxu1  ;;  %5012 = vmatprep.subr.bf16.mxu0 %v8674_v9  ;;  %v8691_v9 = vld [vmem:[#allocation6 + $0x84c] ss:$48 sps:$4 sm:$0xff]  }
 0x35a   : > { %v4880_v4 = vadd.f32 %v4876_v61, %v10240_v45  ;;  %v4877_v23 = vmul.f32 %v8458_v6, %v4802_v19  ;;  %v4888_v45 = vsub.f32 1.0, %v8460_v20  ;;  %v8687_v61 = vld [vmem:[#allocation6 + $0x308] ss:$48 sps:$4 sm:$0xff]   ;;  %v8690_v51 = vld [vmem:[#allocation6 + $0x2b0] ss:$48 sps:$4 sm:$0xff]  }
 0x35b   : > { %v8689_v25 = vld [vmem:[#allocation6 + $0x8a8] ss:$48 sps:$4 sm:$0xff]   ;;  %v8700_v20 = vld [vmem:[#allocation6 + $0x194] ss:$48 sps:$4 sm:$0xff]  }
 0x35c   : > { %8463 = vtanh.f32 %v4880_v4  ;;  %v4881_v52 = vadd.f32 %v4877_v23, %v10248_v40  ;;  %5013 = vmatpush2.bf16.msra.mxu0 %v8675_v30  ;;  %v8682_v40 = vld [vmem:[#allocation6 + $0x36c] ss:$48 sps:$4 sm:$0xff]   ;;  %v8692_v4 = vld [vmem:[#allocation6 + $0x254] ss:$48 sps:$4 sm:$0xff]   ;;  %v8693_v23 = vld [vmem:[#allocation6 + $0x848] ss:$48 sps:$4 sm:$0xff]  }
 0x35d   : > { %5014 = vmatprep.subr.bf16.mxu0 %v8676_v58  ;;  %v8695_v30 = vld [vmem:[#allocation6 + $0x7ec] ss:$48 sps:$4 sm:$0xff]   ;;  %v8696_v58 = vld [vmem:[#allocation6 + $0x1f4] ss:$48 sps:$4 sm:$0xff]  }
 0x35e   : > { %8465 = vtanh.f32 %v4881_v52  ;;  %v8694_v52 = vld [vmem:[#allocation6 + $0x250] ss:$48 sps:$4 sm:$0xff]  }
 0x360   : > { %5015 = vmatpush2.bf16.msra.mxu0 %v8677_v3  ;;  %v8697_v3 = vld [vmem:[#allocation6 + $0x7e8] ss:$48 sps:$4 sm:$0xff]  }
 0x361   : > { %5016 = vmatprep.subr.bf16.mxu0 %v8678_v42  ;;  %v8698_v42 = vld [vmem:[#allocation6 + $0x1f0] ss:$48 sps:$4 sm:$0xff]  }
 0x364   : > { %5017 = vmatpush2.bf16.msra.mxu0 %v8679_v63  ;;  %v8699_v63 = vld [vmem:[#allocation6 + $0x78c] ss:$48 sps:$4 sm:$0xff]  }
 0x365   : > { %5018 = vmatprep.subr.bf16.mxu0 %v8680_v41  ;;  %v8701_v41 = vld [vmem:[#allocation6 + $0x788] ss:$48 sps:$4 sm:$0xff]  }
 0x368   : > { %5019 = vmatpush2.bf16.msra.mxu0 %v8681_v1  ;;  %v8704_v1 = vld [vmem:[#allocation6 + $0x134] ss:$48 sps:$4 sm:$0xff]  }
 0x369   : > { %v8464_v44 = vpop.eup %8463  ;;  %5020 = vmatprep.subr.bf16.mxu0 %v8682_v40  ;;  %v8706_v40 = vld [vmem:[#allocation6 + $0x130] ss:$48 sps:$4 sm:$0xff]  }
 0x36a   : > { %v4892_v32 = vmul.f32 %v8464_v44, %v4888_v45  ;;  %v8703_v45 = vld [vmem:[#allocation6 + $0x72c] ss:$48 sps:$4 sm:$0xff]   ;;  %v8705_v44 = vld [vmem:[#allocation6 + $0x728] ss:$48 sps:$4 sm:$0xff]  }
 0x36b   : > { %v8466_v17 = vpop.eup %8465 }
 0x36c   : > { %v4900_v15 = vadd.f32 %v4896_v53, %v4892_v32  ;;  %v4893_v24 = vmul.f32 %v8466_v17, %v4889_v28  ;;  %5021 = vmatpush2.bf16.msra.mxu0 %v8685_v34  ;;  %v8708_v53 = vld [vmem:[#allocation6 + $0xd4] ss:$48 sps:$4 sm:$0xff]   ;;  %v8709_v32 = vld [vmem:[#allocation6 + $0x6c8] ss:$48 sps:$4 sm:$0xff]   ;;  %v8710_v28 = vld [vmem:[#allocation6 + $0xd0] ss:$48 sps:$4 sm:$0xff]  }
 0x36d   : > { %5022 = vmatprep.subr.bf16.mxu0 %v8686_v26  ;;  %v8711_v17 = vld [vmem:[#allocation6 + $0x66c] ss:$48 sps:$4 sm:$0xff]   ;;  %v8716_v34 = vld [vmem:[#allocation6 + $0x14] ss:$48 sps:$4 sm:$0xff]   ;;  %v8717_v26 = vld [vmem:[#allocation6 + $0x608] ss:$48 sps:$4 sm:$0xff]  }
 0x36e   : > { %4904 = vst [vmem:[%s10028_s12 + $0x10] sm:$0xff] %v4900_v15  ;;  %v4901_v22 = vadd.f32 %v4897_v18, %v4893_v24  ;;  %v10424_v6 = vpack.c.bf16 %v4900_v15, %v4900_v15  ;;  %v8713_v18 = vld [vmem:[#allocation6 + $0x668] ss:$48 sps:$4 sm:$0xff]   ;;  %v8714_v15 = vld [vmem:[#allocation6 + $0x70] ss:$48 sps:$4 sm:$0xff]  }
 0x36f   : > { %v8715_v24 = vld [vmem:[#allocation6 + $0x60c] ss:$48 sps:$4 sm:$0xff]  }
 0x370   : > { %4905 = vst [vmem:[%s10028_s12 + $0x18] sm:$0xff] %v4901_v22  ;;  %5023 = vmatpush2.bf16.msra.mxu0 %v8687_v61  ;;  %v10422_v19 = vpack.c.bf16 %v4901_v22, %v4901_v22  ;;  %v8718_v22 = vld [vmem:[#allocation6 + $0x10] ss:$48 sps:$4 sm:$0xff]   ;;  %v8719_v61 = vld [vmem:[#allocation6 + $0xbac] ss:$48 sps:$4 sm:$0xff]  }
 0x371   : > { %5074 = vmatprep.subr.bf16.mxu0 %v8688_v27  ;;  %v8720_v27 = vld [vmem:[#allocation6 + $0x5b4] ss:$48 sps:$4 sm:$0xff]  }
 0x372   : > { %4983 = vmatprep.mubr.bf16.mxu1 %v10422_v19 }
 0x373   : > { %5025 = vmatmul.mubr.bf16.vlgmr.msra.gmra.mxu0 %v10399_v38  ;;  %4984 = vmatmul.mubr.bf16.vlgmr.msra.gmra.mxu1 %v10424_v6 }
 0x374   : > { %5034 = vmatpush1.bf16.msra.mxu1 %v8689_v25  ;;  %5075 = vmatpush1.bf16.msra.mxu0 %v8690_v51  ;;  %v8721_v25 = vld [vmem:[#allocation6 + $0xba8] ss:$48 sps:$4 sm:$0xff]   ;;  %v8722_v51 = vld [vmem:[#allocation6 + $0x5b0] ss:$48 sps:$4 sm:$0xff]  }
 0x375   : > { %5106 = vmatprep.mubr.bf16.mxu0 %v10397_v14  ;;  %5065 = vmatprep.mubr.bf16.mxu1 %v10422_v19 }
 0x376   : > { %5035 = vmatprep.subr.bf16.mxu1 %v8691_v9  ;;  %5076 = vmatprep.subr.bf16.mxu0 %v8692_v4  ;;  %v8723_v9 = vld [vmem:[#allocation6 + $0xb4c] ss:$48 sps:$4 sm:$0xff]   ;;  %v8724_v4 = vld [vmem:[#allocation6 + $0x554] ss:$48 sps:$4 sm:$0xff]  }
 0x378   : > { %5036 = vmatpush1.bf16.msra.mxu1 %v8693_v23  ;;  %5077 = vmatpush1.bf16.msra.mxu0 %v8694_v52  ;;  %v8725_v23 = vld [vmem:[#allocation6 + $0xb48] ss:$48 sps:$4 sm:$0xff]   ;;  %v8726_v52 = vld [vmem:[#allocation6 + $0x550] ss:$48 sps:$4 sm:$0xff]  }
 0x379   : > { %5037 = vmatprep.subr.bf16.mxu1 %v8695_v30  ;;  %5078 = vmatprep.subr.bf16.mxu0 %v8696_v58  ;;  %v8727_v30 = vld [vmem:[#allocation6 + $0xaec] ss:$48 sps:$4 sm:$0xff]   ;;  %v8728_v58 = vld [vmem:[#allocation6 + $0x4f4] ss:$48 sps:$4 sm:$0xff]  }
 0x37c   : > { %5038 = vmatpush1.bf16.msra.mxu1 %v8697_v3  ;;  %5079 = vmatpush1.bf16.msra.mxu0 %v8698_v42  ;;  %v8729_v3 = vld [vmem:[#allocation6 + $0xae8] ss:$48 sps:$4 sm:$0xff]   ;;  %v8730_v42 = vld [vmem:[#allocation6 + $0x4f0] ss:$48 sps:$4 sm:$0xff]  }
 0x37d   : > { %5039 = vmatprep.subr.bf16.mxu1 %v8699_v63  ;;  %5080 = vmatprep.subr.bf16.mxu0 %v8700_v20  ;;  %v8731_v63 = vld [vmem:[#allocation6 + $0xa8c] ss:$48 sps:$4 sm:$0xff]   ;;  %v8732_v20 = vld [vmem:[#allocation6 + $0x494] ss:$48 sps:$4 sm:$0xff]  }
 0x380   : > { %5040 = vmatpush1.bf16.msra.mxu1 %v8701_v41  ;;  %5081 = vmatpush1.bf16.msra.mxu0 %v8702_v0  ;;  %v8733_v41 = vld [vmem:[#allocation6 + $0xa88] ss:$48 sps:$4 sm:$0xff]   ;;  %v8734_v0 = vld [vmem:[#allocation6 + $0x490] ss:$48 sps:$4 sm:$0xff]  }
 0x381   : > { %5041 = vmatprep.subr.bf16.mxu1 %v8703_v45  ;;  %5082 = vmatprep.subr.bf16.mxu0 %v8704_v1  ;;  %v8735_v45 = vld [vmem:[#allocation6 + $0xa2c] ss:$48 sps:$4 sm:$0xff]   ;;  %v8736_v1 = vld [vmem:[#allocation6 + $0x434] ss:$48 sps:$4 sm:$0xff]  }
 0x384   : > { %5042 = vmatpush1.bf16.msra.mxu1 %v8705_v44  ;;  %5083 = vmatpush1.bf16.msra.mxu0 %v8706_v40  ;;  %v8737_v44 = vld [vmem:[#allocation6 + $0xa28] ss:$48 sps:$4 sm:$0xff]   ;;  %v8738_v40 = vld [vmem:[#allocation6 + $0x430] ss:$48 sps:$4 sm:$0xff]  }
 0x385   : > { %5043 = vmatprep.subr.bf16.mxu1 %v8707_v48  ;;  %5084 = vmatprep.subr.bf16.mxu0 %v8708_v53  ;;  %v8739_v48 = vld [vmem:[#allocation6 + $0x9cc] ss:$48 sps:$4 sm:$0xff]   ;;  %v8740_v53 = vld [vmem:[#allocation6 + $0x3d4] ss:$48 sps:$4 sm:$0xff]  }
 0x388   : > { %5044 = vmatpush1.bf16.msra.mxu1 %v8709_v32  ;;  %5085 = vmatpush1.bf16.msra.mxu0 %v8710_v28  ;;  %v8741_v32 = vld [vmem:[#allocation6 + $0x9c8] ss:$48 sps:$4 sm:$0xff]   ;;  %v8742_v28 = vld [vmem:[#allocation6 + $0x3d0] ss:$48 sps:$4 sm:$0xff]  }
 0x389   : > { %5045 = vmatprep.subr.bf16.mxu1 %v8711_v17  ;;  %5086 = vmatprep.subr.bf16.mxu0 %v8712_v57  ;;  %v8743_v17 = vld [vmem:[#allocation6 + $0x96c] ss:$48 sps:$4 sm:$0xff]   ;;  %v8744_v57 = vld [vmem:[#allocation6 + $0x374] ss:$48 sps:$4 sm:$0xff]  }
 0x38c   : > { %5046 = vmatpush1.bf16.msra.mxu1 %v8713_v18  ;;  %5087 = vmatpush1.bf16.msra.mxu0 %v8714_v15  ;;  %v8745_v18 = vld [vmem:[#allocation6 + $0x968] ss:$48 sps:$4 sm:$0xff]   ;;  %v8746_v15 = vld [vmem:[#allocation6 + $0x370] ss:$48 sps:$4 sm:$0xff]  }
 0x38d   : > { %5047 = vmatprep.subr.bf16.mxu1 %v8715_v24  ;;  %5088 = vmatprep.subr.bf16.mxu0 %v8716_v34  ;;  %v8747_v24 = vld [vmem:[#allocation6 + $0x90c] ss:$48 sps:$4 sm:$0xff]   ;;  %v8748_v34 = vld [vmem:[#allocation6 + $0x314] ss:$48 sps:$4 sm:$0xff]  }
 0x390   : > { %5048 = vmatpush1.bf16.msra.mxu1 %v8717_v26  ;;  %5089 = vmatpush1.bf16.msra.mxu0 %v8718_v22  ;;  %v8749_v26 = vld [vmem:[#allocation6 + $0x908] ss:$48 sps:$4 sm:$0xff]   ;;  %v8750_v22 = vld [vmem:[#allocation6 + $0x310] ss:$48 sps:$4 sm:$0xff]  }
 0x391   : > { %5049 = vmatprep.subr.bf16.mxu1 %v8719_v61  ;;  %5090 = vmatprep.subr.bf16.mxu0 %v8720_v27  ;;  %v8751_v61 = vld [vmem:[#allocation6 + $0x8b4] ss:$48 sps:$4 sm:$0xff]   ;;  %v8752_v27 = vld [vmem:[#allocation6 + $0x2bc] ss:$48 sps:$4 sm:$0xff]  }
 0x394   : > { %5050 = vmatpush2.bf16.msra.mxu1 %v8721_v25  ;;  %5091 = vmatpush2.bf16.msra.mxu0 %v8722_v51  ;;  %v8753_v25 = vld [vmem:[#allocation6 + $0x8b0] ss:$48 sps:$4 sm:$0xff]   ;;  %v8754_v51 = vld [vmem:[#allocation6 + $0x2b8] ss:$48 sps:$4 sm:$0xff]  }
 0x395   : > { %5051 = vmatprep.subr.bf16.mxu1 %v8723_v9  ;;  %5092 = vmatprep.subr.bf16.mxu0 %v8724_v4  ;;  %v8755_v9 = vld [vmem:[#allocation6 + $0x854] ss:$48 sps:$4 sm:$0xff]   ;;  %v8756_v4 = vld [vmem:[#allocation6 + $0x25c] ss:$48 sps:$4 sm:$0xff]  }
 0x398   : > { %5052 = vmatpush2.bf16.msra.mxu1 %v8725_v23  ;;  %5093 = vmatpush2.bf16.msra.mxu0 %v8726_v52  ;;  %v8757_v23 = vld [vmem:[#allocation6 + $0x850] ss:$48 sps:$4 sm:$0xff]   ;;  %v8758_v52 = vld [vmem:[#allocation6 + $0x258] ss:$48 sps:$4 sm:$0xff]  }
 0x399   : > { %5053 = vmatprep.subr.bf16.mxu1 %v8727_v30  ;;  %5094 = vmatprep.subr.bf16.mxu0 %v8728_v58  ;;  %v8759_v30 = vld [vmem:[#allocation6 + $0x7f4] ss:$48 sps:$4 sm:$0xff]   ;;  %v8760_v58 = vld [vmem:[#allocation6 + $0x1fc] ss:$48 sps:$4 sm:$0xff]  }
 0x39c   : > { %5054 = vmatpush2.bf16.msra.mxu1 %v8729_v3  ;;  %5095 = vmatpush2.bf16.msra.mxu0 %v8730_v42  ;;  %v8761_v3 = vld [vmem:[#allocation6 + $0x7f0] ss:$48 sps:$4 sm:$0xff]   ;;  %v8762_v42 = vld [vmem:[#allocation6 + $0x1f8] ss:$48 sps:$4 sm:$0xff]  }
 0x39d   : > { %5055 = vmatprep.subr.bf16.mxu1 %v8731_v63  ;;  %5096 = vmatprep.subr.bf16.mxu0 %v8732_v20  ;;  %v8763_v63 = vld [vmem:[#allocation6 + $0x794] ss:$48 sps:$4 sm:$0xff]   ;;  %v8764_v20 = vld [vmem:[#allocation6 + $0x19c] ss:$48 sps:$4 sm:$0xff]  }
 0x3a0   : > { %5056 = vmatpush2.bf16.msra.mxu1 %v8733_v41  ;;  %5097 = vmatpush2.bf16.msra.mxu0 %v8734_v0  ;;  %v8765_v41 = vld [vmem:[#allocation6 + $0x790] ss:$48 sps:$4 sm:$0xff]   ;;  %v8766_v0 = vld [vmem:[#allocation6 + $0x198] ss:$48 sps:$4 sm:$0xff]  }
 0x3a1   : > { %5057 = vmatprep.subr.bf16.mxu1 %v8735_v45  ;;  %5098 = vmatprep.subr.bf16.mxu0 %v8736_v1  ;;  %v8767_v45 = vld [vmem:[#allocation6 + $0x734] ss:$48 sps:$4 sm:$0xff]   ;;  %v8768_v1 = vld [vmem:[#allocation6 + $0x13c] ss:$48 sps:$4 sm:$0xff]  }
 0x3a4   : > { %5058 = vmatpush2.bf16.msra.mxu1 %v8737_v44  ;;  %5099 = vmatpush2.bf16.msra.mxu0 %v8738_v40  ;;  %v8769_v44 = vld [vmem:[#allocation6 + $0x730] ss:$48 sps:$4 sm:$0xff]   ;;  %v8770_v40 = vld [vmem:[#allocation6 + $0x138] ss:$48 sps:$4 sm:$0xff]  }
 0x3a5   : > { %5059 = vmatprep.subr.bf16.mxu1 %v8739_v48  ;;  %5100 = vmatprep.subr.bf16.mxu0 %v8740_v53  ;;  %v8771_v48 = vld [vmem:[#allocation6 + $0x6d4] ss:$48 sps:$4 sm:$0xff]   ;;  %v8772_v53 = vld [vmem:[#allocation6 + $0xdc] ss:$48 sps:$4 sm:$0xff]  }
 0x3a8   : > { %5060 = vmatpush2.bf16.msra.mxu1 %v8741_v32  ;;  %5101 = vmatpush2.bf16.msra.mxu0 %v8742_v28  ;;  %v8773_v32 = vld [vmem:[#allocation6 + $0x6d0] ss:$48 sps:$4 sm:$0xff]   ;;  %v8774_v28 = vld [vmem:[#allocation6 + $0xd8] ss:$48 sps:$4 sm:$0xff]  }
 0x3a9   : > { %5061 = vmatprep.subr.bf16.mxu1 %v8743_v17  ;;  %5102 = vmatprep.subr.bf16.mxu0 %v8744_v57  ;;  %v8775_v17 = vld [vmem:[#allocation6 + $0x674] ss:$48 sps:$4 sm:$0xff]   ;;  %v8776_v57 = vld [vmem:[#allocation6 + $0x7c] ss:$48 sps:$4 sm:$0xff]  }
 0x3ac   : > { %5062 = vmatpush2.bf16.msra.mxu1 %v8745_v18  ;;  %5103 = vmatpush2.bf16.msra.mxu0 %v8746_v15  ;;  %v8777_v18 = vld [vmem:[#allocation6 + $0x670] ss:$48 sps:$4 sm:$0xff]   ;;  %v8778_v15 = vld [vmem:[#allocation6 + $0x78] ss:$48 sps:$4 sm:$0xff]  }
 0x3ad   : > { %5063 = vmatprep.subr.bf16.mxu1 %v8747_v24  ;;  %5104 = vmatprep.subr.bf16.mxu0 %v8748_v34  ;;  %v8779_v24 = vld [vmem:[#allocation6 + $0x614] ss:$48 sps:$4 sm:$0xff]   ;;  %v8780_v34 = vld [vmem:[#allocation6 + $0x1c] ss:$48 sps:$4 sm:$0xff]  }
 0x3b0   : > { %5064 = vmatpush2.bf16.msra.mxu1 %v8749_v26  ;;  %5105 = vmatpush2.bf16.msra.mxu0 %v8750_v22  ;;  %v8781_v26 = vld [vmem:[#allocation6 + $0x610] ss:$48 sps:$4 sm:$0xff]   ;;  %v8782_v22 = vld [vmem:[#allocation6 + $0x18] ss:$48 sps:$4 sm:$0xff]  }
 0x3b1   : > { %5115 = vmatprep.subr.bf16.mxu1 %v8751_v61  ;;  %5156 = vmatprep.subr.bf16.mxu0 %v8752_v27  ;;  %v8783_v61 = vld [vmem:[#allocation6 + $0xbb4] ss:$48 sps:$4 sm:$0xff]   ;;  %v8784_v27 = vld [vmem:[#allocation6 + $0x5bc] ss:$48 sps:$4 sm:$0xff]  }
 0x3b3   : > { %5066 = vmatmul.mubr.bf16.vlgmr.msra.gmra.mxu1 %v10424_v6  ;;  %5107 = vmatmul.mubr.bf16.vlgmr.msra.gmra.mxu0 %v10399_v38 }
 0x3b4   : > { %5116 = vmatpush1.bf16.msra.mxu1 %v8753_v25  ;;  %5147 = vmatprep.mubr.bf16.mxu1 %v10422_v19  ;;  %v8785_v25 = vld [vmem:[#allocation6 + $0xbb0] ss:$48 sps:$4 sm:$0xff]  }
 0x3b5   : > { %5157 = vmatpush1.bf16.msra.mxu0 %v8754_v51  ;;  %5188 = vmatprep.mubr.bf16.mxu0 %v10397_v14  ;;  %v8786_v51 = vld [vmem:[#allocation6 + $0x5b8] ss:$48 sps:$4 sm:$0xff]  }
 0x3b6   : > { %5117 = vmatprep.subr.bf16.mxu1 %v8755_v9  ;;  %5158 = vmatprep.subr.bf16.mxu0 %v8756_v4  ;;  %v8787_v9 = vld [vmem:[#allocation6 + $0xb54] ss:$48 sps:$4 sm:$0xff]   ;;  %v8788_v4 = vld [vmem:[#allocation6 + $0x55c] ss:$48 sps:$4 sm:$0xff]  }
 0x3b8   : > { %5118 = vmatpush1.bf16.msra.mxu1 %v8757_v23  ;;  %v8789_v23 = vld [vmem:[#allocation6 + $0xb50] ss:$48 sps:$4 sm:$0xff]  }
 0x3b9   : > { %5159 = vmatpush1.bf16.msra.mxu0 %v8758_v52  ;;  %5119 = vmatprep.subr.bf16.mxu1 %v8759_v30  ;;  %v8790_v52 = vld [vmem:[#allocation6 + $0x558] ss:$48 sps:$4 sm:$0xff]   ;;  %v8791_v30 = vld [vmem:[#allocation6 + $0xaf4] ss:$48 sps:$4 sm:$0xff]  }
 0x3ba   : > { %5160 = vmatprep.subr.bf16.mxu0 %v8760_v58  ;;  %v8792_v58 = vld [vmem:[#allocation6 + $0x4fc] ss:$48 sps:$4 sm:$0xff]  }
 0x3bc   : > { %5120 = vmatpush1.bf16.msra.mxu1 %v8761_v3  ;;  %v8793_v3 = vld [vmem:[#allocation6 + $0xaf0] ss:$48 sps:$4 sm:$0xff]  }
 0x3bd   : > { %5161 = vmatpush1.bf16.msra.mxu0 %v8762_v42  ;;  %5121 = vmatprep.subr.bf16.mxu1 %v8763_v63  ;;  %v8794_v42 = vld [vmem:[#allocation6 + $0x4f8] ss:$48 sps:$4 sm:$0xff]   ;;  %v8795_v63 = vld [vmem:[#allocation6 + $0xa94] ss:$48 sps:$4 sm:$0xff]  }
 0x3be   : > { %5162 = vmatprep.subr.bf16.mxu0 %v8764_v20  ;;  %v8796_v20 = vld [vmem:[#allocation6 + $0x49c] ss:$48 sps:$4 sm:$0xff]  }
 0x3c0   : > { %5122 = vmatpush1.bf16.msra.mxu1 %v8765_v41  ;;  %v8797_v41 = vld [vmem:[#allocation6 + $0xa90] ss:$48 sps:$4 sm:$0xff]  }
 0x3c1   : > { %5163 = vmatpush1.bf16.msra.mxu0 %v8766_v0  ;;  %5123 = vmatprep.subr.bf16.mxu1 %v8767_v45  ;;  %v8798_v0 = vld [vmem:[#allocation6 + $0x498] ss:$48 sps:$4 sm:$0xff]   ;;  %v8799_v45 = vld [vmem:[#allocation6 + $0xa34] ss:$48 sps:$4 sm:$0xff]  }
 0x3c2   : > { %5164 = vmatprep.subr.bf16.mxu0 %v8768_v1  ;;  %v8800_v1 = vld [vmem:[#allocation6 + $0x43c] ss:$48 sps:$4 sm:$0xff]  }
 0x3c4   : > { %5124 = vmatpush1.bf16.msra.mxu1 %v8769_v44  ;;  %v8801_v44 = vld [vmem:[#allocation6 + $0xa30] ss:$48 sps:$4 sm:$0xff]  }
 0x3c5   : > { %5165 = vmatpush1.bf16.msra.mxu0 %v8770_v40  ;;  %5125 = vmatprep.subr.bf16.mxu1 %v8771_v48  ;;  %v8802_v40 = vld [vmem:[#allocation6 + $0x438] ss:$48 sps:$4 sm:$0xff]   ;;  %v8803_v48 = vld [vmem:[#allocation6 + $0x9d4] ss:$48 sps:$4 sm:$0xff]  }
 0x3c6   : > { %5166 = vmatprep.subr.bf16.mxu0 %v8772_v53  ;;  %v8804_v53 = vld [vmem:[#allocation6 + $0x3dc] ss:$48 sps:$4 sm:$0xff]  }
 0x3c8   : > { %5126 = vmatpush1.bf16.msra.mxu1 %v8773_v32  ;;  %v8805_v32 = vld [vmem:[#allocation6 + $0x9d0] ss:$48 sps:$4 sm:$0xff]  }
 0x3c9   : > { %5167 = vmatpush1.bf16.msra.mxu0 %v8774_v28  ;;  %5127 = vmatprep.subr.bf16.mxu1 %v8775_v17  ;;  %v8806_v28 = vld [vmem:[#allocation6 + $0x3d8] ss:$48 sps:$4 sm:$0xff]   ;;  %v8807_v17 = vld [vmem:[#allocation6 + $0x974] ss:$48 sps:$4 sm:$0xff]  }
 0x3ca   : > { %5168 = vmatprep.subr.bf16.mxu0 %v8776_v57  ;;  %v8808_v57 = vld [vmem:[#allocation6 + $0x37c] ss:$48 sps:$4 sm:$0xff]  }
 0x3cc   : > { %5128 = vmatpush1.bf16.msra.mxu1 %v8777_v18  ;;  %v8809_v18 = vld [vmem:[#allocation6 + $0x970] ss:$48 sps:$4 sm:$0xff]  }
 0x3cd   : > { %5169 = vmatpush1.bf16.msra.mxu0 %v8778_v15  ;;  %5129 = vmatprep.subr.bf16.mxu1 %v8779_v24  ;;  %v8810_v15 = vld [vmem:[#allocation6 + $0x378] ss:$48 sps:$4 sm:$0xff]   ;;  %v8811_v24 = vld [vmem:[#allocation6 + $0x914] ss:$48 sps:$4 sm:$0xff]  }
 0x3ce   : > { %5170 = vmatprep.subr.bf16.mxu0 %v8780_v34  ;;  %v8812_v34 = vld [vmem:[#allocation6 + $0x31c] ss:$48 sps:$4 sm:$0xff]  }
 0x3d0   : > { %5130 = vmatpush1.bf16.msra.mxu1 %v8781_v26  ;;  %v8813_v26 = vld [vmem:[#allocation6 + $0x910] ss:$48 sps:$4 sm:$0xff]  }
 0x3d1   : > { %5171 = vmatpush1.bf16.msra.mxu0 %v8782_v22  ;;  %5131 = vmatprep.subr.bf16.mxu1 %v8783_v61  ;;  %v8814_v22 = vld [vmem:[#allocation6 + $0x318] ss:$48 sps:$4 sm:$0xff]   ;;  %v8815_v61 = vld [vmem:[#allocation6 + $0x8bc] ss:$48 sps:$4 sm:$0xff]  }
 0x3d2   : > { %5172 = vmatprep.subr.bf16.mxu0 %v8784_v27  ;;  %v8816_v27 = vld [vmem:[#allocation6 + $0x2c4] ss:$48 sps:$4 sm:$0xff]  }
 0x3d4   : > { %5132 = vmatpush2.bf16.msra.mxu1 %v8785_v25 }
 0x3d5   : > { %5173 = vmatpush2.bf16.msra.mxu0 %v8786_v51  ;;  %5133 = vmatprep.subr.bf16.mxu1 %v8787_v9  ;;  %v8817_v51 = vld [vmem:[#allocation6 + $0x8b8] ss:$48 sps:$4 sm:$0xff]   ;;  %v8818_v9 = vld [vmem:[#allocation6 + $0x2c0] ss:$48 sps:$4 sm:$0xff]  }
 0x3d6   : > { %5174 = vmatprep.subr.bf16.mxu0 %v8788_v4 }
 0x3d8   : > { %5134 = vmatpush2.bf16.msra.mxu1 %v8789_v23  ;;  %v8819_v23 = vld [vmem:[#allocation6 + $0x85c] ss:$48 sps:$4 sm:$0xff]  }
 0x3d9   : > { %5175 = vmatpush2.bf16.msra.mxu0 %v8790_v52  ;;  %5135 = vmatprep.subr.bf16.mxu1 %v8791_v30  ;;  %v8820_v52 = vld [vmem:[#allocation6 + $0x264] ss:$48 sps:$4 sm:$0xff]  }
 0x3da   : > { %5176 = vmatprep.subr.bf16.mxu0 %v8792_v58  ;;  %v8821_v58 = vld [vmem:[#allocation6 + $0x858] ss:$48 sps:$4 sm:$0xff]  }
 0x3dc   : > { %5136 = vmatpush2.bf16.msra.mxu1 %v8793_v3  ;;  %v8822_v3 = vld [vmem:[#allocation6 + $0x260] ss:$48 sps:$4 sm:$0xff]  }
 0x3dd   : > { %5177 = vmatpush2.bf16.msra.mxu0 %v8794_v42  ;;  %5137 = vmatprep.subr.bf16.mxu1 %v8795_v63  ;;  %v8823_v63 = vld [vmem:[#allocation6 + $0x7fc] ss:$48 sps:$4 sm:$0xff]  }
 0x3de   : > { %5178 = vmatprep.subr.bf16.mxu0 %v8796_v20  ;;  %v8824_v20 = vld [vmem:[#allocation6 + $0x204] ss:$48 sps:$4 sm:$0xff]  }
 0x3e0   : > { %5138 = vmatpush2.bf16.msra.mxu1 %v8797_v41  ;;  %v8825_v41 = vld [vmem:[#allocation6 + $0x7f8] ss:$48 sps:$4 sm:$0xff]  }
 0x3e1   : > { %5179 = vmatpush2.bf16.msra.mxu0 %v8798_v0  ;;  %5139 = vmatprep.subr.bf16.mxu1 %v8799_v45  ;;  %v8826_v0 = vld [vmem:[#allocation6 + $0x200] ss:$48 sps:$4 sm:$0xff]   ;;  %v8827_v45 = vld [vmem:[#allocation6 + $0x79c] ss:$48 sps:$4 sm:$0xff]  }
 0x3e2   : > { %5180 = vmatprep.subr.bf16.mxu0 %v8800_v1  ;;  %v8828_v1 = vld [vmem:[#allocation6 + $0x1a4] ss:$48 sps:$4 sm:$0xff]  }
 0x3e4   : > { %5140 = vmatpush2.bf16.msra.mxu1 %v8801_v44  ;;  %v8829_v44 = vld [vmem:[#allocation6 + $0x798] ss:$48 sps:$4 sm:$0xff]  }
 0x3e5   : > { %5181 = vmatpush2.bf16.msra.mxu0 %v8802_v40  ;;  %5141 = vmatprep.subr.bf16.mxu1 %v8803_v48  ;;  %v8830_v40 = vld [vmem:[#allocation6 + $0x1a0] ss:$48 sps:$4 sm:$0xff]   ;;  %v8831_v48 = vld [vmem:[#allocation6 + $0x73c] ss:$48 sps:$4 sm:$0xff]  }
 0x3e6   : > { %5182 = vmatprep.subr.bf16.mxu0 %v8804_v53  ;;  %v8832_v53 = vld [vmem:[#allocation6 + $0x144] ss:$48 sps:$4 sm:$0xff]  }
 0x3e8   : > { %5142 = vmatpush2.bf16.msra.mxu1 %v8805_v32  ;;  %v8833_v32 = vld [vmem:[#allocation6 + $0x738] ss:$48 sps:$4 sm:$0xff]  }
 0x3e9   : > { %5183 = vmatpush2.bf16.msra.mxu0 %v8806_v28  ;;  %5143 = vmatprep.subr.bf16.mxu1 %v8807_v17  ;;  %v8834_v28 = vld [vmem:[#allocation6 + $0x140] ss:$48 sps:$4 sm:$0xff]   ;;  %v8835_v17 = vld [vmem:[#allocation6 + $0x6dc] ss:$48 sps:$4 sm:$0xff]  }
 0x3ea   : > { %5184 = vmatprep.subr.bf16.mxu0 %v8808_v57  ;;  %v8836_v57 = vld [vmem:[#allocation6 + $0xe4] ss:$48 sps:$4 sm:$0xff]  }
 0x3ec   : > { %5144 = vmatpush2.bf16.msra.mxu1 %v8809_v18  ;;  %v8837_v18 = vld [vmem:[#allocation6 + $0x6d8] ss:$48 sps:$4 sm:$0xff]  }
 0x3ed   : > { %5185 = vmatpush2.bf16.msra.mxu0 %v8810_v15  ;;  %5145 = vmatprep.subr.bf16.mxu1 %v8811_v24  ;;  %v8838_v15 = vld [vmem:[#allocation6 + $0xe0] ss:$48 sps:$4 sm:$0xff]   ;;  %v8839_v24 = vld [vmem:[#allocation6 + $0x67c] ss:$48 sps:$4 sm:$0xff]  }
 0x3ee   : > { %5186 = vmatprep.subr.bf16.mxu0 %v8812_v34  ;;  %v8840_v34 = vld [vmem:[#allocation6 + $0x84] ss:$48 sps:$4 sm:$0xff]  }
 0x3f0   : > { %5146 = vmatpush2.bf16.msra.mxu1 %v8813_v26  ;;  %v8841_v26 = vld [vmem:[#allocation6 + $0x678] ss:$48 sps:$4 sm:$0xff]  }
 0x3f1   : > { %5187 = vmatpush2.bf16.msra.mxu0 %v8814_v22  ;;  %5197 = vmatprep.subr.bf16.mxu1 %v8815_v61  ;;  %v8842_v22 = vld [vmem:[#allocation6 + $0x80] ss:$48 sps:$4 sm:$0xff]   ;;  %v8843_v61 = vld [vmem:[#allocation6 + $0x61c] ss:$48 sps:$4 sm:$0xff]  }
 0x3f2   : > { %5238 = vmatprep.subr.bf16.mxu0 %v8816_v27  ;;  %v8844_v27 = vld [vmem:[#allocation6 + $0x24] ss:$48 sps:$4 sm:$0xff]  }
 0x3f3   : > { %5148 = vmatmul.mubr.bf16.vlgmr.msra.gmra.mxu1 %v10424_v6  ;;  %v10436_v25 = vpop.f32.mrf.mxu0 }
 0x3f4   : > { %5189 = vmatmul.mubr.bf16.vlgmr.msra.gmra.mxu0 %v10399_v38  ;;  %5198 = vmatpush1.bf16.msra.mxu1 %v8817_v51  ;;  %v8845_v51 = vld [vmem:[#allocation6 + $0x618] ss:$48 sps:$4 sm:$0xff]  }
 0x3f5   : > { %5229 = vmatprep.mubr.bf16.mxu1 %v10422_v19  ;;  %5239 = vmatpush1.bf16.msra.mxu0 %v8818_v9  ;;  %v10440_v4 = vpop.f32.mrf.mxu0  ;;  %v8846_v9 = vld [vmem:[#allocation6 + $0x20] ss:$48 sps:$4 sm:$0xff]  }
 0x3f6   : > { %5270 = vmatprep.mubr.bf16.mxu0 %v10397_v14  ;;  %5199 = vmatprep.subr.bf16.mxu1 %v8819_v23  ;;  %v8847_v23 = vld [vmem:[#allocation6 + $0xbbc] ss:$48 sps:$4 sm:$0xff]  }
 0x3f7   : > { %5240 = vmatprep.subr.bf16.mxu0 %v8820_v52  ;;  %v4948_v30 = vpop.f32.mrf.mxu0  ;;  %v8848_v52 = vld [vmem:[#allocation6 + $0x5c4] ss:$48 sps:$4 sm:$0xff]  }
 0x3f8   : > { %5200 = vmatpush1.bf16.msra.mxu1 %v8821_v58  ;;  %v8849_v30 = vld [vmem:[#allocation6 + $0xbb8] ss:$48 sps:$4 sm:$0xff]   ;;  %v8850_v58 = vld [vmem:[#allocation6 + $0x5c0] ss:$48 sps:$4 sm:$0xff]  }
 0x3f9   : > { %5241 = vmatpush1.bf16.msra.mxu0 %v8822_v3  ;;  %v4949_v42 = vpop.f32.mrf.mxu0  ;;  %5201 = vmatprep.subr.bf16.mxu1 %v8823_v63  ;;  %v8851_v3 = vld [vmem:[#allocation6 + $0xb5c] ss:$48 sps:$4 sm:$0xff]   ;;  %v8853_v63 = vld [vmem:[#allocation6 + $0xb58] ss:$48 sps:$4 sm:$0xff]  }
 0x3fa   : > { %5242 = vmatprep.subr.bf16.mxu0 %v8824_v20  ;;  %v8852_v42 = vld [vmem:[#allocation6 + $0x564] ss:$48 sps:$4 sm:$0xff]   ;;  %v8854_v20 = vld [vmem:[#allocation6 + $0x560] ss:$48 sps:$4 sm:$0xff]  }
 0x3fc   : > { %5202 = vmatpush1.bf16.msra.mxu1 %v8825_v41  ;;  %v8855_v41 = vld [vmem:[#allocation6 + $0xafc] ss:$48 sps:$4 sm:$0xff]  }
 0x3fd   : > { %5243 = vmatpush1.bf16.msra.mxu0 %v8826_v0  ;;  %5203 = vmatprep.subr.bf16.mxu1 %v8827_v45  ;;  %v8856_v0 = vld [vmem:[#allocation6 + $0x504] ss:$48 sps:$4 sm:$0xff]   ;;  %v8857_v45 = vld [vmem:[#allocation6 + $0xaf8] ss:$48 sps:$4 sm:$0xff]  }
 0x3fe   : > { %5244 = vmatprep.subr.bf16.mxu0 %v8828_v1  ;;  %v8858_v1 = vld [vmem:[#allocation6 + $0x500] ss:$48 sps:$4 sm:$0xff]  }
 0x400   : > { %5204 = vmatpush1.bf16.msra.mxu1 %v8829_v44  ;;  %v8859_v44 = vld [vmem:[#allocation6 + $0xa9c] ss:$48 sps:$4 sm:$0xff]  }
 0x401   : > { %5245 = vmatpush1.bf16.msra.mxu0 %v8830_v40  ;;  %5205 = vmatprep.subr.bf16.mxu1 %v8831_v48  ;;  %v8860_v40 = vld [vmem:[#allocation6 + $0x4a4] ss:$48 sps:$4 sm:$0xff]   ;;  %v8861_v48 = vld [vmem:[#allocation6 + $0xa98] ss:$48 sps:$4 sm:$0xff]  }
 0x402   : > { %5246 = vmatprep.subr.bf16.mxu0 %v8832_v53  ;;  %v8862_v53 = vld [vmem:[#allocation6 + $0x4a0] ss:$48 sps:$4 sm:$0xff]  }
 0x404   : > { %5206 = vmatpush1.bf16.msra.mxu1 %v8833_v32  ;;  %v8863_v32 = vld [vmem:[#allocation6 + $0xa3c] ss:$48 sps:$4 sm:$0xff]  }
 0x405   : > { %5247 = vmatpush1.bf16.msra.mxu0 %v8834_v28  ;;  %5207 = vmatprep.subr.bf16.mxu1 %v8835_v17  ;;  %v8864_v28 = vld [vmem:[#allocation6 + $0x444] ss:$48 sps:$4 sm:$0xff]   ;;  %v8865_v17 = vld [vmem:[#allocation6 + $0xa38] ss:$48 sps:$4 sm:$0xff]  }
 0x406   : > { %5248 = vmatprep.subr.bf16.mxu0 %v8836_v57  ;;  %v8866_v57 = vld [vmem:[#allocation6 + $0x440] ss:$48 sps:$4 sm:$0xff]  }
 0x408   : > { %5208 = vmatpush1.bf16.msra.mxu1 %v8837_v18  ;;  %v8867_v18 = vld [vmem:[#allocation6 + $0x9dc] ss:$48 sps:$4 sm:$0xff]  }
 0x409   : > { %5249 = vmatpush1.bf16.msra.mxu0 %v8838_v15  ;;  %5209 = vmatprep.subr.bf16.mxu1 %v8839_v24  ;;  %v8868_v15 = vld [vmem:[#allocation6 + $0x3e4] ss:$48 sps:$4 sm:$0xff]   ;;  %v8869_v24 = vld [vmem:[#allocation6 + $0x9d8] ss:$48 sps:$4 sm:$0xff]  }
 0x40a   : > { %5250 = vmatprep.subr.bf16.mxu0 %v8840_v34  ;;  %v8870_v34 = vld [vmem:[#allocation6 + $0x3e0] ss:$48 sps:$4 sm:$0xff]  }
 0x40c   : > { %5210 = vmatpush1.bf16.msra.mxu1 %v8841_v26  ;;  %v8871_v26 = vld [vmem:[#allocation6 + $0x97c] ss:$48 sps:$4 sm:$0xff]  }
 0x40d   : > { %5251 = vmatpush1.bf16.msra.mxu0 %v8842_v22  ;;  %5211 = vmatprep.subr.bf16.mxu1 %v8843_v61  ;;  %v8872_v22 = vld [vmem:[#allocation6 + $0x384] ss:$48 sps:$4 sm:$0xff]   ;;  %v8873_v61 = vld [vmem:[#allocation6 + $0x978] ss:$48 sps:$4 sm:$0xff]  }
 0x40e   : > { %5252 = vmatprep.subr.bf16.mxu0 %v8844_v27  ;;  %v8874_v27 = vld [vmem:[#allocation6 + $0x380] ss:$48 sps:$4 sm:$0xff]  }
 0x410   : > { %5212 = vmatpush1.bf16.msra.mxu1 %v8845_v51  ;;  %v8875_v51 = vld [vmem:[#allocation6 + $0x91c] ss:$48 sps:$4 sm:$0xff]  }
 0x411   : > { %5253 = vmatpush1.bf16.msra.mxu0 %v8846_v9  ;;  %5213 = vmatprep.subr.bf16.mxu1 %v8847_v23  ;;  %v8876_v9 = vld [vmem:[#allocation6 + $0x324] ss:$48 sps:$4 sm:$0xff]   ;;  %v8877_v23 = vld [vmem:[#allocation6 + $0x918] ss:$48 sps:$4 sm:$0xff]  }
 0x412   : > { %5254 = vmatprep.subr.bf16.mxu0 %v8848_v52  ;;  %v8878_v52 = vld [vmem:[#allocation6 + $0x320] ss:$48 sps:$4 sm:$0xff]  }
 0x414   : > { %5214 = vmatpush2.bf16.msra.mxu1 %v8849_v30  ;;  %v8879_v30 = vld [vmem:[#allocation6 + $0x8c4] ss:$48 sps:$4 sm:$0xff]  }
 0x415   : > { %5255 = vmatpush2.bf16.msra.mxu0 %v8850_v58  ;;  %5215 = vmatprep.subr.bf16.mxu1 %v8851_v3  ;;  %v4945_v58 = vadd.f32 %v10436_v25, %v10295_v11  ;;  %v8880_v3 = vld [vmem:[#allocation6 + $0x2cc] ss:$48 sps:$4 sm:$0xff]  }
 0x416   : > { %5256 = vmatprep.subr.bf16.mxu0 %v8852_v42 }
 0x418   : > { %5216 = vmatpush2.bf16.msra.mxu1 %v8853_v63 }
 0x419   : > { %5257 = vmatpush2.bf16.msra.mxu0 %v8854_v20  ;;  %5217 = vmatprep.subr.bf16.mxu1 %v8855_v41  ;;  %v4947_v20 = vadd.f32 %v10440_v4, %v10299_v35 }
 0x41a   : > { %5258 = vmatprep.subr.bf16.mxu0 %v8856_v0  ;;  %v8881_v0 = vld [vmem:[#allocation6 + $0x8c0] ss:$48 sps:$4 sm:$0xff]  }
 0x41c   : > { %5218 = vmatpush2.bf16.msra.mxu1 %v8857_v45  ;;  %v8882_v45 = vld [vmem:[#allocation6 + $0x2c8] ss:$48 sps:$4 sm:$0xff]  }
 0x41d   : > { %5259 = vmatpush2.bf16.msra.mxu0 %v8858_v1  ;;  %5219 = vmatprep.subr.bf16.mxu1 %v8859_v44  ;;  %v1613_v44 = vadd.f32 %v10125_v59, %v10131_v2 }
 0x41e   : > { %5260 = vmatprep.subr.bf16.mxu0 %v8860_v40 }
 0x420   : > { %5220 = vmatpush2.bf16.msra.mxu1 %v8861_v48  ;;  %v8883_v48 = vld [vmem:[#allocation6 + $0x864] ss:$48 sps:$4 sm:$0xff]  }
 0x421   : > { %5261 = vmatpush2.bf16.msra.mxu0 %v8862_v53  ;;  %5221 = vmatprep.subr.bf16.mxu1 %v8863_v32  ;;  %v8884_v32 = vld [vmem:[#allocation6 + $0x26c] ss:$48 sps:$4 sm:$0xff]  }
 0x422   : > { %5262 = vmatprep.subr.bf16.mxu0 %v8864_v28 }
 0x424   : > { %5222 = vmatpush2.bf16.msra.mxu1 %v8865_v17 }
 0x425   : > { %5263 = vmatpush2.bf16.msra.mxu0 %v8866_v57  ;;  %5223 = vmatprep.subr.bf16.mxu1 %v8867_v18  ;;  %v8885_v57 = vld [vmem:[#allocation6 + $0x860] ss:$48 sps:$4 sm:$0xff]   ;;  %v8886_v18 = vld [vmem:[#allocation6 + $0x268] ss:$48 sps:$4 sm:$0xff]  }
 0x426   : > { %5264 = vmatprep.subr.bf16.mxu0 %v8868_v15 }
 0x428   : > { %5224 = vmatpush2.bf16.msra.mxu1 %v8869_v24  ;;  %v8887_v24 = vld [vmem:[#allocation6 + $0x804] ss:$48 sps:$4 sm:$0xff]  }
 0x429   : > { %5265 = vmatpush2.bf16.msra.mxu0 %v8870_v34  ;;  %5225 = vmatprep.subr.bf16.mxu1 %v8871_v26  ;;  %v8890_v34 = vld [vmem:[#allocation6 + $0x208] ss:$48 sps:$4 sm:$0xff]   ;;  %v8891_v26 = vld [vmem:[#allocation6 + $0x7a4] ss:$48 sps:$4 sm:$0xff]  }
 0x42a   : > { %5266 = vmatprep.subr.bf16.mxu0 %v8872_v22  ;;  %v8892_v22 = vld [vmem:[#allocation6 + $0x1ac] ss:$48 sps:$4 sm:$0xff]  }
 0x42c   : > { %5226 = vmatpush2.bf16.msra.mxu1 %v8873_v61  ;;  %v8893_v61 = vld [vmem:[#allocation6 + $0x7a0] ss:$48 sps:$4 sm:$0xff]  }
 0x42d   : > { %5267 = vmatpush2.bf16.msra.mxu0 %v8874_v27  ;;  %5227 = vmatprep.subr.bf16.mxu1 %v8875_v51  ;;  %v8894_v27 = vld [vmem:[#allocation6 + $0x1a8] ss:$48 sps:$4 sm:$0xff]   ;;  %v8895_v51 = vld [vmem:[#allocation6 + $0x744] ss:$48 sps:$4 sm:$0xff]  }
 0x42e   : > { %5268 = vmatprep.subr.bf16.mxu0 %v8876_v9  ;;  %v8896_v9 = vld [vmem:[#allocation6 + $0x14c] ss:$48 sps:$4 sm:$0xff]  }
 0x430   : > { %5228 = vmatpush2.bf16.msra.mxu1 %v8877_v23  ;;  %v8897_v23 = vld [vmem:[#allocation6 + $0x740] ss:$48 sps:$4 sm:$0xff]  }
 0x431   : > { %5269 = vmatpush2.bf16.msra.mxu0 %v8878_v52  ;;  %5279 = vmatprep.subr.bf16.mxu1 %v8879_v30  ;;  %v8898_v52 = vld [vmem:[#allocation6 + $0x148] ss:$48 sps:$4 sm:$0xff]   ;;  %v8899_v30 = vld [vmem:[#allocation6 + $0x6e4] ss:$48 sps:$4 sm:$0xff]  }
 0x432   : > { %5320 = vmatprep.subr.bf16.mxu0 %v8880_v3  ;;  %v8901_v3 = vld [vmem:[#allocation6 + $0x6e0] ss:$48 sps:$4 sm:$0xff]  }
 0x433   : > { %v10445_v42 = vpop.f32.mrf.mxu0  ;;  %5230 = vmatmul.mubr.bf16.vlgmr.msra.gmra.mxu1 %v10424_v6  ;;  %v4985_v63 = vpop.f32.mrf.mxu1 }
 0x434   : > { %5271 = vmatmul.mubr.bf16.vlgmr.msra.gmra.mxu0 %v10399_v38  ;;  %v4986_v41 = vadd.f32 %v4985_v63, %v4945_v58  ;;  %5280 = vmatpush1.bf16.msra.mxu1 %v8881_v0  ;;  %v8900_v58 = vld [vmem:[#allocation6 + $0xec] ss:$48 sps:$4 sm:$0xff]   ;;  %v8902_v63 = vld [vmem:[#allocation6 + $0xe8] ss:$48 sps:$4 sm:$0xff]   ;;  %v8905_v0 = vld [vmem:[#allocation6 + $0x680] ss:$48 sps:$4 sm:$0xff]  }
 0x435   : > { %5311 = vmatprep.mubr.bf16.mxu1 %v10422_v19  ;;  %5321 = vmatpush1.bf16.msra.mxu0 %v8882_v45  ;;  %v10452_v25 = vpop.f32.mrf.mxu0  ;;  %v4987_v1 = vpop.f32.mrf.mxu1  ;;  %v8906_v45 = vld [vmem:[#allocation6 + $0x88] ss:$48 sps:$4 sm:$0xff]  }
 0x436   : > { %v10457_v40 = vadd.f32 %v4986_v41, %v10117_v46  ;;  %5352 = vmatprep.mubr.bf16.mxu0 %v10397_v14  ;;  %v4988_v4 = vadd.f32 %v4987_v1, %v4947_v20  ;;  %5281 = vmatprep.subr.bf16.mxu1 %v8883_v48  ;;  %v8888_v46 = vld [vmem:[#allocation6 + $0x20c] ss:$48 sps:$4 sm:$0xff]   ;;  %v8889_v14 = vld [vmem:[#allocation6 + $0x800] ss:$48 sps:$4 sm:$0xff]   ;;  %v8903_v20 = vld [vmem:[#allocation6 + $0x684] ss:$48 sps:$4 sm:$0xff]  }
 0x437   : > { %v5030_v53 = vpop.f32.mrf.mxu0  ;;  %5322 = vmatprep.subr.bf16.mxu0 %v8884_v32  ;;  %v4989_v28 = vpop.f32.mrf.mxu1  ;;  %v8904_v41 = vld [vmem:[#allocation6 + $0x8c] ss:$48 sps:$4 sm:$0xff]   ;;  %v8907_v1 = vld [vmem:[#allocation6 + $0x624] ss:$48 sps:$4 sm:$0xff]   ;;  %v8910_v48 = vld [vmem:[#allocation6 + $0x28] ss:$48 sps:$4 sm:$0xff]  }
 0x438   : > { %v10460_v17 = vadd.f32 %v4988_v4, %v1613_v44  ;;  %5282 = vmatpush1.bf16.msra.mxu1 %v8885_v57  ;;  %v8908_v44 = vld [vmem:[#allocation6 + $0x2c] ss:$48 sps:$4 sm:$0xff]   ;;  %v8909_v4 = vld [vmem:[#allocation6 + $0x620] ss:$48 sps:$4 sm:$0xff]   ;;  %v8911_v53 = vld [vmem:[#allocation6 + $0xbc4] ss:$48 sps:$4 sm:$0xff]  }
 0x439   : > { %5323 = vmatpush1.bf16.msra.mxu0 %v8886_v18  ;;  %v5031_v15 = vpop.f32.mrf.mxu0  ;;  %v4990_v59 = vpop.f32.mrf.mxu1  ;;  %5283 = vmatprep.subr.bf16.mxu1 %v8887_v24  ;;  %v8912_v32 = vld [vmem:[#allocation6 + $0x5cc] ss:$48 sps:$4 sm:$0xff]   ;;  %v8913_v28 = vld [vmem:[#allocation6 + $0xbc0] ss:$48 sps:$4 sm:$0xff]   ;;  %v8914_v57 = vld [vmem:[#allocation6 + $0x5c8] ss:$48 sps:$4 sm:$0xff]  }
 0x43a   : > { %5324 = vmatprep.subr.bf16.mxu0 %v8888_v46  ;;  %v8915_v18 = vld [vmem:[#allocation6 + $0xb64] ss:$48 sps:$4 sm:$0xff]   ;;  %v8916_v15 = vld [vmem:[#allocation6 + $0x56c] ss:$48 sps:$4 sm:$0xff]   ;;  %v8917_v59 = vld [vmem:[#allocation6 + $0xb60] ss:$48 sps:$4 sm:$0xff]  }
 0x43b   : > { %v8918_v24 = vld [vmem:[#allocation6 + $0x568] ss:$48 sps:$4 sm:$0xff]   ;;  %v8919_v46 = vld [vmem:[#allocation6 + $0xb04] ss:$48 sps:$4 sm:$0xff]  }
 0x43c   : > { %5284 = vmatpush1.bf16.msra.mxu1 %v8889_v14  ;;  %v8920_v14 = vld [vmem:[#allocation6 + $0x50c] ss:$48 sps:$4 sm:$0xff]  }
 0x43d   : > { %5325 = vmatpush1.bf16.msra.mxu0 %v8890_v34  ;;  %5285 = vmatprep.subr.bf16.mxu1 %v8891_v26  ;;  %v8921_v34 = vld [vmem:[#allocation6 + $0xb00] ss:$48 sps:$4 sm:$0xff]   ;;  %v8922_v26 = vld [vmem:[#allocation6 + $0x508] ss:$48 sps:$4 sm:$0xff]  }
 0x43e   : > { %5326 = vmatprep.subr.bf16.mxu0 %v8892_v22  ;;  %v8923_v22 = vld [vmem:[#allocation6 + $0xaa4] ss:$48 sps:$4 sm:$0xff]  }
 0x440   : > { %5286 = vmatpush1.bf16.msra.mxu1 %v8893_v61  ;;  %v8924_v61 = vld [vmem:[#allocation6 + $0x4ac] ss:$48 sps:$4 sm:$0xff]  }
 0x441   : > { %5327 = vmatpush1.bf16.msra.mxu0 %v8894_v27  ;;  %5287 = vmatprep.subr.bf16.mxu1 %v8895_v51  ;;  %v8925_v27 = vld [vmem:[#allocation6 + $0xaa0] ss:$48 sps:$4 sm:$0xff]   ;;  %v8926_v51 = vld [vmem:[#allocation6 + $0x4a8] ss:$48 sps:$4 sm:$0xff]  }
 0x442   : > { %5328 = vmatprep.subr.bf16.mxu0 %v8896_v9  ;;  %v8927_v9 = vld [vmem:[#allocation6 + $0xa44] ss:$48 sps:$4 sm:$0xff]  }
 0x444   : > { %5288 = vmatpush1.bf16.msra.mxu1 %v8897_v23  ;;  %v8928_v23 = vld [vmem:[#allocation6 + $0x44c] ss:$48 sps:$4 sm:$0xff]  }
 0x445   : > { %5329 = vmatpush1.bf16.msra.mxu0 %v8898_v52  ;;  %5289 = vmatprep.subr.bf16.mxu1 %v8899_v30  ;;  %v8929_v52 = vld [vmem:[#allocation6 + $0xa40] ss:$48 sps:$4 sm:$0xff]   ;;  %v8930_v30 = vld [vmem:[#allocation6 + $0x448] ss:$48 sps:$4 sm:$0xff]  }
 0x446   : > { %5330 = vmatprep.subr.bf16.mxu0 %v8900_v58  ;;  %v8931_v58 = vld [vmem:[#allocation6 + $0x9e4] ss:$48 sps:$4 sm:$0xff]  }
 0x448   : > { %5290 = vmatpush1.bf16.msra.mxu1 %v8901_v3  ;;  %v8932_v3 = vld [vmem:[#allocation6 + $0x3ec] ss:$48 sps:$4 sm:$0xff]  }
 0x449   : > { %5331 = vmatpush1.bf16.msra.mxu0 %v8902_v63  ;;  %5291 = vmatprep.subr.bf16.mxu1 %v8903_v20  ;;  %v8933_v63 = vld [vmem:[#allocation6 + $0x9e0] ss:$48 sps:$4 sm:$0xff]   ;;  %v8934_v20 = vld [vmem:[#allocation6 + $0x3e8] ss:$48 sps:$4 sm:$0xff]  }
 0x44a   : > { %5332 = vmatprep.subr.bf16.mxu0 %v8904_v41  ;;  %v8935_v41 = vld [vmem:[#allocation6 + $0x984] ss:$48 sps:$4 sm:$0xff]  }
 0x44c   : > { %5292 = vmatpush1.bf16.msra.mxu1 %v8905_v0  ;;  %v8936_v0 = vld [vmem:[#allocation6 + $0x38c] ss:$48 sps:$4 sm:$0xff]  }
 0x44d   : > { %5333 = vmatpush1.bf16.msra.mxu0 %v8906_v45  ;;  %5293 = vmatprep.subr.bf16.mxu1 %v8907_v1  ;;  %v8937_v45 = vld [vmem:[#allocation6 + $0x980] ss:$48 sps:$4 sm:$0xff]   ;;  %v8938_v1 = vld [vmem:[#allocation6 + $0x388] ss:$48 sps:$4 sm:$0xff]  }
 0x44e   : > { %5334 = vmatprep.subr.bf16.mxu0 %v8908_v44  ;;  %v8939_v44 = vld [vmem:[#allocation6 + $0x924] ss:$48 sps:$4 sm:$0xff]  }
 0x450   : > { %5294 = vmatpush1.bf16.msra.mxu1 %v8909_v4  ;;  %v8940_v4 = vld [vmem:[#allocation6 + $0x32c] ss:$48 sps:$4 sm:$0xff]  }
 0x451   : > { %5335 = vmatpush1.bf16.msra.mxu0 %v8910_v48  ;;  %5295 = vmatprep.subr.bf16.mxu1 %v8911_v53  ;;  %v8941_v48 = vld [vmem:[#allocation6 + $0x920] ss:$48 sps:$4 sm:$0xff]   ;;  %v8942_v53 = vld [vmem:[#allocation6 + $0x328] ss:$48 sps:$4 sm:$0xff]  }
 0x452   : > { %5336 = vmatprep.subr.bf16.mxu0 %v8912_v32  ;;  %v8943_v32 = vld [vmem:[#allocation6 + $0x8cc] ss:$48 sps:$4 sm:$0xff]  }
 0x454   : > { %5296 = vmatpush2.bf16.msra.mxu1 %v8913_v28  ;;  %v5027_v28 = vadd.f32 %v10445_v42, %v10317_v43  ;;  %v8946_v42 = vld [vmem:[#allocation6 + $0x86c] ss:$48 sps:$4 sm:$0xff]  }
 0x455   : > { %5337 = vmatpush2.bf16.msra.mxu0 %v8914_v57  ;;  %5297 = vmatprep.subr.bf16.mxu1 %v8915_v18  ;;  %v8944_v57 = vld [vmem:[#allocation6 + $0x2a4] ss:$48 sps:$4 sm:$0xff]  }
 0x456   : > { %5338 = vmatprep.subr.bf16.mxu0 %v8916_v15 }
 0x458   : > { %5298 = vmatpush2.bf16.msra.mxu1 %v8917_v59  ;;  %v5029_v59 = vadd.f32 %v10452_v25, %v10321_v55  ;;  %v8947_v25 = vld [vmem:[#allocation6 + $0x2a0] ss:$48 sps:$4 sm:$0xff]  }
 0x459   : > { %5339 = vmatpush2.bf16.msra.mxu0 %v8918_v24  ;;  %5299 = vmatprep.subr.bf16.mxu1 %v8919_v46  ;;  %v8945_v46 = vld [vmem:[#allocation6 + $0x8c8] ss:$48 sps:$4 sm:$0xff]  }
 0x45a   : > { %5340 = vmatprep.subr.bf16.mxu0 %v8920_v14 }
 0x45c   : > { %5300 = vmatpush2.bf16.msra.mxu1 %v8921_v34 }
 0x45d   : > { %5341 = vmatpush2.bf16.msra.mxu0 %v8922_v26  ;;  %5301 = vmatprep.subr.bf16.mxu1 %v8923_v22  ;;  %v1666_v26 = vadd.f32 %v10127_v60, %v10096_v33  ;;  %v8952_v60 = vld [vmem:[#allocation6 + $0x1e4] ss:$48 sps:$4 sm:$0xff]  }
 0x45e   : > { %5342 = vmatprep.subr.bf16.mxu0 %v8924_v61 }
 0x460   : > { %5302 = vmatpush2.bf16.msra.mxu1 %v8925_v27 }
 0x461   : > { %5343 = vmatpush2.bf16.msra.mxu0 %v8926_v51  ;;  %5303 = vmatprep.subr.bf16.mxu1 %v8927_v9  ;;  %v8948_v51 = vld [vmem:[#allocation6 + $0x244] ss:$48 sps:$4 sm:$0xff]  }
 0x462   : > { %5344 = vmatprep.subr.bf16.mxu0 %v8928_v23 }
 0x464   : > { %5304 = vmatpush2.bf16.msra.mxu1 %v8929_v52 }
 0x465   : > { %5345 = vmatpush2.bf16.msra.mxu0 %v8930_v30  ;;  %5305 = vmatprep.subr.bf16.mxu1 %v8931_v58  ;;  %v8950_v30 = vld [vmem:[#allocation6 + $0x80c] ss:$48 sps:$4 sm:$0xff]   ;;  %v8951_v58 = vld [vmem:[#allocation6 + $0x240] ss:$48 sps:$4 sm:$0xff]  }
 0x466   : > { %5346 = vmatprep.subr.bf16.mxu0 %v8932_v3  ;;  %v8954_v3 = vld [vmem:[#allocation6 + $0x7ac] ss:$48 sps:$4 sm:$0xff]  }
 0x468   : > { %5306 = vmatpush2.bf16.msra.mxu1 %v8933_v63  ;;  %v8955_v63 = vld [vmem:[#allocation6 + $0x1e0] ss:$48 sps:$4 sm:$0xff]  }
 0x469   : > { %5347 = vmatpush2.bf16.msra.mxu0 %v8934_v20  ;;  %5307 = vmatprep.subr.bf16.mxu1 %v8935_v41  ;;  %v8956_v20 = vld [vmem:[#allocation6 + $0x184] ss:$48 sps:$4 sm:$0xff]   ;;  %v8957_v41 = vld [vmem:[#allocation6 + $0x7a8] ss:$48 sps:$4 sm:$0xff]  }
 0x46a   : > { %5348 = vmatprep.subr.bf16.mxu0 %v8936_v0  ;;  %v8958_v0 = vld [vmem:[#allocation6 + $0x74c] ss:$48 sps:$4 sm:$0xff]  }
 0x46c   : > { %5308 = vmatpush2.bf16.msra.mxu1 %v8937_v45  ;;  %v8959_v45 = vld [vmem:[#allocation6 + $0x180] ss:$48 sps:$4 sm:$0xff]  }
 0x46d   : > { %5349 = vmatpush2.bf16.msra.mxu0 %v8938_v1  ;;  %5309 = vmatprep.subr.bf16.mxu1 %v8939_v44  ;;  %v8960_v1 = vld [vmem:[#allocation6 + $0x124] ss:$48 sps:$4 sm:$0xff]   ;;  %v8961_v44 = vld [vmem:[#allocation6 + $0x748] ss:$48 sps:$4 sm:$0xff]  }
 0x46e   : > { %5350 = vmatprep.subr.bf16.mxu0 %v8940_v4  ;;  %v8962_v4 = vld [vmem:[#allocation6 + $0x6ec] ss:$48 sps:$4 sm:$0xff]  }
 0x470   : > { %5310 = vmatpush2.bf16.msra.mxu1 %v8941_v48  ;;  %v8963_v48 = vld [vmem:[#allocation6 + $0x120] ss:$48 sps:$4 sm:$0xff]  }
 0x471   : > { %5351 = vmatpush2.bf16.msra.mxu0 %v8942_v53  ;;  %5361 = vmatprep.subr.bf16.mxu1 %v8943_v32  ;;  %v8964_v53 = vld [vmem:[#allocation6 + $0xc4] ss:$48 sps:$4 sm:$0xff]   ;;  %v8965_v32 = vld [vmem:[#allocation6 + $0x6e8] ss:$48 sps:$4 sm:$0xff]  }
 0x472   : > { %5508 = vmatprep.subr.bf16.mxu0 %v8944_v57  ;;  %v8967_v57 = vld [vmem:[#allocation6 + $0xc0] ss:$48 sps:$4 sm:$0xff]  }
 0x473   : > { %v5067_v18 = vpop.f32.mrf.mxu1  ;;  %v10464_v15 = vpop.f32.mrf.mxu0  ;;  %5312 = vmatmul.mubr.bf16.vlgmr.msra.gmra.mxu1 %v10424_v6 }
 0x474   : > { %v5068_v24 = vadd.f32 %v5067_v18, %v5027_v28  ;;  %5353 = vmatmul.mubr.bf16.vlgmr.msra.gmra.mxu0 %v10399_v38  ;;  %5362 = vmatpush1.bf16.msra.mxu1 %v8945_v46  ;;  %v8966_v28 = vld [vmem:[#allocation6 + $0x68c] ss:$48 sps:$4 sm:$0xff]   ;;  %v8968_v18 = vld [vmem:[#allocation6 + $0x64] ss:$48 sps:$4 sm:$0xff]   ;;  %v8971_v46 = vld [vmem:[#allocation6 + $0x60] ss:$48 sps:$4 sm:$0xff]  }
 0x475   : > { %5393 = vmatprep.mubr.bf16.mxu1 %v10422_v19  ;;  %v5069_v14 = vpop.f32.mrf.mxu1  ;;  %v10471_v34 = vpop.f32.mrf.mxu0  ;;  %5363 = vmatprep.subr.bf16.mxu1 %v8946_v42  ;;  %v8949_v19 = vld [vmem:[#allocation6 + $0x868] ss:$48 sps:$4 sm:$0xff]  }
 0x476   : > { %v10476_v22 = vadd.f32 %v5068_v24, %v10120_v47  ;;  %v5070_v61 = vadd.f32 %v5069_v14, %v5029_v59  ;;  %5509 = vmatpush1.bf16.msra.mxu0 %v8947_v25  ;;  %v8953_v47 = vld [vmem:[#allocation6 + $0x808] ss:$48 sps:$4 sm:$0xff]   ;;  %v8970_v24 = vld [vmem:[#allocation6 + $0x62c] ss:$48 sps:$4 sm:$0xff]   ;;  %v8972_v14 = vld [vmem:[#allocation6 + $0x4] ss:$48 sps:$4 sm:$0xff]  }
 0x477   : > { %v5071_v27 = vpop.f32.mrf.mxu1  ;;  %v5112_v38 = vpop.f32.mrf.mxu0  ;;  %5510 = vmatprep.subr.bf16.mxu0 %v8948_v51  ;;  %v8969_v59 = vld [vmem:[#allocation6 + $0x688] ss:$48 sps:$4 sm:$0xff]   ;;  %v8976_v25 = vld [vmem:[#allocation6 + $0x5a4] ss:$48 sps:$4 sm:$0xff]   ;;  %v8979_v51 = vld [vmem:[#allocation6 + $0x5a0] ss:$48 sps:$4 sm:$0xff]  }
 0x478   : > { %v10478_v9 = vadd.f32 %v5070_v61, %v1666_v26  ;;  %5364 = vmatpush1.bf16.msra.mxu1 %v8949_v19  ;;  %v8973_v42 = vld [vmem:[#allocation6 + $0x628] ss:$48 sps:$4 sm:$0xff]   ;;  %v8974_v26 = vld [vmem:[#allocation6 + $0xbcc] ss:$48 sps:$4 sm:$0xff]   ;;  %v8975_v61 = vld [vmem:[#allocation6] ss:$48 sps:$4 sm:$0xff]  }
 0x479   : > { %v5072_v23 = vpop.f32.mrf.mxu1  ;;  %v5113_v52 = vpop.f32.mrf.mxu0  ;;  %5365 = vmatprep.subr.bf16.mxu1 %v8950_v30  ;;  %v8977_v27 = vld [vmem:[#allocation6 + $0xbc8] ss:$48 sps:$4 sm:$0xff]   ;;  %v8978_v38 = vld [vmem:[#allocation6 + $0xb6c] ss:$48 sps:$4 sm:$0xff]   ;;  %v8980_v19 = vld [vmem:[#allocation6 + $0x544] ss:$48 sps:$4 sm:$0xff]  }
 0x47a   : > { %5511 = vmatpush1.bf16.msra.mxu0 %v8951_v58  ;;  %v8981_v23 = vld [vmem:[#allocation6 + $0xb68] ss:$48 sps:$4 sm:$0xff]   ;;  %v8982_v52 = vld [vmem:[#allocation6 + $0xb0c] ss:$48 sps:$4 sm:$0xff]   ;;  %v8983_v30 = vld [vmem:[#allocation6 + $0x540] ss:$48 sps:$4 sm:$0xff]  }
 0x47b   : > { %5512 = vmatprep.subr.bf16.mxu0 %v8952_v60  ;;  %v8984_v58 = vld [vmem:[#allocation6 + $0x4e4] ss:$48 sps:$4 sm:$0xff]   ;;  %v8985_v60 = vld [vmem:[#allocation6 + $0xb08] ss:$48 sps:$4 sm:$0xff]  }
 0x47c   : > { %5366 = vmatpush1.bf16.msra.mxu1 %v8953_v47  ;;  %v8986_v47 = vld [vmem:[#allocation6 + $0xaac] ss:$48 sps:$4 sm:$0xff]  }
 0x47d   : > { %5367 = vmatprep.subr.bf16.mxu1 %v8954_v3  ;;  %v8987_v3 = vld [vmem:[#allocation6 + $0x4e0] ss:$48 sps:$4 sm:$0xff]  }
 0x47e   : > { %5513 = vmatpush1.bf16.msra.mxu0 %v8955_v63  ;;  %v8988_v63 = vld [vmem:[#allocation6 + $0x484] ss:$48 sps:$4 sm:$0xff]  }
 0x47f   : > { %5514 = vmatprep.subr.bf16.mxu0 %v8956_v20  ;;  %v8989_v20 = vld [vmem:[#allocation6 + $0xaa8] ss:$48 sps:$4 sm:$0xff]  }
 0x480   : > { %5368 = vmatpush1.bf16.msra.mxu1 %v8957_v41  ;;  %v8990_v41 = vld [vmem:[#allocation6 + $0xa4c] ss:$48 sps:$4 sm:$0xff]  }
 0x481   : > { %5369 = vmatprep.subr.bf16.mxu1 %v8958_v0  ;;  %v8991_v0 = vld [vmem:[#allocation6 + $0x480] ss:$48 sps:$4 sm:$0xff]  }
 0x482   : > { %5515 = vmatpush1.bf16.msra.mxu0 %v8959_v45  ;;  %v8992_v45 = vld [vmem:[#allocation6 + $0x424] ss:$48 sps:$4 sm:$0xff]  }
 0x483   : > { %5516 = vmatprep.subr.bf16.mxu0 %v8960_v1  ;;  %v8993_v1 = vld [vmem:[#allocation6 + $0xa48] ss:$48 sps:$4 sm:$0xff]  }
 0x484   : > { %5370 = vmatpush1.bf16.msra.mxu1 %v8961_v44  ;;  %v8994_v44 = vld [vmem:[#allocation6 + $0x9ec] ss:$48 sps:$4 sm:$0xff]  }
 0x485   : > { %5371 = vmatprep.subr.bf16.mxu1 %v8962_v4  ;;  %v8995_v4 = vld [vmem:[#allocation6 + $0x420] ss:$48 sps:$4 sm:$0xff]  }
 0x486   : > { %5517 = vmatpush1.bf16.msra.mxu0 %v8963_v48  ;;  %v8996_v48 = vld [vmem:[#allocation6 + $0x3c4] ss:$48 sps:$4 sm:$0xff]  }
 0x487   : > { %5518 = vmatprep.subr.bf16.mxu0 %v8964_v53  ;;  %v8997_v53 = vld [vmem:[#allocation6 + $0x9e8] ss:$48 sps:$4 sm:$0xff]  }
 0x488   : > { %5372 = vmatpush1.bf16.msra.mxu1 %v8965_v32  ;;  %v8998_v32 = vld [vmem:[#allocation6 + $0x98c] ss:$48 sps:$4 sm:$0xff]  }
 0x489   : > { %5373 = vmatprep.subr.bf16.mxu1 %v8966_v28  ;;  %v8999_v28 = vld [vmem:[#allocation6 + $0x3c0] ss:$48 sps:$4 sm:$0xff]  }
 0x48a   : > { %5519 = vmatpush1.bf16.msra.mxu0 %v8967_v57  ;;  %v9000_v57 = vld [vmem:[#allocation6 + $0x364] ss:$48 sps:$4 sm:$0xff]  }
 0x48b   : > { %5520 = vmatprep.subr.bf16.mxu0 %v8968_v18  ;;  %v9001_v18 = vld [vmem:[#allocation6 + $0x988] ss:$48 sps:$4 sm:$0xff]  }
 0x48c   : > { %5374 = vmatpush1.bf16.msra.mxu1 %v8969_v59  ;;  %v9002_v59 = vld [vmem:[#allocation6 + $0x92c] ss:$48 sps:$4 sm:$0xff]  }
 0x48d   : > { %5375 = vmatprep.subr.bf16.mxu1 %v8970_v24  ;;  %v9003_v24 = vld [vmem:[#allocation6 + $0x360] ss:$48 sps:$4 sm:$0xff]  }
 0x48e   : > { %5521 = vmatpush1.bf16.msra.mxu0 %v8971_v46  ;;  %v9004_v46 = vld [vmem:[#allocation6 + $0x304] ss:$48 sps:$4 sm:$0xff]  }
 0x48f   : > { %5522 = vmatprep.subr.bf16.mxu0 %v8972_v14  ;;  %v9005_v14 = vld [vmem:[#allocation6 + $0x928] ss:$48 sps:$4 sm:$0xff]  }
 0x490   : > { %5376 = vmatpush1.bf16.msra.mxu1 %v8973_v42  ;;  %v9006_v42 = vld [vmem:[#allocation6 + $0x8a4] ss:$48 sps:$4 sm:$0xff]  }
 0x491   : > { %5377 = vmatprep.subr.bf16.mxu1 %v8974_v26  ;;  %v5109_v26 = vadd.f32 %v10464_v15, %v10338_v39 }
 0x492   : > { %5523 = vmatpush1.bf16.msra.mxu0 %v8975_v61  ;;  %v9007_v61 = vld [vmem:[#allocation6 + $0x300] ss:$48 sps:$4 sm:$0xff]  }
 0x493   : > { %5524 = vmatprep.subr.bf16.mxu0 %v8976_v25 }
 0x494   : > { %5378 = vmatpush2.bf16.msra.mxu1 %v8977_v27  ;;  %v9008_v27 = vld [vmem:[#allocation6 + $0x2ac] ss:$48 sps:$4 sm:$0xff]  }
 0x495   : > { %5379 = vmatprep.subr.bf16.mxu1 %v8978_v38  ;;  %v5111_v38 = vadd.f32 %v10471_v34, %v10343_v10  ;;  %v9011_v34 = vld [vmem:[#allocation6 + $0x840] ss:$48 sps:$4 sm:$0xff]  }
 0x496   : > { %5525 = vmatpush2.bf16.msra.mxu0 %v8979_v51 }
 0x497   : > { %5526 = vmatprep.subr.bf16.mxu0 %v8980_v19 }
 0x498   : > { %5380 = vmatpush2.bf16.msra.mxu1 %v8981_v23  ;;  %v9009_v23 = vld [vmem:[#allocation6 + $0x8a0] ss:$48 sps:$4 sm:$0xff]  }
 0x499   : > { %5381 = vmatprep.subr.bf16.mxu1 %v8982_v52 }
 0x49a   : > { %5527 = vmatpush2.bf16.msra.mxu0 %v8983_v30  ;;  %v9010_v30 = vld [vmem:[#allocation6 + $0x844] ss:$48 sps:$4 sm:$0xff]  }
 0x49b   : > { %5528 = vmatprep.subr.bf16.mxu0 %v8984_v58 }
 0x49c   : > { %5382 = vmatpush2.bf16.msra.mxu1 %v8985_v60 }
 0x49d   : > { %5383 = vmatprep.subr.bf16.mxu1 %v8986_v47 }
 0x49e   : > { %5529 = vmatpush2.bf16.msra.mxu0 %v8987_v3 }
 0x49f   : > { %5530 = vmatprep.subr.bf16.mxu0 %v8988_v63 }
 0x4a0   : > { %5384 = vmatpush2.bf16.msra.mxu1 %v8989_v20  ;;  %v9012_v20 = vld [vmem:[#allocation6 + $0x7e4] ss:$48 sps:$4 sm:$0xff]  }
 0x4a1   : > { %5385 = vmatprep.subr.bf16.mxu1 %v8990_v41 }
 0x4a2   : > { %5531 = vmatpush2.bf16.msra.mxu0 %v8991_v0  ;;  %v9013_v0 = vld [vmem:[#allocation6 + $0x7e0] ss:$48 sps:$4 sm:$0xff]  }
 0x4a3   : > { %5532 = vmatprep.subr.bf16.mxu0 %v8992_v45  ;;  %v9014_v45 = vld [vmem:[#allocation6 + $0x784] ss:$48 sps:$4 sm:$0xff]  }
 0x4a4   : > { %5386 = vmatpush2.bf16.msra.mxu1 %v8993_v1  ;;  %v9016_v1 = vld [vmem:[#allocation6 + $0x724] ss:$48 sps:$4 sm:$0xff]  }
 0x4a5   : > { %5387 = vmatprep.subr.bf16.mxu1 %v8994_v44  ;;  %v9017_v44 = vld [vmem:[#allocation6 + $0x720] ss:$48 sps:$4 sm:$0xff]  }
 0x4a6   : > { %5533 = vmatpush2.bf16.msra.mxu0 %v8995_v4  ;;  %v9018_v4 = vld [vmem:[#allocation6 + $0x6c4] ss:$48 sps:$4 sm:$0xff]  }
 0x4a7   : > { %5534 = vmatprep.subr.bf16.mxu0 %v8996_v48  ;;  %v9020_v48 = vld [vmem:[#allocation6 + $0x664] ss:$48 sps:$4 sm:$0xff]  }
 0x4a8   : > { %5388 = vmatpush2.bf16.msra.mxu1 %v8997_v53  ;;  %v9021_v53 = vld [vmem:[#allocation6 + $0x660] ss:$48 sps:$4 sm:$0xff]  }
 0x4a9   : > { %5389 = vmatprep.subr.bf16.mxu1 %v8998_v32  ;;  %v9022_v32 = vld [vmem:[#allocation6 + $0x604] ss:$48 sps:$4 sm:$0xff]  }
 0x4aa   : > { %5535 = vmatpush2.bf16.msra.mxu0 %v8999_v28  ;;  %v9023_v28 = vld [vmem:[#allocation6 + $0x600] ss:$48 sps:$4 sm:$0xff]  }
 0x4ab   : > { %5536 = vmatprep.subr.bf16.mxu0 %v9000_v57  ;;  %v9024_v57 = vld [vmem:[#allocation6 + $0xba4] ss:$48 sps:$4 sm:$0xff]  }
 0x4ac   : > { %5390 = vmatpush2.bf16.msra.mxu1 %v9001_v18  ;;  %v9025_v18 = vld [vmem:[#allocation6 + $0xba0] ss:$48 sps:$4 sm:$0xff]  }
 0x4ad   : > { %5391 = vmatprep.subr.bf16.mxu1 %v9002_v59  ;;  %v9026_v59 = vld [vmem:[#allocation6 + $0xb44] ss:$48 sps:$4 sm:$0xff]  }
 0x4ae   : > { %5537 = vmatpush2.bf16.msra.mxu0 %v9003_v24  ;;  %v9027_v24 = vld [vmem:[#allocation6 + $0xb40] ss:$48 sps:$4 sm:$0xff]  }
 0x4af   : > { %5538 = vmatprep.subr.bf16.mxu0 %v9004_v46  ;;  %v9028_v46 = vld [vmem:[#allocation6 + $0xae4] ss:$48 sps:$4 sm:$0xff]  }
 0x4b0   : > { %5392 = vmatpush2.bf16.msra.mxu1 %v9005_v14  ;;  %v9029_v14 = vld [vmem:[#allocation6 + $0xae0] ss:$48 sps:$4 sm:$0xff]  }
 0x4b1   : > { %5549 = vmatprep.subr.bf16.mxu1 %v9006_v42  ;;  %v9030_v42 = vld [vmem:[#allocation6 + $0xa84] ss:$48 sps:$4 sm:$0xff]  }
 0x4b2   : > { %5539 = vmatpush2.bf16.msra.mxu0 %v9007_v61  ;;  %v9032_v61 = vld [vmem:[#allocation6 + $0xa24] ss:$48 sps:$4 sm:$0xff]  }
 0x4b3   : > { %v5149_v25 = vpop.f32.mrf.mxu1  ;;  %5394 = vmatmul.mubr.bf16.vlgmr.msra.gmra.mxu1 %v10424_v6  ;;  %5590 = vmatprep.subr.bf16.mxu0 %v9008_v27  ;;  %v9034_v27 = vld [vmem:[#allocation6 + $0x9c4] ss:$48 sps:$4 sm:$0xff]  }
 0x4b4   : > { %v5150_v51 = vadd.f32 %v5149_v25, %v5109_v26  ;;  %v10485_v19 = vpop.f32.mrf.mxu0  ;;  %5550 = vmatpush1.bf16.msra.mxu1 %v9009_v23  ;;  %v9031_v26 = vld [vmem:[#allocation6 + $0xa80] ss:$48 sps:$4 sm:$0xff]  }
 0x4b5   : > { %v5151_v52 = vpop.f32.mrf.mxu1  ;;  %5551 = vmatprep.subr.bf16.mxu1 %v9010_v30  ;;  %v9033_v25 = vld [vmem:[#allocation6 + $0xa20] ss:$48 sps:$4 sm:$0xff]  }
 0x4b6   : > { %v10488_v15 = vadd.f32 %v5150_v51, %v10194_v7  ;;  %v5152_v58 = vadd.f32 %v5151_v52, %v5111_v38  ;;  %v10490_v60 = vpop.f32.mrf.mxu0  ;;  %v9015_v7 = vld [vmem:[#allocation6 + $0x780] ss:$48 sps:$4 sm:$0xff]   ;;  %v9036_v51 = vld [vmem:[#allocation6 + $0x964] ss:$48 sps:$4 sm:$0xff]  }
 0x4b7   : > { %v5153_v6 = vpop.f32.mrf.mxu1  ;;  %v9035_v38 = vld [vmem:[#allocation6 + $0x9c0] ss:$48 sps:$4 sm:$0xff]   ;;  %v9038_v52 = vld [vmem:[#allocation6 + $0x904] ss:$48 sps:$4 sm:$0xff]  }
 0x4b8   : > { %v10493_v47 = vadd.f32 %v5152_v58, %v10200_v16  ;;  %v5194_v3 = vpop.f32.mrf.mxu0  ;;  %5552 = vmatpush1.bf16.msra.mxu1 %v9011_v34  ;;  %v9019_v16 = vld [vmem:[#allocation6 + $0x6c0] ss:$48 sps:$4 sm:$0xff]   ;;  %v9040_v58 = vld [vmem:[#allocation6 + $0x8ac] ss:$48 sps:$4 sm:$0xff]   ;;  %v5191_v6 = vadd.f32 %v10485_v19, %v10360_v62  ;;  %v5193_v34 = vadd.f32 %v10490_v60, %v10365_v13  ;;  %v7449_v19 = vmul.f32 -1.442695, %v10457_v40 }
 0x4b9   : > { %v5154_v63 = vpop.f32.mrf.mxu1  ;;  %5553 = vmatprep.subr.bf16.mxu1 %v9012_v20  ;;  %v9037_v23 = vld [vmem:[#allocation6 + $0x960] ss:$48 sps:$4 sm:$0xff]   ;;  %v7453_v60 = vmul.f32 -1.442695, %v10488_v15 }
 0x4ba   : > { %v5195_v41 = vpop.f32.mrf.mxu0  ;;  %v9039_v30 = vld [vmem:[#allocation6 + $0x900] ss:$48 sps:$4 sm:$0xff]   ;;  %8467 = vpow2.f32 %v7449_v19 }
 0x4bc   : > { %5554 = vmatpush1.bf16.msra.mxu1 %v9013_v0 }
 0x4bd   : > { %5555 = vmatprep.subr.bf16.mxu1 %v9014_v45 }
 0x4c0   : > { %5556 = vmatpush1.bf16.msra.mxu1 %v9015_v7 }
 0x4c1   : > { %5557 = vmatprep.subr.bf16.mxu1 %v9016_v1 }
 0x4c4   : > { %5558 = vmatpush1.bf16.msra.mxu1 %v9017_v44 }
 0x4c5   : > { %5559 = vmatprep.subr.bf16.mxu1 %v9018_v4 }
 0x4c8   : > { %5560 = vmatpush1.bf16.msra.mxu1 %v9019_v16 }
 0x4c9   : > { %5561 = vmatprep.subr.bf16.mxu1 %v9020_v48 }
 0x4cc   : > { %5562 = vmatpush1.bf16.msra.mxu1 %v9021_v53  ;;  %v7450_v53 = vmul.f32 -1.442695, %v10460_v17 }
 0x4cd   : > { %5563 = vmatprep.subr.bf16.mxu1 %v9022_v32  ;;  %v8468_v32 = vpop.eup %8467 }
 0x4ce   : > { %8469 = vpow2.f32 %v7450_v53 }
 0x4cf   : > { %8471 = vpow2.f32 %v7453_v60 }
 0x4d0   : > { %5564 = vmatpush1.bf16.msra.mxu1 %v9023_v28 }
 0x4d1   : > { %5565 = vmatprep.subr.bf16.mxu1 %v9024_v57  ;;  %v5431_v57 = vadd.f32 1.0, %v8468_v32  ;;  %v7451_v32 = vmul.f32 -1.442695, %v10476_v22  ;;  %v9048_v22 = vld [vmem:[#allocation6 + $0x18c] ss:$48 sps:$4 sm:$0xff]  }
 0x4d4   : > { %5566 = vmatpush2.bf16.msra.mxu1 %v9025_v18 }
 0x4d5   : > { %5567 = vmatprep.subr.bf16.mxu1 %v9026_v59 }
 0x4d8   : > { %5568 = vmatpush2.bf16.msra.mxu1 %v9027_v24 }
 0x4d9   : > { %5569 = vmatprep.subr.bf16.mxu1 %v9028_v46 }
 0x4db   : > { %v8470_v28 = vpop.eup %8469 }
 0x4dc   : > { %5570 = vmatpush2.bf16.msra.mxu1 %v9029_v14  ;;  %v8472_v18 = vpop.eup %8471 }
 0x4dd   : > { %5571 = vmatprep.subr.bf16.mxu1 %v9030_v42  ;;  %v5459_v24 = vadd.f32 1.0, %v8472_v18  ;;  %v9045_v18 = vld [vmem:[#allocation6 + $0x248] ss:$48 sps:$4 sm:$0xff]  }
 0x4e0   : > { %5572 = vmatpush2.bf16.msra.mxu1 %v9031_v26 }
 0x4e1   : > { %5573 = vmatprep.subr.bf16.mxu1 %v9032_v61 }
 0x4e4   : > { %5574 = vmatpush2.bf16.msra.mxu1 %v9033_v25 }
 0x4e5   : > { %5575 = vmatprep.subr.bf16.mxu1 %v9034_v27 }
 0x4e8   : > { %5576 = vmatpush2.bf16.msra.mxu1 %v9035_v38 }
 0x4e9   : > { %5577 = vmatprep.subr.bf16.mxu1 %v9036_v51 }
 0x4ec   : > { %5578 = vmatpush2.bf16.msra.mxu1 %v9037_v23 }
 0x4ed   : > { %5579 = vmatprep.subr.bf16.mxu1 %v9038_v52 }
 0x4f0   : > { %5580 = vmatpush2.bf16.msra.mxu1 %v9039_v30 }
 0x4f1   : > { %5631 = vmatprep.subr.bf16.mxu1 %v9040_v58 }
 0x4f3   : > { %v5231_v3 = vpop.f32.mrf.mxu1 }
 0x4f4   : > { %v5232_v63 = vadd.f32 %v5231_v3, %v5191_v6  ;;  %v5272_v20 = vpop.f32.mrf.mxu0 }
 0x4f5   : > { %v5233_v41 = vpop.f32.mrf.mxu1  ;;  %v5273_v40 = vadd.f32 %v5272_v20, %v10383_v29 }
 0x4f6   : > { %v10500_v0 = vadd.f32 %v5232_v63, %v10197_v8  ;;  %v5234_v45 = vadd.f32 %v5233_v41, %v5193_v34  ;;  %v5274_v7 = vpop.f32.mrf.mxu0  ;;  %v7454_v8 = vmul.f32 -1.442695, %v10493_v47 }
 0x4f7   : > { %v5235_v1 = vpop.f32.mrf.mxu1  ;;  %v5275_v14 = vadd.f32 %v5274_v7, %v10387_v49 }
 0x4f8   : > { %v10503_v44 = vadd.f32 %v5234_v45, %v10203_v21  ;;  %v5276_v4 = vpop.f32.mrf.mxu0  ;;  %8473 = vpow2.f32 %v7454_v8  ;;  %v5432_v21 = vadd.f32 1.0, %v8470_v28  ;;  %v9041_v45 = vld [vmem:[%s10028_s12] sm:$0xff]  ;;  %v7452_v28 = vmul.f32 -1.442695, %v10478_v9  ;;  %v9050_v9 = vld [vmem:[#allocation6 + $0x12c] ss:$48 sps:$4 sm:$0xff]  }
 0x4f9   : > { %v5236_v16 = vpop.f32.mrf.mxu1  ;;  %8475 = vrcp.f32 %v5431_v57  ;;  %v9043_v57 = vld [vmem:[#allocation6 + $0x2a8] ss:$48 sps:$4 sm:$0xff]  }
 0x4fa   : > { %v5277_v48 = vpop.f32.mrf.mxu0  ;;  %8477 = vrcp.f32 %v5432_v21  ;;  %v9042_v16 = vld [vmem:[%s10028_s12 + $0x8] sm:$0xff] }
 0x4fb   : > { %8479 = vrcp.f32 %v5459_v24  ;;  %v9044_v21 = vld [vmem:[#allocation6 + $0x24c] ss:$48 sps:$4 sm:$0xff]   ;;  %v9047_v24 = vld [vmem:[#allocation6 + $0x1e8] ss:$48 sps:$4 sm:$0xff]  }
 0x505   : > { %v8474_v59 = vpop.eup %8473 }
 0x506   : > { %v5460_v46 = vadd.f32 1.0, %v8474_v59  ;;  %v8476_v47 = vpop.eup %8475  ;;  %v9046_v59 = vld [vmem:[#allocation6 + $0x1ec] ss:$48 sps:$4 sm:$0xff]  }
 0x507   : > { %v8478_v38 = vpop.eup %8477 }
 0x508   : > { %8481 = vrcp.f32 %v5460_v46  ;;  %v8480_v34 = vpop.eup %8479  ;;  %v7456_v46 = vmul.f32 -1.442695, %v10503_v44  ;;  %v9057_v44 = vld [vmem:[#allocation6 + $0x8] ss:$48 sps:$4 sm:$0xff]  }
 0x509   : > { %v5483_v20 = vsub.f32 1.0, %v8480_v34  ;;  %v5491_v7 = vmul.f32 %v9041_v45, %v8480_v34  ;;  %v9059_v34 = vld [vmem:[#allocation6 + $0x5a8] ss:$48 sps:$4 sm:$0xff]  }
 0x515   : > { %v8482_v63 = vpop.eup %8481 }
 0x516   : > { %v5484_v4 = vsub.f32 1.0, %v8482_v63  ;;  %v5492_v48 = vmul.f32 %v9042_v16, %v8482_v63 }
 0x533   : > { %v5313_v17 = vpop.f32.mrf.mxu1 }
 0x534   : > { %v5314_v15 = vadd.f32 %v5313_v17, %v5273_v40  ;;  %v10511_v42 = vpop.f32.mrf.mxu0  ;;  %v7455_v40 = vmul.f32 -1.442695, %v10500_v0  ;;  %v9049_v17 = vld [vmem:[#allocation6 + $0x188] ss:$48 sps:$4 sm:$0xff]  }
 0x535   : > { %v5315_v26 = vpop.f32.mrf.mxu1  ;;  %v9055_v0 = vld [vmem:[#allocation6 + $0x68] ss:$48 sps:$4 sm:$0xff]  }
 0x536   : > { %v5471_v61 = vmul.f32 %v8476_v47, %v5314_v15  ;;  %v5316_v25 = vadd.f32 %v5315_v26, %v5275_v14  ;;  %v10513_v27 = vpop.f32.mrf.mxu0  ;;  %v9051_v15 = vld [vmem:[#allocation6 + $0x128] ss:$48 sps:$4 sm:$0xff]   ;;  %v9052_v26 = vld [vmem:[#allocation6 + $0xcc] ss:$48 sps:$4 sm:$0xff]  }
 0x537   : > { %v5317_v51 = vpop.f32.mrf.mxu1  ;;  %v5357_v45 = vadd.f32 %v10513_v27, %v10414_v31 }
 0x538   : > { %v5475_v23 = vadd.f32 %v5471_v61, %v10256_v36  ;;  %v5472_v52 = vmul.f32 %v8478_v38, %v5316_v25  ;;  %v5358_v30 = vpop.f32.mrf.mxu0  ;;  %v9053_v38 = vld [vmem:[#allocation6 + $0xc8] ss:$48 sps:$4 sm:$0xff]   ;;  %v9054_v51 = vld [vmem:[#allocation6 + $0x6c] ss:$48 sps:$4 sm:$0xff]  }
 0x539   : > { %v5318_v58 = vpop.f32.mrf.mxu1  ;;  %v9058_v30 = vld [vmem:[#allocation6 + $0x5ac] ss:$48 sps:$4 sm:$0xff]  }
 0x53a   : > { %8483 = vtanh.f32 %v5475_v23  ;;  %v5476_v6 = vadd.f32 %v5472_v52, %v10262_v37  ;;  %v5359_v3 = vpop.f32.mrf.mxu0  ;;  %v9056_v23 = vld [vmem:[#allocation6 + $0xc] ss:$48 sps:$4 sm:$0xff]  }
 0x53b   : > { %v5355_v3 = vadd.f32 %v10511_v42, %v10410_v54  ;;  %v9062_v42 = vld [vmem:[#allocation6 + $0x4ec] ss:$48 sps:$4 sm:$0xff]  }
 0x53c   : > { %8485 = vtanh.f32 %v5476_v6 }
 0x53d   : > { %8487 = vpow2.f32 %v7451_v32 }
 0x53e   : > { %8489 = vpow2.f32 %v7452_v28 }
 0x53f   : > { %8491 = vpow2.f32 %v7455_v40 }
 0x540   : > { %8493 = vpow2.f32 %v7456_v46  ;;  %v9070_v46 = vld [vmem:[#allocation6 + $0x36c] ss:$48 sps:$4 sm:$0xff]  }
 0x547   : > { %v8484_v41 = vpop.eup %8483 }
 0x548   : > { %v5487_v1 = vmul.f32 %v8484_v41, %v5483_v20  ;;  %v9060_v20 = vld [vmem:[#allocation6 + $0x54c] ss:$48 sps:$4 sm:$0xff]  }
 0x549   : > { %v8486_v36 = vpop.eup %8485 }
 0x54a   : > { %v5495_v19 = vadd.f32 %v5491_v7, %v5487_v1  ;;  %v5488_v53 = vmul.f32 %v8486_v36, %v5484_v4  ;;  %v8488_v14 = vpop.eup %8487 }
 0x54b   : > { %v8490_v47 = vpop.eup %8489  ;;  %v5433_v61 = vadd.f32 1.0, %v8488_v14  ;;  %v9071_v14 = vld [vmem:[%s10028_s12 + $0x10] sm:$0xff] }
 0x54c   : > { %7457 = vst [vmem:[%s10028_s12 + $0x20] sm:$0xff] %v5495_v19  ;;  %v5496_v60 = vadd.f32 %v5492_v48, %v5488_v53  ;;  %v10523_v8 = vpack.c.bf16 %v5495_v19, %v5495_v19  ;;  %v5434_v25 = vadd.f32 1.0, %v8490_v47  ;;  %v8492_v52 = vpop.eup %8491  ;;  %v9061_v48 = vld [vmem:[#allocation6 + $0x548] ss:$48 sps:$4 sm:$0xff]  }
 0x54d   : > { %8495 = vrcp.f32 %v5433_v61  ;;  %v8494_v58 = vpop.eup %8493  ;;  %v5461_v6 = vadd.f32 1.0, %v8492_v52 }
 0x54e   : > { %7458 = vst [vmem:[%s10028_s12 + $0x28] sm:$0xff] %v5496_v60  ;;  %v10521_v37 = vpack.c.bf16 %v5496_v60, %v5496_v60  ;;  %8497 = vrcp.f32 %v5434_v25  ;;  %v5462_v41 = vadd.f32 1.0, %v8494_v58  ;;  %v9072_v25 = vld [vmem:[%s10028_s12 + $0x18] sm:$0xff] }
 0x54f   : > { %8499 = vrcp.f32 %v5461_v6  ;;  %v9076_v6 = vld [vmem:[#allocation6 + $0x2b4] ss:$48 sps:$4 sm:$0xff]  }
 0x550   : > { %5540 = vmatprep.mubr.bf16.mxu0 %v10521_v37  ;;  %8501 = vrcp.f32 %v5462_v41  ;;  %v9080_v41 = vld [vmem:[#allocation6 + $0x254] ss:$48 sps:$4 sm:$0xff]  }
 0x551   : > { %5541 = vmatmul.mubr.bf16.vlgmr.msra.gmra.mxu0 %v10523_v8 }
 0x552   : > { %5591 = vmatpush1.bf16.msra.mxu0 %v9043_v57  ;;  %5622 = vmatprep.mubr.bf16.mxu0 %v10521_v37  ;;  %v9063_v57 = vld [vmem:[#allocation6 + $0x4e8] ss:$48 sps:$4 sm:$0xff]  }
 0x553   : > { %5592 = vmatprep.subr.bf16.mxu0 %v9044_v21  ;;  %v9064_v21 = vld [vmem:[#allocation6 + $0x48c] ss:$48 sps:$4 sm:$0xff]  }
 0x556   : > { %5593 = vmatpush1.bf16.msra.mxu0 %v9045_v18  ;;  %v9065_v18 = vld [vmem:[#allocation6 + $0x488] ss:$48 sps:$4 sm:$0xff]  }
 0x557   : > { %5594 = vmatprep.subr.bf16.mxu0 %v9046_v59  ;;  %v9066_v59 = vld [vmem:[#allocation6 + $0x42c] ss:$48 sps:$4 sm:$0xff]  }
 0x55a   : > { %5595 = vmatpush1.bf16.msra.mxu0 %v9047_v24  ;;  %v8496_v1 = vpop.eup %8495  ;;  %v9067_v24 = vld [vmem:[#allocation6 + $0x428] ss:$48 sps:$4 sm:$0xff]  }
 0x55b   : > { %5596 = vmatprep.subr.bf16.mxu0 %v9048_v22  ;;  %v8498_v19 = vpop.eup %8497 }
 0x55c   : > { %v8500_v22 = vpop.eup %8499 }
 0x55d   : > { %v8502_v40 = vpop.eup %8501 }
 0x55e   : > { %5597 = vmatpush1.bf16.msra.mxu0 %v9049_v17  ;;  %v5485_v17 = vsub.f32 1.0, %v8500_v22 }
 0x55f   : > { %5598 = vmatprep.subr.bf16.mxu0 %v9050_v9  ;;  %v9069_v9 = vld [vmem:[#allocation6 + $0x3c8] ss:$48 sps:$4 sm:$0xff]  }
 0x562   : > { %5599 = vmatpush1.bf16.msra.mxu0 %v9051_v15  ;;  %v5493_v15 = vmul.f32 %v9071_v14, %v8500_v22  ;;  %v9100_v22 = vld [vmem:[#allocation6 + $0x74] ss:$48 sps:$4 sm:$0xff]   ;;  %v9107_v14 = vld [vmem:[#allocation6 + $0xbac] ss:$48 sps:$4 sm:$0xff]  }
 0x563   : > { %5600 = vmatprep.subr.bf16.mxu0 %v9052_v26  ;;  %v5486_v26 = vsub.f32 1.0, %v8502_v40 }
 0x566   : > { %5601 = vmatpush1.bf16.msra.mxu0 %v9053_v38  ;;  %v5494_v38 = vmul.f32 %v9072_v25, %v8502_v40  ;;  %v9102_v40 = vld [vmem:[#allocation6 + $0x70] ss:$48 sps:$4 sm:$0xff]   ;;  %v9112_v25 = vld [vmem:[#allocation6 + $0x554] ss:$48 sps:$4 sm:$0xff]  }
 0x567   : > { %5602 = vmatprep.subr.bf16.mxu0 %v9054_v51 }
 0x56a   : > { %5603 = vmatpush1.bf16.msra.mxu0 %v9055_v0 }
 0x56b   : > { %5604 = vmatprep.subr.bf16.mxu0 %v9056_v23  ;;  %v9073_v23 = vld [vmem:[#allocation6 + $0x368] ss:$48 sps:$4 sm:$0xff]  }
 0x56e   : > { %5605 = vmatpush1.bf16.msra.mxu0 %v9057_v44  ;;  %v9074_v44 = vld [vmem:[#allocation6 + $0x30c] ss:$48 sps:$4 sm:$0xff]  }
 0x56f   : > { %5606 = vmatprep.subr.bf16.mxu0 %v9058_v30  ;;  %v9075_v30 = vld [vmem:[#allocation6 + $0x308] ss:$48 sps:$4 sm:$0xff]  }
 0x572   : > { %5607 = vmatpush2.bf16.msra.mxu0 %v9059_v34  ;;  %v9077_v34 = vld [vmem:[#allocation6 + $0x8a8] ss:$48 sps:$4 sm:$0xff]  }
 0x573   : > { %v5395_v63 = vpop.f32.mrf.mxu1  ;;  %5608 = vmatprep.subr.bf16.mxu0 %v9060_v20  ;;  %v9079_v20 = vld [vmem:[#allocation6 + $0x84c] ss:$48 sps:$4 sm:$0xff]  }
 0x574   : > { %v5396_v7 = vadd.f32 %v5395_v63, %v5355_v3  ;;  %v9078_v63 = vld [vmem:[#allocation6 + $0x2b0] ss:$48 sps:$4 sm:$0xff]  }
 0x575   : > { %v5397_v4 = vpop.f32.mrf.mxu1 }
 0x576   : > { %v5473_v36 = vmul.f32 %v8496_v1, %v5396_v7  ;;  %v5398_v16 = vadd.f32 %v5397_v4, %v5357_v45  ;;  %5609 = vmatpush2.bf16.msra.mxu0 %v9061_v48  ;;  %v9081_v45 = vld [vmem:[#allocation6 + $0x848] ss:$48 sps:$4 sm:$0xff]   ;;  %v9082_v7 = vld [vmem:[#allocation6 + $0x250] ss:$48 sps:$4 sm:$0xff]   ;;  %v9083_v1 = vld [vmem:[#allocation6 + $0x7ec] ss:$48 sps:$4 sm:$0xff]  }
 0x577   : > { %v5399_v53 = vpop.f32.mrf.mxu1  ;;  %5610 = vmatprep.subr.bf16.mxu0 %v9062_v42  ;;  %v9084_v4 = vld [vmem:[#allocation6 + $0x1f4] ss:$48 sps:$4 sm:$0xff]   ;;  %v9087_v48 = vld [vmem:[#allocation6 + $0x78c] ss:$48 sps:$4 sm:$0xff]   ;;  %v9090_v42 = vld [vmem:[#allocation6 + $0x190] ss:$48 sps:$4 sm:$0xff]  }
 0x578   : > { %v5477_v60 = vadd.f32 %v5473_v36, %v10259_v50  ;;  %v5474_v32 = vmul.f32 %v8498_v19, %v5398_v16  ;;  %v9068_v50 = vld [vmem:[#allocation6 + $0x3cc] ss:$48 sps:$4 sm:$0xff]   ;;  %v9085_v36 = vld [vmem:[#allocation6 + $0x7e8] ss:$48 sps:$4 sm:$0xff]   ;;  %v9086_v16 = vld [vmem:[#allocation6 + $0x1f0] ss:$48 sps:$4 sm:$0xff]  }
 0x579   : > { %v5400_v28 = vpop.f32.mrf.mxu1  ;;  %v9088_v19 = vld [vmem:[#allocation6 + $0x194] ss:$48 sps:$4 sm:$0xff]   ;;  %v9089_v53 = vld [vmem:[#allocation6 + $0x788] ss:$48 sps:$4 sm:$0xff]  }
 0x57a   : > { %8503 = vtanh.f32 %v5477_v60  ;;  %v5478_v27 = vadd.f32 %v5474_v32, %v10265_v56  ;;  %5611 = vmatpush2.bf16.msra.mxu0 %v9063_v57  ;;  %v9091_v60 = vld [vmem:[#allocation6 + $0x72c] ss:$48 sps:$4 sm:$0xff]   ;;  %v9092_v32 = vld [vmem:[#allocation6 + $0x134] ss:$48 sps:$4 sm:$0xff]   ;;  %v9093_v28 = vld [vmem:[#allocation6 + $0x728] ss:$48 sps:$4 sm:$0xff]  }
 0x57b   : > { %5612 = vmatprep.subr.bf16.mxu0 %v9064_v21  ;;  %v9095_v57 = vld [vmem:[#allocation6 + $0x6cc] ss:$48 sps:$4 sm:$0xff]   ;;  %v9096_v21 = vld [vmem:[#allocation6 + $0xd4] ss:$48 sps:$4 sm:$0xff]  }
 0x57c   : > { %8505 = vtanh.f32 %v5478_v27  ;;  %v9094_v27 = vld [vmem:[#allocation6 + $0x130] ss:$48 sps:$4 sm:$0xff]  }
 0x57e   : > { %5613 = vmatpush2.bf16.msra.mxu0 %v9065_v18  ;;  %v9097_v18 = vld [vmem:[#allocation6 + $0x6c8] ss:$48 sps:$4 sm:$0xff]  }
 0x57f   : > { %5614 = vmatprep.subr.bf16.mxu0 %v9066_v59  ;;  %v9098_v59 = vld [vmem:[#allocation6 + $0xd0] ss:$48 sps:$4 sm:$0xff]  }
 0x582   : > { %5615 = vmatpush2.bf16.msra.mxu0 %v9067_v24  ;;  %v9099_v24 = vld [vmem:[#allocation6 + $0x66c] ss:$48 sps:$4 sm:$0xff]  }
 0x583   : > { %5616 = vmatprep.subr.bf16.mxu0 %v9068_v50  ;;  %v9101_v50 = vld [vmem:[#allocation6 + $0x668] ss:$48 sps:$4 sm:$0xff]  }
 0x586   : > { %5617 = vmatpush2.bf16.msra.mxu0 %v9069_v9  ;;  %v9104_v9 = vld [vmem:[#allocation6 + $0x14] ss:$48 sps:$4 sm:$0xff]  }
 0x587   : > { %v8504_v56 = vpop.eup %8503  ;;  %5618 = vmatprep.subr.bf16.mxu0 %v9070_v46  ;;  %v9106_v46 = vld [vmem:[#allocation6 + $0x10] ss:$48 sps:$4 sm:$0xff]  }
 0x588   : > { %v5489_v47 = vmul.f32 %v8504_v56, %v5485_v17  ;;  %v9103_v17 = vld [vmem:[#allocation6 + $0x60c] ss:$48 sps:$4 sm:$0xff]   ;;  %v9105_v56 = vld [vmem:[#allocation6 + $0x608] ss:$48 sps:$4 sm:$0xff]  }
 0x589   : > { %v8506_v61 = vpop.eup %8505 }
 0x58a   : > { %v5497_v51 = vadd.f32 %v5493_v15, %v5489_v47  ;;  %v5490_v0 = vmul.f32 %v8506_v61, %v5486_v26  ;;  %5619 = vmatpush2.bf16.msra.mxu0 %v9073_v23  ;;  %v9108_v15 = vld [vmem:[#allocation6 + $0x5b4] ss:$48 sps:$4 sm:$0xff]   ;;  %v9109_v47 = vld [vmem:[#allocation6 + $0xba8] ss:$48 sps:$4 sm:$0xff]   ;;  %v9110_v26 = vld [vmem:[#allocation6 + $0x5b0] ss:$48 sps:$4 sm:$0xff]  }
 0x58b   : > { %5620 = vmatprep.subr.bf16.mxu0 %v9074_v44  ;;  %v9111_v61 = vld [vmem:[#allocation6 + $0xb4c] ss:$48 sps:$4 sm:$0xff]   ;;  %v9116_v23 = vld [vmem:[#allocation6 + $0x4f4] ss:$48 sps:$4 sm:$0xff]   ;;  %v9117_v44 = vld [vmem:[#allocation6 + $0xae8] ss:$48 sps:$4 sm:$0xff]  }
 0x58c   : > { %7459 = vst [vmem:[%s10028_s12 + $0x30] sm:$0xff] %v5497_v51  ;;  %v5498_v52 = vadd.f32 %v5494_v38, %v5490_v0  ;;  %v10544_v3 = vpack.c.bf16 %v5497_v51, %v5497_v51  ;;  %v9113_v38 = vld [vmem:[#allocation6 + $0xb48] ss:$48 sps:$4 sm:$0xff]   ;;  %v9114_v51 = vld [vmem:[#allocation6 + $0x550] ss:$48 sps:$4 sm:$0xff]  }
 0x58d   : > { %v9115_v0 = vld [vmem:[#allocation6 + $0xaec] ss:$48 sps:$4 sm:$0xff]  }
 0x58e   : > { %7460 = vst [vmem:[%s10028_s12 + $0x38] sm:$0xff] %v5498_v52  ;;  %5621 = vmatpush2.bf16.msra.mxu0 %v9075_v30  ;;  %v10542_v58 = vpack.c.bf16 %v5498_v52, %v5498_v52  ;;  %v9118_v52 = vld [vmem:[#allocation6 + $0x4f0] ss:$48 sps:$4 sm:$0xff]   ;;  %v9119_v30 = vld [vmem:[#allocation6 + $0xa8c] ss:$48 sps:$4 sm:$0xff]  }
 0x58f   : > { %5672 = vmatprep.subr.bf16.mxu0 %v9076_v6  ;;  %v9120_v6 = vld [vmem:[#allocation6 + $0x494] ss:$48 sps:$4 sm:$0xff]  }
 0x590   : > { %5581 = vmatprep.mubr.bf16.mxu1 %v10542_v58 }
 0x591   : > { %5623 = vmatmul.mubr.bf16.vlgmr.msra.gmra.mxu0 %v10523_v8  ;;  %5582 = vmatmul.mubr.bf16.vlgmr.msra.gmra.mxu1 %v10544_v3 }
 0x592   : > { %5632 = vmatpush1.bf16.msra.mxu1 %v9077_v34  ;;  %5673 = vmatpush1.bf16.msra.mxu0 %v9078_v63  ;;  %v9121_v34 = vld [vmem:[#allocation6 + $0xa88] ss:$48 sps:$4 sm:$0xff]   ;;  %v9122_v63 = vld [vmem:[#allocation6 + $0x490] ss:$48 sps:$4 sm:$0xff]  }
 0x593   : > { %5704 = vmatprep.mubr.bf16.mxu0 %v10521_v37  ;;  %5663 = vmatprep.mubr.bf16.mxu1 %v10542_v58 }
 0x594   : > { %5633 = vmatprep.subr.bf16.mxu1 %v9079_v20  ;;  %5674 = vmatprep.subr.bf16.mxu0 %v9080_v41  ;;  %v9123_v20 = vld [vmem:[#allocation6 + $0xa2c] ss:$48 sps:$4 sm:$0xff]   ;;  %v9124_v41 = vld [vmem:[#allocation6 + $0x434] ss:$48 sps:$4 sm:$0xff]  }
 0x596   : > { %5634 = vmatpush1.bf16.msra.mxu1 %v9081_v45  ;;  %5675 = vmatpush1.bf16.msra.mxu0 %v9082_v7  ;;  %v9125_v45 = vld [vmem:[#allocation6 + $0xa28] ss:$48 sps:$4 sm:$0xff]   ;;  %v9126_v7 = vld [vmem:[#allocation6 + $0x430] ss:$48 sps:$4 sm:$0xff]  }
 0x597   : > { %5635 = vmatprep.subr.bf16.mxu1 %v9083_v1  ;;  %5676 = vmatprep.subr.bf16.mxu0 %v9084_v4  ;;  %v9127_v1 = vld [vmem:[#allocation6 + $0x9cc] ss:$48 sps:$4 sm:$0xff]   ;;  %v9128_v4 = vld [vmem:[#allocation6 + $0x3d4] ss:$48 sps:$4 sm:$0xff]  }
 0x59a   : > { %5636 = vmatpush1.bf16.msra.mxu1 %v9085_v36  ;;  %5677 = vmatpush1.bf16.msra.mxu0 %v9086_v16  ;;  %v9129_v36 = vld [vmem:[#allocation6 + $0x9c8] ss:$48 sps:$4 sm:$0xff]   ;;  %v9130_v16 = vld [vmem:[#allocation6 + $0x3d0] ss:$48 sps:$4 sm:$0xff]  }
 0x59b   : > { %5637 = vmatprep.subr.bf16.mxu1 %v9087_v48  ;;  %5678 = vmatprep.subr.bf16.mxu0 %v9088_v19  ;;  %v9131_v48 = vld [vmem:[#allocation6 + $0x96c] ss:$48 sps:$4 sm:$0xff]   ;;  %v9132_v19 = vld [vmem:[#allocation6 + $0x374] ss:$48 sps:$4 sm:$0xff]  }
 0x59e   : > { %5638 = vmatpush1.bf16.msra.mxu1 %v9089_v53  ;;  %5679 = vmatpush1.bf16.msra.mxu0 %v9090_v42  ;;  %v9133_v53 = vld [vmem:[#allocation6 + $0x968] ss:$48 sps:$4 sm:$0xff]   ;;  %v9134_v42 = vld [vmem:[#allocation6 + $0x370] ss:$48 sps:$4 sm:$0xff]  }
 0x59f   : > { %5639 = vmatprep.subr.bf16.mxu1 %v9091_v60  ;;  %5680 = vmatprep.subr.bf16.mxu0 %v9092_v32  ;;  %v9135_v60 = vld [vmem:[#allocation6 + $0x90c] ss:$48 sps:$4 sm:$0xff]   ;;  %v9136_v32 = vld [vmem:[#allocation6 + $0x314] ss:$48 sps:$4 sm:$0xff]  }
 0x5a2   : > { %5640 = vmatpush1.bf16.msra.mxu1 %v9093_v28  ;;  %5681 = vmatpush1.bf16.msra.mxu0 %v9094_v27  ;;  %v9137_v28 = vld [vmem:[#allocation6 + $0x908] ss:$48 sps:$4 sm:$0xff]   ;;  %v9138_v27 = vld [vmem:[#allocation6 + $0x310] ss:$48 sps:$4 sm:$0xff]  }
 0x5a3   : > { %5641 = vmatprep.subr.bf16.mxu1 %v9095_v57  ;;  %5682 = vmatprep.subr.bf16.mxu0 %v9096_v21  ;;  %v9139_v57 = vld [vmem:[#allocation6 + $0x8b4] ss:$48 sps:$4 sm:$0xff]   ;;  %v9140_v21 = vld [vmem:[#allocation6 + $0x2bc] ss:$48 sps:$4 sm:$0xff]  }
 0x5a6   : > { %5642 = vmatpush1.bf16.msra.mxu1 %v9097_v18  ;;  %5683 = vmatpush1.bf16.msra.mxu0 %v9098_v59  ;;  %v9141_v18 = vld [vmem:[#allocation6 + $0x8b0] ss:$48 sps:$4 sm:$0xff]   ;;  %v9142_v59 = vld [vmem:[#allocation6 + $0x2b8] ss:$48 sps:$4 sm:$0xff]  }
 0x5a7   : > { %5643 = vmatprep.subr.bf16.mxu1 %v9099_v24  ;;  %5684 = vmatprep.subr.bf16.mxu0 %v9100_v22  ;;  %v9143_v24 = vld [vmem:[#allocation6 + $0x854] ss:$48 sps:$4 sm:$0xff]   ;;  %v9144_v22 = vld [vmem:[#allocation6 + $0x25c] ss:$48 sps:$4 sm:$0xff]  }
 0x5aa   : > { %5644 = vmatpush1.bf16.msra.mxu1 %v9101_v50  ;;  %5685 = vmatpush1.bf16.msra.mxu0 %v9102_v40  ;;  %v9145_v50 = vld [vmem:[#allocation6 + $0x850] ss:$48 sps:$4 sm:$0xff]   ;;  %v9146_v40 = vld [vmem:[#allocation6 + $0x258] ss:$48 sps:$4 sm:$0xff]  }
 0x5ab   : > { %5645 = vmatprep.subr.bf16.mxu1 %v9103_v17  ;;  %5686 = vmatprep.subr.bf16.mxu0 %v9104_v9  ;;  %v9147_v17 = vld [vmem:[#allocation6 + $0x7f4] ss:$48 sps:$4 sm:$0xff]   ;;  %v9148_v9 = vld [vmem:[#allocation6 + $0x1fc] ss:$48 sps:$4 sm:$0xff]  }
 0x5ae   : > { %5646 = vmatpush1.bf16.msra.mxu1 %v9105_v56  ;;  %5687 = vmatpush1.bf16.msra.mxu0 %v9106_v46  ;;  %v9149_v56 = vld [vmem:[#allocation6 + $0x7f0] ss:$48 sps:$4 sm:$0xff]   ;;  %v9150_v46 = vld [vmem:[#allocation6 + $0x1f8] ss:$48 sps:$4 sm:$0xff]  }
 0x5af   : > { %5647 = vmatprep.subr.bf16.mxu1 %v9107_v14  ;;  %5688 = vmatprep.subr.bf16.mxu0 %v9108_v15  ;;  %v9151_v14 = vld [vmem:[#allocation6 + $0x794] ss:$48 sps:$4 sm:$0xff]   ;;  %v9152_v15 = vld [vmem:[#allocation6 + $0x19c] ss:$48 sps:$4 sm:$0xff]  }
 0x5b2   : > { %5648 = vmatpush2.bf16.msra.mxu1 %v9109_v47  ;;  %5689 = vmatpush2.bf16.msra.mxu0 %v9110_v26  ;;  %v9153_v47 = vld [vmem:[#allocation6 + $0x790] ss:$48 sps:$4 sm:$0xff]   ;;  %v9154_v26 = vld [vmem:[#allocation6 + $0x198] ss:$48 sps:$4 sm:$0xff]  }
 0x5b3   : > { %5649 = vmatprep.subr.bf16.mxu1 %v9111_v61  ;;  %5690 = vmatprep.subr.bf16.mxu0 %v9112_v25  ;;  %v9155_v61 = vld [vmem:[#allocation6 + $0x734] ss:$48 sps:$4 sm:$0xff]   ;;  %v9156_v25 = vld [vmem:[#allocation6 + $0x13c] ss:$48 sps:$4 sm:$0xff]  }
 0x5b6   : > { %5650 = vmatpush2.bf16.msra.mxu1 %v9113_v38  ;;  %5691 = vmatpush2.bf16.msra.mxu0 %v9114_v51  ;;  %v9157_v38 = vld [vmem:[#allocation6 + $0x730] ss:$48 sps:$4 sm:$0xff]   ;;  %v9158_v51 = vld [vmem:[#allocation6 + $0x138] ss:$48 sps:$4 sm:$0xff]  }
 0x5b7   : > { %5651 = vmatprep.subr.bf16.mxu1 %v9115_v0  ;;  %5692 = vmatprep.subr.bf16.mxu0 %v9116_v23  ;;  %v9159_v0 = vld [vmem:[#allocation6 + $0x6d4] ss:$48 sps:$4 sm:$0xff]   ;;  %v9160_v23 = vld [vmem:[#allocation6 + $0xdc] ss:$48 sps:$4 sm:$0xff]  }
 0x5ba   : > { %5652 = vmatpush2.bf16.msra.mxu1 %v9117_v44  ;;  %5693 = vmatpush2.bf16.msra.mxu0 %v9118_v52  ;;  %v9161_v44 = vld [vmem:[#allocation6 + $0x6d0] ss:$48 sps:$4 sm:$0xff]   ;;  %v9162_v52 = vld [vmem:[#allocation6 + $0xd8] ss:$48 sps:$4 sm:$0xff]  }
 0x5bb   : > { %5653 = vmatprep.subr.bf16.mxu1 %v9119_v30  ;;  %5694 = vmatprep.subr.bf16.mxu0 %v9120_v6  ;;  %v9163_v30 = vld [vmem:[#allocation6 + $0x674] ss:$48 sps:$4 sm:$0xff]   ;;  %v9164_v6 = vld [vmem:[#allocation6 + $0x7c] ss:$48 sps:$4 sm:$0xff]  }
 0x5be   : > { %5654 = vmatpush2.bf16.msra.mxu1 %v9121_v34  ;;  %5695 = vmatpush2.bf16.msra.mxu0 %v9122_v63  ;;  %v9165_v34 = vld [vmem:[#allocation6 + $0x670] ss:$48 sps:$4 sm:$0xff]   ;;  %v9166_v63 = vld [vmem:[#allocation6 + $0x78] ss:$48 sps:$4 sm:$0xff]  }
 0x5bf   : > { %5655 = vmatprep.subr.bf16.mxu1 %v9123_v20  ;;  %5696 = vmatprep.subr.bf16.mxu0 %v9124_v41  ;;  %v9167_v20 = vld [vmem:[#allocation6 + $0x614] ss:$48 sps:$4 sm:$0xff]   ;;  %v9168_v41 = vld [vmem:[#allocation6 + $0x1c] ss:$48 sps:$4 sm:$0xff]  }
 0x5c2   : > { %5656 = vmatpush2.bf16.msra.mxu1 %v9125_v45  ;;  %5697 = vmatpush2.bf16.msra.mxu0 %v9126_v7  ;;  %v9169_v45 = vld [vmem:[#allocation6 + $0x610] ss:$48 sps:$4 sm:$0xff]   ;;  %v9170_v7 = vld [vmem:[#allocation6 + $0x18] ss:$48 sps:$4 sm:$0xff]  }
 0x5c3   : > { %5657 = vmatprep.subr.bf16.mxu1 %v9127_v1  ;;  %5698 = vmatprep.subr.bf16.mxu0 %v9128_v4  ;;  %v9171_v1 = vld [vmem:[#allocation6 + $0xbb4] ss:$48 sps:$4 sm:$0xff]   ;;  %v9172_v4 = vld [vmem:[#allocation6 + $0x5bc] ss:$48 sps:$4 sm:$0xff]  }
 0x5c6   : > { %5658 = vmatpush2.bf16.msra.mxu1 %v9129_v36  ;;  %5699 = vmatpush2.bf16.msra.mxu0 %v9130_v16  ;;  %v9173_v36 = vld [vmem:[#allocation6 + $0xbb0] ss:$48 sps:$4 sm:$0xff]   ;;  %v9174_v16 = vld [vmem:[#allocation6 + $0x5b8] ss:$48 sps:$4 sm:$0xff]  }
 0x5c7   : > { %5659 = vmatprep.subr.bf16.mxu1 %v9131_v48  ;;  %5700 = vmatprep.subr.bf16.mxu0 %v9132_v19  ;;  %v9175_v48 = vld [vmem:[#allocation6 + $0xb54] ss:$48 sps:$4 sm:$0xff]   ;;  %v9176_v19 = vld [vmem:[#allocation6 + $0x55c] ss:$48 sps:$4 sm:$0xff]  }
 0x5ca   : > { %5660 = vmatpush2.bf16.msra.mxu1 %v9133_v53  ;;  %5701 = vmatpush2.bf16.msra.mxu0 %v9134_v42  ;;  %v9177_v53 = vld [vmem:[#allocation6 + $0xb50] ss:$48 sps:$4 sm:$0xff]   ;;  %v9178_v42 = vld [vmem:[#allocation6 + $0x558] ss:$48 sps:$4 sm:$0xff]  }
 0x5cb   : > { %5661 = vmatprep.subr.bf16.mxu1 %v9135_v60  ;;  %5702 = vmatprep.subr.bf16.mxu0 %v9136_v32  ;;  %v9179_v60 = vld [vmem:[#allocation6 + $0xaf4] ss:$48 sps:$4 sm:$0xff]   ;;  %v9180_v32 = vld [vmem:[#allocation6 + $0x4fc] ss:$48 sps:$4 sm:$0xff]  }
 0x5ce   : > { %5662 = vmatpush2.bf16.msra.mxu1 %v9137_v28  ;;  %5703 = vmatpush2.bf16.msra.mxu0 %v9138_v27  ;;  %v9181_v28 = vld [vmem:[#allocation6 + $0xaf0] ss:$48 sps:$4 sm:$0xff]   ;;  %v9182_v27 = vld [vmem:[#allocation6 + $0x4f8] ss:$48 sps:$4 sm:$0xff]  }
 0x5cf   : > { %5713 = vmatprep.subr.bf16.mxu1 %v9139_v57  ;;  %5754 = vmatprep.subr.bf16.mxu0 %v9140_v21  ;;  %v9183_v57 = vld [vmem:[#allocation6 + $0xa94] ss:$48 sps:$4 sm:$0xff]   ;;  %v9184_v21 = vld [vmem:[#allocation6 + $0x49c] ss:$48 sps:$4 sm:$0xff]  }
 0x5d1   : > { %5664 = vmatmul.mubr.bf16.vlgmr.msra.gmra.mxu1 %v10544_v3  ;;  %5705 = vmatmul.mubr.bf16.vlgmr.msra.gmra.mxu0 %v10523_v8 }
 0x5d2   : > { %5714 = vmatpush1.bf16.msra.mxu1 %v9141_v18  ;;  %5745 = vmatprep.mubr.bf16.mxu1 %v10542_v58  ;;  %v9185_v18 = vld [vmem:[#allocation6 + $0xa90] ss:$48 sps:$4 sm:$0xff]  }
 0x5d3   : > { %5755 = vmatpush1.bf16.msra.mxu0 %v9142_v59  ;;  %5786 = vmatprep.mubr.bf16.mxu0 %v10521_v37  ;;  %v9186_v59 = vld [vmem:[#allocation6 + $0x498] ss:$48 sps:$4 sm:$0xff]  }
 0x5d4   : > { %5715 = vmatprep.subr.bf16.mxu1 %v9143_v24  ;;  %5756 = vmatprep.subr.bf16.mxu0 %v9144_v22  ;;  %v9187_v24 = vld [vmem:[#allocation6 + $0xa34] ss:$48 sps:$4 sm:$0xff]   ;;  %v9188_v22 = vld [vmem:[#allocation6 + $0x43c] ss:$48 sps:$4 sm:$0xff]  }
 0x5d6   : > { %5716 = vmatpush1.bf16.msra.mxu1 %v9145_v50  ;;  %v9189_v50 = vld [vmem:[#allocation6 + $0xa30] ss:$48 sps:$4 sm:$0xff]  }
 0x5d7   : > { %5757 = vmatpush1.bf16.msra.mxu0 %v9146_v40  ;;  %5717 = vmatprep.subr.bf16.mxu1 %v9147_v17  ;;  %v9190_v40 = vld [vmem:[#allocation6 + $0x438] ss:$48 sps:$4 sm:$0xff]   ;;  %v9191_v17 = vld [vmem:[#allocation6 + $0x9d4] ss:$48 sps:$4 sm:$0xff]  }
 0x5d8   : > { %5758 = vmatprep.subr.bf16.mxu0 %v9148_v9  ;;  %v9192_v9 = vld [vmem:[#allocation6 + $0x3dc] ss:$48 sps:$4 sm:$0xff]  }
 0x5da   : > { %5718 = vmatpush1.bf16.msra.mxu1 %v9149_v56  ;;  %v9193_v56 = vld [vmem:[#allocation6 + $0x9d0] ss:$48 sps:$4 sm:$0xff]  }
 0x5db   : > { %5759 = vmatpush1.bf16.msra.mxu0 %v9150_v46  ;;  %5719 = vmatprep.subr.bf16.mxu1 %v9151_v14  ;;  %v9194_v46 = vld [vmem:[#allocation6 + $0x3d8] ss:$48 sps:$4 sm:$0xff]   ;;  %v9195_v14 = vld [vmem:[#allocation6 + $0x974] ss:$48 sps:$4 sm:$0xff]  }
 0x5dc   : > { %5760 = vmatprep.subr.bf16.mxu0 %v9152_v15  ;;  %v9196_v15 = vld [vmem:[#allocation6 + $0x37c] ss:$48 sps:$4 sm:$0xff]  }
 0x5de   : > { %5720 = vmatpush1.bf16.msra.mxu1 %v9153_v47  ;;  %v9197_v47 = vld [vmem:[#allocation6 + $0x970] ss:$48 sps:$4 sm:$0xff]  }
 0x5df   : > { %5761 = vmatpush1.bf16.msra.mxu0 %v9154_v26  ;;  %5721 = vmatprep.subr.bf16.mxu1 %v9155_v61  ;;  %v9198_v26 = vld [vmem:[#allocation6 + $0x378] ss:$48 sps:$4 sm:$0xff]   ;;  %v9199_v61 = vld [vmem:[#allocation6 + $0x914] ss:$48 sps:$4 sm:$0xff]  }
 0x5e0   : > { %5762 = vmatprep.subr.bf16.mxu0 %v9156_v25  ;;  %v9200_v25 = vld [vmem:[#allocation6 + $0x31c] ss:$48 sps:$4 sm:$0xff]  }
 0x5e2   : > { %5722 = vmatpush1.bf16.msra.mxu1 %v9157_v38  ;;  %v9201_v38 = vld [vmem:[#allocation6 + $0x910] ss:$48 sps:$4 sm:$0xff]  }
 0x5e3   : > { %5763 = vmatpush1.bf16.msra.mxu0 %v9158_v51  ;;  %5723 = vmatprep.subr.bf16.mxu1 %v9159_v0  ;;  %v9202_v51 = vld [vmem:[#allocation6 + $0x318] ss:$48 sps:$4 sm:$0xff]   ;;  %v9203_v0 = vld [vmem:[#allocation6 + $0x8bc] ss:$48 sps:$4 sm:$0xff]  }
 0x5e4   : > { %5764 = vmatprep.subr.bf16.mxu0 %v9160_v23  ;;  %v9204_v23 = vld [vmem:[#allocation6 + $0x2c4] ss:$48 sps:$4 sm:$0xff]  }
 0x5e6   : > { %5724 = vmatpush1.bf16.msra.mxu1 %v9161_v44 }
 0x5e7   : > { %5765 = vmatpush1.bf16.msra.mxu0 %v9162_v52  ;;  %5725 = vmatprep.subr.bf16.mxu1 %v9163_v30  ;;  %v9205_v52 = vld [vmem:[#allocation6 + $0x8b8] ss:$48 sps:$4 sm:$0xff]   ;;  %v9206_v30 = vld [vmem:[#allocation6 + $0x2c0] ss:$48 sps:$4 sm:$0xff]  }
 0x5e8   : > { %5766 = vmatprep.subr.bf16.mxu0 %v9164_v6 }
 0x5ea   : > { %5726 = vmatpush1.bf16.msra.mxu1 %v9165_v34  ;;  %v9207_v34 = vld [vmem:[#allocation6 + $0x85c] ss:$48 sps:$4 sm:$0xff]  }
 0x5eb   : > { %5767 = vmatpush1.bf16.msra.mxu0 %v9166_v63  ;;  %5727 = vmatprep.subr.bf16.mxu1 %v9167_v20  ;;  %v9208_v63 = vld [vmem:[#allocation6 + $0x264] ss:$48 sps:$4 sm:$0xff]  }
 0x5ec   : > { %5768 = vmatprep.subr.bf16.mxu0 %v9168_v41  ;;  %v9209_v41 = vld [vmem:[#allocation6 + $0x858] ss:$48 sps:$4 sm:$0xff]  }
 0x5ee   : > { %5728 = vmatpush1.bf16.msra.mxu1 %v9169_v45  ;;  %v9210_v45 = vld [vmem:[#allocation6 + $0x260] ss:$48 sps:$4 sm:$0xff]  }
 0x5ef   : > { %5769 = vmatpush1.bf16.msra.mxu0 %v9170_v7  ;;  %5729 = vmatprep.subr.bf16.mxu1 %v9171_v1  ;;  %v9211_v1 = vld [vmem:[#allocation6 + $0x7fc] ss:$48 sps:$4 sm:$0xff]  }
 0x5f0   : > { %5770 = vmatprep.subr.bf16.mxu0 %v9172_v4  ;;  %v9212_v4 = vld [vmem:[#allocation6 + $0x204] ss:$48 sps:$4 sm:$0xff]  }
 0x5f2   : > { %5730 = vmatpush2.bf16.msra.mxu1 %v9173_v36  ;;  %v9213_v36 = vld [vmem:[#allocation6 + $0x7f8] ss:$48 sps:$4 sm:$0xff]  }
 0x5f3   : > { %5771 = vmatpush2.bf16.msra.mxu0 %v9174_v16  ;;  %5731 = vmatprep.subr.bf16.mxu1 %v9175_v48  ;;  %v9214_v16 = vld [vmem:[#allocation6 + $0x200] ss:$48 sps:$4 sm:$0xff]   ;;  %v9215_v48 = vld [vmem:[#allocation6 + $0x79c] ss:$48 sps:$4 sm:$0xff]  }
 0x5f4   : > { %5772 = vmatprep.subr.bf16.mxu0 %v9176_v19  ;;  %v9216_v19 = vld [vmem:[#allocation6 + $0x1a4] ss:$48 sps:$4 sm:$0xff]  }
 0x5f6   : > { %5732 = vmatpush2.bf16.msra.mxu1 %v9177_v53  ;;  %v9217_v53 = vld [vmem:[#allocation6 + $0x798] ss:$48 sps:$4 sm:$0xff]  }
 0x5f7   : > { %5773 = vmatpush2.bf16.msra.mxu0 %v9178_v42  ;;  %5733 = vmatprep.subr.bf16.mxu1 %v9179_v60  ;;  %v9218_v42 = vld [vmem:[#allocation6 + $0x1a0] ss:$48 sps:$4 sm:$0xff]   ;;  %v9219_v60 = vld [vmem:[#allocation6 + $0x73c] ss:$48 sps:$4 sm:$0xff]  }
 0x5f8   : > { %5774 = vmatprep.subr.bf16.mxu0 %v9180_v32  ;;  %v9220_v32 = vld [vmem:[#allocation6 + $0x144] ss:$48 sps:$4 sm:$0xff]  }
 0x5fa   : > { %5734 = vmatpush2.bf16.msra.mxu1 %v9181_v28  ;;  %v9221_v28 = vld [vmem:[#allocation6 + $0x738] ss:$48 sps:$4 sm:$0xff]  }
 0x5fb   : > { %5775 = vmatpush2.bf16.msra.mxu0 %v9182_v27  ;;  %5735 = vmatprep.subr.bf16.mxu1 %v9183_v57  ;;  %v9222_v27 = vld [vmem:[#allocation6 + $0x140] ss:$48 sps:$4 sm:$0xff]   ;;  %v9223_v57 = vld [vmem:[#allocation6 + $0x6dc] ss:$48 sps:$4 sm:$0xff]  }
 0x5fc   : > { %5776 = vmatprep.subr.bf16.mxu0 %v9184_v21  ;;  %v9224_v21 = vld [vmem:[#allocation6 + $0xe4] ss:$48 sps:$4 sm:$0xff]  }
 0x5fe   : > { %5736 = vmatpush2.bf16.msra.mxu1 %v9185_v18  ;;  %v9225_v18 = vld [vmem:[#allocation6 + $0x6d8] ss:$48 sps:$4 sm:$0xff]  }
 0x5ff   : > { %5777 = vmatpush2.bf16.msra.mxu0 %v9186_v59  ;;  %5737 = vmatprep.subr.bf16.mxu1 %v9187_v24  ;;  %v9226_v59 = vld [vmem:[#allocation6 + $0xe0] ss:$48 sps:$4 sm:$0xff]   ;;  %v9227_v24 = vld [vmem:[#allocation6 + $0x67c] ss:$48 sps:$4 sm:$0xff]  }
 0x600   : > { %5778 = vmatprep.subr.bf16.mxu0 %v9188_v22  ;;  %v9228_v22 = vld [vmem:[#allocation6 + $0x84] ss:$48 sps:$4 sm:$0xff]  }
 0x602   : > { %5738 = vmatpush2.bf16.msra.mxu1 %v9189_v50  ;;  %v9229_v50 = vld [vmem:[#allocation6 + $0x678] ss:$48 sps:$4 sm:$0xff]  }
 0x603   : > { %5779 = vmatpush2.bf16.msra.mxu0 %v9190_v40  ;;  %5739 = vmatprep.subr.bf16.mxu1 %v9191_v17  ;;  %v9230_v40 = vld [vmem:[#allocation6 + $0x80] ss:$48 sps:$4 sm:$0xff]   ;;  %v9231_v17 = vld [vmem:[#allocation6 + $0x61c] ss:$48 sps:$4 sm:$0xff]  }
 0x604   : > { %5780 = vmatprep.subr.bf16.mxu0 %v9192_v9  ;;  %v9232_v9 = vld [vmem:[#allocation6 + $0x24] ss:$48 sps:$4 sm:$0xff]  }
 0x606   : > { %5740 = vmatpush2.bf16.msra.mxu1 %v9193_v56  ;;  %v9233_v56 = vld [vmem:[#allocation6 + $0x618] ss:$48 sps:$4 sm:$0xff]  }
 0x607   : > { %5781 = vmatpush2.bf16.msra.mxu0 %v9194_v46  ;;  %5741 = vmatprep.subr.bf16.mxu1 %v9195_v14  ;;  %v9234_v46 = vld [vmem:[#allocation6 + $0x20] ss:$48 sps:$4 sm:$0xff]   ;;  %v9235_v14 = vld [vmem:[#allocation6 + $0xbbc] ss:$48 sps:$4 sm:$0xff]  }
 0x608   : > { %5782 = vmatprep.subr.bf16.mxu0 %v9196_v15  ;;  %v9236_v15 = vld [vmem:[#allocation6 + $0x5c4] ss:$48 sps:$4 sm:$0xff]  }
 0x60a   : > { %5742 = vmatpush2.bf16.msra.mxu1 %v9197_v47  ;;  %v9237_v47 = vld [vmem:[#allocation6 + $0xbb8] ss:$48 sps:$4 sm:$0xff]  }
 0x60b   : > { %5783 = vmatpush2.bf16.msra.mxu0 %v9198_v26  ;;  %5743 = vmatprep.subr.bf16.mxu1 %v9199_v61  ;;  %v9238_v26 = vld [vmem:[#allocation6 + $0x5c0] ss:$48 sps:$4 sm:$0xff]   ;;  %v9239_v61 = vld [vmem:[#allocation6 + $0xb5c] ss:$48 sps:$4 sm:$0xff]  }
 0x60c   : > { %5784 = vmatprep.subr.bf16.mxu0 %v9200_v25  ;;  %v9240_v25 = vld [vmem:[#allocation6 + $0x564] ss:$48 sps:$4 sm:$0xff]  }
 0x60e   : > { %5744 = vmatpush2.bf16.msra.mxu1 %v9201_v38  ;;  %v9241_v38 = vld [vmem:[#allocation6 + $0xb58] ss:$48 sps:$4 sm:$0xff]  }
 0x60f   : > { %5785 = vmatpush2.bf16.msra.mxu0 %v9202_v51  ;;  %5795 = vmatprep.subr.bf16.mxu1 %v9203_v0  ;;  %v9242_v51 = vld [vmem:[#allocation6 + $0x560] ss:$48 sps:$4 sm:$0xff]   ;;  %v9243_v0 = vld [vmem:[#allocation6 + $0xafc] ss:$48 sps:$4 sm:$0xff]  }
 0x610   : > { %5836 = vmatprep.subr.bf16.mxu0 %v9204_v23  ;;  %v9244_v23 = vld [vmem:[#allocation6 + $0x504] ss:$48 sps:$4 sm:$0xff]  }
 0x611   : > { %5746 = vmatmul.mubr.bf16.vlgmr.msra.gmra.mxu1 %v10544_v3  ;;  %v10556_v44 = vpop.f32.mrf.mxu0 }
 0x612   : > { %5787 = vmatmul.mubr.bf16.vlgmr.msra.gmra.mxu0 %v10523_v8  ;;  %5796 = vmatpush1.bf16.msra.mxu1 %v9205_v52  ;;  %v9245_v52 = vld [vmem:[#allocation6 + $0xaf8] ss:$48 sps:$4 sm:$0xff]  }
 0x613   : > { %5827 = vmatprep.mubr.bf16.mxu1 %v10542_v58  ;;  %5837 = vmatpush1.bf16.msra.mxu0 %v9206_v30  ;;  %v10560_v6 = vpop.f32.mrf.mxu0  ;;  %v9246_v30 = vld [vmem:[#allocation6 + $0x500] ss:$48 sps:$4 sm:$0xff]  }
 0x614   : > { %5868 = vmatprep.mubr.bf16.mxu0 %v10521_v37  ;;  %5797 = vmatprep.subr.bf16.mxu1 %v9207_v34  ;;  %v9247_v34 = vld [vmem:[#allocation6 + $0xa9c] ss:$48 sps:$4 sm:$0xff]  }
 0x615   : > { %5838 = vmatprep.subr.bf16.mxu0 %v9208_v63  ;;  %v5546_v20 = vpop.f32.mrf.mxu0  ;;  %v9248_v63 = vld [vmem:[#allocation6 + $0x4a4] ss:$48 sps:$4 sm:$0xff]  }
 0x616   : > { %5798 = vmatpush1.bf16.msra.mxu1 %v9209_v41  ;;  %v9249_v20 = vld [vmem:[#allocation6 + $0xa98] ss:$48 sps:$4 sm:$0xff]   ;;  %v9250_v41 = vld [vmem:[#allocation6 + $0x4a0] ss:$48 sps:$4 sm:$0xff]  }
 0x617   : > { %5839 = vmatpush1.bf16.msra.mxu0 %v9210_v45  ;;  %v5547_v7 = vpop.f32.mrf.mxu0  ;;  %5799 = vmatprep.subr.bf16.mxu1 %v9211_v1  ;;  %v9251_v45 = vld [vmem:[#allocation6 + $0xa3c] ss:$48 sps:$4 sm:$0xff]   ;;  %v9253_v1 = vld [vmem:[#allocation6 + $0xa38] ss:$48 sps:$4 sm:$0xff]  }
 0x618   : > { %5840 = vmatprep.subr.bf16.mxu0 %v9212_v4  ;;  %v9252_v7 = vld [vmem:[#allocation6 + $0x444] ss:$48 sps:$4 sm:$0xff]   ;;  %v9254_v4 = vld [vmem:[#allocation6 + $0x440] ss:$48 sps:$4 sm:$0xff]  }
 0x61a   : > { %5800 = vmatpush1.bf16.msra.mxu1 %v9213_v36  ;;  %v9255_v36 = vld [vmem:[#allocation6 + $0x9dc] ss:$48 sps:$4 sm:$0xff]  }
 0x61b   : > { %5841 = vmatpush1.bf16.msra.mxu0 %v9214_v16  ;;  %5801 = vmatprep.subr.bf16.mxu1 %v9215_v48  ;;  %v9256_v16 = vld [vmem:[#allocation6 + $0x3e4] ss:$48 sps:$4 sm:$0xff]   ;;  %v9257_v48 = vld [vmem:[#allocation6 + $0x9d8] ss:$48 sps:$4 sm:$0xff]  }
 0x61c   : > { %5842 = vmatprep.subr.bf16.mxu0 %v9216_v19  ;;  %v9258_v19 = vld [vmem:[#allocation6 + $0x3e0] ss:$48 sps:$4 sm:$0xff]  }
 0x61e   : > { %5802 = vmatpush1.bf16.msra.mxu1 %v9217_v53  ;;  %v9259_v53 = vld [vmem:[#allocation6 + $0x97c] ss:$48 sps:$4 sm:$0xff]  }
 0x61f   : > { %5843 = vmatpush1.bf16.msra.mxu0 %v9218_v42  ;;  %5803 = vmatprep.subr.bf16.mxu1 %v9219_v60  ;;  %v9260_v42 = vld [vmem:[#allocation6 + $0x384] ss:$48 sps:$4 sm:$0xff]   ;;  %v9261_v60 = vld [vmem:[#allocation6 + $0x978] ss:$48 sps:$4 sm:$0xff]  }
 0x620   : > { %5844 = vmatprep.subr.bf16.mxu0 %v9220_v32  ;;  %v9262_v32 = vld [vmem:[#allocation6 + $0x380] ss:$48 sps:$4 sm:$0xff]  }
 0x622   : > { %5804 = vmatpush1.bf16.msra.mxu1 %v9221_v28  ;;  %v9263_v28 = vld [vmem:[#allocation6 + $0x91c] ss:$48 sps:$4 sm:$0xff]  }
 0x623   : > { %5845 = vmatpush1.bf16.msra.mxu0 %v9222_v27  ;;  %5805 = vmatprep.subr.bf16.mxu1 %v9223_v57  ;;  %v9264_v27 = vld [vmem:[#allocation6 + $0x324] ss:$48 sps:$4 sm:$0xff]   ;;  %v9265_v57 = vld [vmem:[#allocation6 + $0x918] ss:$48 sps:$4 sm:$0xff]  }
 0x624   : > { %5846 = vmatprep.subr.bf16.mxu0 %v9224_v21  ;;  %v9266_v21 = vld [vmem:[#allocation6 + $0x320] ss:$48 sps:$4 sm:$0xff]  }
 0x626   : > { %5806 = vmatpush1.bf16.msra.mxu1 %v9225_v18  ;;  %v9267_v18 = vld [vmem:[#allocation6 + $0x8c4] ss:$48 sps:$4 sm:$0xff]  }
 0x627   : > { %5847 = vmatpush1.bf16.msra.mxu0 %v9226_v59  ;;  %5807 = vmatprep.subr.bf16.mxu1 %v9227_v24  ;;  %v5543_v59 = vadd.f32 %v10556_v44, %v10295_v11  ;;  %v9268_v24 = vld [vmem:[#allocation6 + $0x2cc] ss:$48 sps:$4 sm:$0xff]  }
 0x628   : > { %5848 = vmatprep.subr.bf16.mxu0 %v9228_v22 }
 0x62a   : > { %5808 = vmatpush1.bf16.msra.mxu1 %v9229_v50 }
 0x62b   : > { %5849 = vmatpush1.bf16.msra.mxu0 %v9230_v40  ;;  %5809 = vmatprep.subr.bf16.mxu1 %v9231_v17  ;;  %v5545_v40 = vadd.f32 %v10560_v6, %v10299_v35 }
 0x62c   : > { %5850 = vmatprep.subr.bf16.mxu0 %v9232_v9  ;;  %v9269_v9 = vld [vmem:[#allocation6 + $0x8c0] ss:$48 sps:$4 sm:$0xff]  }
 0x62e   : > { %5810 = vmatpush1.bf16.msra.mxu1 %v9233_v56  ;;  %v9270_v56 = vld [vmem:[#allocation6 + $0x2c8] ss:$48 sps:$4 sm:$0xff]  }
 0x62f   : > { %5851 = vmatpush1.bf16.msra.mxu0 %v9234_v46  ;;  %5811 = vmatprep.subr.bf16.mxu1 %v9235_v14 }
 0x630   : > { %5852 = vmatprep.subr.bf16.mxu0 %v9236_v15 }
 0x632   : > { %5812 = vmatpush2.bf16.msra.mxu1 %v9237_v47  ;;  %v9271_v47 = vld [vmem:[#allocation6 + $0x864] ss:$48 sps:$4 sm:$0xff]  }
 0x633   : > { %5853 = vmatpush2.bf16.msra.mxu0 %v9238_v26  ;;  %5813 = vmatprep.subr.bf16.mxu1 %v9239_v61  ;;  %v9272_v26 = vld [vmem:[#allocation6 + $0x26c] ss:$48 sps:$4 sm:$0xff]  }
 0x634   : > { %5854 = vmatprep.subr.bf16.mxu0 %v9240_v25 }
 0x636   : > { %5814 = vmatpush2.bf16.msra.mxu1 %v9241_v38  ;;  %v9273_v38 = vld [vmem:[#allocation6 + $0x860] ss:$48 sps:$4 sm:$0xff]  }
 0x637   : > { %5855 = vmatpush2.bf16.msra.mxu0 %v9242_v51  ;;  %5815 = vmatprep.subr.bf16.mxu1 %v9243_v0  ;;  %v9274_v51 = vld [vmem:[#allocation6 + $0x268] ss:$48 sps:$4 sm:$0xff]  }
 0x638   : > { %5856 = vmatprep.subr.bf16.mxu0 %v9244_v23 }
 0x63a   : > { %5816 = vmatpush2.bf16.msra.mxu1 %v9245_v52  ;;  %v9276_v52 = vld [vmem:[#allocation6 + $0x20c] ss:$48 sps:$4 sm:$0xff]  }
 0x63b   : > { %5857 = vmatpush2.bf16.msra.mxu0 %v9246_v30  ;;  %5817 = vmatprep.subr.bf16.mxu1 %v9247_v34  ;;  %v9278_v30 = vld [vmem:[#allocation6 + $0x208] ss:$48 sps:$4 sm:$0xff]   ;;  %v9279_v34 = vld [vmem:[#allocation6 + $0x7a4] ss:$48 sps:$4 sm:$0xff]  }
 0x63c   : > { %5858 = vmatprep.subr.bf16.mxu0 %v9248_v63  ;;  %v9280_v63 = vld [vmem:[#allocation6 + $0x1ac] ss:$48 sps:$4 sm:$0xff]  }
 0x63e   : > { %5818 = vmatpush2.bf16.msra.mxu1 %v9249_v20  ;;  %v9282_v20 = vld [vmem:[#allocation6 + $0x1a8] ss:$48 sps:$4 sm:$0xff]  }
 0x63f   : > { %5859 = vmatpush2.bf16.msra.mxu0 %v9250_v41  ;;  %5819 = vmatprep.subr.bf16.mxu1 %v9251_v45  ;;  %v9283_v41 = vld [vmem:[#allocation6 + $0x744] ss:$48 sps:$4 sm:$0xff]   ;;  %v9284_v45 = vld [vmem:[#allocation6 + $0x14c] ss:$48 sps:$4 sm:$0xff]  }
 0x640   : > { %5860 = vmatprep.subr.bf16.mxu0 %v9252_v7  ;;  %v9285_v7 = vld [vmem:[#allocation6 + $0x740] ss:$48 sps:$4 sm:$0xff]  }
 0x642   : > { %5820 = vmatpush2.bf16.msra.mxu1 %v9253_v1  ;;  %v9286_v1 = vld [vmem:[#allocation6 + $0x148] ss:$48 sps:$4 sm:$0xff]  }
 0x643   : > { %5861 = vmatpush2.bf16.msra.mxu0 %v9254_v4  ;;  %5821 = vmatprep.subr.bf16.mxu1 %v9255_v36  ;;  %v9287_v4 = vld [vmem:[#allocation6 + $0x6e4] ss:$48 sps:$4 sm:$0xff]   ;;  %v9288_v36 = vld [vmem:[#allocation6 + $0xec] ss:$48 sps:$4 sm:$0xff]  }
 0x644   : > { %5862 = vmatprep.subr.bf16.mxu0 %v9256_v16  ;;  %v9289_v16 = vld [vmem:[#allocation6 + $0x6e0] ss:$48 sps:$4 sm:$0xff]  }
 0x646   : > { %5822 = vmatpush2.bf16.msra.mxu1 %v9257_v48  ;;  %v9290_v48 = vld [vmem:[#allocation6 + $0xe8] ss:$48 sps:$4 sm:$0xff]  }
 0x647   : > { %5863 = vmatpush2.bf16.msra.mxu0 %v9258_v19  ;;  %5823 = vmatprep.subr.bf16.mxu1 %v9259_v53  ;;  %v9291_v19 = vld [vmem:[#allocation6 + $0x684] ss:$48 sps:$4 sm:$0xff]   ;;  %v9292_v53 = vld [vmem:[#allocation6 + $0x8c] ss:$48 sps:$4 sm:$0xff]  }
 0x648   : > { %5864 = vmatprep.subr.bf16.mxu0 %v9260_v42  ;;  %v9293_v42 = vld [vmem:[#allocation6 + $0x680] ss:$48 sps:$4 sm:$0xff]  }
 0x64a   : > { %5824 = vmatpush2.bf16.msra.mxu1 %v9261_v60  ;;  %v9294_v60 = vld [vmem:[#allocation6 + $0x88] ss:$48 sps:$4 sm:$0xff]  }
 0x64b   : > { %5865 = vmatpush2.bf16.msra.mxu0 %v9262_v32  ;;  %5825 = vmatprep.subr.bf16.mxu1 %v9263_v28  ;;  %v9295_v32 = vld [vmem:[#allocation6 + $0x624] ss:$48 sps:$4 sm:$0xff]   ;;  %v9296_v28 = vld [vmem:[#allocation6 + $0x2c] ss:$48 sps:$4 sm:$0xff]  }
 0x64c   : > { %5866 = vmatprep.subr.bf16.mxu0 %v9264_v27  ;;  %v9297_v27 = vld [vmem:[#allocation6 + $0x620] ss:$48 sps:$4 sm:$0xff]  }
 0x64e   : > { %5826 = vmatpush2.bf16.msra.mxu1 %v9265_v57  ;;  %v9298_v57 = vld [vmem:[#allocation6 + $0x28] ss:$48 sps:$4 sm:$0xff]  }
 0x64f   : > { %5867 = vmatpush2.bf16.msra.mxu0 %v9266_v21  ;;  %5877 = vmatprep.subr.bf16.mxu1 %v9267_v18  ;;  %v9299_v21 = vld [vmem:[#allocation6 + $0xbc4] ss:$48 sps:$4 sm:$0xff]   ;;  %v9300_v18 = vld [vmem:[#allocation6 + $0x5cc] ss:$48 sps:$4 sm:$0xff]  }
 0x650   : > { %5918 = vmatprep.subr.bf16.mxu0 %v9268_v24  ;;  %v9302_v24 = vld [vmem:[#allocation6 + $0x5c8] ss:$48 sps:$4 sm:$0xff]  }
 0x651   : > { %v10565_v22 = vpop.f32.mrf.mxu0  ;;  %5828 = vmatmul.mubr.bf16.vlgmr.msra.gmra.mxu1 %v10544_v3  ;;  %v5583_v50 = vpop.f32.mrf.mxu1 }
 0x652   : > { %5869 = vmatmul.mubr.bf16.vlgmr.msra.gmra.mxu0 %v10523_v8  ;;  %v5584_v17 = vadd.f32 %v5583_v50, %v5543_v59  ;;  %5878 = vmatpush1.bf16.msra.mxu1 %v9269_v9  ;;  %v9301_v59 = vld [vmem:[#allocation6 + $0xbc0] ss:$48 sps:$4 sm:$0xff]   ;;  %v9303_v50 = vld [vmem:[#allocation6 + $0xb64] ss:$48 sps:$4 sm:$0xff]   ;;  %v9306_v9 = vld [vmem:[#allocation6 + $0x568] ss:$48 sps:$4 sm:$0xff]  }
 0x653   : > { %5909 = vmatprep.mubr.bf16.mxu1 %v10542_v58  ;;  %5919 = vmatpush1.bf16.msra.mxu0 %v9270_v56  ;;  %v10572_v44 = vpop.f32.mrf.mxu0  ;;  %v5585_v46 = vpop.f32.mrf.mxu1  ;;  %v9307_v56 = vld [vmem:[#allocation6 + $0xb04] ss:$48 sps:$4 sm:$0xff]  }
 0x654   : > { %v10575_v14 = vadd.f32 %v5584_v17, %v10134_v5  ;;  %5950 = vmatprep.mubr.bf16.mxu0 %v10521_v37  ;;  %v5586_v15 = vadd.f32 %v5585_v46, %v5545_v40  ;;  %5879 = vmatprep.subr.bf16.mxu1 %v9271_v47  ;;  %v9275_v5 = vld [vmem:[#allocation6 + $0x804] ss:$48 sps:$4 sm:$0xff]   ;;  %v9277_v37 = vld [vmem:[#allocation6 + $0x800] ss:$48 sps:$4 sm:$0xff]   ;;  %v9304_v40 = vld [vmem:[#allocation6 + $0x56c] ss:$48 sps:$4 sm:$0xff]  }
 0x655   : > { %v5628_v6 = vpop.f32.mrf.mxu0  ;;  %5920 = vmatprep.subr.bf16.mxu0 %v9272_v26  ;;  %v5587_v61 = vpop.f32.mrf.mxu1  ;;  %v9305_v17 = vld [vmem:[#allocation6 + $0xb60] ss:$48 sps:$4 sm:$0xff]   ;;  %v9308_v46 = vld [vmem:[#allocation6 + $0x50c] ss:$48 sps:$4 sm:$0xff]   ;;  %v9310_v47 = vld [vmem:[#allocation6 + $0x508] ss:$48 sps:$4 sm:$0xff]  }
 0x656   : > { %v10579_v25 = vadd.f32 %v5586_v15, %v10140_v12  ;;  %5880 = vmatpush1.bf16.msra.mxu1 %v9273_v38  ;;  %v9281_v12 = vld [vmem:[#allocation6 + $0x7a0] ss:$48 sps:$4 sm:$0xff]   ;;  %v9311_v6 = vld [vmem:[#allocation6 + $0xaa4] ss:$48 sps:$4 sm:$0xff]   ;;  %v9312_v26 = vld [vmem:[#allocation6 + $0x4ac] ss:$48 sps:$4 sm:$0xff]  }
 0x657   : > { %5921 = vmatpush1.bf16.msra.mxu0 %v9274_v51  ;;  %v5629_v0 = vpop.f32.mrf.mxu0  ;;  %v5588_v23 = vpop.f32.mrf.mxu1  ;;  %5881 = vmatprep.subr.bf16.mxu1 %v9275_v5  ;;  %v9309_v15 = vld [vmem:[#allocation6 + $0xb00] ss:$48 sps:$4 sm:$0xff]   ;;  %v9314_v38 = vld [vmem:[#allocation6 + $0x4a8] ss:$48 sps:$4 sm:$0xff]   ;;  %v9315_v51 = vld [vmem:[#allocation6 + $0xa44] ss:$48 sps:$4 sm:$0xff]  }
 0x658   : > { %5922 = vmatprep.subr.bf16.mxu0 %v9276_v52  ;;  %v9313_v61 = vld [vmem:[#allocation6 + $0xaa0] ss:$48 sps:$4 sm:$0xff]   ;;  %v9316_v0 = vld [vmem:[#allocation6 + $0x44c] ss:$48 sps:$4 sm:$0xff]   ;;  %v9318_v5 = vld [vmem:[#allocation6 + $0x448] ss:$48 sps:$4 sm:$0xff]  }
 0x659   : > { %v9317_v23 = vld [vmem:[#allocation6 + $0xa40] ss:$48 sps:$4 sm:$0xff]   ;;  %v9319_v52 = vld [vmem:[#allocation6 + $0x9e4] ss:$48 sps:$4 sm:$0xff]  }
 0x65a   : > { %5882 = vmatpush1.bf16.msra.mxu1 %v9277_v37  ;;  %v9320_v37 = vld [vmem:[#allocation6 + $0x3ec] ss:$48 sps:$4 sm:$0xff]  }
 0x65b   : > { %5923 = vmatpush1.bf16.msra.mxu0 %v9278_v30  ;;  %5883 = vmatprep.subr.bf16.mxu1 %v9279_v34  ;;  %v9321_v30 = vld [vmem:[#allocation6 + $0x9e0] ss:$48 sps:$4 sm:$0xff]   ;;  %v9322_v34 = vld [vmem:[#allocation6 + $0x3e8] ss:$48 sps:$4 sm:$0xff]  }
 0x65c   : > { %5924 = vmatprep.subr.bf16.mxu0 %v9280_v63  ;;  %v9323_v63 = vld [vmem:[#allocation6 + $0x984] ss:$48 sps:$4 sm:$0xff]  }
 0x65e   : > { %5884 = vmatpush1.bf16.msra.mxu1 %v9281_v12  ;;  %v9324_v12 = vld [vmem:[#allocation6 + $0x38c] ss:$48 sps:$4 sm:$0xff]  }
 0x65f   : > { %5925 = vmatpush1.bf16.msra.mxu0 %v9282_v20  ;;  %5885 = vmatprep.subr.bf16.mxu1 %v9283_v41  ;;  %v9325_v20 = vld [vmem:[#allocation6 + $0x980] ss:$48 sps:$4 sm:$0xff]   ;;  %v9326_v41 = vld [vmem:[#allocation6 + $0x388] ss:$48 sps:$4 sm:$0xff]  }
 0x660   : > { %5926 = vmatprep.subr.bf16.mxu0 %v9284_v45  ;;  %v9327_v45 = vld [vmem:[#allocation6 + $0x924] ss:$48 sps:$4 sm:$0xff]  }
 0x662   : > { %5886 = vmatpush1.bf16.msra.mxu1 %v9285_v7  ;;  %v9328_v7 = vld [vmem:[#allocation6 + $0x32c] ss:$48 sps:$4 sm:$0xff]  }
 0x663   : > { %5927 = vmatpush1.bf16.msra.mxu0 %v9286_v1  ;;  %5887 = vmatprep.subr.bf16.mxu1 %v9287_v4  ;;  %v9329_v1 = vld [vmem:[#allocation6 + $0x920] ss:$48 sps:$4 sm:$0xff]   ;;  %v9330_v4 = vld [vmem:[#allocation6 + $0x328] ss:$48 sps:$4 sm:$0xff]  }
 0x664   : > { %5928 = vmatprep.subr.bf16.mxu0 %v9288_v36  ;;  %v9331_v36 = vld [vmem:[#allocation6 + $0x8cc] ss:$48 sps:$4 sm:$0xff]  }
 0x666   : > { %5888 = vmatpush1.bf16.msra.mxu1 %v9289_v16  ;;  %v5625_v16 = vadd.f32 %v10565_v22, %v10317_v43  ;;  %v9334_v22 = vld [vmem:[#allocation6 + $0x86c] ss:$48 sps:$4 sm:$0xff]  }
 0x667   : > { %5929 = vmatpush1.bf16.msra.mxu0 %v9290_v48  ;;  %5889 = vmatprep.subr.bf16.mxu1 %v9291_v19  ;;  %v9332_v48 = vld [vmem:[#allocation6 + $0x2a4] ss:$48 sps:$4 sm:$0xff]  }
 0x668   : > { %5930 = vmatprep.subr.bf16.mxu0 %v9292_v53 }
 0x66a   : > { %5890 = vmatpush1.bf16.msra.mxu1 %v9293_v42  ;;  %v5627_v42 = vadd.f32 %v10572_v44, %v10321_v55 }
 0x66b   : > { %5931 = vmatpush1.bf16.msra.mxu0 %v9294_v60  ;;  %5891 = vmatprep.subr.bf16.mxu1 %v9295_v32  ;;  %v9333_v32 = vld [vmem:[#allocation6 + $0x8c8] ss:$48 sps:$4 sm:$0xff]  }
 0x66c   : > { %5932 = vmatprep.subr.bf16.mxu0 %v9296_v28 }
 0x66e   : > { %5892 = vmatpush1.bf16.msra.mxu1 %v9297_v27 }
 0x66f   : > { %5933 = vmatpush1.bf16.msra.mxu0 %v9298_v57  ;;  %5893 = vmatprep.subr.bf16.mxu1 %v9299_v21  ;;  %v10827_v57 = vld [vmem:[#allocation14_spill] sm:$0xff] }
 0x670   : > { %5934 = vmatprep.subr.bf16.mxu0 %v9300_v18 }
 0x672   : > { %5894 = vmatpush2.bf16.msra.mxu1 %v9301_v59  ;;  %v9335_v59 = vld [vmem:[#allocation6 + $0x2a0] ss:$48 sps:$4 sm:$0xff]  }
 0x673   : > { %5935 = vmatpush2.bf16.msra.mxu0 %v9302_v24  ;;  %5895 = vmatprep.subr.bf16.mxu1 %v9303_v50  ;;  %v9336_v50 = vld [vmem:[#allocation6 + $0x244] ss:$48 sps:$4 sm:$0xff]  }
 0x674   : > { %5936 = vmatprep.subr.bf16.mxu0 %v9304_v40 }
 0x676   : > { %5896 = vmatpush2.bf16.msra.mxu1 %v9305_v17  ;;  %v9337_v17 = vld [vmem:[#allocation6 + $0x868] ss:$48 sps:$4 sm:$0xff]  }
 0x677   : > { %5937 = vmatpush2.bf16.msra.mxu0 %v9306_v9  ;;  %5897 = vmatprep.subr.bf16.mxu1 %v9307_v56  ;;  %v9338_v56 = vld [vmem:[#allocation6 + $0x80c] ss:$48 sps:$4 sm:$0xff]  }
 0x678   : > { %5938 = vmatprep.subr.bf16.mxu0 %v9308_v46  ;;  %v9339_v46 = vld [vmem:[#allocation6 + $0x240] ss:$48 sps:$4 sm:$0xff]  }
 0x67a   : > { %5898 = vmatpush2.bf16.msra.mxu1 %v9309_v15  ;;  %v9340_v15 = vld [vmem:[#allocation6 + $0x1e4] ss:$48 sps:$4 sm:$0xff]  }
 0x67b   : > { %5939 = vmatpush2.bf16.msra.mxu0 %v9310_v47  ;;  %5899 = vmatprep.subr.bf16.mxu1 %v9311_v6  ;;  %v9341_v47 = vld [vmem:[#allocation6 + $0x808] ss:$48 sps:$4 sm:$0xff]   ;;  %v9342_v6 = vld [vmem:[#allocation6 + $0x7ac] ss:$48 sps:$4 sm:$0xff]  }
 0x67c   : > { %5940 = vmatprep.subr.bf16.mxu0 %v9312_v26  ;;  %v9343_v26 = vld [vmem:[#allocation6 + $0x1e0] ss:$48 sps:$4 sm:$0xff]  }
 0x67e   : > { %5900 = vmatpush2.bf16.msra.mxu1 %v9313_v61  ;;  %v9344_v61 = vld [vmem:[#allocation6 + $0x184] ss:$48 sps:$4 sm:$0xff]  }
 0x67f   : > { %5941 = vmatpush2.bf16.msra.mxu0 %v9314_v38  ;;  %5901 = vmatprep.subr.bf16.mxu1 %v9315_v51  ;;  %v9345_v38 = vld [vmem:[#allocation6 + $0x7a8] ss:$48 sps:$4 sm:$0xff]   ;;  %v9346_v51 = vld [vmem:[#allocation6 + $0x74c] ss:$48 sps:$4 sm:$0xff]  }
 0x680   : > { %5942 = vmatprep.subr.bf16.mxu0 %v9316_v0  ;;  %v9347_v0 = vld [vmem:[#allocation6 + $0x180] ss:$48 sps:$4 sm:$0xff]  }
 0x682   : > { %5902 = vmatpush2.bf16.msra.mxu1 %v9317_v23  ;;  %v9348_v23 = vld [vmem:[#allocation6 + $0x124] ss:$48 sps:$4 sm:$0xff]  }
 0x683   : > { %5943 = vmatpush2.bf16.msra.mxu0 %v9318_v5  ;;  %5903 = vmatprep.subr.bf16.mxu1 %v9319_v52  ;;  %v9349_v5 = vld [vmem:[#allocation6 + $0x748] ss:$48 sps:$4 sm:$0xff]   ;;  %v9350_v52 = vld [vmem:[#allocation6 + $0x6ec] ss:$48 sps:$4 sm:$0xff]  }
 0x684   : > { %5944 = vmatprep.subr.bf16.mxu0 %v9320_v37  ;;  %v9351_v37 = vld [vmem:[#allocation6 + $0x120] ss:$48 sps:$4 sm:$0xff]  }
 0x686   : > { %5904 = vmatpush2.bf16.msra.mxu1 %v9321_v30  ;;  %v9352_v30 = vld [vmem:[#allocation6 + $0xc4] ss:$48 sps:$4 sm:$0xff]  }
 0x687   : > { %5945 = vmatpush2.bf16.msra.mxu0 %v9322_v34  ;;  %5905 = vmatprep.subr.bf16.mxu1 %v9323_v63  ;;  %v9353_v34 = vld [vmem:[#allocation6 + $0x6e8] ss:$48 sps:$4 sm:$0xff]   ;;  %v9354_v63 = vld [vmem:[#allocation6 + $0x68c] ss:$48 sps:$4 sm:$0xff]  }
 0x688   : > { %5946 = vmatprep.subr.bf16.mxu0 %v9324_v12  ;;  %v9355_v12 = vld [vmem:[#allocation6 + $0xc0] ss:$48 sps:$4 sm:$0xff]  }
 0x68a   : > { %5906 = vmatpush2.bf16.msra.mxu1 %v9325_v20  ;;  %v9356_v20 = vld [vmem:[#allocation6 + $0x64] ss:$48 sps:$4 sm:$0xff]  }
 0x68b   : > { %5947 = vmatpush2.bf16.msra.mxu0 %v9326_v41  ;;  %5907 = vmatprep.subr.bf16.mxu1 %v9327_v45  ;;  %v9357_v41 = vld [vmem:[#allocation6 + $0x688] ss:$48 sps:$4 sm:$0xff]   ;;  %v9358_v45 = vld [vmem:[#allocation6 + $0x62c] ss:$48 sps:$4 sm:$0xff]  }
 0x68c   : > { %5948 = vmatprep.subr.bf16.mxu0 %v9328_v7  ;;  %v9359_v7 = vld [vmem:[#allocation6 + $0x60] ss:$48 sps:$4 sm:$0xff]  }
 0x68e   : > { %5908 = vmatpush2.bf16.msra.mxu1 %v9329_v1  ;;  %v9360_v1 = vld [vmem:[#allocation6 + $0x4] ss:$48 sps:$4 sm:$0xff]  }
 0x68f   : > { %5949 = vmatpush2.bf16.msra.mxu0 %v9330_v4  ;;  %5959 = vmatprep.subr.bf16.mxu1 %v9331_v36  ;;  %v9361_v4 = vld [vmem:[#allocation6 + $0x628] ss:$48 sps:$4 sm:$0xff]   ;;  %v9362_v36 = vld [vmem:[#allocation6 + $0xbcc] ss:$48 sps:$4 sm:$0xff]  }
 0x690   : > { %6106 = vmatprep.subr.bf16.mxu0 %v9332_v48  ;;  %v9364_v48 = vld [vmem:[#allocation6 + $0x5a4] ss:$48 sps:$4 sm:$0xff]  }
 0x691   : > { %v5665_v19 = vpop.f32.mrf.mxu1  ;;  %v10583_v53 = vpop.f32.mrf.mxu0  ;;  %5910 = vmatmul.mubr.bf16.vlgmr.msra.gmra.mxu1 %v10544_v3 }
 0x692   : > { %v5666_v60 = vadd.f32 %v5665_v19, %v5625_v16  ;;  %5951 = vmatmul.mubr.bf16.vlgmr.msra.gmra.mxu0 %v10523_v8  ;;  %5960 = vmatpush1.bf16.msra.mxu1 %v9333_v32  ;;  %v10828_v8 = vld [vmem:[#allocation15_spill] sm:$0xff]  ;;  %v9365_v19 = vld [vmem:[#allocation6 + $0xbc8] ss:$48 sps:$4 sm:$0xff]  }
 0x693   : > { %5991 = vmatprep.mubr.bf16.mxu1 %v10542_v58  ;;  %v5667_v28 = vpop.f32.mrf.mxu1  ;;  %v10590_v27 = vpop.f32.mrf.mxu0  ;;  %5961 = vmatprep.subr.bf16.mxu1 %v9334_v22  ;;  %v9363_v16 = vld [vmem:[#allocation6] ss:$48 sps:$4 sm:$0xff]   ;;  %v9368_v32 = vld [vmem:[#allocation6 + $0x544] ss:$48 sps:$4 sm:$0xff]   ;;  %v9370_v22 = vld [vmem:[#allocation6 + $0xb0c] ss:$48 sps:$4 sm:$0xff]  }
 0x694   : > { %v10593_v21 = vadd.f32 %v5666_v60, %v10827_v57  ;;  %v5668_v18 = vadd.f32 %v5667_v28, %v5627_v42  ;;  %6107 = vmatpush1.bf16.msra.mxu0 %v9335_v59  ;;  %v9366_v42 = vld [vmem:[#allocation6 + $0xb6c] ss:$48 sps:$4 sm:$0xff]   ;;  %v9367_v60 = vld [vmem:[#allocation6 + $0x5a0] ss:$48 sps:$4 sm:$0xff]   ;;  %v9369_v28 = vld [vmem:[#allocation6 + $0xb68] ss:$48 sps:$4 sm:$0xff]  }
 0x695   : > { %v5669_v24 = vpop.f32.mrf.mxu1  ;;  %v5710_v44 = vpop.f32.mrf.mxu0  ;;  %6108 = vmatprep.subr.bf16.mxu0 %v9336_v50  ;;  %v9371_v57 = vld [vmem:[#allocation6 + $0x540] ss:$48 sps:$4 sm:$0xff]   ;;  %v9373_v59 = vld [vmem:[#allocation6 + $0xb08] ss:$48 sps:$4 sm:$0xff]   ;;  %v9376_v50 = vld [vmem:[#allocation6 + $0x484] ss:$48 sps:$4 sm:$0xff]  }
 0x696   : > { %v10596_v40 = vadd.f32 %v5668_v18, %v10828_v8  ;;  %5962 = vmatpush1.bf16.msra.mxu1 %v9337_v17  ;;  %v9372_v18 = vld [vmem:[#allocation6 + $0x4e4] ss:$48 sps:$4 sm:$0xff]   ;;  %v9374_v24 = vld [vmem:[#allocation6 + $0xaac] ss:$48 sps:$4 sm:$0xff]   ;;  %v9375_v44 = vld [vmem:[#allocation6 + $0x4e0] ss:$48 sps:$4 sm:$0xff]  }
 0x697   : > { %v5670_v58 = vpop.f32.mrf.mxu1  ;;  %v5711_v9 = vpop.f32.mrf.mxu0  ;;  %5963 = vmatprep.subr.bf16.mxu1 %v9338_v56  ;;  %v9377_v8 = vld [vmem:[#allocation6 + $0xaa8] ss:$48 sps:$4 sm:$0xff]   ;;  %v9378_v17 = vld [vmem:[#allocation6 + $0xa4c] ss:$48 sps:$4 sm:$0xff]  }
 0x698   : > { %6109 = vmatpush1.bf16.msra.mxu0 %v9339_v46  ;;  %v9379_v58 = vld [vmem:[#allocation6 + $0x480] ss:$48 sps:$4 sm:$0xff]   ;;  %v9380_v9 = vld [vmem:[#allocation6 + $0x424] ss:$48 sps:$4 sm:$0xff]   ;;  %v9381_v56 = vld [vmem:[#allocation6 + $0xa48] ss:$48 sps:$4 sm:$0xff]  }
 0x699   : > { %6110 = vmatprep.subr.bf16.mxu0 %v9340_v15  ;;  %v9382_v46 = vld [vmem:[#allocation6 + $0x9ec] ss:$48 sps:$4 sm:$0xff]   ;;  %v9383_v15 = vld [vmem:[#allocation6 + $0x420] ss:$48 sps:$4 sm:$0xff]  }
 0x69a   : > { %5964 = vmatpush1.bf16.msra.mxu1 %v9341_v47  ;;  %v9384_v47 = vld [vmem:[#allocation6 + $0x3c4] ss:$48 sps:$4 sm:$0xff]  }
 0x69b   : > { %5965 = vmatprep.subr.bf16.mxu1 %v9342_v6  ;;  %v9385_v6 = vld [vmem:[#allocation6 + $0x9e8] ss:$48 sps:$4 sm:$0xff]  }
 0x69c   : > { %6111 = vmatpush1.bf16.msra.mxu0 %v9343_v26  ;;  %v9386_v26 = vld [vmem:[#allocation6 + $0x98c] ss:$48 sps:$4 sm:$0xff]  }
 0x69d   : > { %6112 = vmatprep.subr.bf16.mxu0 %v9344_v61  ;;  %v9387_v61 = vld [vmem:[#allocation6 + $0x3c0] ss:$48 sps:$4 sm:$0xff]  }
 0x69e   : > { %5966 = vmatpush1.bf16.msra.mxu1 %v9345_v38  ;;  %v9388_v38 = vld [vmem:[#allocation6 + $0x364] ss:$48 sps:$4 sm:$0xff]  }
 0x69f   : > { %5967 = vmatprep.subr.bf16.mxu1 %v9346_v51  ;;  %v9389_v51 = vld [vmem:[#allocation6 + $0x988] ss:$48 sps:$4 sm:$0xff]  }
 0x6a0   : > { %6113 = vmatpush1.bf16.msra.mxu0 %v9347_v0  ;;  %v9390_v0 = vld [vmem:[#allocation6 + $0x92c] ss:$48 sps:$4 sm:$0xff]  }
 0x6a1   : > { %6114 = vmatprep.subr.bf16.mxu0 %v9348_v23  ;;  %v9391_v23 = vld [vmem:[#allocation6 + $0x360] ss:$48 sps:$4 sm:$0xff]  }
 0x6a2   : > { %5968 = vmatpush1.bf16.msra.mxu1 %v9349_v5  ;;  %v9392_v5 = vld [vmem:[#allocation6 + $0x304] ss:$48 sps:$4 sm:$0xff]  }
 0x6a3   : > { %5969 = vmatprep.subr.bf16.mxu1 %v9350_v52  ;;  %v9393_v52 = vld [vmem:[#allocation6 + $0x928] ss:$48 sps:$4 sm:$0xff]  }
 0x6a4   : > { %6115 = vmatpush1.bf16.msra.mxu0 %v9351_v37  ;;  %v9394_v37 = vld [vmem:[#allocation6 + $0x8a4] ss:$48 sps:$4 sm:$0xff]  }
 0x6a5   : > { %6116 = vmatprep.subr.bf16.mxu0 %v9352_v30  ;;  %v5707_v30 = vadd.f32 %v10583_v53, %v10338_v39 }
 0x6a6   : > { %5970 = vmatpush1.bf16.msra.mxu1 %v9353_v34  ;;  %v9395_v34 = vld [vmem:[#allocation6 + $0x300] ss:$48 sps:$4 sm:$0xff]  }
 0x6a7   : > { %5971 = vmatprep.subr.bf16.mxu1 %v9354_v63 }
 0x6a8   : > { %6117 = vmatpush1.bf16.msra.mxu0 %v9355_v12  ;;  %v9396_v12 = vld [vmem:[#allocation6 + $0x2ac] ss:$48 sps:$4 sm:$0xff]  }
 0x6a9   : > { %6118 = vmatprep.subr.bf16.mxu0 %v9356_v20  ;;  %v5709_v20 = vadd.f32 %v10590_v27, %v10343_v10  ;;  %v9399_v27 = vld [vmem:[#allocation6 + $0x840] ss:$48 sps:$4 sm:$0xff]  }
 0x6aa   : > { %5972 = vmatpush1.bf16.msra.mxu1 %v9357_v41 }
 0x6ab   : > { %5973 = vmatprep.subr.bf16.mxu1 %v9358_v45 }
 0x6ac   : > { %6119 = vmatpush1.bf16.msra.mxu0 %v9359_v7  ;;  %v9397_v7 = vld [vmem:[#allocation6 + $0x8a0] ss:$48 sps:$4 sm:$0xff]  }
 0x6ad   : > { %6120 = vmatprep.subr.bf16.mxu0 %v9360_v1 }
 0x6ae   : > { %5974 = vmatpush1.bf16.msra.mxu1 %v9361_v4  ;;  %v9398_v4 = vld [vmem:[#allocation6 + $0x844] ss:$48 sps:$4 sm:$0xff]  }
 0x6af   : > { %5975 = vmatprep.subr.bf16.mxu1 %v9362_v36  ;;  %v10829_v36 = vld [vmem:[#allocation20_spill] sm:$0xff] }
 0x6b0   : > { %6121 = vmatpush1.bf16.msra.mxu0 %v9363_v16 }
 0x6b1   : > { %6122 = vmatprep.subr.bf16.mxu0 %v9364_v48 }
 0x6b2   : > { %5976 = vmatpush2.bf16.msra.mxu1 %v9365_v19  ;;  %v10830_v19 = vld [vmem:[#allocation22_spill] sm:$0xff] }
 0x6b3   : > { %5977 = vmatprep.subr.bf16.mxu1 %v9366_v42 }
 0x6b4   : > { %6123 = vmatpush2.bf16.msra.mxu0 %v9367_v60 }
 0x6b5   : > { %6124 = vmatprep.subr.bf16.mxu0 %v9368_v32 }
 0x6b6   : > { %5978 = vmatpush2.bf16.msra.mxu1 %v9369_v28  ;;  %v9400_v28 = vld [vmem:[#allocation6 + $0x7e4] ss:$48 sps:$4 sm:$0xff]  }
 0x6b7   : > { %5979 = vmatprep.subr.bf16.mxu1 %v9370_v22 }
 0x6b8   : > { %6125 = vmatpush2.bf16.msra.mxu0 %v9371_v57  ;;  %v9401_v57 = vld [vmem:[#allocation6 + $0x7e0] ss:$48 sps:$4 sm:$0xff]  }
 0x6b9   : > { %6126 = vmatprep.subr.bf16.mxu0 %v9372_v18  ;;  %v9402_v18 = vld [vmem:[#allocation6 + $0x784] ss:$48 sps:$4 sm:$0xff]  }
 0x6ba   : > { %5980 = vmatpush2.bf16.msra.mxu1 %v9373_v59  ;;  %v9403_v59 = vld [vmem:[#allocation6 + $0x780] ss:$48 sps:$4 sm:$0xff]  }
 0x6bb   : > { %5981 = vmatprep.subr.bf16.mxu1 %v9374_v24  ;;  %v9404_v24 = vld [vmem:[#allocation6 + $0x724] ss:$48 sps:$4 sm:$0xff]  }
 0x6bc   : > { %6127 = vmatpush2.bf16.msra.mxu0 %v9375_v44  ;;  %v9405_v44 = vld [vmem:[#allocation6 + $0x720] ss:$48 sps:$4 sm:$0xff]  }
 0x6bd   : > { %6128 = vmatprep.subr.bf16.mxu0 %v9376_v50  ;;  %v9406_v50 = vld [vmem:[#allocation6 + $0x6c4] ss:$48 sps:$4 sm:$0xff]  }
 0x6be   : > { %5982 = vmatpush2.bf16.msra.mxu1 %v9377_v8  ;;  %v9407_v8 = vld [vmem:[#allocation6 + $0x6c0] ss:$48 sps:$4 sm:$0xff]  }
 0x6bf   : > { %5983 = vmatprep.subr.bf16.mxu1 %v9378_v17  ;;  %v9408_v17 = vld [vmem:[#allocation6 + $0x664] ss:$48 sps:$4 sm:$0xff]  }
 0x6c0   : > { %6129 = vmatpush2.bf16.msra.mxu0 %v9379_v58  ;;  %v9409_v58 = vld [vmem:[#allocation6 + $0x660] ss:$48 sps:$4 sm:$0xff]  }
 0x6c1   : > { %6130 = vmatprep.subr.bf16.mxu0 %v9380_v9  ;;  %v9410_v9 = vld [vmem:[#allocation6 + $0x604] ss:$48 sps:$4 sm:$0xff]  }
 0x6c2   : > { %5984 = vmatpush2.bf16.msra.mxu1 %v9381_v56  ;;  %v9411_v56 = vld [vmem:[#allocation6 + $0x600] ss:$48 sps:$4 sm:$0xff]  }
 0x6c3   : > { %5985 = vmatprep.subr.bf16.mxu1 %v9382_v46  ;;  %v9412_v46 = vld [vmem:[#allocation6 + $0xba4] ss:$48 sps:$4 sm:$0xff]  }
 0x6c4   : > { %6131 = vmatpush2.bf16.msra.mxu0 %v9383_v15  ;;  %v9413_v15 = vld [vmem:[#allocation6 + $0xba0] ss:$48 sps:$4 sm:$0xff]  }
 0x6c5   : > { %6132 = vmatprep.subr.bf16.mxu0 %v9384_v47  ;;  %v9414_v47 = vld [vmem:[#allocation6 + $0xb44] ss:$48 sps:$4 sm:$0xff]  }
 0x6c6   : > { %5986 = vmatpush2.bf16.msra.mxu1 %v9385_v6  ;;  %v9415_v6 = vld [vmem:[#allocation6 + $0xb40] ss:$48 sps:$4 sm:$0xff]  }
 0x6c7   : > { %5987 = vmatprep.subr.bf16.mxu1 %v9386_v26  ;;  %v9416_v26 = vld [vmem:[#allocation6 + $0xae4] ss:$48 sps:$4 sm:$0xff]  }
 0x6c8   : > { %6133 = vmatpush2.bf16.msra.mxu0 %v9387_v61  ;;  %v9417_v61 = vld [vmem:[#allocation6 + $0xae0] ss:$48 sps:$4 sm:$0xff]  }
 0x6c9   : > { %6134 = vmatprep.subr.bf16.mxu0 %v9388_v38  ;;  %v9418_v38 = vld [vmem:[#allocation6 + $0xa84] ss:$48 sps:$4 sm:$0xff]  }
 0x6ca   : > { %5988 = vmatpush2.bf16.msra.mxu1 %v9389_v51  ;;  %v9419_v51 = vld [vmem:[#allocation6 + $0xa80] ss:$48 sps:$4 sm:$0xff]  }
 0x6cb   : > { %5989 = vmatprep.subr.bf16.mxu1 %v9390_v0  ;;  %v9420_v0 = vld [vmem:[#allocation6 + $0xa24] ss:$48 sps:$4 sm:$0xff]  }
 0x6cc   : > { %6135 = vmatpush2.bf16.msra.mxu0 %v9391_v23  ;;  %v9421_v23 = vld [vmem:[#allocation6 + $0xa20] ss:$48 sps:$4 sm:$0xff]  }
 0x6cd   : > { %6136 = vmatprep.subr.bf16.mxu0 %v9392_v5  ;;  %v9422_v5 = vld [vmem:[#allocation6 + $0x9c4] ss:$48 sps:$4 sm:$0xff]  }
 0x6ce   : > { %5990 = vmatpush2.bf16.msra.mxu1 %v9393_v52  ;;  %v9423_v52 = vld [vmem:[#allocation6 + $0x9c0] ss:$48 sps:$4 sm:$0xff]  }
 0x6cf   : > { %6147 = vmatprep.subr.bf16.mxu1 %v9394_v37  ;;  %v9424_v37 = vld [vmem:[#allocation6 + $0x964] ss:$48 sps:$4 sm:$0xff]  }
 0x6d0   : > { %6137 = vmatpush2.bf16.msra.mxu0 %v9395_v34  ;;  %v9426_v34 = vld [vmem:[#allocation6 + $0x904] ss:$48 sps:$4 sm:$0xff]  }
 0x6d1   : > { %v5747_v63 = vpop.f32.mrf.mxu1  ;;  %5992 = vmatmul.mubr.bf16.vlgmr.msra.gmra.mxu1 %v10544_v3  ;;  %6188 = vmatprep.subr.bf16.mxu0 %v9396_v12  ;;  %v9428_v12 = vld [vmem:[#allocation6 + $0x8ac] ss:$48 sps:$4 sm:$0xff]  }
 0x6d2   : > { %v5748_v41 = vadd.f32 %v5747_v63, %v5707_v30  ;;  %v10603_v45 = vpop.f32.mrf.mxu0  ;;  %6148 = vmatpush1.bf16.msra.mxu1 %v9397_v7  ;;  %v9425_v30 = vld [vmem:[#allocation6 + $0x960] ss:$48 sps:$4 sm:$0xff]  }
 0x6d3   : > { %v5749_v1 = vpop.f32.mrf.mxu1  ;;  %6149 = vmatprep.subr.bf16.mxu1 %v9398_v4  ;;  %v9427_v63 = vld [vmem:[#allocation6 + $0x900] ss:$48 sps:$4 sm:$0xff]  }
 0x6d4   : > { %v10606_v53 = vadd.f32 %v5748_v41, %v10829_v36  ;;  %v5750_v16 = vadd.f32 %v5749_v1, %v5709_v20  ;;  %v10608_v48 = vpop.f32.mrf.mxu0  ;;  %v5789_v20 = vadd.f32 %v10603_v45, %v10360_v62  ;;  %v7461_v45 = vmul.f32 -1.442695, %v10575_v14 }
 0x6d5   : > { %v5751_v3 = vpop.f32.mrf.mxu1  ;;  %v5791_v7 = vadd.f32 %v10608_v48, %v10365_v13 }
 0x6d6   : > { %v10611_v42 = vadd.f32 %v5750_v16, %v10830_v19  ;;  %v5792_v60 = vpop.f32.mrf.mxu0  ;;  %6150 = vmatpush1.bf16.msra.mxu1 %v9399_v27  ;;  %v10831_v16 = vld [vmem:[#allocation21_spill] sm:$0xff]  ;;  %8507 = vpow2.f32 %v7461_v45  ;;  %v7465_v48 = vmul.f32 -1.442695, %v10606_v53 }
 0x6d7   : > { %v5752_v32 = vpop.f32.mrf.mxu1  ;;  %6151 = vmatprep.subr.bf16.mxu1 %v9400_v28 }
 0x6d8   : > { %v5793_v22 = vpop.f32.mrf.mxu0  ;;  %v10832_v32 = vld [vmem:[#allocation23_spill] sm:$0xff] }
 0x6da   : > { %6152 = vmatpush1.bf16.msra.mxu1 %v9401_v57 }
 0x6db   : > { %6153 = vmatprep.subr.bf16.mxu1 %v9402_v18 }
 0x6de   : > { %6154 = vmatpush1.bf16.msra.mxu1 %v9403_v59  ;;  %v7462_v59 = vmul.f32 -1.442695, %v10579_v25 }
 0x6df   : > { %6155 = vmatprep.subr.bf16.mxu1 %v9404_v24  ;;  %v7466_v24 = vmul.f32 -1.442695, %v10611_v42 }
 0x6e0   : > { %8509 = vpow2.f32 %v7462_v59 }
 0x6e1   : > { %8511 = vpow2.f32 %v7465_v48  ;;  %v7463_v48 = vmul.f32 -1.442695, %v10593_v21  ;;  %v9436_v21 = vld [vmem:[#allocation6 + $0x18c] ss:$48 sps:$4 sm:$0xff]  }
 0x6e2   : > { %6156 = vmatpush1.bf16.msra.mxu1 %v9405_v44  ;;  %8513 = vpow2.f32 %v7466_v24  ;;  %v7464_v24 = vmul.f32 -1.442695, %v10596_v40  ;;  %v9438_v40 = vld [vmem:[#allocation6 + $0x12c] ss:$48 sps:$4 sm:$0xff]  }
 0x6e3   : > { %6157 = vmatprep.subr.bf16.mxu1 %v9406_v50  ;;  %v8508_v44 = vpop.eup %8507 }
 0x6e6   : > { %6158 = vmatpush1.bf16.msra.mxu1 %v9407_v8  ;;  %v6029_v8 = vadd.f32 1.0, %v8508_v44  ;;  %v9431_v44 = vld [vmem:[#allocation6 + $0x2a8] ss:$48 sps:$4 sm:$0xff]  }
 0x6e7   : > { %6159 = vmatprep.subr.bf16.mxu1 %v9408_v17 }
 0x6e8   : > { %8515 = vrcp.f32 %v6029_v8  ;;  %v9433_v8 = vld [vmem:[#allocation6 + $0x248] ss:$48 sps:$4 sm:$0xff]  }
 0x6ea   : > { %6160 = vmatpush1.bf16.msra.mxu1 %v9409_v58 }
 0x6eb   : > { %6161 = vmatprep.subr.bf16.mxu1 %v9410_v9 }
 0x6ed   : > { %v8510_v50 = vpop.eup %8509 }
 0x6ee   : > { %6162 = vmatpush1.bf16.msra.mxu1 %v9411_v56  ;;  %v6030_v17 = vadd.f32 1.0, %v8510_v50  ;;  %v8512_v58 = vpop.eup %8511  ;;  %v9432_v50 = vld [vmem:[#allocation6 + $0x24c] ss:$48 sps:$4 sm:$0xff]  }
 0x6ef   : > { %6163 = vmatprep.subr.bf16.mxu1 %v9412_v46  ;;  %v8514_v9 = vpop.eup %8513  ;;  %v6057_v56 = vadd.f32 1.0, %v8512_v58  ;;  %v9435_v58 = vld [vmem:[#allocation6 + $0x1e8] ss:$48 sps:$4 sm:$0xff]  }
 0x6f0   : > { %8517 = vrcp.f32 %v6030_v17  ;;  %v6058_v46 = vadd.f32 1.0, %v8514_v9  ;;  %v9434_v17 = vld [vmem:[#allocation6 + $0x1ec] ss:$48 sps:$4 sm:$0xff]  }
 0x6f1   : > { %8519 = vrcp.f32 %v6057_v56  ;;  %v9437_v56 = vld [vmem:[#allocation6 + $0x188] ss:$48 sps:$4 sm:$0xff]  }
 0x6f2   : > { %6164 = vmatpush2.bf16.msra.mxu1 %v9413_v15  ;;  %8521 = vrcp.f32 %v6058_v46  ;;  %v9439_v46 = vld [vmem:[#allocation6 + $0x128] ss:$48 sps:$4 sm:$0xff]  }
 0x6f3   : > { %6165 = vmatprep.subr.bf16.mxu1 %v9414_v47 }
 0x6f5   : > { %v8516_v42 = vpop.eup %8515 }
 0x6f6   : > { %6166 = vmatpush2.bf16.msra.mxu1 %v9415_v6 }
 0x6f7   : > { %6167 = vmatprep.subr.bf16.mxu1 %v9416_v26 }
 0x6fa   : > { %6168 = vmatpush2.bf16.msra.mxu1 %v9417_v61 }
 0x6fb   : > { %6169 = vmatprep.subr.bf16.mxu1 %v9418_v38 }
 0x6fe   : > { %6170 = vmatpush2.bf16.msra.mxu1 %v9419_v51  ;;  %v8518_v51 = vpop.eup %8517 }
 0x6ff   : > { %6171 = vmatprep.subr.bf16.mxu1 %v9420_v0 }
 0x702   : > { %6172 = vmatpush2.bf16.msra.mxu1 %v9421_v23  ;;  %v10833_v23 = vld [vmem:[#allocation28_spill] sm:$0xff] }
 0x703   : > { %6173 = vmatprep.subr.bf16.mxu1 %v9422_v5 }
 0x706   : > { %6174 = vmatpush2.bf16.msra.mxu1 %v9423_v52 }
 0x707   : > { %6175 = vmatprep.subr.bf16.mxu1 %v9424_v37 }
 0x70a   : > { %6176 = vmatpush2.bf16.msra.mxu1 %v9425_v30 }
 0x70b   : > { %6177 = vmatprep.subr.bf16.mxu1 %v9426_v34  ;;  %v10834_v34 = vld [vmem:[#allocation30_spill] sm:$0xff] }
 0x70e   : > { %6178 = vmatpush2.bf16.msra.mxu1 %v9427_v63 }
 0x70f   : > { %6229 = vmatprep.subr.bf16.mxu1 %v9428_v12 }
 0x711   : > { %v5829_v41 = vpop.f32.mrf.mxu1 }
 0x712   : > { %v5830_v1 = vadd.f32 %v5829_v41, %v5789_v20  ;;  %v5870_v4 = vpop.f32.mrf.mxu0  ;;  %v8520_v20 = vpop.eup %8519 }
 0x713   : > { %v5831_v36 = vpop.f32.mrf.mxu1  ;;  %v5871_v14 = vadd.f32 %v5870_v4, %v10383_v29  ;;  %v8522_v41 = vpop.eup %8521  ;;  %v9429_v4 = vld [vmem:[%s10028_s12 + $0x20] sm:$0xff] }
 0x714   : > { %v10618_v3 = vadd.f32 %v5830_v1, %v10831_v16  ;;  %v5832_v19 = vadd.f32 %v5831_v36, %v5791_v7  ;;  %v5872_v60 = vpop.f32.mrf.mxu0  ;;  %v6081_v7 = vsub.f32 1.0, %v8520_v20  ;;  %v6089_v36 = vmul.f32 %v9429_v4, %v8520_v20 }
 0x715   : > { %v5833_v27 = vpop.f32.mrf.mxu1  ;;  %v5873_v15 = vadd.f32 %v5872_v60, %v10387_v49 }
 0x716   : > { %v10621_v28 = vadd.f32 %v5832_v19, %v10832_v32  ;;  %v5874_v22 = vpop.f32.mrf.mxu0  ;;  %v6082_v19 = vsub.f32 1.0, %v8522_v41  ;;  %v9430_v27 = vld [vmem:[%s10028_s12 + $0x28] sm:$0xff]  ;;  %v7467_v9 = vmul.f32 -1.442695, %v10618_v3 }
 0x717   : > { %v5834_v57 = vpop.f32.mrf.mxu1  ;;  %v6090_v32 = vmul.f32 %v9430_v27, %v8522_v41  ;;  %v9443_v3 = vld [vmem:[#allocation6 + $0x68] ss:$48 sps:$4 sm:$0xff]   ;;  %v10835_v27 = vld [vmem:[#allocation29_spill] sm:$0xff] }
 0x718   : > { %v5875_v18 = vpop.f32.mrf.mxu0 }
 0x751   : > { %v5911_v25 = vpop.f32.mrf.mxu1 }
 0x752   : > { %v5912_v53 = vadd.f32 %v5911_v25, %v5871_v14  ;;  %v10629_v47 = vpop.f32.mrf.mxu0  ;;  %v7468_v14 = vmul.f32 -1.442695, %v10621_v28  ;;  %v9445_v28 = vld [vmem:[#allocation6 + $0x8] ss:$48 sps:$4 sm:$0xff]  }
 0x753   : > { %v5913_v6 = vpop.f32.mrf.mxu1 }
 0x754   : > { %v6069_v26 = vmul.f32 %v8516_v42, %v5912_v53  ;;  %v5914_v61 = vadd.f32 %v5913_v6, %v5873_v15  ;;  %v10631_v38 = vpop.f32.mrf.mxu0  ;;  %v9440_v53 = vld [vmem:[#allocation6 + $0xcc] ss:$48 sps:$4 sm:$0xff]  }
 0x755   : > { %v5915_v0 = vpop.f32.mrf.mxu1  ;;  %v5955_v20 = vadd.f32 %v10631_v38, %v10414_v31 }
 0x756   : > { %v6073_v5 = vadd.f32 %v6069_v26, %v10833_v23  ;;  %v6070_v52 = vmul.f32 %v8518_v51, %v5914_v61  ;;  %v5956_v37 = vpop.f32.mrf.mxu0  ;;  %v9441_v26 = vld [vmem:[#allocation6 + $0xc8] ss:$48 sps:$4 sm:$0xff]   ;;  %v9442_v61 = vld [vmem:[#allocation6 + $0x6c] ss:$48 sps:$4 sm:$0xff]  }
 0x757   : > { %v5916_v30 = vpop.f32.mrf.mxu1  ;;  %v9444_v51 = vld [vmem:[#allocation6 + $0xc] ss:$48 sps:$4 sm:$0xff]   ;;  %v5953_v37 = vadd.f32 %v10629_v47, %v10410_v54 }
 0x758   : > { %8523 = vtanh.f32 %v6073_v5  ;;  %v6074_v63 = vadd.f32 %v6070_v52, %v10834_v34  ;;  %v5957_v12 = vpop.f32.mrf.mxu0  ;;  %v9446_v23 = vld [vmem:[#allocation6 + $0x5ac] ss:$48 sps:$4 sm:$0xff]   ;;  %v9447_v30 = vld [vmem:[#allocation6 + $0x5a8] ss:$48 sps:$4 sm:$0xff]  }
 0x759   : > { %v9450_v47 = vld [vmem:[#allocation6 + $0x4ec] ss:$48 sps:$4 sm:$0xff]  }
 0x75a   : > { %8525 = vtanh.f32 %v6074_v63  ;;  %v9448_v63 = vld [vmem:[#allocation6 + $0x54c] ss:$48 sps:$4 sm:$0xff]  }
 0x75b   : > { %8527 = vpow2.f32 %v7463_v48 }
 0x75c   : > { %8529 = vpow2.f32 %v7464_v24  ;;  %v10836_v24 = vld [vmem:[#allocation31_spill] sm:$0xff] }
 0x75d   : > { %8531 = vpow2.f32 %v7467_v9  ;;  %v9456_v9 = vld [vmem:[#allocation6 + $0x3cc] ss:$48 sps:$4 sm:$0xff]  }
 0x75e   : > { %8533 = vpow2.f32 %v7468_v14  ;;  %v9457_v14 = vld [vmem:[#allocation6 + $0x3c8] ss:$48 sps:$4 sm:$0xff]  }
 0x765   : > { %v8524_v1 = vpop.eup %8523 }
 0x766   : > { %v6085_v16 = vmul.f32 %v8524_v1, %v6081_v7 }
 0x767   : > { %v8526_v60 = vpop.eup %8525 }
 0x768   : > { %v10637_v22 = vadd.f32 %v6089_v36, %v6085_v16  ;;  %v6086_v57 = vmul.f32 %v8526_v60, %v6082_v19  ;;  %v8528_v25 = vpop.eup %8527  ;;  %v9449_v16 = vld [vmem:[#allocation6 + $0x548] ss:$48 sps:$4 sm:$0xff]  }
 0x769   : > { %v8530_v15 = vpop.eup %8529  ;;  %v6031_v42 = vadd.f32 1.0, %v8528_v25 }
 0x76a   : > { %7469 = vst [vmem:[%s10028_s12 + $0x40] sm:$0xff] %v10637_v22  ;;  %v10641_v18 = vadd.f32 %v6090_v32, %v6086_v57  ;;  %v10651_v59 = vpack.c.bf16 %v10637_v22, %v10637_v22  ;;  %v6032_v6 = vadd.f32 1.0, %v8530_v15  ;;  %v8532_v0 = vpop.eup %8531  ;;  %v9459_v15 = vld [vmem:[%s10028_s12 + $0x30] sm:$0xff] }
 0x76b   : > { %8535 = vrcp.f32 %v6031_v42  ;;  %v8534_v5 = vpop.eup %8533  ;;  %v6059_v52 = vadd.f32 1.0, %v8532_v0  ;;  %v9461_v0 = vld [vmem:[#allocation6 + $0x368] ss:$48 sps:$4 sm:$0xff]  }
 0x76c   : > { %7470 = vst [vmem:[%s10028_s12 + $0x48] sm:$0xff] %v10641_v18  ;;  %v10647_v45 = vpack.c.bf16 %v10641_v18, %v10641_v18  ;;  %8537 = vrcp.f32 %v6032_v6  ;;  %v6060_v12 = vadd.f32 1.0, %v8534_v5 }
 0x76d   : > { %8539 = vrcp.f32 %v6059_v52  ;;  %v9463_v52 = vld [vmem:[#allocation6 + $0x308] ss:$48 sps:$4 sm:$0xff]  }
 0x76e   : > { %6138 = vmatprep.mubr.bf16.mxu0 %v10647_v45  ;;  %8541 = vrcp.f32 %v6060_v12  ;;  %v9466_v12 = vld [vmem:[#allocation6 + $0x2b0] ss:$48 sps:$4 sm:$0xff]  }
 0x76f   : > { %6139 = vmatmul.mubr.bf16.vlgmr.msra.gmra.mxu0 %v10651_v59 }
 0x770   : > { %6189 = vmatpush1.bf16.msra.mxu0 %v9431_v44  ;;  %6220 = vmatprep.mubr.bf16.mxu0 %v10647_v45  ;;  %v9451_v44 = vld [vmem:[#allocation6 + $0x4e8] ss:$48 sps:$4 sm:$0xff]  }
 0x771   : > { %6190 = vmatprep.subr.bf16.mxu0 %v9432_v50  ;;  %v9452_v50 = vld [vmem:[#allocation6 + $0x48c] ss:$48 sps:$4 sm:$0xff]  }
 0x774   : > { %6191 = vmatpush1.bf16.msra.mxu0 %v9433_v8  ;;  %v9453_v8 = vld [vmem:[#allocation6 + $0x488] ss:$48 sps:$4 sm:$0xff]  }
 0x775   : > { %6192 = vmatprep.subr.bf16.mxu0 %v9434_v17  ;;  %v9454_v17 = vld [vmem:[#allocation6 + $0x42c] ss:$48 sps:$4 sm:$0xff]  }
 0x778   : > { %6193 = vmatpush1.bf16.msra.mxu0 %v9435_v58  ;;  %v8536_v7 = vpop.eup %8535  ;;  %v9455_v58 = vld [vmem:[#allocation6 + $0x428] ss:$48 sps:$4 sm:$0xff]  }
 0x779   : > { %6194 = vmatprep.subr.bf16.mxu0 %v9436_v21  ;;  %v8538_v19 = vpop.eup %8537 }
 0x77a   : > { %v8540_v21 = vpop.eup %8539 }
 0x77c   : > { %6195 = vmatpush1.bf16.msra.mxu0 %v9437_v56  ;;  %v8542_v56 = vpop.eup %8541 }
 0x77d   : > { %6196 = vmatprep.subr.bf16.mxu0 %v9438_v40  ;;  %v6083_v40 = vsub.f32 1.0, %v8540_v21  ;;  %v6084_v6 = vsub.f32 1.0, %v8542_v56 }
 0x780   : > { %6197 = vmatpush1.bf16.msra.mxu0 %v9439_v46  ;;  %v9458_v46 = vld [vmem:[#allocation6 + $0x36c] ss:$48 sps:$4 sm:$0xff]  }
 0x781   : > { %6198 = vmatprep.subr.bf16.mxu0 %v9440_v53  ;;  %v6091_v53 = vmul.f32 %v9459_v15, %v8540_v21  ;;  %v9488_v21 = vld [vmem:[#allocation6 + $0x74] ss:$48 sps:$4 sm:$0xff]   ;;  %v9495_v15 = vld [vmem:[#allocation6 + $0xbac] ss:$48 sps:$4 sm:$0xff]  }
 0x784   : > { %6199 = vmatpush1.bf16.msra.mxu0 %v9441_v26 }
 0x785   : > { %6200 = vmatprep.subr.bf16.mxu0 %v9442_v61  ;;  %v9460_v61 = vld [vmem:[%s10028_s12 + $0x38] sm:$0xff] }
 0x788   : > { %6201 = vmatpush1.bf16.msra.mxu0 %v9443_v3  ;;  %v6092_v3 = vmul.f32 %v9460_v61, %v8542_v56  ;;  %v9490_v56 = vld [vmem:[#allocation6 + $0x70] ss:$48 sps:$4 sm:$0xff]   ;;  %v9500_v61 = vld [vmem:[#allocation6 + $0x554] ss:$48 sps:$4 sm:$0xff]  }
 0x789   : > { %6202 = vmatprep.subr.bf16.mxu0 %v9444_v51 }
 0x78c   : > { %6203 = vmatpush1.bf16.msra.mxu0 %v9445_v28 }
 0x78d   : > { %6204 = vmatprep.subr.bf16.mxu0 %v9446_v23  ;;  %v9462_v23 = vld [vmem:[#allocation6 + $0x30c] ss:$48 sps:$4 sm:$0xff]  }
 0x790   : > { %6205 = vmatpush2.bf16.msra.mxu0 %v9447_v30  ;;  %v9464_v30 = vld [vmem:[#allocation6 + $0x2b4] ss:$48 sps:$4 sm:$0xff]  }
 0x791   : > { %v5993_v34 = vpop.f32.mrf.mxu1  ;;  %6206 = vmatprep.subr.bf16.mxu0 %v9448_v63  ;;  %v9465_v63 = vld [vmem:[#allocation6 + $0x8a8] ss:$48 sps:$4 sm:$0xff]  }
 0x792   : > { %v5994_v41 = vadd.f32 %v5993_v34, %v5953_v37 }
 0x793   : > { %v5995_v1 = vpop.f32.mrf.mxu1 }
 0x794   : > { %v6071_v4 = vmul.f32 %v8536_v7, %v5994_v41  ;;  %v5996_v36 = vadd.f32 %v5995_v1, %v5955_v20  ;;  %6207 = vmatpush2.bf16.msra.mxu0 %v9449_v16  ;;  %v9467_v20 = vld [vmem:[#allocation6 + $0x84c] ss:$48 sps:$4 sm:$0xff]   ;;  %v9468_v41 = vld [vmem:[#allocation6 + $0x254] ss:$48 sps:$4 sm:$0xff]   ;;  %v9469_v7 = vld [vmem:[#allocation6 + $0x848] ss:$48 sps:$4 sm:$0xff]  }
 0x795   : > { %v5997_v60 = vpop.f32.mrf.mxu1  ;;  %6208 = vmatprep.subr.bf16.mxu0 %v9450_v47  ;;  %v9470_v1 = vld [vmem:[#allocation6 + $0x250] ss:$48 sps:$4 sm:$0xff]   ;;  %v9473_v16 = vld [vmem:[#allocation6 + $0x7e8] ss:$48 sps:$4 sm:$0xff]   ;;  %v9476_v47 = vld [vmem:[#allocation6 + $0x194] ss:$48 sps:$4 sm:$0xff]  }
 0x796   : > { %v6075_v32 = vadd.f32 %v6071_v4, %v10835_v27  ;;  %v6072_v57 = vmul.f32 %v8538_v19, %v5996_v36  ;;  %v9471_v4 = vld [vmem:[#allocation6 + $0x7ec] ss:$48 sps:$4 sm:$0xff]   ;;  %v9472_v36 = vld [vmem:[#allocation6 + $0x1f4] ss:$48 sps:$4 sm:$0xff]   ;;  %v9474_v19 = vld [vmem:[#allocation6 + $0x1f0] ss:$48 sps:$4 sm:$0xff]  }
 0x797   : > { %v5998_v48 = vpop.f32.mrf.mxu1  ;;  %v9475_v60 = vld [vmem:[#allocation6 + $0x78c] ss:$48 sps:$4 sm:$0xff]   ;;  %v9477_v27 = vld [vmem:[#allocation6 + $0x788] ss:$48 sps:$4 sm:$0xff]  }
 0x798   : > { %8543 = vtanh.f32 %v6075_v32  ;;  %v6076_v38 = vadd.f32 %v6072_v57, %v10836_v24  ;;  %6209 = vmatpush2.bf16.msra.mxu0 %v9451_v44  ;;  %v9478_v32 = vld [vmem:[#allocation6 + $0x190] ss:$48 sps:$4 sm:$0xff]   ;;  %v9479_v57 = vld [vmem:[#allocation6 + $0x72c] ss:$48 sps:$4 sm:$0xff]   ;;  %v9480_v48 = vld [vmem:[#allocation6 + $0x134] ss:$48 sps:$4 sm:$0xff]  }
 0x799   : > { %6210 = vmatprep.subr.bf16.mxu0 %v9452_v50  ;;  %v9481_v24 = vld [vmem:[#allocation6 + $0x728] ss:$48 sps:$4 sm:$0xff]   ;;  %v9483_v44 = vld [vmem:[#allocation6 + $0x6cc] ss:$48 sps:$4 sm:$0xff]   ;;  %v9484_v50 = vld [vmem:[#allocation6 + $0xd4] ss:$48 sps:$4 sm:$0xff]  }
 0x79a   : > { %8545 = vtanh.f32 %v6076_v38  ;;  %v9482_v38 = vld [vmem:[#allocation6 + $0x130] ss:$48 sps:$4 sm:$0xff]  }
 0x79c   : > { %6211 = vmatpush2.bf16.msra.mxu0 %v9453_v8  ;;  %v9485_v8 = vld [vmem:[#allocation6 + $0x6c8] ss:$48 sps:$4 sm:$0xff]  }
 0x79d   : > { %6212 = vmatprep.subr.bf16.mxu0 %v9454_v17  ;;  %v9486_v17 = vld [vmem:[#allocation6 + $0xd0] ss:$48 sps:$4 sm:$0xff]  }
 0x7a0   : > { %6213 = vmatpush2.bf16.msra.mxu0 %v9455_v58  ;;  %v9487_v58 = vld [vmem:[#allocation6 + $0x66c] ss:$48 sps:$4 sm:$0xff]  }
 0x7a1   : > { %6214 = vmatprep.subr.bf16.mxu0 %v9456_v9  ;;  %v9489_v9 = vld [vmem:[#allocation6 + $0x668] ss:$48 sps:$4 sm:$0xff]  }
 0x7a4   : > { %6215 = vmatpush2.bf16.msra.mxu0 %v9457_v14  ;;  %v9492_v14 = vld [vmem:[#allocation6 + $0x14] ss:$48 sps:$4 sm:$0xff]  }
 0x7a5   : > { %v8544_v25 = vpop.eup %8543  ;;  %6216 = vmatprep.subr.bf16.mxu0 %v9458_v46  ;;  %v9494_v46 = vld [vmem:[#allocation6 + $0x10] ss:$48 sps:$4 sm:$0xff]  }
 0x7a6   : > { %v6087_v42 = vmul.f32 %v8544_v25, %v6083_v40  ;;  %v9491_v40 = vld [vmem:[#allocation6 + $0x60c] ss:$48 sps:$4 sm:$0xff]   ;;  %v9493_v25 = vld [vmem:[#allocation6 + $0x608] ss:$48 sps:$4 sm:$0xff]  }
 0x7a7   : > { %v8546_v26 = vpop.eup %8545 }
 0x7a8   : > { %v10668_v51 = vadd.f32 %v6091_v53, %v6087_v42  ;;  %v6088_v28 = vmul.f32 %v8546_v26, %v6084_v6  ;;  %6217 = vmatpush2.bf16.msra.mxu0 %v9461_v0  ;;  %v9496_v53 = vld [vmem:[#allocation6 + $0x5b4] ss:$48 sps:$4 sm:$0xff]   ;;  %v9497_v42 = vld [vmem:[#allocation6 + $0xba8] ss:$48 sps:$4 sm:$0xff]   ;;  %v9498_v6 = vld [vmem:[#allocation6 + $0x5b0] ss:$48 sps:$4 sm:$0xff]  }
 0x7a9   : > { %6218 = vmatprep.subr.bf16.mxu0 %v9462_v23  ;;  %v9499_v26 = vld [vmem:[#allocation6 + $0xb4c] ss:$48 sps:$4 sm:$0xff]   ;;  %v9504_v23 = vld [vmem:[#allocation6 + $0x4f4] ss:$48 sps:$4 sm:$0xff]  }
 0x7aa   : > { %7471 = vst [vmem:[%s10028_s12 + $0x50] sm:$0xff] %v10668_v51  ;;  %v10672_v5 = vadd.f32 %v6092_v3, %v6088_v28  ;;  %v10682_v34 = vpack.c.bf16 %v10668_v51, %v10668_v51  ;;  %v9501_v3 = vld [vmem:[#allocation6 + $0xb48] ss:$48 sps:$4 sm:$0xff]   ;;  %v9502_v28 = vld [vmem:[#allocation6 + $0x550] ss:$48 sps:$4 sm:$0xff]  }
 0x7ab   : > { %v9503_v0 = vld [vmem:[#allocation6 + $0xaec] ss:$48 sps:$4 sm:$0xff]  }
 0x7ac   : > { %7472 = vst [vmem:[%s10028_s12 + $0x58] sm:$0xff] %v10672_v5  ;;  %6219 = vmatpush2.bf16.msra.mxu0 %v9463_v52  ;;  %v10678_v37 = vpack.c.bf16 %v10672_v5, %v10672_v5  ;;  %v9505_v52 = vld [vmem:[#allocation6 + $0xae8] ss:$48 sps:$4 sm:$0xff]  }
 0x7ad   : > { %6270 = vmatprep.subr.bf16.mxu0 %v9464_v30  ;;  %v9506_v30 = vld [vmem:[#allocation6 + $0x4f0] ss:$48 sps:$4 sm:$0xff]  }
 0x7ae   : > { %6179 = vmatprep.mubr.bf16.mxu1 %v10678_v37 }
 0x7af   : > { %6221 = vmatmul.mubr.bf16.vlgmr.msra.gmra.mxu0 %v10651_v59  ;;  %6180 = vmatmul.mubr.bf16.vlgmr.msra.gmra.mxu1 %v10682_v34 }
 0x7b0   : > { %6230 = vmatpush1.bf16.msra.mxu1 %v9465_v63  ;;  %6271 = vmatpush1.bf16.msra.mxu0 %v9466_v12  ;;  %v9507_v63 = vld [vmem:[#allocation6 + $0xa8c] ss:$48 sps:$4 sm:$0xff]   ;;  %v9508_v12 = vld [vmem:[#allocation6 + $0x494] ss:$48 sps:$4 sm:$0xff]  }
 0x7b1   : > { %6302 = vmatprep.mubr.bf16.mxu0 %v10647_v45  ;;  %6261 = vmatprep.mubr.bf16.mxu1 %v10678_v37 }
 0x7b2   : > { %6231 = vmatprep.subr.bf16.mxu1 %v9467_v20  ;;  %6272 = vmatprep.subr.bf16.mxu0 %v9468_v41  ;;  %v9509_v20 = vld [vmem:[#allocation6 + $0xa88] ss:$48 sps:$4 sm:$0xff]   ;;  %v9510_v41 = vld [vmem:[#allocation6 + $0x490] ss:$48 sps:$4 sm:$0xff]  }
 0x7b4   : > { %6232 = vmatpush1.bf16.msra.mxu1 %v9469_v7  ;;  %6273 = vmatpush1.bf16.msra.mxu0 %v9470_v1  ;;  %v9511_v7 = vld [vmem:[#allocation6 + $0xa2c] ss:$48 sps:$4 sm:$0xff]   ;;  %v9512_v1 = vld [vmem:[#allocation6 + $0x434] ss:$48 sps:$4 sm:$0xff]  }
 0x7b5   : > { %6233 = vmatprep.subr.bf16.mxu1 %v9471_v4  ;;  %6274 = vmatprep.subr.bf16.mxu0 %v9472_v36  ;;  %v9513_v4 = vld [vmem:[#allocation6 + $0xa28] ss:$48 sps:$4 sm:$0xff]   ;;  %v9514_v36 = vld [vmem:[#allocation6 + $0x430] ss:$48 sps:$4 sm:$0xff]  }
 0x7b8   : > { %6234 = vmatpush1.bf16.msra.mxu1 %v9473_v16  ;;  %6275 = vmatpush1.bf16.msra.mxu0 %v9474_v19  ;;  %v9515_v16 = vld [vmem:[#allocation6 + $0x9cc] ss:$48 sps:$4 sm:$0xff]   ;;  %v9516_v19 = vld [vmem:[#allocation6 + $0x3d4] ss:$48 sps:$4 sm:$0xff]  }
 0x7b9   : > { %6235 = vmatprep.subr.bf16.mxu1 %v9475_v60  ;;  %6276 = vmatprep.subr.bf16.mxu0 %v9476_v47  ;;  %v9517_v60 = vld [vmem:[#allocation6 + $0x9c8] ss:$48 sps:$4 sm:$0xff]   ;;  %v9518_v47 = vld [vmem:[#allocation6 + $0x3d0] ss:$48 sps:$4 sm:$0xff]  }
 0x7bc   : > { %6236 = vmatpush1.bf16.msra.mxu1 %v9477_v27  ;;  %6277 = vmatpush1.bf16.msra.mxu0 %v9478_v32  ;;  %v9519_v27 = vld [vmem:[#allocation6 + $0x96c] ss:$48 sps:$4 sm:$0xff]   ;;  %v9520_v32 = vld [vmem:[#allocation6 + $0x374] ss:$48 sps:$4 sm:$0xff]  }
 0x7bd   : > { %6237 = vmatprep.subr.bf16.mxu1 %v9479_v57  ;;  %6278 = vmatprep.subr.bf16.mxu0 %v9480_v48  ;;  %v9521_v57 = vld [vmem:[#allocation6 + $0x968] ss:$48 sps:$4 sm:$0xff]   ;;  %v9522_v48 = vld [vmem:[#allocation6 + $0x370] ss:$48 sps:$4 sm:$0xff]  }
 0x7c0   : > { %6238 = vmatpush1.bf16.msra.mxu1 %v9481_v24  ;;  %6279 = vmatpush1.bf16.msra.mxu0 %v9482_v38  ;;  %v9523_v24 = vld [vmem:[#allocation6 + $0x90c] ss:$48 sps:$4 sm:$0xff]   ;;  %v9524_v38 = vld [vmem:[#allocation6 + $0x314] ss:$48 sps:$4 sm:$0xff]  }
 0x7c1   : > { %6239 = vmatprep.subr.bf16.mxu1 %v9483_v44  ;;  %6280 = vmatprep.subr.bf16.mxu0 %v9484_v50  ;;  %v9525_v44 = vld [vmem:[#allocation6 + $0x908] ss:$48 sps:$4 sm:$0xff]   ;;  %v9526_v50 = vld [vmem:[#allocation6 + $0x310] ss:$48 sps:$4 sm:$0xff]  }
 0x7c4   : > { %6240 = vmatpush1.bf16.msra.mxu1 %v9485_v8  ;;  %6281 = vmatpush1.bf16.msra.mxu0 %v9486_v17  ;;  %v9527_v8 = vld [vmem:[#allocation6 + $0x8b4] ss:$48 sps:$4 sm:$0xff]   ;;  %v9528_v17 = vld [vmem:[#allocation6 + $0x2bc] ss:$48 sps:$4 sm:$0xff]  }
 0x7c5   : > { %6241 = vmatprep.subr.bf16.mxu1 %v9487_v58  ;;  %6282 = vmatprep.subr.bf16.mxu0 %v9488_v21  ;;  %v9529_v58 = vld [vmem:[#allocation6 + $0x8b0] ss:$48 sps:$4 sm:$0xff]   ;;  %v9530_v21 = vld [vmem:[#allocation6 + $0x2b8] ss:$48 sps:$4 sm:$0xff]  }
 0x7c8   : > { %6242 = vmatpush1.bf16.msra.mxu1 %v9489_v9  ;;  %6283 = vmatpush1.bf16.msra.mxu0 %v9490_v56  ;;  %v9531_v9 = vld [vmem:[#allocation6 + $0x854] ss:$48 sps:$4 sm:$0xff]   ;;  %v9532_v56 = vld [vmem:[#allocation6 + $0x25c] ss:$48 sps:$4 sm:$0xff]  }
 0x7c9   : > { %6243 = vmatprep.subr.bf16.mxu1 %v9491_v40  ;;  %6284 = vmatprep.subr.bf16.mxu0 %v9492_v14  ;;  %v9533_v40 = vld [vmem:[#allocation6 + $0x850] ss:$48 sps:$4 sm:$0xff]   ;;  %v9534_v14 = vld [vmem:[#allocation6 + $0x258] ss:$48 sps:$4 sm:$0xff]  }
 0x7cc   : > { %6244 = vmatpush1.bf16.msra.mxu1 %v9493_v25  ;;  %6285 = vmatpush1.bf16.msra.mxu0 %v9494_v46  ;;  %v9535_v25 = vld [vmem:[#allocation6 + $0x7f4] ss:$48 sps:$4 sm:$0xff]   ;;  %v9536_v46 = vld [vmem:[#allocation6 + $0x1fc] ss:$48 sps:$4 sm:$0xff]  }
 0x7cd   : > { %6245 = vmatprep.subr.bf16.mxu1 %v9495_v15  ;;  %6286 = vmatprep.subr.bf16.mxu0 %v9496_v53  ;;  %v9537_v15 = vld [vmem:[#allocation6 + $0x7f0] ss:$48 sps:$4 sm:$0xff]   ;;  %v9538_v53 = vld [vmem:[#allocation6 + $0x1f8] ss:$48 sps:$4 sm:$0xff]  }
 0x7d0   : > { %6246 = vmatpush2.bf16.msra.mxu1 %v9497_v42  ;;  %6287 = vmatpush2.bf16.msra.mxu0 %v9498_v6  ;;  %v9539_v42 = vld [vmem:[#allocation6 + $0x794] ss:$48 sps:$4 sm:$0xff]   ;;  %v9540_v6 = vld [vmem:[#allocation6 + $0x19c] ss:$48 sps:$4 sm:$0xff]  }
 0x7d1   : > { %6247 = vmatprep.subr.bf16.mxu1 %v9499_v26  ;;  %6288 = vmatprep.subr.bf16.mxu0 %v9500_v61  ;;  %v9541_v26 = vld [vmem:[#allocation6 + $0x790] ss:$48 sps:$4 sm:$0xff]   ;;  %v9542_v61 = vld [vmem:[#allocation6 + $0x198] ss:$48 sps:$4 sm:$0xff]  }
 0x7d4   : > { %6248 = vmatpush2.bf16.msra.mxu1 %v9501_v3  ;;  %6289 = vmatpush2.bf16.msra.mxu0 %v9502_v28  ;;  %v9543_v3 = vld [vmem:[#allocation6 + $0x734] ss:$48 sps:$4 sm:$0xff]   ;;  %v9544_v28 = vld [vmem:[#allocation6 + $0x13c] ss:$48 sps:$4 sm:$0xff]  }
 0x7d5   : > { %6249 = vmatprep.subr.bf16.mxu1 %v9503_v0  ;;  %6290 = vmatprep.subr.bf16.mxu0 %v9504_v23  ;;  %v9545_v0 = vld [vmem:[#allocation6 + $0x730] ss:$48 sps:$4 sm:$0xff]   ;;  %v9546_v23 = vld [vmem:[#allocation6 + $0x138] ss:$48 sps:$4 sm:$0xff]  }
 0x7d8   : > { %6250 = vmatpush2.bf16.msra.mxu1 %v9505_v52  ;;  %6291 = vmatpush2.bf16.msra.mxu0 %v9506_v30  ;;  %v9547_v52 = vld [vmem:[#allocation6 + $0x6d4] ss:$48 sps:$4 sm:$0xff]   ;;  %v9548_v30 = vld [vmem:[#allocation6 + $0xdc] ss:$48 sps:$4 sm:$0xff]  }
 0x7d9   : > { %6251 = vmatprep.subr.bf16.mxu1 %v9507_v63  ;;  %6292 = vmatprep.subr.bf16.mxu0 %v9508_v12  ;;  %v9549_v63 = vld [vmem:[#allocation6 + $0x6d0] ss:$48 sps:$4 sm:$0xff]   ;;  %v9550_v12 = vld [vmem:[#allocation6 + $0xd8] ss:$48 sps:$4 sm:$0xff]  }
 0x7dc   : > { %6252 = vmatpush2.bf16.msra.mxu1 %v9509_v20  ;;  %6293 = vmatpush2.bf16.msra.mxu0 %v9510_v41  ;;  %v9551_v20 = vld [vmem:[#allocation6 + $0x674] ss:$48 sps:$4 sm:$0xff]   ;;  %v9552_v41 = vld [vmem:[#allocation6 + $0x7c] ss:$48 sps:$4 sm:$0xff]  }
 0x7dd   : > { %6253 = vmatprep.subr.bf16.mxu1 %v9511_v7  ;;  %6294 = vmatprep.subr.bf16.mxu0 %v9512_v1  ;;  %v9553_v7 = vld [vmem:[#allocation6 + $0x670] ss:$48 sps:$4 sm:$0xff]   ;;  %v9554_v1 = vld [vmem:[#allocation6 + $0x78] ss:$48 sps:$4 sm:$0xff]  }
 0x7e0   : > { %6254 = vmatpush2.bf16.msra.mxu1 %v9513_v4  ;;  %6295 = vmatpush2.bf16.msra.mxu0 %v9514_v36  ;;  %v9555_v4 = vld [vmem:[#allocation6 + $0x614] ss:$48 sps:$4 sm:$0xff]   ;;  %v9556_v36 = vld [vmem:[#allocation6 + $0x1c] ss:$48 sps:$4 sm:$0xff]  }
 0x7e1   : > { %6255 = vmatprep.subr.bf16.mxu1 %v9515_v16  ;;  %6296 = vmatprep.subr.bf16.mxu0 %v9516_v19  ;;  %v9557_v16 = vld [vmem:[#allocation6 + $0x610] ss:$48 sps:$4 sm:$0xff]   ;;  %v9558_v19 = vld [vmem:[#allocation6 + $0x18] ss:$48 sps:$4 sm:$0xff]  }
 0x7e4   : > { %6256 = vmatpush2.bf16.msra.mxu1 %v9517_v60  ;;  %6297 = vmatpush2.bf16.msra.mxu0 %v9518_v47  ;;  %v9559_v60 = vld [vmem:[#allocation6 + $0xbb4] ss:$48 sps:$4 sm:$0xff]   ;;  %v9560_v47 = vld [vmem:[#allocation6 + $0x5bc] ss:$48 sps:$4 sm:$0xff]  }
 0x7e5   : > { %6257 = vmatprep.subr.bf16.mxu1 %v9519_v27  ;;  %6298 = vmatprep.subr.bf16.mxu0 %v9520_v32  ;;  %v9561_v27 = vld [vmem:[#allocation6 + $0xbb0] ss:$48 sps:$4 sm:$0xff]   ;;  %v9562_v32 = vld [vmem:[#allocation6 + $0x5b8] ss:$48 sps:$4 sm:$0xff]  }
 0x7e8   : > { %6258 = vmatpush2.bf16.msra.mxu1 %v9521_v57  ;;  %6299 = vmatpush2.bf16.msra.mxu0 %v9522_v48  ;;  %v9563_v57 = vld [vmem:[#allocation6 + $0xb54] ss:$48 sps:$4 sm:$0xff]   ;;  %v9564_v48 = vld [vmem:[#allocation6 + $0x55c] ss:$48 sps:$4 sm:$0xff]  }
 0x7e9   : > { %6259 = vmatprep.subr.bf16.mxu1 %v9523_v24  ;;  %6300 = vmatprep.subr.bf16.mxu0 %v9524_v38  ;;  %v9565_v24 = vld [vmem:[#allocation6 + $0xb50] ss:$48 sps:$4 sm:$0xff]   ;;  %v9566_v38 = vld [vmem:[#allocation6 + $0x558] ss:$48 sps:$4 sm:$0xff]  }
 0x7ec   : > { %6260 = vmatpush2.bf16.msra.mxu1 %v9525_v44  ;;  %6301 = vmatpush2.bf16.msra.mxu0 %v9526_v50  ;;  %v9567_v44 = vld [vmem:[#allocation6 + $0xaf4] ss:$48 sps:$4 sm:$0xff]   ;;  %v9568_v50 = vld [vmem:[#allocation6 + $0x4fc] ss:$48 sps:$4 sm:$0xff]  }
 0x7ed   : > { %6311 = vmatprep.subr.bf16.mxu1 %v9527_v8  ;;  %6352 = vmatprep.subr.bf16.mxu0 %v9528_v17  ;;  %v9569_v8 = vld [vmem:[#allocation6 + $0xaf0] ss:$48 sps:$4 sm:$0xff]   ;;  %v9570_v17 = vld [vmem:[#allocation6 + $0x4f8] ss:$48 sps:$4 sm:$0xff]  }
 0x7ef   : > { %6262 = vmatmul.mubr.bf16.vlgmr.msra.gmra.mxu1 %v10682_v34  ;;  %6303 = vmatmul.mubr.bf16.vlgmr.msra.gmra.mxu0 %v10651_v59 }
 0x7f0   : > { %6312 = vmatpush1.bf16.msra.mxu1 %v9529_v58  ;;  %6343 = vmatprep.mubr.bf16.mxu1 %v10678_v37  ;;  %v9571_v58 = vld [vmem:[#allocation6 + $0xa94] ss:$48 sps:$4 sm:$0xff]  }
 0x7f1   : > { %6353 = vmatpush1.bf16.msra.mxu0 %v9530_v21  ;;  %6384 = vmatprep.mubr.bf16.mxu0 %v10647_v45  ;;  %v9572_v21 = vld [vmem:[#allocation6 + $0x49c] ss:$48 sps:$4 sm:$0xff]  }
 0x7f2   : > { %6313 = vmatprep.subr.bf16.mxu1 %v9531_v9  ;;  %6354 = vmatprep.subr.bf16.mxu0 %v9532_v56  ;;  %v9573_v9 = vld [vmem:[#allocation6 + $0xa90] ss:$48 sps:$4 sm:$0xff]   ;;  %v9574_v56 = vld [vmem:[#allocation6 + $0x498] ss:$48 sps:$4 sm:$0xff]  }
 0x7f4   : > { %6314 = vmatpush1.bf16.msra.mxu1 %v9533_v40  ;;  %v9575_v40 = vld [vmem:[#allocation6 + $0xa34] ss:$48 sps:$4 sm:$0xff]  }
 0x7f5   : > { %6355 = vmatpush1.bf16.msra.mxu0 %v9534_v14  ;;  %6315 = vmatprep.subr.bf16.mxu1 %v9535_v25  ;;  %v9576_v14 = vld [vmem:[#allocation6 + $0x43c] ss:$48 sps:$4 sm:$0xff]   ;;  %v9577_v25 = vld [vmem:[#allocation6 + $0xa30] ss:$48 sps:$4 sm:$0xff]  }
 0x7f6   : > { %6356 = vmatprep.subr.bf16.mxu0 %v9536_v46  ;;  %v9578_v46 = vld [vmem:[#allocation6 + $0x438] ss:$48 sps:$4 sm:$0xff]  }
 0x7f8   : > { %6316 = vmatpush1.bf16.msra.mxu1 %v9537_v15  ;;  %v9579_v15 = vld [vmem:[#allocation6 + $0x9d4] ss:$48 sps:$4 sm:$0xff]  }
 0x7f9   : > { %6357 = vmatpush1.bf16.msra.mxu0 %v9538_v53  ;;  %6317 = vmatprep.subr.bf16.mxu1 %v9539_v42  ;;  %v9580_v53 = vld [vmem:[#allocation6 + $0x3dc] ss:$48 sps:$4 sm:$0xff]   ;;  %v9581_v42 = vld [vmem:[#allocation6 + $0x9d0] ss:$48 sps:$4 sm:$0xff]  }
 0x7fa   : > { %6358 = vmatprep.subr.bf16.mxu0 %v9540_v6  ;;  %v9582_v6 = vld [vmem:[#allocation6 + $0x3d8] ss:$48 sps:$4 sm:$0xff]  }
 0x7fc   : > { %6318 = vmatpush1.bf16.msra.mxu1 %v9541_v26  ;;  %v9583_v26 = vld [vmem:[#allocation6 + $0x974] ss:$48 sps:$4 sm:$0xff]  }
 0x7fd   : > { %6359 = vmatpush1.bf16.msra.mxu0 %v9542_v61  ;;  %6319 = vmatprep.subr.bf16.mxu1 %v9543_v3  ;;  %v9584_v61 = vld [vmem:[#allocation6 + $0x37c] ss:$48 sps:$4 sm:$0xff]   ;;  %v9585_v3 = vld [vmem:[#allocation6 + $0x970] ss:$48 sps:$4 sm:$0xff]  }
 0x7fe   : > { %6360 = vmatprep.subr.bf16.mxu0 %v9544_v28  ;;  %v9586_v28 = vld [vmem:[#allocation6 + $0x378] ss:$48 sps:$4 sm:$0xff]  }
 0x800   : > { %6320 = vmatpush1.bf16.msra.mxu1 %v9545_v0  ;;  %v9587_v0 = vld [vmem:[#allocation6 + $0x914] ss:$48 sps:$4 sm:$0xff]  }
 0x801   : > { %6361 = vmatpush1.bf16.msra.mxu0 %v9546_v23  ;;  %6321 = vmatprep.subr.bf16.mxu1 %v9547_v52  ;;  %v9588_v23 = vld [vmem:[#allocation6 + $0x31c] ss:$48 sps:$4 sm:$0xff]   ;;  %v9589_v52 = vld [vmem:[#allocation6 + $0x910] ss:$48 sps:$4 sm:$0xff]  }
 0x802   : > { %6362 = vmatprep.subr.bf16.mxu0 %v9548_v30  ;;  %v9590_v30 = vld [vmem:[#allocation6 + $0x318] ss:$48 sps:$4 sm:$0xff]  }
 0x804   : > { %6322 = vmatpush1.bf16.msra.mxu1 %v9549_v63  ;;  %v9591_v63 = vld [vmem:[#allocation6 + $0x8bc] ss:$48 sps:$4 sm:$0xff]  }
 0x805   : > { %6363 = vmatpush1.bf16.msra.mxu0 %v9550_v12  ;;  %6323 = vmatprep.subr.bf16.mxu1 %v9551_v20  ;;  %v9592_v12 = vld [vmem:[#allocation6 + $0x2c4] ss:$48 sps:$4 sm:$0xff]  }
 0x806   : > { %6364 = vmatprep.subr.bf16.mxu0 %v9552_v41  ;;  %v9593_v41 = vld [vmem:[#allocation6 + $0x8b8] ss:$48 sps:$4 sm:$0xff]  }
 0x808   : > { %6324 = vmatpush1.bf16.msra.mxu1 %v9553_v7  ;;  %v9594_v7 = vld [vmem:[#allocation6 + $0x2c0] ss:$48 sps:$4 sm:$0xff]  }
 0x809   : > { %6365 = vmatpush1.bf16.msra.mxu0 %v9554_v1  ;;  %6325 = vmatprep.subr.bf16.mxu1 %v9555_v4  ;;  %v9595_v4 = vld [vmem:[#allocation6 + $0x85c] ss:$48 sps:$4 sm:$0xff]  }
 0x80a   : > { %6366 = vmatprep.subr.bf16.mxu0 %v9556_v36  ;;  %v9596_v36 = vld [vmem:[#allocation6 + $0x264] ss:$48 sps:$4 sm:$0xff]  }
 0x80c   : > { %6326 = vmatpush1.bf16.msra.mxu1 %v9557_v16 }
 0x80d   : > { %6367 = vmatpush1.bf16.msra.mxu0 %v9558_v19  ;;  %6327 = vmatprep.subr.bf16.mxu1 %v9559_v60  ;;  %v9597_v19 = vld [vmem:[#allocation6 + $0x858] ss:$48 sps:$4 sm:$0xff]   ;;  %v9598_v60 = vld [vmem:[#allocation6 + $0x260] ss:$48 sps:$4 sm:$0xff]  }
 0x80e   : > { %6368 = vmatprep.subr.bf16.mxu0 %v9560_v47 }
 0x810   : > { %6328 = vmatpush2.bf16.msra.mxu1 %v9561_v27  ;;  %v9599_v27 = vld [vmem:[#allocation6 + $0x7fc] ss:$48 sps:$4 sm:$0xff]  }
 0x811   : > { %6369 = vmatpush2.bf16.msra.mxu0 %v9562_v32  ;;  %6329 = vmatprep.subr.bf16.mxu1 %v9563_v57  ;;  %v9600_v32 = vld [vmem:[#allocation6 + $0x204] ss:$48 sps:$4 sm:$0xff]   ;;  %v9601_v57 = vld [vmem:[#allocation6 + $0x7f8] ss:$48 sps:$4 sm:$0xff]  }
 0x812   : > { %6370 = vmatprep.subr.bf16.mxu0 %v9564_v48  ;;  %v9602_v48 = vld [vmem:[#allocation6 + $0x200] ss:$48 sps:$4 sm:$0xff]  }
 0x814   : > { %6330 = vmatpush2.bf16.msra.mxu1 %v9565_v24  ;;  %v9603_v24 = vld [vmem:[#allocation6 + $0x79c] ss:$48 sps:$4 sm:$0xff]  }
 0x815   : > { %6371 = vmatpush2.bf16.msra.mxu0 %v9566_v38  ;;  %6331 = vmatprep.subr.bf16.mxu1 %v9567_v44  ;;  %v9604_v38 = vld [vmem:[#allocation6 + $0x1a4] ss:$48 sps:$4 sm:$0xff]   ;;  %v9605_v44 = vld [vmem:[#allocation6 + $0x798] ss:$48 sps:$4 sm:$0xff]  }
 0x816   : > { %6372 = vmatprep.subr.bf16.mxu0 %v9568_v50  ;;  %v9606_v50 = vld [vmem:[#allocation6 + $0x1a0] ss:$48 sps:$4 sm:$0xff]  }
 0x818   : > { %6332 = vmatpush2.bf16.msra.mxu1 %v9569_v8  ;;  %v9607_v8 = vld [vmem:[#allocation6 + $0x73c] ss:$48 sps:$4 sm:$0xff]  }
 0x819   : > { %6373 = vmatpush2.bf16.msra.mxu0 %v9570_v17  ;;  %6333 = vmatprep.subr.bf16.mxu1 %v9571_v58  ;;  %v9608_v17 = vld [vmem:[#allocation6 + $0x144] ss:$48 sps:$4 sm:$0xff]   ;;  %v9609_v58 = vld [vmem:[#allocation6 + $0x738] ss:$48 sps:$4 sm:$0xff]  }
 0x81a   : > { %6374 = vmatprep.subr.bf16.mxu0 %v9572_v21  ;;  %v9610_v21 = vld [vmem:[#allocation6 + $0x140] ss:$48 sps:$4 sm:$0xff]  }
 0x81c   : > { %6334 = vmatpush2.bf16.msra.mxu1 %v9573_v9  ;;  %v9611_v9 = vld [vmem:[#allocation6 + $0x6dc] ss:$48 sps:$4 sm:$0xff]  }
 0x81d   : > { %6375 = vmatpush2.bf16.msra.mxu0 %v9574_v56  ;;  %6335 = vmatprep.subr.bf16.mxu1 %v9575_v40  ;;  %v9612_v56 = vld [vmem:[#allocation6 + $0xe4] ss:$48 sps:$4 sm:$0xff]   ;;  %v9613_v40 = vld [vmem:[#allocation6 + $0x6d8] ss:$48 sps:$4 sm:$0xff]  }
 0x81e   : > { %6376 = vmatprep.subr.bf16.mxu0 %v9576_v14  ;;  %v9614_v14 = vld [vmem:[#allocation6 + $0xe0] ss:$48 sps:$4 sm:$0xff]  }
 0x820   : > { %6336 = vmatpush2.bf16.msra.mxu1 %v9577_v25  ;;  %v9615_v25 = vld [vmem:[#allocation6 + $0x67c] ss:$48 sps:$4 sm:$0xff]  }
 0x821   : > { %6377 = vmatpush2.bf16.msra.mxu0 %v9578_v46  ;;  %6337 = vmatprep.subr.bf16.mxu1 %v9579_v15  ;;  %v9616_v46 = vld [vmem:[#allocation6 + $0x84] ss:$48 sps:$4 sm:$0xff]   ;;  %v9617_v15 = vld [vmem:[#allocation6 + $0x678] ss:$48 sps:$4 sm:$0xff]  }
 0x822   : > { %6378 = vmatprep.subr.bf16.mxu0 %v9580_v53  ;;  %v9618_v53 = vld [vmem:[#allocation6 + $0x80] ss:$48 sps:$4 sm:$0xff]  }
 0x824   : > { %6338 = vmatpush2.bf16.msra.mxu1 %v9581_v42  ;;  %v9619_v42 = vld [vmem:[#allocation6 + $0x61c] ss:$48 sps:$4 sm:$0xff]  }
 0x825   : > { %6379 = vmatpush2.bf16.msra.mxu0 %v9582_v6  ;;  %6339 = vmatprep.subr.bf16.mxu1 %v9583_v26  ;;  %v9620_v6 = vld [vmem:[#allocation6 + $0x24] ss:$48 sps:$4 sm:$0xff]   ;;  %v9621_v26 = vld [vmem:[#allocation6 + $0x618] ss:$48 sps:$4 sm:$0xff]  }
 0x826   : > { %6380 = vmatprep.subr.bf16.mxu0 %v9584_v61  ;;  %v9622_v61 = vld [vmem:[#allocation6 + $0x20] ss:$48 sps:$4 sm:$0xff]  }
 0x828   : > { %6340 = vmatpush2.bf16.msra.mxu1 %v9585_v3  ;;  %v9623_v3 = vld [vmem:[#allocation6 + $0xbbc] ss:$48 sps:$4 sm:$0xff]  }
 0x829   : > { %6381 = vmatpush2.bf16.msra.mxu0 %v9586_v28  ;;  %6341 = vmatprep.subr.bf16.mxu1 %v9587_v0  ;;  %v9624_v28 = vld [vmem:[#allocation6 + $0x5c4] ss:$48 sps:$4 sm:$0xff]   ;;  %v9625_v0 = vld [vmem:[#allocation6 + $0xbb8] ss:$48 sps:$4 sm:$0xff]  }
 0x82a   : > { %6382 = vmatprep.subr.bf16.mxu0 %v9588_v23  ;;  %v9626_v23 = vld [vmem:[#allocation6 + $0x5c0] ss:$48 sps:$4 sm:$0xff]  }
 0x82c   : > { %6342 = vmatpush2.bf16.msra.mxu1 %v9589_v52  ;;  %v9627_v52 = vld [vmem:[#allocation6 + $0xb5c] ss:$48 sps:$4 sm:$0xff]  }
 0x82d   : > { %6383 = vmatpush2.bf16.msra.mxu0 %v9590_v30  ;;  %6393 = vmatprep.subr.bf16.mxu1 %v9591_v63  ;;  %v9628_v30 = vld [vmem:[#allocation6 + $0x564] ss:$48 sps:$4 sm:$0xff]   ;;  %v9629_v63 = vld [vmem:[#allocation6 + $0xb58] ss:$48 sps:$4 sm:$0xff]  }
 0x82e   : > { %6434 = vmatprep.subr.bf16.mxu0 %v9592_v12  ;;  %v9630_v12 = vld [vmem:[#allocation6 + $0x560] ss:$48 sps:$4 sm:$0xff]  }
 0x82f   : > { %6344 = vmatmul.mubr.bf16.vlgmr.msra.gmra.mxu1 %v10682_v34  ;;  %v10694_v20 = vpop.f32.mrf.mxu0 }
 0x830   : > { %6385 = vmatmul.mubr.bf16.vlgmr.msra.gmra.mxu0 %v10651_v59  ;;  %6394 = vmatpush1.bf16.msra.mxu1 %v9593_v41  ;;  %v9631_v41 = vld [vmem:[#allocation6 + $0xafc] ss:$48 sps:$4 sm:$0xff]  }
 0x831   : > { %6425 = vmatprep.mubr.bf16.mxu1 %v10678_v37  ;;  %6435 = vmatpush1.bf16.msra.mxu0 %v9594_v7  ;;  %v10698_v1 = vpop.f32.mrf.mxu0  ;;  %v9632_v7 = vld [vmem:[#allocation6 + $0x504] ss:$48 sps:$4 sm:$0xff]  }
 0x832   : > { %6466 = vmatprep.mubr.bf16.mxu0 %v10647_v45  ;;  %6395 = vmatprep.subr.bf16.mxu1 %v9595_v4  ;;  %v9633_v4 = vld [vmem:[#allocation6 + $0xaf8] ss:$48 sps:$4 sm:$0xff]  }
 0x833   : > { %6436 = vmatprep.subr.bf16.mxu0 %v9596_v36  ;;  %v6144_v16 = vpop.f32.mrf.mxu0  ;;  %v9634_v36 = vld [vmem:[#allocation6 + $0x500] ss:$48 sps:$4 sm:$0xff]  }
 0x834   : > { %6396 = vmatpush1.bf16.msra.mxu1 %v9597_v19  ;;  %v9635_v16 = vld [vmem:[#allocation6 + $0xa9c] ss:$48 sps:$4 sm:$0xff]   ;;  %v9636_v19 = vld [vmem:[#allocation6 + $0x4a4] ss:$48 sps:$4 sm:$0xff]  }
 0x835   : > { %6437 = vmatpush1.bf16.msra.mxu0 %v9598_v60  ;;  %v6145_v47 = vpop.f32.mrf.mxu0  ;;  %6397 = vmatprep.subr.bf16.mxu1 %v9599_v27  ;;  %v9637_v60 = vld [vmem:[#allocation6 + $0xa98] ss:$48 sps:$4 sm:$0xff]   ;;  %v9639_v27 = vld [vmem:[#allocation6 + $0xa3c] ss:$48 sps:$4 sm:$0xff]  }
 0x836   : > { %6438 = vmatprep.subr.bf16.mxu0 %v9600_v32  ;;  %v9638_v47 = vld [vmem:[#allocation6 + $0x4a0] ss:$48 sps:$4 sm:$0xff]   ;;  %v9640_v32 = vld [vmem:[#allocation6 + $0x444] ss:$48 sps:$4 sm:$0xff]  }
 0x838   : > { %6398 = vmatpush1.bf16.msra.mxu1 %v9601_v57  ;;  %v9641_v57 = vld [vmem:[#allocation6 + $0xa38] ss:$48 sps:$4 sm:$0xff]  }
 0x839   : > { %6439 = vmatpush1.bf16.msra.mxu0 %v9602_v48  ;;  %6399 = vmatprep.subr.bf16.mxu1 %v9603_v24  ;;  %v9642_v48 = vld [vmem:[#allocation6 + $0x440] ss:$48 sps:$4 sm:$0xff]   ;;  %v9643_v24 = vld [vmem:[#allocation6 + $0x9dc] ss:$48 sps:$4 sm:$0xff]  }
 0x83a   : > { %6440 = vmatprep.subr.bf16.mxu0 %v9604_v38  ;;  %v9644_v38 = vld [vmem:[#allocation6 + $0x3e4] ss:$48 sps:$4 sm:$0xff]  }
 0x83c   : > { %6400 = vmatpush1.bf16.msra.mxu1 %v9605_v44  ;;  %v9645_v44 = vld [vmem:[#allocation6 + $0x9d8] ss:$48 sps:$4 sm:$0xff]  }
 0x83d   : > { %6441 = vmatpush1.bf16.msra.mxu0 %v9606_v50  ;;  %6401 = vmatprep.subr.bf16.mxu1 %v9607_v8  ;;  %v9646_v50 = vld [vmem:[#allocation6 + $0x3e0] ss:$48 sps:$4 sm:$0xff]   ;;  %v9647_v8 = vld [vmem:[#allocation6 + $0x97c] ss:$48 sps:$4 sm:$0xff]  }
 0x83e   : > { %6442 = vmatprep.subr.bf16.mxu0 %v9608_v17  ;;  %v9648_v17 = vld [vmem:[#allocation6 + $0x384] ss:$48 sps:$4 sm:$0xff]  }
 0x840   : > { %6402 = vmatpush1.bf16.msra.mxu1 %v9609_v58  ;;  %v9649_v58 = vld [vmem:[#allocation6 + $0x978] ss:$48 sps:$4 sm:$0xff]  }
 0x841   : > { %6443 = vmatpush1.bf16.msra.mxu0 %v9610_v21  ;;  %6403 = vmatprep.subr.bf16.mxu1 %v9611_v9  ;;  %v9650_v21 = vld [vmem:[#allocation6 + $0x380] ss:$48 sps:$4 sm:$0xff]   ;;  %v9651_v9 = vld [vmem:[#allocation6 + $0x91c] ss:$48 sps:$4 sm:$0xff]  }
 0x842   : > { %6444 = vmatprep.subr.bf16.mxu0 %v9612_v56  ;;  %v9652_v56 = vld [vmem:[#allocation6 + $0x324] ss:$48 sps:$4 sm:$0xff]  }
 0x844   : > { %6404 = vmatpush1.bf16.msra.mxu1 %v9613_v40  ;;  %v9653_v40 = vld [vmem:[#allocation6 + $0x918] ss:$48 sps:$4 sm:$0xff]  }
 0x845   : > { %6445 = vmatpush1.bf16.msra.mxu0 %v9614_v14  ;;  %6405 = vmatprep.subr.bf16.mxu1 %v9615_v25  ;;  %v9654_v14 = vld [vmem:[#allocation6 + $0x320] ss:$48 sps:$4 sm:$0xff]   ;;  %v9655_v25 = vld [vmem:[#allocation6 + $0x8c4] ss:$48 sps:$4 sm:$0xff]  }
 0x846   : > { %6446 = vmatprep.subr.bf16.mxu0 %v9616_v46  ;;  %v6141_v46 = vadd.f32 %v10694_v20, %v10295_v11 }
 0x848   : > { %6406 = vmatpush1.bf16.msra.mxu1 %v9617_v15  ;;  %v9656_v15 = vld [vmem:[#allocation6 + $0x2cc] ss:$48 sps:$4 sm:$0xff]  }
 0x849   : > { %6447 = vmatpush1.bf16.msra.mxu0 %v9618_v53  ;;  %6407 = vmatprep.subr.bf16.mxu1 %v9619_v42 }
 0x84a   : > { %6448 = vmatprep.subr.bf16.mxu0 %v9620_v6  ;;  %v6143_v6 = vadd.f32 %v10698_v1, %v10299_v35  ;;  %v9659_v1 = vld [vmem:[#allocation6 + $0x864] ss:$48 sps:$4 sm:$0xff]  }
 0x84c   : > { %6408 = vmatpush1.bf16.msra.mxu1 %v9621_v26 }
 0x84d   : > { %6449 = vmatpush1.bf16.msra.mxu0 %v9622_v61  ;;  %6409 = vmatprep.subr.bf16.mxu1 %v9623_v3  ;;  %v9657_v61 = vld [vmem:[#allocation6 + $0x8c0] ss:$48 sps:$4 sm:$0xff]   ;;  %v9658_v3 = vld [vmem:[#allocation6 + $0x2c8] ss:$48 sps:$4 sm:$0xff]  }
 0x84e   : > { %6450 = vmatprep.subr.bf16.mxu0 %v9624_v28  ;;  %v10837_v28 = vld [vmem:[#allocation18_spill] sm:$0xff] }
 0x850   : > { %6410 = vmatpush2.bf16.msra.mxu1 %v9625_v0  ;;  %v1623_v0 = vadd.f32 %v10837_v28, %v10131_v2  ;;  %v9693_v28 = vld [vmem:[#allocation6 + $0xb60] ss:$48 sps:$4 sm:$0xff]  }
 0x851   : > { %6451 = vmatpush2.bf16.msra.mxu0 %v9626_v23  ;;  %6411 = vmatprep.subr.bf16.mxu1 %v9627_v52  ;;  %v10838_v23 = vld [vmem:[#allocation16_spill] sm:$0xff] }
 0x852   : > { %6452 = vmatprep.subr.bf16.mxu0 %v9628_v30 }
 0x854   : > { %6412 = vmatpush2.bf16.msra.mxu1 %v9629_v63  ;;  %v9660_v63 = vld [vmem:[#allocation6 + $0x26c] ss:$48 sps:$4 sm:$0xff]  }
 0x855   : > { %6453 = vmatpush2.bf16.msra.mxu0 %v9630_v12  ;;  %6413 = vmatprep.subr.bf16.mxu1 %v9631_v41 }
 0x856   : > { %6454 = vmatprep.subr.bf16.mxu0 %v9632_v7  ;;  %v9661_v7 = vld [vmem:[#allocation6 + $0x860] ss:$48 sps:$4 sm:$0xff]  }
 0x858   : > { %6414 = vmatpush2.bf16.msra.mxu1 %v9633_v4  ;;  %v9662_v4 = vld [vmem:[#allocation6 + $0x268] ss:$48 sps:$4 sm:$0xff]  }
 0x859   : > { %6455 = vmatpush2.bf16.msra.mxu0 %v9634_v36  ;;  %6415 = vmatprep.subr.bf16.mxu1 %v9635_v16  ;;  %v9663_v16 = vld [vmem:[#allocation6 + $0x804] ss:$48 sps:$4 sm:$0xff]  }
 0x85a   : > { %6456 = vmatprep.subr.bf16.mxu0 %v9636_v19  ;;  %v9664_v19 = vld [vmem:[#allocation6 + $0x20c] ss:$48 sps:$4 sm:$0xff]  }
 0x85c   : > { %6416 = vmatpush2.bf16.msra.mxu1 %v9637_v60  ;;  %v9666_v60 = vld [vmem:[#allocation6 + $0x208] ss:$48 sps:$4 sm:$0xff]  }
 0x85d   : > { %6457 = vmatpush2.bf16.msra.mxu0 %v9638_v47  ;;  %6417 = vmatprep.subr.bf16.mxu1 %v9639_v27  ;;  %v9667_v47 = vld [vmem:[#allocation6 + $0x7a4] ss:$48 sps:$4 sm:$0xff]   ;;  %v9668_v27 = vld [vmem:[#allocation6 + $0x1ac] ss:$48 sps:$4 sm:$0xff]  }
 0x85e   : > { %6458 = vmatprep.subr.bf16.mxu0 %v9640_v32  ;;  %v9669_v32 = vld [vmem:[#allocation6 + $0x7a0] ss:$48 sps:$4 sm:$0xff]  }
 0x860   : > { %6418 = vmatpush2.bf16.msra.mxu1 %v9641_v57  ;;  %v9670_v57 = vld [vmem:[#allocation6 + $0x1a8] ss:$48 sps:$4 sm:$0xff]  }
 0x861   : > { %6459 = vmatpush2.bf16.msra.mxu0 %v9642_v48  ;;  %6419 = vmatprep.subr.bf16.mxu1 %v9643_v24  ;;  %v9671_v48 = vld [vmem:[#allocation6 + $0x744] ss:$48 sps:$4 sm:$0xff]   ;;  %v9672_v24 = vld [vmem:[#allocation6 + $0x14c] ss:$48 sps:$4 sm:$0xff]  }
 0x862   : > { %6460 = vmatprep.subr.bf16.mxu0 %v9644_v38  ;;  %v9673_v38 = vld [vmem:[#allocation6 + $0x740] ss:$48 sps:$4 sm:$0xff]  }
 0x864   : > { %6420 = vmatpush2.bf16.msra.mxu1 %v9645_v44  ;;  %v9674_v44 = vld [vmem:[#allocation6 + $0x148] ss:$48 sps:$4 sm:$0xff]  }
 0x865   : > { %6461 = vmatpush2.bf16.msra.mxu0 %v9646_v50  ;;  %6421 = vmatprep.subr.bf16.mxu1 %v9647_v8  ;;  %v9675_v50 = vld [vmem:[#allocation6 + $0x6e4] ss:$48 sps:$4 sm:$0xff]   ;;  %v9676_v8 = vld [vmem:[#allocation6 + $0xec] ss:$48 sps:$4 sm:$0xff]  }
 0x866   : > { %6462 = vmatprep.subr.bf16.mxu0 %v9648_v17  ;;  %v9677_v17 = vld [vmem:[#allocation6 + $0x6e0] ss:$48 sps:$4 sm:$0xff]  }
 0x868   : > { %6422 = vmatpush2.bf16.msra.mxu1 %v9649_v58  ;;  %v9678_v58 = vld [vmem:[#allocation6 + $0xe8] ss:$48 sps:$4 sm:$0xff]  }
 0x869   : > { %6463 = vmatpush2.bf16.msra.mxu0 %v9650_v21  ;;  %6423 = vmatprep.subr.bf16.mxu1 %v9651_v9  ;;  %v9679_v21 = vld [vmem:[#allocation6 + $0x684] ss:$48 sps:$4 sm:$0xff]   ;;  %v9680_v9 = vld [vmem:[#allocation6 + $0x8c] ss:$48 sps:$4 sm:$0xff]  }
 0x86a   : > { %6464 = vmatprep.subr.bf16.mxu0 %v9652_v56  ;;  %v9681_v56 = vld [vmem:[#allocation6 + $0x680] ss:$48 sps:$4 sm:$0xff]  }
 0x86c   : > { %6424 = vmatpush2.bf16.msra.mxu1 %v9653_v40  ;;  %v9682_v40 = vld [vmem:[#allocation6 + $0x88] ss:$48 sps:$4 sm:$0xff]  }
 0x86d   : > { %6465 = vmatpush2.bf16.msra.mxu0 %v9654_v14  ;;  %6475 = vmatprep.subr.bf16.mxu1 %v9655_v25  ;;  %v9683_v14 = vld [vmem:[#allocation6 + $0x624] ss:$48 sps:$4 sm:$0xff]   ;;  %v9684_v25 = vld [vmem:[#allocation6 + $0x2c] ss:$48 sps:$4 sm:$0xff]  }
 0x86e   : > { %6516 = vmatprep.subr.bf16.mxu0 %v9656_v15  ;;  %v9686_v15 = vld [vmem:[#allocation6 + $0x28] ss:$48 sps:$4 sm:$0xff]  }
 0x86f   : > { %v10703_v53 = vpop.f32.mrf.mxu0  ;;  %6426 = vmatmul.mubr.bf16.vlgmr.msra.gmra.mxu1 %v10682_v34  ;;  %v6181_v42 = vpop.f32.mrf.mxu1 }
 0x870   : > { %6467 = vmatmul.mubr.bf16.vlgmr.msra.gmra.mxu0 %v10651_v59  ;;  %v6182_v26 = vadd.f32 %v6181_v42, %v6141_v46  ;;  %6476 = vmatpush1.bf16.msra.mxu1 %v9657_v61  ;;  %v9685_v46 = vld [vmem:[#allocation6 + $0x620] ss:$48 sps:$4 sm:$0xff]   ;;  %v9687_v42 = vld [vmem:[#allocation6 + $0xbc4] ss:$48 sps:$4 sm:$0xff]   ;;  %v9690_v61 = vld [vmem:[#allocation6 + $0x5c8] ss:$48 sps:$4 sm:$0xff]  }
 0x871   : > { %6507 = vmatprep.mubr.bf16.mxu1 %v10678_v37  ;;  %6517 = vmatpush1.bf16.msra.mxu0 %v9658_v3  ;;  %v10710_v11 = vpop.f32.mrf.mxu0  ;;  %v6183_v20 = vpop.f32.mrf.mxu1  ;;  %v9691_v3 = vld [vmem:[#allocation6 + $0xb64] ss:$48 sps:$4 sm:$0xff]  }
 0x872   : > { %v10715_v52 = vadd.f32 %v6182_v26, %v10838_v23  ;;  %6548 = vmatprep.mubr.bf16.mxu0 %v10647_v45  ;;  %v6184_v35 = vadd.f32 %v6183_v20, %v6143_v6  ;;  %6477 = vmatprep.subr.bf16.mxu1 %v9659_v1  ;;  %v9665_v45 = vld [vmem:[#allocation6 + $0x800] ss:$48 sps:$4 sm:$0xff]   ;;  %v9688_v6 = vld [vmem:[#allocation6 + $0x5cc] ss:$48 sps:$4 sm:$0xff]   ;;  %v9695_v23 = vld [vmem:[#allocation6 + $0xb04] ss:$48 sps:$4 sm:$0xff]  }
 0x873   : > { %v6226_v30 = vpop.f32.mrf.mxu0  ;;  %6518 = vmatprep.subr.bf16.mxu0 %v9660_v63  ;;  %v6185_v12 = vpop.f32.mrf.mxu1  ;;  %v9689_v26 = vld [vmem:[#allocation6 + $0xbc0] ss:$48 sps:$4 sm:$0xff]   ;;  %v9692_v20 = vld [vmem:[#allocation6 + $0x56c] ss:$48 sps:$4 sm:$0xff]   ;;  %v9699_v63 = vld [vmem:[#allocation6 + $0xaa4] ss:$48 sps:$4 sm:$0xff]  }
 0x874   : > { %v10718_v41 = vadd.f32 %v6184_v35, %v1623_v0  ;;  %6478 = vmatpush1.bf16.msra.mxu1 %v9661_v7  ;;  %v9694_v0 = vld [vmem:[#allocation6 + $0x568] ss:$48 sps:$4 sm:$0xff]   ;;  %v9696_v35 = vld [vmem:[#allocation6 + $0x50c] ss:$48 sps:$4 sm:$0xff]   ;;  %v9697_v1 = vld [vmem:[#allocation6 + $0xb00] ss:$48 sps:$4 sm:$0xff]  }
 0x875   : > { %6519 = vmatpush1.bf16.msra.mxu0 %v9662_v4  ;;  %v6227_v36 = vpop.f32.mrf.mxu0  ;;  %v6186_v2 = vpop.f32.mrf.mxu1  ;;  %6479 = vmatprep.subr.bf16.mxu1 %v9663_v16  ;;  %v9698_v30 = vld [vmem:[#allocation6 + $0x508] ss:$48 sps:$4 sm:$0xff]   ;;  %v9700_v12 = vld [vmem:[#allocation6 + $0x4ac] ss:$48 sps:$4 sm:$0xff]   ;;  %v9701_v7 = vld [vmem:[#allocation6 + $0xaa0] ss:$48 sps:$4 sm:$0xff]  }
 0x876   : > { %6520 = vmatprep.subr.bf16.mxu0 %v9664_v19  ;;  %v9702_v4 = vld [vmem:[#allocation6 + $0x4a8] ss:$48 sps:$4 sm:$0xff]   ;;  %v9703_v36 = vld [vmem:[#allocation6 + $0xa44] ss:$48 sps:$4 sm:$0xff]   ;;  %v9704_v2 = vld [vmem:[#allocation6 + $0x44c] ss:$48 sps:$4 sm:$0xff]  }
 0x877   : > { %v9705_v16 = vld [vmem:[#allocation6 + $0xa40] ss:$48 sps:$4 sm:$0xff]   ;;  %v9706_v19 = vld [vmem:[#allocation6 + $0x448] ss:$48 sps:$4 sm:$0xff]  }
 0x878   : > { %6480 = vmatpush1.bf16.msra.mxu1 %v9665_v45  ;;  %v9707_v45 = vld [vmem:[#allocation6 + $0x9e4] ss:$48 sps:$4 sm:$0xff]  }
 0x879   : > { %6521 = vmatpush1.bf16.msra.mxu0 %v9666_v60  ;;  %6481 = vmatprep.subr.bf16.mxu1 %v9667_v47  ;;  %v9708_v60 = vld [vmem:[#allocation6 + $0x3ec] ss:$48 sps:$4 sm:$0xff]   ;;  %v9709_v47 = vld [vmem:[#allocation6 + $0x9e0] ss:$48 sps:$4 sm:$0xff]  }
 0x87a   : > { %6522 = vmatprep.subr.bf16.mxu0 %v9668_v27  ;;  %v9710_v27 = vld [vmem:[#allocation6 + $0x3e8] ss:$48 sps:$4 sm:$0xff]  }
 0x87c   : > { %6482 = vmatpush1.bf16.msra.mxu1 %v9669_v32  ;;  %v9711_v32 = vld [vmem:[#allocation6 + $0x984] ss:$48 sps:$4 sm:$0xff]  }
 0x87d   : > { %6523 = vmatpush1.bf16.msra.mxu0 %v9670_v57  ;;  %6483 = vmatprep.subr.bf16.mxu1 %v9671_v48  ;;  %v9712_v57 = vld [vmem:[#allocation6 + $0x38c] ss:$48 sps:$4 sm:$0xff]   ;;  %v9713_v48 = vld [vmem:[#allocation6 + $0x980] ss:$48 sps:$4 sm:$0xff]  }
 0x87e   : > { %6524 = vmatprep.subr.bf16.mxu0 %v9672_v24  ;;  %v9714_v24 = vld [vmem:[#allocation6 + $0x388] ss:$48 sps:$4 sm:$0xff]  }
 0x880   : > { %6484 = vmatpush1.bf16.msra.mxu1 %v9673_v38  ;;  %v9715_v38 = vld [vmem:[#allocation6 + $0x924] ss:$48 sps:$4 sm:$0xff]  }
 0x881   : > { %6525 = vmatpush1.bf16.msra.mxu0 %v9674_v44  ;;  %6485 = vmatprep.subr.bf16.mxu1 %v9675_v50  ;;  %v9716_v44 = vld [vmem:[#allocation6 + $0x32c] ss:$48 sps:$4 sm:$0xff]   ;;  %v9717_v50 = vld [vmem:[#allocation6 + $0x920] ss:$48 sps:$4 sm:$0xff]  }
 0x882   : > { %6526 = vmatprep.subr.bf16.mxu0 %v9676_v8  ;;  %v9718_v8 = vld [vmem:[#allocation6 + $0x328] ss:$48 sps:$4 sm:$0xff]  }
 0x884   : > { %6486 = vmatpush1.bf16.msra.mxu1 %v9677_v17  ;;  %v9719_v17 = vld [vmem:[#allocation6 + $0x8cc] ss:$48 sps:$4 sm:$0xff]  }
 0x885   : > { %6527 = vmatpush1.bf16.msra.mxu0 %v9678_v58  ;;  %6487 = vmatprep.subr.bf16.mxu1 %v9679_v21  ;;  %v6223_v58 = vadd.f32 %v10703_v53, %v10317_v43  ;;  %v10839_v43 = vld [vmem:[#allocation19_spill] sm:$0xff] }
 0x886   : > { %6528 = vmatprep.subr.bf16.mxu0 %v9680_v9  ;;  %v1676_v53 = vadd.f32 %v10839_v43, %v10096_v33  ;;  %v9727_v33 = vld [vmem:[#allocation6 + $0x74c] ss:$48 sps:$4 sm:$0xff]  }
 0x888   : > { %6488 = vmatpush1.bf16.msra.mxu1 %v9681_v56  ;;  %v6225_v56 = vadd.f32 %v10710_v11, %v10321_v55 }
 0x889   : > { %6529 = vmatpush1.bf16.msra.mxu0 %v9682_v40  ;;  %6489 = vmatprep.subr.bf16.mxu1 %v9683_v14  ;;  %v9720_v14 = vld [vmem:[#allocation6 + $0x8c8] ss:$48 sps:$4 sm:$0xff]  }
 0x88a   : > { %6530 = vmatprep.subr.bf16.mxu0 %v9684_v25 }
 0x88c   : > { %6490 = vmatpush1.bf16.msra.mxu1 %v9685_v46 }
 0x88d   : > { %6531 = vmatpush1.bf16.msra.mxu0 %v9686_v15  ;;  %6491 = vmatprep.subr.bf16.mxu1 %v9687_v42  ;;  %v9721_v15 = vld [vmem:[#allocation6 + $0x86c] ss:$48 sps:$4 sm:$0xff]   ;;  %v10840_v42 = vld [vmem:[#allocation17_spill] sm:$0xff] }
 0x88e   : > { %6532 = vmatprep.subr.bf16.mxu0 %v9688_v6 }
 0x890   : > { %6492 = vmatpush2.bf16.msra.mxu1 %v9689_v26 }
 0x891   : > { %6533 = vmatpush2.bf16.msra.mxu0 %v9690_v61  ;;  %6493 = vmatprep.subr.bf16.mxu1 %v9691_v3 }
 0x892   : > { %6534 = vmatprep.subr.bf16.mxu0 %v9692_v20  ;;  %v9723_v20 = vld [vmem:[#allocation6 + $0x80c] ss:$48 sps:$4 sm:$0xff]  }
 0x894   : > { %6494 = vmatpush2.bf16.msra.mxu1 %v9693_v28  ;;  %v9724_v28 = vld [vmem:[#allocation6 + $0x808] ss:$48 sps:$4 sm:$0xff]  }
 0x895   : > { %6535 = vmatpush2.bf16.msra.mxu0 %v9694_v0  ;;  %6495 = vmatprep.subr.bf16.mxu1 %v9695_v23  ;;  %v9725_v0 = vld [vmem:[#allocation6 + $0x7ac] ss:$48 sps:$4 sm:$0xff]   ;;  %v9726_v23 = vld [vmem:[#allocation6 + $0x7a8] ss:$48 sps:$4 sm:$0xff]  }
 0x896   : > { %6536 = vmatprep.subr.bf16.mxu0 %v9696_v35  ;;  %v9728_v35 = vld [vmem:[#allocation6 + $0x748] ss:$48 sps:$4 sm:$0xff]  }
 0x898   : > { %6496 = vmatpush2.bf16.msra.mxu1 %v9697_v1  ;;  %v9729_v1 = vld [vmem:[#allocation6 + $0x6ec] ss:$48 sps:$4 sm:$0xff]  }
 0x899   : > { %6537 = vmatpush2.bf16.msra.mxu0 %v9698_v30  ;;  %6497 = vmatprep.subr.bf16.mxu1 %v9699_v63  ;;  %v9730_v30 = vld [vmem:[#allocation6 + $0x6e8] ss:$48 sps:$4 sm:$0xff]   ;;  %v9731_v63 = vld [vmem:[#allocation6 + $0x68c] ss:$48 sps:$4 sm:$0xff]  }
 0x89a   : > { %6538 = vmatprep.subr.bf16.mxu0 %v9700_v12  ;;  %v9732_v12 = vld [vmem:[#allocation6 + $0x688] ss:$48 sps:$4 sm:$0xff]  }
 0x89c   : > { %6498 = vmatpush2.bf16.msra.mxu1 %v9701_v7  ;;  %v9733_v7 = vld [vmem:[#allocation6 + $0x62c] ss:$48 sps:$4 sm:$0xff]  }
 0x89d   : > { %6539 = vmatpush2.bf16.msra.mxu0 %v9702_v4  ;;  %6499 = vmatprep.subr.bf16.mxu1 %v9703_v36  ;;  %v9734_v4 = vld [vmem:[#allocation6 + $0x628] ss:$48 sps:$4 sm:$0xff]   ;;  %v9735_v36 = vld [vmem:[#allocation6 + $0xbcc] ss:$48 sps:$4 sm:$0xff]  }
 0x89e   : > { %6540 = vmatprep.subr.bf16.mxu0 %v9704_v2  ;;  %v9736_v2 = vld [vmem:[#allocation6 + $0xbc8] ss:$48 sps:$4 sm:$0xff]  }
 0x8a0   : > { %6500 = vmatpush2.bf16.msra.mxu1 %v9705_v16  ;;  %v9737_v16 = vld [vmem:[#allocation6 + $0xb6c] ss:$48 sps:$4 sm:$0xff]  }
 0x8a1   : > { %6541 = vmatpush2.bf16.msra.mxu0 %v9706_v19  ;;  %6501 = vmatprep.subr.bf16.mxu1 %v9707_v45  ;;  %v9738_v19 = vld [vmem:[#allocation6 + $0xb68] ss:$48 sps:$4 sm:$0xff]   ;;  %v9739_v45 = vld [vmem:[#allocation6 + $0xb0c] ss:$48 sps:$4 sm:$0xff]  }
 0x8a2   : > { %6542 = vmatprep.subr.bf16.mxu0 %v9708_v60  ;;  %v9740_v60 = vld [vmem:[#allocation6 + $0xb08] ss:$48 sps:$4 sm:$0xff]  }
 0x8a4   : > { %6502 = vmatpush2.bf16.msra.mxu1 %v9709_v47  ;;  %v9741_v47 = vld [vmem:[#allocation6 + $0xaac] ss:$48 sps:$4 sm:$0xff]  }
 0x8a5   : > { %6543 = vmatpush2.bf16.msra.mxu0 %v9710_v27  ;;  %6503 = vmatprep.subr.bf16.mxu1 %v9711_v32  ;;  %v9742_v27 = vld [vmem:[#allocation6 + $0xaa8] ss:$48 sps:$4 sm:$0xff]   ;;  %v9743_v32 = vld [vmem:[#allocation6 + $0xa4c] ss:$48 sps:$4 sm:$0xff]  }
 0x8a6   : > { %6544 = vmatprep.subr.bf16.mxu0 %v9712_v57  ;;  %v9744_v57 = vld [vmem:[#allocation6 + $0xa48] ss:$48 sps:$4 sm:$0xff]  }
 0x8a8   : > { %6504 = vmatpush2.bf16.msra.mxu1 %v9713_v48  ;;  %v9745_v48 = vld [vmem:[#allocation6 + $0x9ec] ss:$48 sps:$4 sm:$0xff]  }
 0x8a9   : > { %6545 = vmatpush2.bf16.msra.mxu0 %v9714_v24  ;;  %6505 = vmatprep.subr.bf16.mxu1 %v9715_v38  ;;  %v9746_v24 = vld [vmem:[#allocation6 + $0x9e8] ss:$48 sps:$4 sm:$0xff]   ;;  %v9747_v38 = vld [vmem:[#allocation6 + $0x98c] ss:$48 sps:$4 sm:$0xff]  }
 0x8aa   : > { %6546 = vmatprep.subr.bf16.mxu0 %v9716_v44  ;;  %v9748_v44 = vld [vmem:[#allocation6 + $0x988] ss:$48 sps:$4 sm:$0xff]  }
 0x8ac   : > { %6506 = vmatpush2.bf16.msra.mxu1 %v9717_v50  ;;  %v9749_v50 = vld [vmem:[#allocation6 + $0x92c] ss:$48 sps:$4 sm:$0xff]  }
 0x8ad   : > { %6547 = vmatpush2.bf16.msra.mxu0 %v9718_v8  ;;  %6557 = vmatprep.subr.bf16.mxu1 %v9719_v17  ;;  %v9750_v8 = vld [vmem:[#allocation6 + $0x928] ss:$48 sps:$4 sm:$0xff]  }
 0x8af   : > { %v6263_v21 = vpop.f32.mrf.mxu1  ;;  %v10722_v9 = vpop.f32.mrf.mxu0  ;;  %6508 = vmatmul.mubr.bf16.vlgmr.msra.gmra.mxu1 %v10682_v34 }
 0x8b0   : > { %v6264_v40 = vadd.f32 %v6263_v21, %v6223_v58  ;;  %6549 = vmatmul.mubr.bf16.vlgmr.msra.gmra.mxu0 %v10651_v59  ;;  %6558 = vmatpush1.bf16.msra.mxu1 %v9720_v14  ;;  %v9722_v59 = vld [vmem:[#allocation6 + $0x868] ss:$48 sps:$4 sm:$0xff]   ;;  %v6305_v17 = vadd.f32 %v10722_v9, %v10338_v39 }
 0x8b1   : > { %6589 = vmatprep.mubr.bf16.mxu1 %v10678_v37  ;;  %v6265_v25 = vpop.f32.mrf.mxu1  ;;  %v10729_v46 = vpop.f32.mrf.mxu0  ;;  %6559 = vmatprep.subr.bf16.mxu1 %v9721_v15 }
 0x8b2   : > { %v10734_v6 = vadd.f32 %v6264_v40, %v10840_v42  ;;  %v6266_v26 = vadd.f32 %v6265_v25, %v6225_v56  ;;  %v6307_v21 = vadd.f32 %v10729_v46, %v10343_v10  ;;  %v10841_v25 = vld [vmem:[#allocation24_spill] sm:$0xff] }
 0x8b3   : > { %v6267_v55 = vpop.f32.mrf.mxu1  ;;  %v6308_v11 = vpop.f32.mrf.mxu0 }
 0x8b4   : > { %v10736_v61 = vadd.f32 %v6266_v26, %v1676_v53  ;;  %6560 = vmatpush1.bf16.msra.mxu1 %v9722_v59  ;;  %v10842_v26 = vld [vmem:[#allocation26_spill] sm:$0xff] }
 0x8b5   : > { %v6268_v3 = vpop.f32.mrf.mxu1  ;;  %v6309_v37 = vpop.f32.mrf.mxu0  ;;  %6561 = vmatprep.subr.bf16.mxu1 %v9723_v20  ;;  %v10843_v20 = vld [vmem:[#allocation25_spill] sm:$0xff] }
 0x8b8   : > { %6562 = vmatpush1.bf16.msra.mxu1 %v9724_v28 }
 0x8b9   : > { %6563 = vmatprep.subr.bf16.mxu1 %v9725_v0 }
 0x8bc   : > { %6564 = vmatpush1.bf16.msra.mxu1 %v9726_v23 }
 0x8bd   : > { %6565 = vmatprep.subr.bf16.mxu1 %v9727_v33 }
 0x8c0   : > { %6566 = vmatpush1.bf16.msra.mxu1 %v9728_v35  ;;  %v10844_v35 = vld [vmem:[#allocation27_spill] sm:$0xff] }
 0x8c1   : > { %6567 = vmatprep.subr.bf16.mxu1 %v9729_v1 }
 0x8c4   : > { %6568 = vmatpush1.bf16.msra.mxu1 %v9730_v30 }
 0x8c5   : > { %6569 = vmatprep.subr.bf16.mxu1 %v9731_v63 }
 0x8c8   : > { %6570 = vmatpush1.bf16.msra.mxu1 %v9732_v12 }
 0x8c9   : > { %6571 = vmatprep.subr.bf16.mxu1 %v9733_v7  ;;  %v7474_v7 = vmul.f32 -1.442695, %v10718_v41 }
 0x8cc   : > { %6572 = vmatpush1.bf16.msra.mxu1 %v9734_v4 }
 0x8cd   : > { %6573 = vmatprep.subr.bf16.mxu1 %v9735_v36 }
 0x8d0   : > { %6574 = vmatpush2.bf16.msra.mxu1 %v9736_v2 }
 0x8d1   : > { %6575 = vmatprep.subr.bf16.mxu1 %v9737_v16 }
 0x8d4   : > { %6576 = vmatpush2.bf16.msra.mxu1 %v9738_v19 }
 0x8d5   : > { %6577 = vmatprep.subr.bf16.mxu1 %v9739_v45 }
 0x8d8   : > { %6578 = vmatpush2.bf16.msra.mxu1 %v9740_v60 }
 0x8d9   : > { %6579 = vmatprep.subr.bf16.mxu1 %v9741_v47 }
 0x8dc   : > { %6580 = vmatpush2.bf16.msra.mxu1 %v9742_v27 }
 0x8dd   : > { %6581 = vmatprep.subr.bf16.mxu1 %v9743_v32 }
 0x8e0   : > { %6582 = vmatpush2.bf16.msra.mxu1 %v9744_v57 }
 0x8e1   : > { %6583 = vmatprep.subr.bf16.mxu1 %v9745_v48 }
 0x8e4   : > { %6584 = vmatpush2.bf16.msra.mxu1 %v9746_v24 }
 0x8e5   : > { %6585 = vmatprep.subr.bf16.mxu1 %v9747_v38 }
 0x8e8   : > { %6586 = vmatpush2.bf16.msra.mxu1 %v9748_v44 }
 0x8e9   : > { %6587 = vmatprep.subr.bf16.mxu1 %v9749_v50 }
 0x8ec   : > { %6588 = vmatpush2.bf16.msra.mxu1 %v9750_v8 }
 0x8ef   : > { %v6345_v58 = vpop.f32.mrf.mxu1  ;;  %6590 = vmatmul.mubr.bf16.vlgmr.msra.gmra.mxu1 %v10682_v34 }
 0x8f0   : > { %v6346_v56 = vadd.f32 %v6345_v58, %v6305_v17  ;;  %v6386_v40 = vpop.f32.mrf.mxu0 }
 0x8f1   : > { %v6347_v14 = vpop.f32.mrf.mxu1  ;;  %v6387_v39 = vadd.f32 %v6386_v40, %v10360_v62  ;;  %v7473_v62 = vmul.f32 -1.442695, %v10715_v52 }
 0x8f2   : > { %v6639_v15 = vadd.f32 %v6346_v56, %v10841_v25  ;;  %v6348_v43 = vadd.f32 %v6347_v14, %v6307_v21  ;;  %v6388_v53 = vpop.f32.mrf.mxu0  ;;  %v10845_v21 = vld [vmem:[#allocation32_spill] sm:$0xff]  ;;  %v10846_v25 = vld [vmem:[#allocation34_spill] sm:$0xff] }
 0x8f3   : > { %v6349_v42 = vpop.f32.mrf.mxu1  ;;  %v6389_v34 = vadd.f32 %v6388_v53, %v10365_v13  ;;  %8547 = vpow2.f32 %v7473_v62 }
 0x8f4   : > { %v6640_v55 = vadd.f32 %v6348_v43, %v10842_v26  ;;  %v6390_v11 = vpop.f32.mrf.mxu0  ;;  %8549 = vpow2.f32 %v7474_v7  ;;  %v7477_v13 = vmul.f32 -1.442695, %v6639_v15 }
 0x8f5   : > { %v6350_v59 = vpop.f32.mrf.mxu1 }
 0x8f6   : > { %v6391_v3 = vpop.f32.mrf.mxu0  ;;  %v7478_v4 = vmul.f32 -1.442695, %v6640_v55  ;;  %8551 = vpow2.f32 %v7477_v13 }
 0x8f8   : > { %8553 = vpow2.f32 %v7478_v4 }
 0x900   : > { %v8548_v36 = vpop.eup %8547 }
 0x901   : > { %v8550_v2 = vpop.eup %8549  ;;  %v6627_v16 = vadd.f32 1.0, %v8548_v36 }
 0x902   : > { %v6628_v19 = vadd.f32 1.0, %v8550_v2 }
 0x903   : > { %8555 = vrcp.f32 %v6627_v16  ;;  %v8552_v45 = vpop.eup %8551  ;;  %v10847_v16 = vld [vmem:[#allocation33_spill] sm:$0xff] }
 0x904   : > { %8557 = vrcp.f32 %v6628_v19  ;;  %v6655_v47 = vadd.f32 1.0, %v8552_v45 }
 0x905   : > { %v8554_v60 = vpop.eup %8553 }
 0x906   : > { %v6656_v32 = vadd.f32 1.0, %v8554_v60  ;;  %8559 = vrcp.f32 %v6655_v47 }
 0x908   : > { %8561 = vrcp.f32 %v6656_v32 }
 0x910   : > { %v8556_v24 = vpop.eup %8555 }
 0x911   : > { %v8558_v17 = vpop.eup %8557 }
 0x913   : > { %v8560_v43 = vpop.eup %8559 }
 0x914   : > { %v6679_v42 = vsub.f32 1.0, %v8560_v43  ;;  %v6687_v55 = vmul.f32 %v8560_v43, %v10637_v22 }
 0x915   : > { %v8562_v53 = vpop.eup %8561 }
 0x916   : > { %v6680_v59 = vsub.f32 1.0, %v8562_v53 }
 0x92f   : > { %v6427_v9 = vpop.f32.mrf.mxu1 }
 0x930   : > { %v6428_v37 = vadd.f32 %v6427_v9, %v6387_v39  ;;  %v6468_v10 = vpop.f32.mrf.mxu0  ;;  %v6688_v39 = vmul.f32 %v8562_v53, %v10641_v18 }
 0x931   : > { %v6429_v46 = vpop.f32.mrf.mxu1  ;;  %v6469_v27 = vadd.f32 %v6468_v10, %v10383_v29  ;;  %v7475_v10 = vmul.f32 -1.442695, %v10734_v6 }
 0x932   : > { %v10748_v28 = vadd.f32 %v6428_v37, %v10843_v20  ;;  %v6430_v0 = vadd.f32 %v6429_v46, %v6389_v34  ;;  %v6470_v23 = vpop.f32.mrf.mxu0  ;;  %v7476_v46 = vmul.f32 -1.442695, %v10736_v61 }
 0x933   : > { %v6431_v33 = vpop.f32.mrf.mxu1  ;;  %v6471_v41 = vadd.f32 %v6470_v23, %v10387_v49 }
 0x934   : > { %v10751_v1 = vadd.f32 %v6430_v0, %v10844_v35  ;;  %v6472_v30 = vpop.f32.mrf.mxu0  ;;  %v7479_v22 = vmul.f32 -1.442695, %v10748_v28 }
 0x935   : > { %v6432_v63 = vpop.f32.mrf.mxu1 }
 0x936   : > { %v6473_v12 = vpop.f32.mrf.mxu0  ;;  %v7480_v20 = vmul.f32 -1.442695, %v10751_v1 }
 0x96f   : > { %v6509_v52 = vpop.f32.mrf.mxu1 }
 0x970   : > { %v6510_v57 = vadd.f32 %v6509_v52, %v6469_v27  ;;  %v6550_v48 = vpop.f32.mrf.mxu0 }
 0x971   : > { %v6511_v38 = vpop.f32.mrf.mxu1  ;;  %v6551_v6 = vadd.f32 %v6550_v48, %v10410_v54  ;;  %v10848_v54 = vld [vmem:[#allocation35_spill] sm:$0xff] }
 0x972   : > { %v6667_v44 = vmul.f32 %v8556_v24, %v6510_v57  ;;  %v6512_v50 = vadd.f32 %v6511_v38, %v6471_v41  ;;  %v6552_v8 = vpop.f32.mrf.mxu0 }
 0x973   : > { %v6513_v58 = vpop.f32.mrf.mxu1  ;;  %v6553_v62 = vadd.f32 %v6552_v8, %v10414_v31 }
 0x974   : > { %v6671_v56 = vadd.f32 %v6667_v44, %v10845_v21  ;;  %v6668_v40 = vmul.f32 %v8558_v17, %v6512_v50  ;;  %v6554_v14 = vpop.f32.mrf.mxu0 }
 0x975   : > { %v6514_v29 = vpop.f32.mrf.mxu1 }
 0x976   : > { %8563 = vtanh.f32 %v6671_v56  ;;  %v6672_v49 = vadd.f32 %v6668_v40, %v10846_v25  ;;  %v6555_v15 = vpop.f32.mrf.mxu0 }
 0x978   : > { %8565 = vtanh.f32 %v6672_v49 }
 0x979   : > { %8567 = vpow2.f32 %v7475_v10 }
 0x97a   : > { %8569 = vpow2.f32 %v7476_v46 }
 0x97b   : > { %8571 = vpow2.f32 %v7479_v22 }
 0x97c   : > { %8573 = vpow2.f32 %v7480_v20 }
 0x983   : > { %v8564_v26 = vpop.eup %8563 }
 0x984   : > { %v6683_v11 = vmul.f32 %v8564_v26, %v6679_v42 }
 0x985   : > { %v8566_v3 = vpop.eup %8565 }
 0x986   : > { %v6691_v9 = vadd.f32 %v6687_v55, %v6683_v11  ;;  %v6684_v34 = vmul.f32 %v8566_v3, %v6680_v59  ;;  %v8568_v0 = vpop.eup %8567 }
 0x987   : > { %v8570_v18 = vpop.eup %8569  ;;  %v6629_v23 = vadd.f32 1.0, %v8568_v0 }
 0x988   : > { %7481 = vst [vmem:[%s10028_s12 + $0x60] sm:$0xff] %v6691_v9  ;;  %6700 = vst [vmem:[#allocation3 + $0x10] sm:$0xff] %v6691_v9  ;;  %v6692_v37 = vadd.f32 %v6688_v39, %v6684_v34  ;;  %v6630_v33 = vadd.f32 1.0, %v8570_v18  ;;  %v8572_v35 = vpop.eup %8571 }
 0x989   : > { %8575 = vrcp.f32 %v6629_v23  ;;  %v8574_v30 = vpop.eup %8573  ;;  %v6657_v63 = vadd.f32 1.0, %v8572_v35 }
 0x98a   : > { %7482 = vst [vmem:[%s10028_s12 + $0x68] sm:$0xff] %v6692_v37  ;;  %6701 = vst [vmem:[#allocation3] sm:$0xff] %v6692_v37  ;;  %8577 = vrcp.f32 %v6630_v33  ;;  %v6658_v12 = vadd.f32 1.0, %v8574_v30 }
 0x98b   : > { %8579 = vrcp.f32 %v6657_v63 }
 0x98c   : > { %8581 = vrcp.f32 %v6658_v12 }
 0x996   : > { %v8576_v7 = vpop.eup %8575 }
 0x997   : > { %v8578_v36 = vpop.eup %8577 }
 0x998   : > { %v8580_v31 = vpop.eup %8579 }
 0x999   : > { %v8582_v27 = vpop.eup %8581  ;;  %v6681_v52 = vsub.f32 1.0, %v8580_v31  ;;  %v6689_v41 = vmul.f32 %v8580_v31, %v10668_v51 }
 0x99a   : > { %v6682_v48 = vsub.f32 1.0, %v8582_v27  ;;  %v6690_v38 = vmul.f32 %v8582_v27, %v10672_v5 }
 0x9af   : > { %v6591_v61 = vpop.f32.mrf.mxu1 }
 0x9b0   : > { %v6592_v28 = vadd.f32 %v6591_v61, %v6551_v6 }
 0x9b1   : > { %v6593_v1 = vpop.f32.mrf.mxu1 }
 0x9b2   : > { %v6669_v13 = vmul.f32 %v8576_v7, %v6592_v28  ;;  %v6594_v4 = vadd.f32 %v6593_v1, %v6553_v62 }
 0x9b3   : > { %v6595_v2 = vpop.f32.mrf.mxu1 }
 0x9b4   : > { %v6673_v19 = vadd.f32 %v6669_v13, %v10847_v16  ;;  %v6670_v45 = vmul.f32 %v8578_v36, %v6594_v4 }
 0x9b5   : > { %v6596_v60 = vpop.f32.mrf.mxu1 }
 0x9b6   : > { %8583 = vtanh.f32 %v6673_v19  ;;  %v6674_v47 = vadd.f32 %v6670_v45, %v10848_v54 }
 0x9b8   : > { %8585 = vtanh.f32 %v6674_v47 }
 0x9c3   : > { %v8584_v32 = vpop.eup %8583 }
 0x9c4   : > { %v6685_v57 = vmul.f32 %v8584_v32, %v6681_v52 }
 0x9c5   : > { %v8586_v24 = vpop.eup %8585 }
 0x9c6   : > { %v6693_v44 = vadd.f32 %v6689_v41, %v6685_v57  ;;  %v6686_v50 = vmul.f32 %v8586_v24, %v6682_v48 }
 0x9c8   : > { %7483 = vst [vmem:[%s10028_s12 + $0x70] sm:$0xff] %v6693_v44  ;;  %6702 = vst [vmem:[#allocation3 + $0x18] sm:$0xff] %v6693_v44  ;;  %v6694_v8 = vadd.f32 %v6690_v38, %v6686_v50 }
 0x9ca   : > { %7484 = vst [vmem:[%s10028_s12 + $0x78] sm:$0xff] %v6694_v8  ;;  %6703 = vst [vmem:[#allocation3 + $0x8] sm:$0xff] %v6694_v8 }
 0x9cb PF: > { %s18_s20 = sadd.s32 1, %s9889_s20   ;;  %s10849_s18 = smov %s9885_s19 }
 0x9cc   : > { %p15_p5 = scmp.ge.s32.totalorder %s18_s20, 4   ;;  %s10850_s19 = smov %s10852_s27 }
 0x9ce   :  { %17 = sbr.rel (!%p15_p5) target bundleno = 4 (0x4), region = 97 }
 0x9d3   :  { %6736 = vsyncpa [#allocation5], 1 }
 0x9d4   :  { %6738 = vsyncpa [#allocation5 + $0x1], 1 }
 0x9d5   :  { %6739 = vsyncpa [#allocation7], 1 }
 0x9d6   :  { %6740 = vsyncpa [#allocation10], 1 }

</bundles_post_ra>
